<compile_context>
chip_gen: v6e
topology: v6e:2x2x1
jax: 0.10.0
libtpu: 0.0.40
codegen_flags: <defaults>
</compile_context>

<pallas_src>
import functools

import jax
import jax.numpy as jnp
from jax.experimental import pallas as pl
from jax.experimental.pallas import tpu as pltpu


def _esr_max_kernel(x_ref, w_ref, o_ref, *, TH, W, K, C, s, Nb):
    """One grid step: (Nb, ss, TH, W) channel-max conv maps for one row strip.

    x_ref: (Nb, Hp, Wp)     VMEM  padded single-channel images (full height)
    w_ref: (ss*C*K*K,)      SMEM  flattened conv weight, layout [out_ch, kh, kw]
    o_ref: (Nb, ss, TH, W)  VMEM  per-subpixel-slot channel max for this strip
    """
    ss = s * s
    kk = K * K
    ht = pl.program_id(1)
    row0 = ht * TH
    if TH % 8 == 0:
        row0 = pl.multiple_of(row0, 8)

    for b in range(Nb):
        # Row strip including the K-1 halo rows (input is pre-padded in H and W).
        xs = x_ref[b, pl.ds(row0, TH + K - 1), :]                 # (TH+K-1, Wp)
        # Hoist the K*K shifted windows: sliced once here, reused for every one
        # of the ss*C output channels below.
        windows = [xs[kh:kh + TH, kw:kw + W]
                   for kh in range(K) for kw in range(K)]         # each (TH, W)
        for idx in range(ss):            # sub-pixel slot i*s + j of the shuffle
            m = None
            for c in range(C):           # channels the max reduces over
                base = (c * ss + idx) * kk
                # Seed the accumulator with the first tap (no zeros + add).
                acc = w_ref[base] * windows[0]
                for t in range(1, kk):
                    acc = acc + w_ref[base + t] * windows[t]
                m = acc if m is None else jnp.maximum(m, acc)
            # For W a multiple of 128 (typical SR widths) this store is already
            # lane-dense / unmasked.  For tiny W the store traffic is negligible
            # next to the ss*C*K*K MACs per pixel.
            o_ref[b, idx] = m.astype(o_ref.dtype)


def _tpu_vmem_capacity_bytes():
    try:
        return int(pltpu.get_tpu_info().vmem_capacity_bytes)
    except Exception:
        return None


def _working_set_bytes(Nb, TH, *, Hp, Wp, W, K, ss, itemsize):
    """Approximate per-grid-step VMEM footprint."""
    inp = 2 * Nb * Hp * Wp * itemsize                    # double-buffered input block
    out = 2 * Nb * ss * TH * W * itemsize                # double-buffered output block
    tmp = ((K * K + 2) * TH * W + (TH + K - 1) * Wp) * itemsize  # windows + acc + max + strip
    return inp + out + tmp


def _pick_tiles(N, H, W, *, Hp, Wp, K, ss, itemsize, budget):
    """Choose (batch items per grid step, rows per strip) within the VMEM budget."""
    def fits(nb, th):
        return _working_set_bytes(nb, th, Hp=Hp, Wp=Wp, W=W, K=K,
                                  ss=ss, itemsize=itemsize) <= budget

    if fits(1, H):
        # Small images: whole image per step; batch several items per step to
        # amortize the per-grid-step overhead.
        nb = 1
        for cand in range(min(8, N), 1, -1):
            if N % cand == 0 and fits(cand, H):
                nb = cand
                break
        return nb, H

    # Large images: one image per step, tile H into strips.  TH must be a
    # multiple of 8 that divides H so the output BlockSpec stays (8,128)-legal.
    best = None
    for cand in range(8, H, 8):
        if H % cand == 0 and fits(1, cand):
            best = cand
    if best is not None:
        return 1, best
    return 1, H   # fallback: rely on the raised scoped-VMEM limit


def edge_sr_max(x, weight, *, C, K, s):
    """x: (N, 1, H, W) f32, weight: (s*s*C, 1, K, K) f32 -> (N, 1, H*s, W*s) f32."""
    N, cin, H, W = x.shape
    assert cin == 1
    # Even K would make the halo slices read out of bounds (no VMEM bounds
    # checks on TPU); the PyTorch module's pad=(K-1)//2 also assumes odd K.
    assert K % 2 == 1, "edgeSR_MAX requires an odd kernel size K"
    ss = s * s
    assert weight.shape == (ss * C, 1, K, K)
    pad = (K - 1) // 2
    Hp, Wp = H + 2 * pad, W + 2 * pad

    # Note: the explicit pad costs one extra HBM pass over the (input-sized)
    # tensor; the input is 1/(s*s) the size of the output so this is minor.
    x_pad = jnp.pad(x[:, 0], ((0, 0), (pad, pad), (pad, pad)))       # (N, Hp, Wp)
    w_flat = weight.reshape(-1).astype(jnp.float32)                  # (ss*C*K*K,)

    itemsize = x.dtype.itemsize
    cap = _tpu_vmem_capacity_bytes()
    # Budget ~3/4 of physical VMEM when known; stay under the default scoped
    # limit (32 MiB) when the hardware can't be queried.
    budget = (24 << 20) if cap is None else (cap * 3) // 4

    Nb, TH = _pick_tiles(N, H, W, Hp=Hp, Wp=Wp, K=K, ss=ss,
                         itemsize=itemsize, budget=budget)
    ws = _working_set_bytes(Nb, TH, Hp=Hp, Wp=Wp, W=W, K=K,
                            ss=ss, itemsize=itemsize)
    vmem_limit = None if cap is None else int(min(cap, max(ws + (8 << 20), 32 << 20)))

    grid = (N // Nb, H // TH)
    kernel = functools.partial(_esr_max_kernel, TH=TH, W=W, K=K, C=C, s=s, Nb=Nb)

    # Advisory cost hint for XLA's scheduler.
    flops = 2 * N * H * W * ss * C * K * K + N * H * W * ss * (C - 1)
    bytes_accessed = (int(x_pad.size) + N * ss * H * W) * itemsize + int(w_flat.size) * 4

    conv_max = pl.pallas_call(
        kernel,
        out_shape=jax.ShapeDtypeStruct((N, ss, H, W), x.dtype),
        grid=grid,
        in_specs=[
            # Full padded image(s) for this batch block; row strips are taken
            # inside the kernel with a dynamic halo slice, so the same input
            # block is reused (not re-DMA'd) across all H strips.
            pl.BlockSpec((Nb, Hp, Wp), lambda nb, ht: (nb, 0, 0)),
            pl.BlockSpec(memory_space=pltpu.MemorySpace.SMEM),   # tiny weight vector
        ],
        out_specs=pl.BlockSpec((Nb, ss, TH, W), lambda nb, ht: (nb, 0, ht, 0)),
        compiler_params=pltpu.CompilerParams(
            dimension_semantics=("parallel", "parallel"),
            vmem_limit_bytes=vmem_limit,
        ),
        cost_estimate=pl.CostEstimate(
            flops=flops, transcendentals=0, bytes_accessed=bytes_accessed),
    )(x_pad, w_flat)

    # Pixel shuffle (channel max already fused in-kernel):
    #   out[n, 0, h*s + i, w*s + j] = conv_max[n, i*s + j, h, w]
    # XLA fuses this reshape/transpose/reshape into a single pass.
    y = conv_max.reshape(N, s, s, H, W)
    y = jnp.transpose(y, (0, 3, 1, 4, 2))        # (N, H, s, W, s)
    return y.reshape(N, 1, H * s, W * s)


def _reference(x, weight, *, C, K, s):
    """Pure-JAX reference matching the PyTorch forward exactly."""
    pad = (K - 1) // 2
    y = jax.lax.conv_general_dilated(
        x, weight, window_strides=(1, 1), padding=((pad, pad), (pad, pad)),
        dimension_numbers=("NCHW", "OIHW", "NCHW"))
    N, _, H, W = x.shape
    y = y.reshape(N, C, s, s, H, W)
    y = jnp.transpose(y, (0, 1, 4, 2, 5, 3)).reshape(N, C, H * s, W * s)  # PixelShuffle(s)
    return jnp.max(y, axis=1, keepdims=True)


if __name__ == "__main__":
    # eSR-MAX_s2_K3_C4  -> channels C=4, kernel K=3, upscale s=2
    C, K, s = 4, 3, 2
    N, H, W = 2, 16, 16

    key = jax.random.PRNGKey(0)
    kx, kw = jax.random.split(key)

    # Deterministic xavier_normal_(gain=1.0)-style init, then center tap = 1.0
    # (mirrors the module's __init__).
    fan_in = 1 * K * K
    fan_out = (s * s * C) * K * K
    std = (2.0 / (fan_in + fan_out)) ** 0.5
    weight = std * jax.random.normal(kw, (s * s * C, 1, K, K), dtype=jnp.float32)
    weight = weight.at[:, 0, K // 2, K // 2].set(1.0)

    x = jax.random.normal(kx, (N, 1, H, W), dtype=jnp.float32)

    out = edge_sr_max(x, weight, C=C, K=K, s=s)
    out = jax.block_until_ready(out)

    ref = jax.block_until_ready(_reference(x, weight, C=C, K=K, s=s))
    assert out.shape == (N, 1, H * s, W * s)
    assert jnp.allclose(out, ref, atol=1e-5, rtol=1e-5)

    print("KERNEL_OK")
</pallas_src>

<mosaic_0001>
module attributes {stable_mosaic.version = 11 : i64} {
  func.func @_esr_max_kernel(%arg0: i32, %arg1: i32, %arg2: memref<2x18x18xf32, #tpu.memory_space<vmem>>, %arg3: memref<144xf32, #tpu.memory_space<smem>>, %arg4: memref<2x4x16x16xf32, #tpu.memory_space<vmem>>) attributes {dimension_semantics = [#tpu.dimension_semantics<parallel>, #tpu.dimension_semantics<parallel>], iteration_bounds = array<i64: 1, 1>, scalar_prefetch = 0 : i64, scratch_operands = 0 : i64, tpu.core_type = #tpu.core_type<tc>, window_params = [{transform_indices = @transform_0, window_bounds = array<i64: 2, 18, 18>}, {transform_indices = @transform_1, window_bounds = array<i64: 144>}, {transform_indices = @transform_2, window_bounds = array<i64: 2, 4, 16, 16>}]} {
    %c16_i32 = arith.constant 16 : i32
    %0 = arith.muli %arg1, %c16_i32 : i32
    %1 = tpu.assume_multiple %0, 8 : i32
    %c0 = arith.constant 0 : index
    %2 = arith.index_cast %1 : i32 to index
    %c0_0 = arith.constant 0 : index
    %3 = vector.load %arg2[%c0, %2, %c0_0] : memref<2x18x18xf32, #tpu.memory_space<vmem>>, vector<1x18x18xf32>
    %4 = vector.shape_cast %3 : vector<1x18x18xf32> to vector<18x18xf32>
    %5 = vector.extract_strided_slice %4 {offsets = [0, 0], sizes = [16, 16], strides = [1, 1]} : vector<18x18xf32> to vector<16x16xf32>
    %6 = vector.extract_strided_slice %4 {offsets = [0, 1], sizes = [16, 16], strides = [1, 1]} : vector<18x18xf32> to vector<16x16xf32>
    %7 = vector.extract_strided_slice %4 {offsets = [0, 2], sizes = [16, 16], strides = [1, 1]} : vector<18x18xf32> to vector<16x16xf32>
    %8 = vector.extract_strided_slice %4 {offsets = [1, 0], sizes = [16, 16], strides = [1, 1]} : vector<18x18xf32> to vector<16x16xf32>
    %9 = vector.extract_strided_slice %4 {offsets = [1, 1], sizes = [16, 16], strides = [1, 1]} : vector<18x18xf32> to vector<16x16xf32>
    %10 = vector.extract_strided_slice %4 {offsets = [1, 2], sizes = [16, 16], strides = [1, 1]} : vector<18x18xf32> to vector<16x16xf32>
    %11 = vector.extract_strided_slice %4 {offsets = [2, 0], sizes = [16, 16], strides = [1, 1]} : vector<18x18xf32> to vector<16x16xf32>
    %12 = vector.extract_strided_slice %4 {offsets = [2, 1], sizes = [16, 16], strides = [1, 1]} : vector<18x18xf32> to vector<16x16xf32>
    %13 = vector.extract_strided_slice %4 {offsets = [2, 2], sizes = [16, 16], strides = [1, 1]} : vector<18x18xf32> to vector<16x16xf32>
    %c0_1 = arith.constant 0 : index
    %14 = memref.load %arg3[%c0_1] : memref<144xf32, #tpu.memory_space<smem>>
    %15 = vector.broadcast %14 : f32 to vector<16x16xf32>
    %16 = arith.mulf %15, %5 : vector<16x16xf32>
    %c1 = arith.constant 1 : index
    %17 = memref.load %arg3[%c1] : memref<144xf32, #tpu.memory_space<smem>>
    %18 = vector.broadcast %17 : f32 to vector<16x16xf32>
    %19 = arith.mulf %18, %6 : vector<16x16xf32>
    %20 = arith.addf %16, %19 : vector<16x16xf32>
    %c2 = arith.constant 2 : index
    %21 = memref.load %arg3[%c2] : memref<144xf32, #tpu.memory_space<smem>>
    %22 = vector.broadcast %21 : f32 to vector<16x16xf32>
    %23 = arith.mulf %22, %7 : vector<16x16xf32>
    %24 = arith.addf %20, %23 : vector<16x16xf32>
    %c3 = arith.constant 3 : index
    %25 = memref.load %arg3[%c3] : memref<144xf32, #tpu.memory_space<smem>>
    %26 = vector.broadcast %25 : f32 to vector<16x16xf32>
    %27 = arith.mulf %26, %8 : vector<16x16xf32>
    %28 = arith.addf %24, %27 : vector<16x16xf32>
    %c4 = arith.constant 4 : index
    %29 = memref.load %arg3[%c4] : memref<144xf32, #tpu.memory_space<smem>>
    %30 = vector.broadcast %29 : f32 to vector<16x16xf32>
    %31 = arith.mulf %30, %9 : vector<16x16xf32>
    %32 = arith.addf %28, %31 : vector<16x16xf32>
    %c5 = arith.constant 5 : index
    %33 = memref.load %arg3[%c5] : memref<144xf32, #tpu.memory_space<smem>>
    %34 = vector.broadcast %33 : f32 to vector<16x16xf32>
    %35 = arith.mulf %34, %10 : vector<16x16xf32>
    %36 = arith.addf %32, %35 : vector<16x16xf32>
    %c6 = arith.constant 6 : index
    %37 = memref.load %arg3[%c6] : memref<144xf32, #tpu.memory_space<smem>>
    %38 = vector.broadcast %37 : f32 to vector<16x16xf32>
    %39 = arith.mulf %38, %11 : vector<16x16xf32>
    %40 = arith.addf %36, %39 : vector<16x16xf32>
    %c7 = arith.constant 7 : index
    %41 = memref.load %arg3[%c7] : memref<144xf32, #tpu.memory_space<smem>>
    %42 = vector.broadcast %41 : f32 to vector<16x16xf32>
    %43 = arith.mulf %42, %12 : vector<16x16xf32>
    %44 = arith.addf %40, %43 : vector<16x16xf32>
    %c8 = arith.constant 8 : index
    %45 = memref.load %arg3[%c8] : memref<144xf32, #tpu.memory_space<smem>>
    %46 = vector.broadcast %45 : f32 to vector<16x16xf32>
    %47 = arith.mulf %46, %13 : vector<16x16xf32>
    %48 = arith.addf %44, %47 : vector<16x16xf32>
    %c36 = arith.constant 36 : index
    %49 = memref.load %arg3[%c36] : memref<144xf32, #tpu.memory_space<smem>>
    %50 = vector.broadcast %49 : f32 to vector<16x16xf32>
    %51 = arith.mulf %50, %5 : vector<16x16xf32>
    %c37 = arith.constant 37 : index
    %52 = memref.load %arg3[%c37] : memref<144xf32, #tpu.memory_space<smem>>
    %53 = vector.broadcast %52 : f32 to vector<16x16xf32>
    %54 = arith.mulf %53, %6 : vector<16x16xf32>
    %55 = arith.addf %51, %54 : vector<16x16xf32>
    %c38 = arith.constant 38 : index
    %56 = memref.load %arg3[%c38] : memref<144xf32, #tpu.memory_space<smem>>
    %57 = vector.broadcast %56 : f32 to vector<16x16xf32>
    %58 = arith.mulf %57, %7 : vector<16x16xf32>
    %59 = arith.addf %55, %58 : vector<16x16xf32>
    %c39 = arith.constant 39 : index
    %60 = memref.load %arg3[%c39] : memref<144xf32, #tpu.memory_space<smem>>
    %61 = vector.broadcast %60 : f32 to vector<16x16xf32>
    %62 = arith.mulf %61, %8 : vector<16x16xf32>
    %63 = arith.addf %59, %62 : vector<16x16xf32>
    %c40 = arith.constant 40 : index
    %64 = memref.load %arg3[%c40] : memref<144xf32, #tpu.memory_space<smem>>
    %65 = vector.broadcast %64 : f32 to vector<16x16xf32>
    %66 = arith.mulf %65, %9 : vector<16x16xf32>
    %67 = arith.addf %63, %66 : vector<16x16xf32>
    %c41 = arith.constant 41 : index
    %68 = memref.load %arg3[%c41] : memref<144xf32, #tpu.memory_space<smem>>
    %69 = vector.broadcast %68 : f32 to vector<16x16xf32>
    %70 = arith.mulf %69, %10 : vector<16x16xf32>
    %71 = arith.addf %67, %70 : vector<16x16xf32>
    %c42 = arith.constant 42 : index
    %72 = memref.load %arg3[%c42] : memref<144xf32, #tpu.memory_space<smem>>
    %73 = vector.broadcast %72 : f32 to vector<16x16xf32>
    %74 = arith.mulf %73, %11 : vector<16x16xf32>
    %75 = arith.addf %71, %74 : vector<16x16xf32>
    %c43 = arith.constant 43 : index
    %76 = memref.load %arg3[%c43] : memref<144xf32, #tpu.memory_space<smem>>
    %77 = vector.broadcast %76 : f32 to vector<16x16xf32>
    %78 = arith.mulf %77, %12 : vector<16x16xf32>
    %79 = arith.addf %75, %78 : vector<16x16xf32>
    %c44 = arith.constant 44 : index
    %80 = memref.load %arg3[%c44] : memref<144xf32, #tpu.memory_space<smem>>
    %81 = vector.broadcast %80 : f32 to vector<16x16xf32>
    %82 = arith.mulf %81, %13 : vector<16x16xf32>
    %83 = arith.addf %79, %82 : vector<16x16xf32>
    %84 = arith.maximumf %48, %83 : vector<16x16xf32>
    %c72 = arith.constant 72 : index
    %85 = memref.load %arg3[%c72] : memref<144xf32, #tpu.memory_space<smem>>
    %86 = vector.broadcast %85 : f32 to vector<16x16xf32>
    %87 = arith.mulf %86, %5 : vector<16x16xf32>
    %c73 = arith.constant 73 : index
    %88 = memref.load %arg3[%c73] : memref<144xf32, #tpu.memory_space<smem>>
    %89 = vector.broadcast %88 : f32 to vector<16x16xf32>
    %90 = arith.mulf %89, %6 : vector<16x16xf32>
    %91 = arith.addf %87, %90 : vector<16x16xf32>
    %c74 = arith.constant 74 : index
    %92 = memref.load %arg3[%c74] : memref<144xf32, #tpu.memory_space<smem>>
    %93 = vector.broadcast %92 : f32 to vector<16x16xf32>
    %94 = arith.mulf %93, %7 : vector<16x16xf32>
    %95 = arith.addf %91, %94 : vector<16x16xf32>
    %c75 = arith.constant 75 : index
    %96 = memref.load %arg3[%c75] : memref<144xf32, #tpu.memory_space<smem>>
    %97 = vector.broadcast %96 : f32 to vector<16x16xf32>
    %98 = arith.mulf %97, %8 : vector<16x16xf32>
    %99 = arith.addf %95, %98 : vector<16x16xf32>
    %c76 = arith.constant 76 : index
    %100 = memref.load %arg3[%c76] : memref<144xf32, #tpu.memory_space<smem>>
    %101 = vector.broadcast %100 : f32 to vector<16x16xf32>
    %102 = arith.mulf %101, %9 : vector<16x16xf32>
    %103 = arith.addf %99, %102 : vector<16x16xf32>
    %c77 = arith.constant 77 : index
    %104 = memref.load %arg3[%c77] : memref<144xf32, #tpu.memory_space<smem>>
    %105 = vector.broadcast %104 : f32 to vector<16x16xf32>
    %106 = arith.mulf %105, %10 : vector<16x16xf32>
    %107 = arith.addf %103, %106 : vector<16x16xf32>
    %c78 = arith.constant 78 : index
    %108 = memref.load %arg3[%c78] : memref<144xf32, #tpu.memory_space<smem>>
    %109 = vector.broadcast %108 : f32 to vector<16x16xf32>
    %110 = arith.mulf %109, %11 : vector<16x16xf32>
    %111 = arith.addf %107, %110 : vector<16x16xf32>
    %c79 = arith.constant 79 : index
    %112 = memref.load %arg3[%c79] : memref<144xf32, #tpu.memory_space<smem>>
    %113 = vector.broadcast %112 : f32 to vector<16x16xf32>
    %114 = arith.mulf %113, %12 : vector<16x16xf32>
    %115 = arith.addf %111, %114 : vector<16x16xf32>
    %c80 = arith.constant 80 : index
    %116 = memref.load %arg3[%c80] : memref<144xf32, #tpu.memory_space<smem>>
    %117 = vector.broadcast %116 : f32 to vector<16x16xf32>
    %118 = arith.mulf %117, %13 : vector<16x16xf32>
    %119 = arith.addf %115, %118 : vector<16x16xf32>
    %120 = arith.maximumf %84, %119 : vector<16x16xf32>
    %c108 = arith.constant 108 : index
    %121 = memref.load %arg3[%c108] : memref<144xf32, #tpu.memory_space<smem>>
    %122 = vector.broadcast %121 : f32 to vector<16x16xf32>
    %123 = arith.mulf %122, %5 : vector<16x16xf32>
    %c109 = arith.constant 109 : index
    %124 = memref.load %arg3[%c109] : memref<144xf32, #tpu.memory_space<smem>>
    %125 = vector.broadcast %124 : f32 to vector<16x16xf32>
    %126 = arith.mulf %125, %6 : vector<16x16xf32>
    %127 = arith.addf %123, %126 : vector<16x16xf32>
    %c110 = arith.constant 110 : index
    %128 = memref.load %arg3[%c110] : memref<144xf32, #tpu.memory_space<smem>>
    %129 = vector.broadcast %128 : f32 to vector<16x16xf32>
    %130 = arith.mulf %129, %7 : vector<16x16xf32>
    %131 = arith.addf %127, %130 : vector<16x16xf32>
    %c111 = arith.constant 111 : index
    %132 = memref.load %arg3[%c111] : memref<144xf32, #tpu.memory_space<smem>>
    %133 = vector.broadcast %132 : f32 to vector<16x16xf32>
    %134 = arith.mulf %133, %8 : vector<16x16xf32>
    %135 = arith.addf %131, %134 : vector<16x16xf32>
    %c112 = arith.constant 112 : index
    %136 = memref.load %arg3[%c112] : memref<144xf32, #tpu.memory_space<smem>>
    %137 = vector.broadcast %136 : f32 to vector<16x16xf32>
    %138 = arith.mulf %137, %9 : vector<16x16xf32>
    %139 = arith.addf %135, %138 : vector<16x16xf32>
    %c113 = arith.constant 113 : index
    %140 = memref.load %arg3[%c113] : memref<144xf32, #tpu.memory_space<smem>>
    %141 = vector.broadcast %140 : f32 to vector<16x16xf32>
    %142 = arith.mulf %141, %10 : vector<16x16xf32>
    %143 = arith.addf %139, %142 : vector<16x16xf32>
    %c114 = arith.constant 114 : index
    %144 = memref.load %arg3[%c114] : memref<144xf32, #tpu.memory_space<smem>>
    %145 = vector.broadcast %144 : f32 to vector<16x16xf32>
    %146 = arith.mulf %145, %11 : vector<16x16xf32>
    %147 = arith.addf %143, %146 : vector<16x16xf32>
    %c115 = arith.constant 115 : index
    %148 = memref.load %arg3[%c115] : memref<144xf32, #tpu.memory_space<smem>>
    %149 = vector.broadcast %148 : f32 to vector<16x16xf32>
    %150 = arith.mulf %149, %12 : vector<16x16xf32>
    %151 = arith.addf %147, %150 : vector<16x16xf32>
    %c116 = arith.constant 116 : index
    %152 = memref.load %arg3[%c116] : memref<144xf32, #tpu.memory_space<smem>>
    %153 = vector.broadcast %152 : f32 to vector<16x16xf32>
    %154 = arith.mulf %153, %13 : vector<16x16xf32>
    %155 = arith.addf %151, %154 : vector<16x16xf32>
    %156 = arith.maximumf %120, %155 : vector<16x16xf32>
    %c0_2 = arith.constant 0 : index
    %c0_3 = arith.constant 0 : index
    %c0_4 = arith.constant 0 : index
    %c0_5 = arith.constant 0 : index
    %157 = vector.load %arg4[%c0_2, %c0_3, %c0_4, %c0_5] : memref<2x4x16x16xf32, #tpu.memory_space<vmem>>, vector<1x1x16x16xf32>
    %158 = vector.shape_cast %157 : vector<1x1x16x16xf32> to vector<16x16xf32>
    %159 = vector.shape_cast %156 : vector<16x16xf32> to vector<1x1x16x16xf32>
    tpu.vector_store %arg4[%c0_2, %c0_3, %c0_4, %c0_5], %159 {strides = array<i32>} : memref<2x4x16x16xf32, #tpu.memory_space<vmem>>, vector<1x1x16x16xf32>,
    %c9 = arith.constant 9 : index
    %160 = memref.load %arg3[%c9] : memref<144xf32, #tpu.memory_space<smem>>
    %161 = vector.broadcast %160 : f32 to vector<16x16xf32>
    %162 = arith.mulf %161, %5 : vector<16x16xf32>
    %c10 = arith.constant 10 : index
    %163 = memref.load %arg3[%c10] : memref<144xf32, #tpu.memory_space<smem>>
    %164 = vector.broadcast %163 : f32 to vector<16x16xf32>
    %165 = arith.mulf %164, %6 : vector<16x16xf32>
    %166 = arith.addf %162, %165 : vector<16x16xf32>
    %c11 = arith.constant 11 : index
    %167 = memref.load %arg3[%c11] : memref<144xf32, #tpu.memory_space<smem>>
    %168 = vector.broadcast %167 : f32 to vector<16x16xf32>
    %169 = arith.mulf %168, %7 : vector<16x16xf32>
    %170 = arith.addf %166, %169 : vector<16x16xf32>
    %c12 = arith.constant 12 : index
    %171 = memref.load %arg3[%c12] : memref<144xf32, #tpu.memory_space<smem>>
    %172 = vector.broadcast %171 : f32 to vector<16x16xf32>
    %173 = arith.mulf %172, %8 : vector<16x16xf32>
    %174 = arith.addf %170, %173 : vector<16x16xf32>
    %c13 = arith.constant 13 : index
    %175 = memref.load %arg3[%c13] : memref<144xf32, #tpu.memory_space<smem>>
    %176 = vector.broadcast %175 : f32 to vector<16x16xf32>
    %177 = arith.mulf %176, %9 : vector<16x16xf32>
    %178 = arith.addf %174, %177 : vector<16x16xf32>
    %c14 = arith.constant 14 : index
    %179 = memref.load %arg3[%c14] : memref<144xf32, #tpu.memory_space<smem>>
    %180 = vector.broadcast %179 : f32 to vector<16x16xf32>
    %181 = arith.mulf %180, %10 : vector<16x16xf32>
    %182 = arith.addf %178, %181 : vector<16x16xf32>
    %c15 = arith.constant 15 : index
    %183 = memref.load %arg3[%c15] : memref<144xf32, #tpu.memory_space<smem>>
    %184 = vector.broadcast %183 : f32 to vector<16x16xf32>
    %185 = arith.mulf %184, %11 : vector<16x16xf32>
    %186 = arith.addf %182, %185 : vector<16x16xf32>
    %c16 = arith.constant 16 : index
    %187 = memref.load %arg3[%c16] : memref<144xf32, #tpu.memory_space<smem>>
    %188 = vector.broadcast %187 : f32 to vector<16x16xf32>
    %189 = arith.mulf %188, %12 : vector<16x16xf32>
    %190 = arith.addf %186, %189 : vector<16x16xf32>
    %c17 = arith.constant 17 : index
    %191 = memref.load %arg3[%c17] : memref<144xf32, #tpu.memory_space<smem>>
    %192 = vector.broadcast %191 : f32 to vector<16x16xf32>
    %193 = arith.mulf %192, %13 : vector<16x16xf32>
    %194 = arith.addf %190, %193 : vector<16x16xf32>
    %c45 = arith.constant 45 : index
    %195 = memref.load %arg3[%c45] : memref<144xf32, #tpu.memory_space<smem>>
    %196 = vector.broadcast %195 : f32 to vector<16x16xf32>
    %197 = arith.mulf %196, %5 : vector<16x16xf32>
    %c46 = arith.constant 46 : index
    %198 = memref.load %arg3[%c46] : memref<144xf32, #tpu.memory_space<smem>>
    %199 = vector.broadcast %198 : f32 to vector<16x16xf32>
    %200 = arith.mulf %199, %6 : vector<16x16xf32>
    %201 = arith.addf %197, %200 : vector<16x16xf32>
    %c47 = arith.constant 47 : index
    %202 = memref.load %arg3[%c47] : memref<144xf32, #tpu.memory_space<smem>>
    %203 = vector.broadcast %202 : f32 to vector<16x16xf32>
    %204 = arith.mulf %203, %7 : vector<16x16xf32>
    %205 = arith.addf %201, %204 : vector<16x16xf32>
    %c48 = arith.constant 48 : index
    %206 = memref.load %arg3[%c48] : memref<144xf32, #tpu.memory_space<smem>>
    %207 = vector.broadcast %206 : f32 to vector<16x16xf32>
    %208 = arith.mulf %207, %8 : vector<16x16xf32>
    %209 = arith.addf %205, %208 : vector<16x16xf32>
    %c49 = arith.constant 49 : index
    %210 = memref.load %arg3[%c49] : memref<144xf32, #tpu.memory_space<smem>>
    %211 = vector.broadcast %210 : f32 to vector<16x16xf32>
    %212 = arith.mulf %211, %9 : vector<16x16xf32>
    %213 = arith.addf %209, %212 : vector<16x16xf32>
    %c50 = arith.constant 50 : index
    %214 = memref.load %arg3[%c50] : memref<144xf32, #tpu.memory_space<smem>>
    %215 = vector.broadcast %214 : f32 to vector<16x16xf32>
    %216 = arith.mulf %215, %10 : vector<16x16xf32>
    %217 = arith.addf %213, %216 : vector<16x16xf32>
    %c51 = arith.constant 51 : index
    %218 = memref.load %arg3[%c51] : memref<144xf32, #tpu.memory_space<smem>>
    %219 = vector.broadcast %218 : f32 to vector<16x16xf32>
    %220 = arith.mulf %219, %11 : vector<16x16xf32>
    %221 = arith.addf %217, %220 : vector<16x16xf32>
    %c52 = arith.constant 52 : index
    %222 = memref.load %arg3[%c52] : memref<144xf32, #tpu.memory_space<smem>>
    %223 = vector.broadcast %222 : f32 to vector<16x16xf32>
    %224 = arith.mulf %223, %12 : vector<16x16xf32>
    %225 = arith.addf %221, %224 : vector<16x16xf32>
    %c53 = arith.constant 53 : index
    %226 = memref.load %arg3[%c53] : memref<144xf32, #tpu.memory_space<smem>>
    %227 = vector.broadcast %226 : f32 to vector<16x16xf32>
    %228 = arith.mulf %227, %13 : vector<16x16xf32>
    %229 = arith.addf %225, %228 : vector<16x16xf32>
    %230 = arith.maximumf %194, %229 : vector<16x16xf32>
    %c81 = arith.constant 81 : index
    %231 = memref.load %arg3[%c81] : memref<144xf32, #tpu.memory_space<smem>>
    %232 = vector.broadcast %231 : f32 to vector<16x16xf32>
    %233 = arith.mulf %232, %5 : vector<16x16xf32>
    %c82 = arith.constant 82 : index
    %234 = memref.load %arg3[%c82] : memref<144xf32, #tpu.memory_space<smem>>
    %235 = vector.broadcast %234 : f32 to vector<16x16xf32>
    %236 = arith.mulf %235, %6 : vector<16x16xf32>
    %237 = arith.addf %233, %236 : vector<16x16xf32>
    %c83 = arith.constant 83 : index
    %238 = memref.load %arg3[%c83] : memref<144xf32, #tpu.memory_space<smem>>
    %239 = vector.broadcast %238 : f32 to vector<16x16xf32>
    %240 = arith.mulf %239, %7 : vector<16x16xf32>
    %241 = arith.addf %237, %240 : vector<16x16xf32>
    %c84 = arith.constant 84 : index
    %242 = memref.load %arg3[%c84] : memref<144xf32, #tpu.memory_space<smem>>
    %243 = vector.broadcast %242 : f32 to vector<16x16xf32>
    %244 = arith.mulf %243, %8 : vector<16x16xf32>
    %245 = arith.addf %241, %244 : vector<16x16xf32>
    %c85 = arith.constant 85 : index
    %246 = memref.load %arg3[%c85] : memref<144xf32, #tpu.memory_space<smem>>
    %247 = vector.broadcast %246 : f32 to vector<16x16xf32>
    %248 = arith.mulf %247, %9 : vector<16x16xf32>
    %249 = arith.addf %245, %248 : vector<16x16xf32>
    %c86 = arith.constant 86 : index
    %250 = memref.load %arg3[%c86] : memref<144xf32, #tpu.memory_space<smem>>
    %251 = vector.broadcast %250 : f32 to vector<16x16xf32>
    %252 = arith.mulf %251, %10 : vector<16x16xf32>
    %253 = arith.addf %249, %252 : vector<16x16xf32>
    %c87 = arith.constant 87 : index
    %254 = memref.load %arg3[%c87] : memref<144xf32, #tpu.memory_space<smem>>
    %255 = vector.broadcast %254 : f32 to vector<16x16xf32>
    %256 = arith.mulf %255, %11 : vector<16x16xf32>
    %257 = arith.addf %253, %256 : vector<16x16xf32>
    %c88 = arith.constant 88 : index
    %258 = memref.load %arg3[%c88] : memref<144xf32, #tpu.memory_space<smem>>
    %259 = vector.broadcast %258 : f32 to vector<16x16xf32>
    %260 = arith.mulf %259, %12 : vector<16x16xf32>
    %261 = arith.addf %257, %260 : vector<16x16xf32>
    %c89 = arith.constant 89 : index
    %262 = memref.load %arg3[%c89] : memref<144xf32, #tpu.memory_space<smem>>
    %263 = vector.broadcast %262 : f32 to vector<16x16xf32>
    %264 = arith.mulf %263, %13 : vector<16x16xf32>
    %265 = arith.addf %261, %264 : vector<16x16xf32>
    %266 = arith.maximumf %230, %265 : vector<16x16xf32>
    %c117 = arith.constant 117 : index
    %267 = memref.load %arg3[%c117] : memref<144xf32, #tpu.memory_space<smem>>
    %268 = vector.broadcast %267 : f32 to vector<16x16xf32>
    %269 = arith.mulf %268, %5 : vector<16x16xf32>
    %c118 = arith.constant 118 : index
    %270 = memref.load %arg3[%c118] : memref<144xf32, #tpu.memory_space<smem>>
    %271 = vector.broadcast %270 : f32 to vector<16x16xf32>
    %272 = arith.mulf %271, %6 : vector<16x16xf32>
    %273 = arith.addf %269, %272 : vector<16x16xf32>
    %c119 = arith.constant 119 : index
    %274 = memref.load %arg3[%c119] : memref<144xf32, #tpu.memory_space<smem>>
    %275 = vector.broadcast %274 : f32 to vector<16x16xf32>
    %276 = arith.mulf %275, %7 : vector<16x16xf32>
    %277 = arith.addf %273, %276 : vector<16x16xf32>
    %c120 = arith.constant 120 : index
    %278 = memref.load %arg3[%c120] : memref<144xf32, #tpu.memory_space<smem>>
    %279 = vector.broadcast %278 : f32 to vector<16x16xf32>
    %280 = arith.mulf %279, %8 : vector<16x16xf32>
    %281 = arith.addf %277, %280 : vector<16x16xf32>
    %c121 = arith.constant 121 : index
    %282 = memref.load %arg3[%c121] : memref<144xf32, #tpu.memory_space<smem>>
    %283 = vector.broadcast %282 : f32 to vector<16x16xf32>
    %284 = arith.mulf %283, %9 : vector<16x16xf32>
    %285 = arith.addf %281, %284 : vector<16x16xf32>
    %c122 = arith.constant 122 : index
    %286 = memref.load %arg3[%c122] : memref<144xf32, #tpu.memory_space<smem>>
    %287 = vector.broadcast %286 : f32 to vector<16x16xf32>
    %288 = arith.mulf %287, %10 : vector<16x16xf32>
    %289 = arith.addf %285, %288 : vector<16x16xf32>
    %c123 = arith.constant 123 : index
    %290 = memref.load %arg3[%c123] : memref<144xf32, #tpu.memory_space<smem>>
    %291 = vector.broadcast %290 : f32 to vector<16x16xf32>
    %292 = arith.mulf %291, %11 : vector<16x16xf32>
    %293 = arith.addf %289, %292 : vector<16x16xf32>
    %c124 = arith.constant 124 : index
    %294 = memref.load %arg3[%c124] : memref<144xf32, #tpu.memory_space<smem>>
    %295 = vector.broadcast %294 : f32 to vector<16x16xf32>
    %296 = arith.mulf %295, %12 : vector<16x16xf32>
    %297 = arith.addf %293, %296 : vector<16x16xf32>
    %c125 = arith.constant 125 : index
    %298 = memref.load %arg3[%c125] : memref<144xf32, #tpu.memory_space<smem>>
    %299 = vector.broadcast %298 : f32 to vector<16x16xf32>
    %300 = arith.mulf %299, %13 : vector<16x16xf32>
    %301 = arith.addf %297, %300 : vector<16x16xf32>
    %302 = arith.maximumf %266, %301 : vector<16x16xf32>
    %c0_6 = arith.constant 0 : index
    %c1_7 = arith.constant 1 : index
    %c0_8 = arith.constant 0 : index
    %c0_9 = arith.constant 0 : index
    %303 = vector.load %arg4[%c0_6, %c1_7, %c0_8, %c0_9] : memref<2x4x16x16xf32, #tpu.memory_space<vmem>>, vector<1x1x16x16xf32>
    %304 = vector.shape_cast %303 : vector<1x1x16x16xf32> to vector<16x16xf32>
    %305 = vector.shape_cast %302 : vector<16x16xf32> to vector<1x1x16x16xf32>
    tpu.vector_store %arg4[%c0_6, %c1_7, %c0_8, %c0_9], %305 {strides = array<i32>} : memref<2x4x16x16xf32, #tpu.memory_space<vmem>>, vector<1x1x16x16xf32>,
    %c18 = arith.constant 18 : index
    %306 = memref.load %arg3[%c18] : memref<144xf32, #tpu.memory_space<smem>>
    %307 = vector.broadcast %306 : f32 to vector<16x16xf32>
    %308 = arith.mulf %307, %5 : vector<16x16xf32>
    %c19 = arith.constant 19 : index
    %309 = memref.load %arg3[%c19] : memref<144xf32, #tpu.memory_space<smem>>
    %310 = vector.broadcast %309 : f32 to vector<16x16xf32>
    %311 = arith.mulf %310, %6 : vector<16x16xf32>
    %312 = arith.addf %308, %311 : vector<16x16xf32>
    %c20 = arith.constant 20 : index
    %313 = memref.load %arg3[%c20] : memref<144xf32, #tpu.memory_space<smem>>
    %314 = vector.broadcast %313 : f32 to vector<16x16xf32>
    %315 = arith.mulf %314, %7 : vector<16x16xf32>
    %316 = arith.addf %312, %315 : vector<16x16xf32>
    %c21 = arith.constant 21 : index
    %317 = memref.load %arg3[%c21] : memref<144xf32, #tpu.memory_space<smem>>
    %318 = vector.broadcast %317 : f32 to vector<16x16xf32>
    %319 = arith.mulf %318, %8 : vector<16x16xf32>
    %320 = arith.addf %316, %319 : vector<16x16xf32>
    %c22 = arith.constant 22 : index
    %321 = memref.load %arg3[%c22] : memref<144xf32, #tpu.memory_space<smem>>
    %322 = vector.broadcast %321 : f32 to vector<16x16xf32>
    %323 = arith.mulf %322, %9 : vector<16x16xf32>
    %324 = arith.addf %320, %323 : vector<16x16xf32>
    %c23 = arith.constant 23 : index
    %325 = memref.load %arg3[%c23] : memref<144xf32, #tpu.memory_space<smem>>
    %326 = vector.broadcast %325 : f32 to vector<16x16xf32>
    %327 = arith.mulf %326, %10 : vector<16x16xf32>
    %328 = arith.addf %324, %327 : vector<16x16xf32>
    %c24 = arith.constant 24 : index
    %329 = memref.load %arg3[%c24] : memref<144xf32, #tpu.memory_space<smem>>
    %330 = vector.broadcast %329 : f32 to vector<16x16xf32>
    %331 = arith.mulf %330, %11 : vector<16x16xf32>
    %332 = arith.addf %328, %331 : vector<16x16xf32>
    %c25 = arith.constant 25 : index
    %333 = memref.load %arg3[%c25] : memref<144xf32, #tpu.memory_space<smem>>
    %334 = vector.broadcast %333 : f32 to vector<16x16xf32>
    %335 = arith.mulf %334, %12 : vector<16x16xf32>
    %336 = arith.addf %332, %335 : vector<16x16xf32>
    %c26 = arith.constant 26 : index
    %337 = memref.load %arg3[%c26] : memref<144xf32, #tpu.memory_space<smem>>
    %338 = vector.broadcast %337 : f32 to vector<16x16xf32>
    %339 = arith.mulf %338, %13 : vector<16x16xf32>
    %340 = arith.addf %336, %339 : vector<16x16xf32>
    %c54 = arith.constant 54 : index
    %341 = memref.load %arg3[%c54] : memref<144xf32, #tpu.memory_space<smem>>
    %342 = vector.broadcast %341 : f32 to vector<16x16xf32>
    %343 = arith.mulf %342, %5 : vector<16x16xf32>
    %c55 = arith.constant 55 : index
    %344 = memref.load %arg3[%c55] : memref<144xf32, #tpu.memory_space<smem>>
    %345 = vector.broadcast %344 : f32 to vector<16x16xf32>
    %346 = arith.mulf %345, %6 : vector<16x16xf32>
    %347 = arith.addf %343, %346 : vector<16x16xf32>
    %c56 = arith.constant 56 : index
    %348 = memref.load %arg3[%c56] : memref<144xf32, #tpu.memory_space<smem>>
    %349 = vector.broadcast %348 : f32 to vector<16x16xf32>
    %350 = arith.mulf %349, %7 : vector<16x16xf32>
    %351 = arith.addf %347, %350 : vector<16x16xf32>
    %c57 = arith.constant 57 : index
    %352 = memref.load %arg3[%c57] : memref<144xf32, #tpu.memory_space<smem>>
    %353 = vector.broadcast %352 : f32 to vector<16x16xf32>
    %354 = arith.mulf %353, %8 : vector<16x16xf32>
    %355 = arith.addf %351, %354 : vector<16x16xf32>
    %c58 = arith.constant 58 : index
    %356 = memref.load %arg3[%c58] : memref<144xf32, #tpu.memory_space<smem>>
    %357 = vector.broadcast %356 : f32 to vector<16x16xf32>
    %358 = arith.mulf %357, %9 : vector<16x16xf32>
    %359 = arith.addf %355, %358 : vector<16x16xf32>
    %c59 = arith.constant 59 : index
    %360 = memref.load %arg3[%c59] : memref<144xf32, #tpu.memory_space<smem>>
    %361 = vector.broadcast %360 : f32 to vector<16x16xf32>
    %362 = arith.mulf %361, %10 : vector<16x16xf32>
    %363 = arith.addf %359, %362 : vector<16x16xf32>
    %c60 = arith.constant 60 : index
    %364 = memref.load %arg3[%c60] : memref<144xf32, #tpu.memory_space<smem>>
    %365 = vector.broadcast %364 : f32 to vector<16x16xf32>
    %366 = arith.mulf %365, %11 : vector<16x16xf32>
    %367 = arith.addf %363, %366 : vector<16x16xf32>
    %c61 = arith.constant 61 : index
    %368 = memref.load %arg3[%c61] : memref<144xf32, #tpu.memory_space<smem>>
    %369 = vector.broadcast %368 : f32 to vector<16x16xf32>
    %370 = arith.mulf %369, %12 : vector<16x16xf32>
    %371 = arith.addf %367, %370 : vector<16x16xf32>
    %c62 = arith.constant 62 : index
    %372 = memref.load %arg3[%c62] : memref<144xf32, #tpu.memory_space<smem>>
    %373 = vector.broadcast %372 : f32 to vector<16x16xf32>
    %374 = arith.mulf %373, %13 : vector<16x16xf32>
    %375 = arith.addf %371, %374 : vector<16x16xf32>
    %376 = arith.maximumf %340, %375 : vector<16x16xf32>
    %c90 = arith.constant 90 : index
    %377 = memref.load %arg3[%c90] : memref<144xf32, #tpu.memory_space<smem>>
    %378 = vector.broadcast %377 : f32 to vector<16x16xf32>
    %379 = arith.mulf %378, %5 : vector<16x16xf32>
    %c91 = arith.constant 91 : index
    %380 = memref.load %arg3[%c91] : memref<144xf32, #tpu.memory_space<smem>>
    %381 = vector.broadcast %380 : f32 to vector<16x16xf32>
    %382 = arith.mulf %381, %6 : vector<16x16xf32>
    %383 = arith.addf %379, %382 : vector<16x16xf32>
    %c92 = arith.constant 92 : index
    %384 = memref.load %arg3[%c92] : memref<144xf32, #tpu.memory_space<smem>>
    %385 = vector.broadcast %384 : f32 to vector<16x16xf32>
    %386 = arith.mulf %385, %7 : vector<16x16xf32>
    %387 = arith.addf %383, %386 : vector<16x16xf32>
    %c93 = arith.constant 93 : index
    %388 = memref.load %arg3[%c93] : memref<144xf32, #tpu.memory_space<smem>>
    %389 = vector.broadcast %388 : f32 to vector<16x16xf32>
    %390 = arith.mulf %389, %8 : vector<16x16xf32>
    %391 = arith.addf %387, %390 : vector<16x16xf32>
    %c94 = arith.constant 94 : index
    %392 = memref.load %arg3[%c94] : memref<144xf32, #tpu.memory_space<smem>>
    %393 = vector.broadcast %392 : f32 to vector<16x16xf32>
    %394 = arith.mulf %393, %9 : vector<16x16xf32>
    %395 = arith.addf %391, %394 : vector<16x16xf32>
    %c95 = arith.constant 95 : index
    %396 = memref.load %arg3[%c95] : memref<144xf32, #tpu.memory_space<smem>>
    %397 = vector.broadcast %396 : f32 to vector<16x16xf32>
    %398 = arith.mulf %397, %10 : vector<16x16xf32>
    %399 = arith.addf %395, %398 : vector<16x16xf32>
    %c96 = arith.constant 96 : index
    %400 = memref.load %arg3[%c96] : memref<144xf32, #tpu.memory_space<smem>>
    %401 = vector.broadcast %400 : f32 to vector<16x16xf32>
    %402 = arith.mulf %401, %11 : vector<16x16xf32>
    %403 = arith.addf %399, %402 : vector<16x16xf32>
    %c97 = arith.constant 97 : index
    %404 = memref.load %arg3[%c97] : memref<144xf32, #tpu.memory_space<smem>>
    %405 = vector.broadcast %404 : f32 to vector<16x16xf32>
    %406 = arith.mulf %405, %12 : vector<16x16xf32>
    %407 = arith.addf %403, %406 : vector<16x16xf32>
    %c98 = arith.constant 98 : index
    %408 = memref.load %arg3[%c98] : memref<144xf32, #tpu.memory_space<smem>>
    %409 = vector.broadcast %408 : f32 to vector<16x16xf32>
    %410 = arith.mulf %409, %13 : vector<16x16xf32>
    %411 = arith.addf %407, %410 : vector<16x16xf32>
    %412 = arith.maximumf %376, %411 : vector<16x16xf32>
    %c126 = arith.constant 126 : index
    %413 = memref.load %arg3[%c126] : memref<144xf32, #tpu.memory_space<smem>>
    %414 = vector.broadcast %413 : f32 to vector<16x16xf32>
    %415 = arith.mulf %414, %5 : vector<16x16xf32>
    %c127 = arith.constant 127 : index
    %416 = memref.load %arg3[%c127] : memref<144xf32, #tpu.memory_space<smem>>
    %417 = vector.broadcast %416 : f32 to vector<16x16xf32>
    %418 = arith.mulf %417, %6 : vector<16x16xf32>
    %419 = arith.addf %415, %418 : vector<16x16xf32>
    %c128 = arith.constant 128 : index
    %420 = memref.load %arg3[%c128] : memref<144xf32, #tpu.memory_space<smem>>
    %421 = vector.broadcast %420 : f32 to vector<16x16xf32>
    %422 = arith.mulf %421, %7 : vector<16x16xf32>
    %423 = arith.addf %419, %422 : vector<16x16xf32>
    %c129 = arith.constant 129 : index
    %424 = memref.load %arg3[%c129] : memref<144xf32, #tpu.memory_space<smem>>
    %425 = vector.broadcast %424 : f32 to vector<16x16xf32>
    %426 = arith.mulf %425, %8 : vector<16x16xf32>
    %427 = arith.addf %423, %426 : vector<16x16xf32>
    %c130 = arith.constant 130 : index
    %428 = memref.load %arg3[%c130] : memref<144xf32, #tpu.memory_space<smem>>
    %429 = vector.broadcast %428 : f32 to vector<16x16xf32>
    %430 = arith.mulf %429, %9 : vector<16x16xf32>
    %431 = arith.addf %427, %430 : vector<16x16xf32>
    %c131 = arith.constant 131 : index
    %432 = memref.load %arg3[%c131] : memref<144xf32, #tpu.memory_space<smem>>
    %433 = vector.broadcast %432 : f32 to vector<16x16xf32>
    %434 = arith.mulf %433, %10 : vector<16x16xf32>
    %435 = arith.addf %431, %434 : vector<16x16xf32>
    %c132 = arith.constant 132 : index
    %436 = memref.load %arg3[%c132] : memref<144xf32, #tpu.memory_space<smem>>
    %437 = vector.broadcast %436 : f32 to vector<16x16xf32>
    %438 = arith.mulf %437, %11 : vector<16x16xf32>
    %439 = arith.addf %435, %438 : vector<16x16xf32>
    %c133 = arith.constant 133 : index
    %440 = memref.load %arg3[%c133] : memref<144xf32, #tpu.memory_space<smem>>
    %441 = vector.broadcast %440 : f32 to vector<16x16xf32>
    %442 = arith.mulf %441, %12 : vector<16x16xf32>
    %443 = arith.addf %439, %442 : vector<16x16xf32>
    %c134 = arith.constant 134 : index
    %444 = memref.load %arg3[%c134] : memref<144xf32, #tpu.memory_space<smem>>
    %445 = vector.broadcast %444 : f32 to vector<16x16xf32>
    %446 = arith.mulf %445, %13 : vector<16x16xf32>
    %447 = arith.addf %443, %446 : vector<16x16xf32>
    %448 = arith.maximumf %412, %447 : vector<16x16xf32>
    %c0_10 = arith.constant 0 : index
    %c2_11 = arith.constant 2 : index
    %c0_12 = arith.constant 0 : index
    %c0_13 = arith.constant 0 : index
    %449 = vector.load %arg4[%c0_10, %c2_11, %c0_12, %c0_13] : memref<2x4x16x16xf32, #tpu.memory_space<vmem>>, vector<1x1x16x16xf32>
    %450 = vector.shape_cast %449 : vector<1x1x16x16xf32> to vector<16x16xf32>
    %451 = vector.shape_cast %448 : vector<16x16xf32> to vector<1x1x16x16xf32>
    tpu.vector_store %arg4[%c0_10, %c2_11, %c0_12, %c0_13], %451 {strides = array<i32>} : memref<2x4x16x16xf32, #tpu.memory_space<vmem>>, vector<1x1x16x16xf32>,
    %c27 = arith.constant 27 : index
    %452 = memref.load %arg3[%c27] : memref<144xf32, #tpu.memory_space<smem>>
    %453 = vector.broadcast %452 : f32 to vector<16x16xf32>
    %454 = arith.mulf %453, %5 : vector<16x16xf32>
    %c28 = arith.constant 28 : index
    %455 = memref.load %arg3[%c28] : memref<144xf32, #tpu.memory_space<smem>>
    %456 = vector.broadcast %455 : f32 to vector<16x16xf32>
    %457 = arith.mulf %456, %6 : vector<16x16xf32>
    %458 = arith.addf %454, %457 : vector<16x16xf32>
    %c29 = arith.constant 29 : index
    %459 = memref.load %arg3[%c29] : memref<144xf32, #tpu.memory_space<smem>>
    %460 = vector.broadcast %459 : f32 to vector<16x16xf32>
    %461 = arith.mulf %460, %7 : vector<16x16xf32>
    %462 = arith.addf %458, %461 : vector<16x16xf32>
    %c30 = arith.constant 30 : index
    %463 = memref.load %arg3[%c30] : memref<144xf32, #tpu.memory_space<smem>>
    %464 = vector.broadcast %463 : f32 to vector<16x16xf32>
    %465 = arith.mulf %464, %8 : vector<16x16xf32>
    %466 = arith.addf %462, %465 : vector<16x16xf32>
    %c31 = arith.constant 31 : index
    %467 = memref.load %arg3[%c31] : memref<144xf32, #tpu.memory_space<smem>>
    %468 = vector.broadcast %467 : f32 to vector<16x16xf32>
    %469 = arith.mulf %468, %9 : vector<16x16xf32>
    %470 = arith.addf %466, %469 : vector<16x16xf32>
    %c32 = arith.constant 32 : index
    %471 = memref.load %arg3[%c32] : memref<144xf32, #tpu.memory_space<smem>>
    %472 = vector.broadcast %471 : f32 to vector<16x16xf32>
    %473 = arith.mulf %472, %10 : vector<16x16xf32>
    %474 = arith.addf %470, %473 : vector<16x16xf32>
    %c33 = arith.constant 33 : index
    %475 = memref.load %arg3[%c33] : memref<144xf32, #tpu.memory_space<smem>>
    %476 = vector.broadcast %475 : f32 to vector<16x16xf32>
    %477 = arith.mulf %476, %11 : vector<16x16xf32>
    %478 = arith.addf %474, %477 : vector<16x16xf32>
    %c34 = arith.constant 34 : index
    %479 = memref.load %arg3[%c34] : memref<144xf32, #tpu.memory_space<smem>>
    %480 = vector.broadcast %479 : f32 to vector<16x16xf32>
    %481 = arith.mulf %480, %12 : vector<16x16xf32>
    %482 = arith.addf %478, %481 : vector<16x16xf32>
    %c35 = arith.constant 35 : index
    %483 = memref.load %arg3[%c35] : memref<144xf32, #tpu.memory_space<smem>>
    %484 = vector.broadcast %483 : f32 to vector<16x16xf32>
    %485 = arith.mulf %484, %13 : vector<16x16xf32>
    %486 = arith.addf %482, %485 : vector<16x16xf32>
    %c63 = arith.constant 63 : index
    %487 = memref.load %arg3[%c63] : memref<144xf32, #tpu.memory_space<smem>>
    %488 = vector.broadcast %487 : f32 to vector<16x16xf32>
    %489 = arith.mulf %488, %5 : vector<16x16xf32>
    %c64 = arith.constant 64 : index
    %490 = memref.load %arg3[%c64] : memref<144xf32, #tpu.memory_space<smem>>
    %491 = vector.broadcast %490 : f32 to vector<16x16xf32>
    %492 = arith.mulf %491, %6 : vector<16x16xf32>
    %493 = arith.addf %489, %492 : vector<16x16xf32>
    %c65 = arith.constant 65 : index
    %494 = memref.load %arg3[%c65] : memref<144xf32, #tpu.memory_space<smem>>
    %495 = vector.broadcast %494 : f32 to vector<16x16xf32>
    %496 = arith.mulf %495, %7 : vector<16x16xf32>
    %497 = arith.addf %493, %496 : vector<16x16xf32>
    %c66 = arith.constant 66 : index
    %498 = memref.load %arg3[%c66] : memref<144xf32, #tpu.memory_space<smem>>
    %499 = vector.broadcast %498 : f32 to vector<16x16xf32>
    %500 = arith.mulf %499, %8 : vector<16x16xf32>
    %501 = arith.addf %497, %500 : vector<16x16xf32>
    %c67 = arith.constant 67 : index
    %502 = memref.load %arg3[%c67] : memref<144xf32, #tpu.memory_space<smem>>
    %503 = vector.broadcast %502 : f32 to vector<16x16xf32>
    %504 = arith.mulf %503, %9 : vector<16x16xf32>
    %505 = arith.addf %501, %504 : vector<16x16xf32>
    %c68 = arith.constant 68 : index
    %506 = memref.load %arg3[%c68] : memref<144xf32, #tpu.memory_space<smem>>
    %507 = vector.broadcast %506 : f32 to vector<16x16xf32>
    %508 = arith.mulf %507, %10 : vector<16x16xf32>
    %509 = arith.addf %505, %508 : vector<16x16xf32>
    %c69 = arith.constant 69 : index
    %510 = memref.load %arg3[%c69] : memref<144xf32, #tpu.memory_space<smem>>
    %511 = vector.broadcast %510 : f32 to vector<16x16xf32>
    %512 = arith.mulf %511, %11 : vector<16x16xf32>
    %513 = arith.addf %509, %512 : vector<16x16xf32>
    %c70 = arith.constant 70 : index
    %514 = memref.load %arg3[%c70] : memref<144xf32, #tpu.memory_space<smem>>
    %515 = vector.broadcast %514 : f32 to vector<16x16xf32>
    %516 = arith.mulf %515, %12 : vector<16x16xf32>
    %517 = arith.addf %513, %516 : vector<16x16xf32>
    %c71 = arith.constant 71 : index
    %518 = memref.load %arg3[%c71] : memref<144xf32, #tpu.memory_space<smem>>
    %519 = vector.broadcast %518 : f32 to vector<16x16xf32>
    %520 = arith.mulf %519, %13 : vector<16x16xf32>
    %521 = arith.addf %517, %520 : vector<16x16xf32>
    %522 = arith.maximumf %486, %521 : vector<16x16xf32>
    %c99 = arith.constant 99 : index
    %523 = memref.load %arg3[%c99] : memref<144xf32, #tpu.memory_space<smem>>
    %524 = vector.broadcast %523 : f32 to vector<16x16xf32>
    %525 = arith.mulf %524, %5 : vector<16x16xf32>
    %c100 = arith.constant 100 : index
    %526 = memref.load %arg3[%c100] : memref<144xf32, #tpu.memory_space<smem>>
    %527 = vector.broadcast %526 : f32 to vector<16x16xf32>
    %528 = arith.mulf %527, %6 : vector<16x16xf32>
    %529 = arith.addf %525, %528 : vector<16x16xf32>
    %c101 = arith.constant 101 : index
    %530 = memref.load %arg3[%c101] : memref<144xf32, #tpu.memory_space<smem>>
    %531 = vector.broadcast %530 : f32 to vector<16x16xf32>
    %532 = arith.mulf %531, %7 : vector<16x16xf32>
    %533 = arith.addf %529, %532 : vector<16x16xf32>
    %c102 = arith.constant 102 : index
    %534 = memref.load %arg3[%c102] : memref<144xf32, #tpu.memory_space<smem>>
    %535 = vector.broadcast %534 : f32 to vector<16x16xf32>
    %536 = arith.mulf %535, %8 : vector<16x16xf32>
    %537 = arith.addf %533, %536 : vector<16x16xf32>
    %c103 = arith.constant 103 : index
    %538 = memref.load %arg3[%c103] : memref<144xf32, #tpu.memory_space<smem>>
    %539 = vector.broadcast %538 : f32 to vector<16x16xf32>
    %540 = arith.mulf %539, %9 : vector<16x16xf32>
    %541 = arith.addf %537, %540 : vector<16x16xf32>
    %c104 = arith.constant 104 : index
    %542 = memref.load %arg3[%c104] : memref<144xf32, #tpu.memory_space<smem>>
    %543 = vector.broadcast %542 : f32 to vector<16x16xf32>
    %544 = arith.mulf %543, %10 : vector<16x16xf32>
    %545 = arith.addf %541, %544 : vector<16x16xf32>
    %c105 = arith.constant 105 : index
    %546 = memref.load %arg3[%c105] : memref<144xf32, #tpu.memory_space<smem>>
    %547 = vector.broadcast %546 : f32 to vector<16x16xf32>
    %548 = arith.mulf %547, %11 : vector<16x16xf32>
    %549 = arith.addf %545, %548 : vector<16x16xf32>
    %c106 = arith.constant 106 : index
    %550 = memref.load %arg3[%c106] : memref<144xf32, #tpu.memory_space<smem>>
    %551 = vector.broadcast %550 : f32 to vector<16x16xf32>
    %552 = arith.mulf %551, %12 : vector<16x16xf32>
    %553 = arith.addf %549, %552 : vector<16x16xf32>
    %c107 = arith.constant 107 : index
    %554 = memref.load %arg3[%c107] : memref<144xf32, #tpu.memory_space<smem>>
    %555 = vector.broadcast %554 : f32 to vector<16x16xf32>
    %556 = arith.mulf %555, %13 : vector<16x16xf32>
    %557 = arith.addf %553, %556 : vector<16x16xf32>
    %558 = arith.maximumf %522, %557 : vector<16x16xf32>
    %c135 = arith.constant 135 : index
    %559 = memref.load %arg3[%c135] : memref<144xf32, #tpu.memory_space<smem>>
    %560 = vector.broadcast %559 : f32 to vector<16x16xf32>
    %561 = arith.mulf %560, %5 : vector<16x16xf32>
    %c136 = arith.constant 136 : index
    %562 = memref.load %arg3[%c136] : memref<144xf32, #tpu.memory_space<smem>>
    %563 = vector.broadcast %562 : f32 to vector<16x16xf32>
    %564 = arith.mulf %563, %6 : vector<16x16xf32>
    %565 = arith.addf %561, %564 : vector<16x16xf32>
    %c137 = arith.constant 137 : index
    %566 = memref.load %arg3[%c137] : memref<144xf32, #tpu.memory_space<smem>>
    %567 = vector.broadcast %566 : f32 to vector<16x16xf32>
    %568 = arith.mulf %567, %7 : vector<16x16xf32>
    %569 = arith.addf %565, %568 : vector<16x16xf32>
    %c138 = arith.constant 138 : index
    %570 = memref.load %arg3[%c138] : memref<144xf32, #tpu.memory_space<smem>>
    %571 = vector.broadcast %570 : f32 to vector<16x16xf32>
    %572 = arith.mulf %571, %8 : vector<16x16xf32>
    %573 = arith.addf %569, %572 : vector<16x16xf32>
    %c139 = arith.constant 139 : index
    %574 = memref.load %arg3[%c139] : memref<144xf32, #tpu.memory_space<smem>>
    %575 = vector.broadcast %574 : f32 to vector<16x16xf32>
    %576 = arith.mulf %575, %9 : vector<16x16xf32>
    %577 = arith.addf %573, %576 : vector<16x16xf32>
    %c140 = arith.constant 140 : index
    %578 = memref.load %arg3[%c140] : memref<144xf32, #tpu.memory_space<smem>>
    %579 = vector.broadcast %578 : f32 to vector<16x16xf32>
    %580 = arith.mulf %579, %10 : vector<16x16xf32>
    %581 = arith.addf %577, %580 : vector<16x16xf32>
    %c141 = arith.constant 141 : index
    %582 = memref.load %arg3[%c141] : memref<144xf32, #tpu.memory_space<smem>>
    %583 = vector.broadcast %582 : f32 to vector<16x16xf32>
    %584 = arith.mulf %583, %11 : vector<16x16xf32>
    %585 = arith.addf %581, %584 : vector<16x16xf32>
    %c142 = arith.constant 142 : index
    %586 = memref.load %arg3[%c142] : memref<144xf32, #tpu.memory_space<smem>>
    %587 = vector.broadcast %586 : f32 to vector<16x16xf32>
    %588 = arith.mulf %587, %12 : vector<16x16xf32>
    %589 = arith.addf %585, %588 : vector<16x16xf32>
    %c143 = arith.constant 143 : index
    %590 = memref.load %arg3[%c143] : memref<144xf32, #tpu.memory_space<smem>>
    %591 = vector.broadcast %590 : f32 to vector<16x16xf32>
    %592 = arith.mulf %591, %13 : vector<16x16xf32>
    %593 = arith.addf %589, %592 : vector<16x16xf32>
    %594 = arith.maximumf %558, %593 : vector<16x16xf32>
    %c0_14 = arith.constant 0 : index
    %c3_15 = arith.constant 3 : index
    %c0_16 = arith.constant 0 : index
    %c0_17 = arith.constant 0 : index
    %595 = vector.load %arg4[%c0_14, %c3_15, %c0_16, %c0_17] : memref<2x4x16x16xf32, #tpu.memory_space<vmem>>, vector<1x1x16x16xf32>
    %596 = vector.shape_cast %595 : vector<1x1x16x16xf32> to vector<16x16xf32>
    %597 = vector.shape_cast %594 : vector<16x16xf32> to vector<1x1x16x16xf32>
    tpu.vector_store %arg4[%c0_14, %c3_15, %c0_16, %c0_17], %597 {strides = array<i32>} : memref<2x4x16x16xf32, #tpu.memory_space<vmem>>, vector<1x1x16x16xf32>,
    %c1_18 = arith.constant 1 : index
    %598 = arith.index_cast %1 : i32 to index
    %c0_19 = arith.constant 0 : index
    %599 = vector.load %arg2[%c1_18, %598, %c0_19] : memref<2x18x18xf32, #tpu.memory_space<vmem>>, vector<1x18x18xf32>
    %600 = vector.shape_cast %599 : vector<1x18x18xf32> to vector<18x18xf32>
    %601 = vector.extract_strided_slice %600 {offsets = [0, 0], sizes = [16, 16], strides = [1, 1]} : vector<18x18xf32> to vector<16x16xf32>
    %602 = vector.extract_strided_slice %600 {offsets = [0, 1], sizes = [16, 16], strides = [1, 1]} : vector<18x18xf32> to vector<16x16xf32>
    %603 = vector.extract_strided_slice %600 {offsets = [0, 2], sizes = [16, 16], strides = [1, 1]} : vector<18x18xf32> to vector<16x16xf32>
    %604 = vector.extract_strided_slice %600 {offsets = [1, 0], sizes = [16, 16], strides = [1, 1]} : vector<18x18xf32> to vector<16x16xf32>
    %605 = vector.extract_strided_slice %600 {offsets = [1, 1], sizes = [16, 16], strides = [1, 1]} : vector<18x18xf32> to vector<16x16xf32>
    %606 = vector.extract_strided_slice %600 {offsets = [1, 2], sizes = [16, 16], strides = [1, 1]} : vector<18x18xf32> to vector<16x16xf32>
    %607 = vector.extract_strided_slice %600 {offsets = [2, 0], sizes = [16, 16], strides = [1, 1]} : vector<18x18xf32> to vector<16x16xf32>
    %608 = vector.extract_strided_slice %600 {offsets = [2, 1], sizes = [16, 16], strides = [1, 1]} : vector<18x18xf32> to vector<16x16xf32>
    %609 = vector.extract_strided_slice %600 {offsets = [2, 2], sizes = [16, 16], strides = [1, 1]} : vector<18x18xf32> to vector<16x16xf32>
    %c0_20 = arith.constant 0 : index
    %610 = memref.load %arg3[%c0_20] : memref<144xf32, #tpu.memory_space<smem>>
    %611 = vector.broadcast %610 : f32 to vector<16x16xf32>
    %612 = arith.mulf %611, %601 : vector<16x16xf32>
    %c1_21 = arith.constant 1 : index
    %613 = memref.load %arg3[%c1_21] : memref<144xf32, #tpu.memory_space<smem>>
    %614 = vector.broadcast %613 : f32 to vector<16x16xf32>
    %615 = arith.mulf %614, %602 : vector<16x16xf32>
    %616 = arith.addf %612, %615 : vector<16x16xf32>
    %c2_22 = arith.constant 2 : index
    %617 = memref.load %arg3[%c2_22] : memref<144xf32, #tpu.memory_space<smem>>
    %618 = vector.broadcast %617 : f32 to vector<16x16xf32>
    %619 = arith.mulf %618, %603 : vector<16x16xf32>
    %620 = arith.addf %616, %619 : vector<16x16xf32>
    %c3_23 = arith.constant 3 : index
    %621 = memref.load %arg3[%c3_23] : memref<144xf32, #tpu.memory_space<smem>>
    %622 = vector.broadcast %621 : f32 to vector<16x16xf32>
    %623 = arith.mulf %622, %604 : vector<16x16xf32>
    %624 = arith.addf %620, %623 : vector<16x16xf32>
    %c4_24 = arith.constant 4 : index
    %625 = memref.load %arg3[%c4_24] : memref<144xf32, #tpu.memory_space<smem>>
    %626 = vector.broadcast %625 : f32 to vector<16x16xf32>
    %627 = arith.mulf %626, %605 : vector<16x16xf32>
    %628 = arith.addf %624, %627 : vector<16x16xf32>
    %c5_25 = arith.constant 5 : index
    %629 = memref.load %arg3[%c5_25] : memref<144xf32, #tpu.memory_space<smem>>
    %630 = vector.broadcast %629 : f32 to vector<16x16xf32>
    %631 = arith.mulf %630, %606 : vector<16x16xf32>
    %632 = arith.addf %628, %631 : vector<16x16xf32>
    %c6_26 = arith.constant 6 : index
    %633 = memref.load %arg3[%c6_26] : memref<144xf32, #tpu.memory_space<smem>>
    %634 = vector.broadcast %633 : f32 to vector<16x16xf32>
    %635 = arith.mulf %634, %607 : vector<16x16xf32>
    %636 = arith.addf %632, %635 : vector<16x16xf32>
    %c7_27 = arith.constant 7 : index
    %637 = memref.load %arg3[%c7_27] : memref<144xf32, #tpu.memory_space<smem>>
    %638 = vector.broadcast %637 : f32 to vector<16x16xf32>
    %639 = arith.mulf %638, %608 : vector<16x16xf32>
    %640 = arith.addf %636, %639 : vector<16x16xf32>
    %c8_28 = arith.constant 8 : index
    %641 = memref.load %arg3[%c8_28] : memref<144xf32, #tpu.memory_space<smem>>
    %642 = vector.broadcast %641 : f32 to vector<16x16xf32>
    %643 = arith.mulf %642, %609 : vector<16x16xf32>
    %644 = arith.addf %640, %643 : vector<16x16xf32>
    %c36_29 = arith.constant 36 : index
    %645 = memref.load %arg3[%c36_29] : memref<144xf32, #tpu.memory_space<smem>>
    %646 = vector.broadcast %645 : f32 to vector<16x16xf32>
    %647 = arith.mulf %646, %601 : vector<16x16xf32>
    %c37_30 = arith.constant 37 : index
    %648 = memref.load %arg3[%c37_30] : memref<144xf32, #tpu.memory_space<smem>>
    %649 = vector.broadcast %648 : f32 to vector<16x16xf32>
    %650 = arith.mulf %649, %602 : vector<16x16xf32>
    %651 = arith.addf %647, %650 : vector<16x16xf32>
    %c38_31 = arith.constant 38 : index
    %652 = memref.load %arg3[%c38_31] : memref<144xf32, #tpu.memory_space<smem>>
    %653 = vector.broadcast %652 : f32 to vector<16x16xf32>
    %654 = arith.mulf %653, %603 : vector<16x16xf32>
    %655 = arith.addf %651, %654 : vector<16x16xf32>
    %c39_32 = arith.constant 39 : index
    %656 = memref.load %arg3[%c39_32] : memref<144xf32, #tpu.memory_space<smem>>
    %657 = vector.broadcast %656 : f32 to vector<16x16xf32>
    %658 = arith.mulf %657, %604 : vector<16x16xf32>
    %659 = arith.addf %655, %658 : vector<16x16xf32>
    %c40_33 = arith.constant 40 : index
    %660 = memref.load %arg3[%c40_33] : memref<144xf32, #tpu.memory_space<smem>>
    %661 = vector.broadcast %660 : f32 to vector<16x16xf32>
    %662 = arith.mulf %661, %605 : vector<16x16xf32>
    %663 = arith.addf %659, %662 : vector<16x16xf32>
    %c41_34 = arith.constant 41 : index
    %664 = memref.load %arg3[%c41_34] : memref<144xf32, #tpu.memory_space<smem>>
    %665 = vector.broadcast %664 : f32 to vector<16x16xf32>
    %666 = arith.mulf %665, %606 : vector<16x16xf32>
    %667 = arith.addf %663, %666 : vector<16x16xf32>
    %c42_35 = arith.constant 42 : index
    %668 = memref.load %arg3[%c42_35] : memref<144xf32, #tpu.memory_space<smem>>
    %669 = vector.broadcast %668 : f32 to vector<16x16xf32>
    %670 = arith.mulf %669, %607 : vector<16x16xf32>
    %671 = arith.addf %667, %670 : vector<16x16xf32>
    %c43_36 = arith.constant 43 : index
    %672 = memref.load %arg3[%c43_36] : memref<144xf32, #tpu.memory_space<smem>>
    %673 = vector.broadcast %672 : f32 to vector<16x16xf32>
    %674 = arith.mulf %673, %608 : vector<16x16xf32>
    %675 = arith.addf %671, %674 : vector<16x16xf32>
    %c44_37 = arith.constant 44 : index
    %676 = memref.load %arg3[%c44_37] : memref<144xf32, #tpu.memory_space<smem>>
    %677 = vector.broadcast %676 : f32 to vector<16x16xf32>
    %678 = arith.mulf %677, %609 : vector<16x16xf32>
    %679 = arith.addf %675, %678 : vector<16x16xf32>
    %680 = arith.maximumf %644, %679 : vector<16x16xf32>
    %c72_38 = arith.constant 72 : index
    %681 = memref.load %arg3[%c72_38] : memref<144xf32, #tpu.memory_space<smem>>
    %682 = vector.broadcast %681 : f32 to vector<16x16xf32>
    %683 = arith.mulf %682, %601 : vector<16x16xf32>
    %c73_39 = arith.constant 73 : index
    %684 = memref.load %arg3[%c73_39] : memref<144xf32, #tpu.memory_space<smem>>
    %685 = vector.broadcast %684 : f32 to vector<16x16xf32>
    %686 = arith.mulf %685, %602 : vector<16x16xf32>
    %687 = arith.addf %683, %686 : vector<16x16xf32>
    %c74_40 = arith.constant 74 : index
    %688 = memref.load %arg3[%c74_40] : memref<144xf32, #tpu.memory_space<smem>>
    %689 = vector.broadcast %688 : f32 to vector<16x16xf32>
    %690 = arith.mulf %689, %603 : vector<16x16xf32>
    %691 = arith.addf %687, %690 : vector<16x16xf32>
    %c75_41 = arith.constant 75 : index
    %692 = memref.load %arg3[%c75_41] : memref<144xf32, #tpu.memory_space<smem>>
    %693 = vector.broadcast %692 : f32 to vector<16x16xf32>
    %694 = arith.mulf %693, %604 : vector<16x16xf32>
    %695 = arith.addf %691, %694 : vector<16x16xf32>
    %c76_42 = arith.constant 76 : index
    %696 = memref.load %arg3[%c76_42] : memref<144xf32, #tpu.memory_space<smem>>
    %697 = vector.broadcast %696 : f32 to vector<16x16xf32>
    %698 = arith.mulf %697, %605 : vector<16x16xf32>
    %699 = arith.addf %695, %698 : vector<16x16xf32>
    %c77_43 = arith.constant 77 : index
    %700 = memref.load %arg3[%c77_43] : memref<144xf32, #tpu.memory_space<smem>>
    %701 = vector.broadcast %700 : f32 to vector<16x16xf32>
    %702 = arith.mulf %701, %606 : vector<16x16xf32>
    %703 = arith.addf %699, %702 : vector<16x16xf32>
    %c78_44 = arith.constant 78 : index
    %704 = memref.load %arg3[%c78_44] : memref<144xf32, #tpu.memory_space<smem>>
    %705 = vector.broadcast %704 : f32 to vector<16x16xf32>
    %706 = arith.mulf %705, %607 : vector<16x16xf32>
    %707 = arith.addf %703, %706 : vector<16x16xf32>
    %c79_45 = arith.constant 79 : index
    %708 = memref.load %arg3[%c79_45] : memref<144xf32, #tpu.memory_space<smem>>
    %709 = vector.broadcast %708 : f32 to vector<16x16xf32>
    %710 = arith.mulf %709, %608 : vector<16x16xf32>
    %711 = arith.addf %707, %710 : vector<16x16xf32>
    %c80_46 = arith.constant 80 : index
    %712 = memref.load %arg3[%c80_46] : memref<144xf32, #tpu.memory_space<smem>>
    %713 = vector.broadcast %712 : f32 to vector<16x16xf32>
    %714 = arith.mulf %713, %609 : vector<16x16xf32>
    %715 = arith.addf %711, %714 : vector<16x16xf32>
    %716 = arith.maximumf %680, %715 : vector<16x16xf32>
    %c108_47 = arith.constant 108 : index
    %717 = memref.load %arg3[%c108_47] : memref<144xf32, #tpu.memory_space<smem>>
    %718 = vector.broadcast %717 : f32 to vector<16x16xf32>
    %719 = arith.mulf %718, %601 : vector<16x16xf32>
    %c109_48 = arith.constant 109 : index
    %720 = memref.load %arg3[%c109_48] : memref<144xf32, #tpu.memory_space<smem>>
    %721 = vector.broadcast %720 : f32 to vector<16x16xf32>
    %722 = arith.mulf %721, %602 : vector<16x16xf32>
    %723 = arith.addf %719, %722 : vector<16x16xf32>
    %c110_49 = arith.constant 110 : index
    %724 = memref.load %arg3[%c110_49] : memref<144xf32, #tpu.memory_space<smem>>
    %725 = vector.broadcast %724 : f32 to vector<16x16xf32>
    %726 = arith.mulf %725, %603 : vector<16x16xf32>
    %727 = arith.addf %723, %726 : vector<16x16xf32>
    %c111_50 = arith.constant 111 : index
    %728 = memref.load %arg3[%c111_50] : memref<144xf32, #tpu.memory_space<smem>>
    %729 = vector.broadcast %728 : f32 to vector<16x16xf32>
    %730 = arith.mulf %729, %604 : vector<16x16xf32>
    %731 = arith.addf %727, %730 : vector<16x16xf32>
    %c112_51 = arith.constant 112 : index
    %732 = memref.load %arg3[%c112_51] : memref<144xf32, #tpu.memory_space<smem>>
    %733 = vector.broadcast %732 : f32 to vector<16x16xf32>
    %734 = arith.mulf %733, %605 : vector<16x16xf32>
    %735 = arith.addf %731, %734 : vector<16x16xf32>
    %c113_52 = arith.constant 113 : index
    %736 = memref.load %arg3[%c113_52] : memref<144xf32, #tpu.memory_space<smem>>
    %737 = vector.broadcast %736 : f32 to vector<16x16xf32>
    %738 = arith.mulf %737, %606 : vector<16x16xf32>
    %739 = arith.addf %735, %738 : vector<16x16xf32>
    %c114_53 = arith.constant 114 : index
    %740 = memref.load %arg3[%c114_53] : memref<144xf32, #tpu.memory_space<smem>>
    %741 = vector.broadcast %740 : f32 to vector<16x16xf32>
    %742 = arith.mulf %741, %607 : vector<16x16xf32>
    %743 = arith.addf %739, %742 : vector<16x16xf32>
    %c115_54 = arith.constant 115 : index
    %744 = memref.load %arg3[%c115_54] : memref<144xf32, #tpu.memory_space<smem>>
    %745 = vector.broadcast %744 : f32 to vector<16x16xf32>
    %746 = arith.mulf %745, %608 : vector<16x16xf32>
    %747 = arith.addf %743, %746 : vector<16x16xf32>
    %c116_55 = arith.constant 116 : index
    %748 = memref.load %arg3[%c116_55] : memref<144xf32, #tpu.memory_space<smem>>
    %749 = vector.broadcast %748 : f32 to vector<16x16xf32>
    %750 = arith.mulf %749, %609 : vector<16x16xf32>
    %751 = arith.addf %747, %750 : vector<16x16xf32>
    %752 = arith.maximumf %716, %751 : vector<16x16xf32>
    %c1_56 = arith.constant 1 : index
    %c0_57 = arith.constant 0 : index
    %c0_58 = arith.constant 0 : index
    %c0_59 = arith.constant 0 : index
    %753 = vector.load %arg4[%c1_56, %c0_57, %c0_58, %c0_59] : memref<2x4x16x16xf32, #tpu.memory_space<vmem>>, vector<1x1x16x16xf32>
    %754 = vector.shape_cast %753 : vector<1x1x16x16xf32> to vector<16x16xf32>
    %755 = vector.shape_cast %752 : vector<16x16xf32> to vector<1x1x16x16xf32>
    tpu.vector_store %arg4[%c1_56, %c0_57, %c0_58, %c0_59], %755 {strides = array<i32>} : memref<2x4x16x16xf32, #tpu.memory_space<vmem>>, vector<1x1x16x16xf32>,
    %c9_60 = arith.constant 9 : index
    %756 = memref.load %arg3[%c9_60] : memref<144xf32, #tpu.memory_space<smem>>
    %757 = vector.broadcast %756 : f32 to vector<16x16xf32>
    %758 = arith.mulf %757, %601 : vector<16x16xf32>
    %c10_61 = arith.constant 10 : index
    %759 = memref.load %arg3[%c10_61] : memref<144xf32, #tpu.memory_space<smem>>
    %760 = vector.broadcast %759 : f32 to vector<16x16xf32>
    %761 = arith.mulf %760, %602 : vector<16x16xf32>
    %762 = arith.addf %758, %761 : vector<16x16xf32>
    %c11_62 = arith.constant 11 : index
    %763 = memref.load %arg3[%c11_62] : memref<144xf32, #tpu.memory_space<smem>>
    %764 = vector.broadcast %763 : f32 to vector<16x16xf32>
    %765 = arith.mulf %764, %603 : vector<16x16xf32>
    %766 = arith.addf %762, %765 : vector<16x16xf32>
    %c12_63 = arith.constant 12 : index
    %767 = memref.load %arg3[%c12_63] : memref<144xf32, #tpu.memory_space<smem>>
    %768 = vector.broadcast %767 : f32 to vector<16x16xf32>
    %769 = arith.mulf %768, %604 : vector<16x16xf32>
    %770 = arith.addf %766, %769 : vector<16x16xf32>
    %c13_64 = arith.constant 13 : index
    %771 = memref.load %arg3[%c13_64] : memref<144xf32, #tpu.memory_space<smem>>
    %772 = vector.broadcast %771 : f32 to vector<16x16xf32>
    %773 = arith.mulf %772, %605 : vector<16x16xf32>
    %774 = arith.addf %770, %773 : vector<16x16xf32>
    %c14_65 = arith.constant 14 : index
    %775 = memref.load %arg3[%c14_65] : memref<144xf32, #tpu.memory_space<smem>>
    %776 = vector.broadcast %775 : f32 to vector<16x16xf32>
    %777 = arith.mulf %776, %606 : vector<16x16xf32>
    %778 = arith.addf %774, %777 : vector<16x16xf32>
    %c15_66 = arith.constant 15 : index
    %779 = memref.load %arg3[%c15_66] : memref<144xf32, #tpu.memory_space<smem>>
    %780 = vector.broadcast %779 : f32 to vector<16x16xf32>
    %781 = arith.mulf %780, %607 : vector<16x16xf32>
    %782 = arith.addf %778, %781 : vector<16x16xf32>
    %c16_67 = arith.constant 16 : index
    %783 = memref.load %arg3[%c16_67] : memref<144xf32, #tpu.memory_space<smem>>
    %784 = vector.broadcast %783 : f32 to vector<16x16xf32>
    %785 = arith.mulf %784, %608 : vector<16x16xf32>
    %786 = arith.addf %782, %785 : vector<16x16xf32>
    %c17_68 = arith.constant 17 : index
    %787 = memref.load %arg3[%c17_68] : memref<144xf32, #tpu.memory_space<smem>>
    %788 = vector.broadcast %787 : f32 to vector<16x16xf32>
    %789 = arith.mulf %788, %609 : vector<16x16xf32>
    %790 = arith.addf %786, %789 : vector<16x16xf32>
    %c45_69 = arith.constant 45 : index
    %791 = memref.load %arg3[%c45_69] : memref<144xf32, #tpu.memory_space<smem>>
    %792 = vector.broadcast %791 : f32 to vector<16x16xf32>
    %793 = arith.mulf %792, %601 : vector<16x16xf32>
    %c46_70 = arith.constant 46 : index
    %794 = memref.load %arg3[%c46_70] : memref<144xf32, #tpu.memory_space<smem>>
    %795 = vector.broadcast %794 : f32 to vector<16x16xf32>
    %796 = arith.mulf %795, %602 : vector<16x16xf32>
    %797 = arith.addf %793, %796 : vector<16x16xf32>
    %c47_71 = arith.constant 47 : index
    %798 = memref.load %arg3[%c47_71] : memref<144xf32, #tpu.memory_space<smem>>
    %799 = vector.broadcast %798 : f32 to vector<16x16xf32>
    %800 = arith.mulf %799, %603 : vector<16x16xf32>
    %801 = arith.addf %797, %800 : vector<16x16xf32>
    %c48_72 = arith.constant 48 : index
    %802 = memref.load %arg3[%c48_72] : memref<144xf32, #tpu.memory_space<smem>>
    %803 = vector.broadcast %802 : f32 to vector<16x16xf32>
    %804 = arith.mulf %803, %604 : vector<16x16xf32>
    %805 = arith.addf %801, %804 : vector<16x16xf32>
    %c49_73 = arith.constant 49 : index
    %806 = memref.load %arg3[%c49_73] : memref<144xf32, #tpu.memory_space<smem>>
    %807 = vector.broadcast %806 : f32 to vector<16x16xf32>
    %808 = arith.mulf %807, %605 : vector<16x16xf32>
    %809 = arith.addf %805, %808 : vector<16x16xf32>
    %c50_74 = arith.constant 50 : index
    %810 = memref.load %arg3[%c50_74] : memref<144xf32, #tpu.memory_space<smem>>
    %811 = vector.broadcast %810 : f32 to vector<16x16xf32>
    %812 = arith.mulf %811, %606 : vector<16x16xf32>
    %813 = arith.addf %809, %812 : vector<16x16xf32>
    %c51_75 = arith.constant 51 : index
    %814 = memref.load %arg3[%c51_75] : memref<144xf32, #tpu.memory_space<smem>>
    %815 = vector.broadcast %814 : f32 to vector<16x16xf32>
    %816 = arith.mulf %815, %607 : vector<16x16xf32>
    %817 = arith.addf %813, %816 : vector<16x16xf32>
    %c52_76 = arith.constant 52 : index
    %818 = memref.load %arg3[%c52_76] : memref<144xf32, #tpu.memory_space<smem>>
    %819 = vector.broadcast %818 : f32 to vector<16x16xf32>
    %820 = arith.mulf %819, %608 : vector<16x16xf32>
    %821 = arith.addf %817, %820 : vector<16x16xf32>
    %c53_77 = arith.constant 53 : index
    %822 = memref.load %arg3[%c53_77] : memref<144xf32, #tpu.memory_space<smem>>
    %823 = vector.broadcast %822 : f32 to vector<16x16xf32>
    %824 = arith.mulf %823, %609 : vector<16x16xf32>
    %825 = arith.addf %821, %824 : vector<16x16xf32>
    %826 = arith.maximumf %790, %825 : vector<16x16xf32>
    %c81_78 = arith.constant 81 : index
    %827 = memref.load %arg3[%c81_78] : memref<144xf32, #tpu.memory_space<smem>>
    %828 = vector.broadcast %827 : f32 to vector<16x16xf32>
    %829 = arith.mulf %828, %601 : vector<16x16xf32>
    %c82_79 = arith.constant 82 : index
    %830 = memref.load %arg3[%c82_79] : memref<144xf32, #tpu.memory_space<smem>>
    %831 = vector.broadcast %830 : f32 to vector<16x16xf32>
    %832 = arith.mulf %831, %602 : vector<16x16xf32>
    %833 = arith.addf %829, %832 : vector<16x16xf32>
    %c83_80 = arith.constant 83 : index
    %834 = memref.load %arg3[%c83_80] : memref<144xf32, #tpu.memory_space<smem>>
    %835 = vector.broadcast %834 : f32 to vector<16x16xf32>
    %836 = arith.mulf %835, %603 : vector<16x16xf32>
    %837 = arith.addf %833, %836 : vector<16x16xf32>
    %c84_81 = arith.constant 84 : index
    %838 = memref.load %arg3[%c84_81] : memref<144xf32, #tpu.memory_space<smem>>
    %839 = vector.broadcast %838 : f32 to vector<16x16xf32>
    %840 = arith.mulf %839, %604 : vector<16x16xf32>
    %841 = arith.addf %837, %840 : vector<16x16xf32>
    %c85_82 = arith.constant 85 : index
    %842 = memref.load %arg3[%c85_82] : memref<144xf32, #tpu.memory_space<smem>>
    %843 = vector.broadcast %842 : f32 to vector<16x16xf32>
    %844 = arith.mulf %843, %605 : vector<16x16xf32>
    %845 = arith.addf %841, %844 : vector<16x16xf32>
    %c86_83 = arith.constant 86 : index
    %846 = memref.load %arg3[%c86_83] : memref<144xf32, #tpu.memory_space<smem>>
    %847 = vector.broadcast %846 : f32 to vector<16x16xf32>
    %848 = arith.mulf %847, %606 : vector<16x16xf32>
    %849 = arith.addf %845, %848 : vector<16x16xf32>
    %c87_84 = arith.constant 87 : index
    %850 = memref.load %arg3[%c87_84] : memref<144xf32, #tpu.memory_space<smem>>
    %851 = vector.broadcast %850 : f32 to vector<16x16xf32>
    %852 = arith.mulf %851, %607 : vector<16x16xf32>
    %853 = arith.addf %849, %852 : vector<16x16xf32>
    %c88_85 = arith.constant 88 : index
    %854 = memref.load %arg3[%c88_85] : memref<144xf32, #tpu.memory_space<smem>>
    %855 = vector.broadcast %854 : f32 to vector<16x16xf32>
    %856 = arith.mulf %855, %608 : vector<16x16xf32>
    %857 = arith.addf %853, %856 : vector<16x16xf32>
    %c89_86 = arith.constant 89 : index
    %858 = memref.load %arg3[%c89_86] : memref<144xf32, #tpu.memory_space<smem>>
    %859 = vector.broadcast %858 : f32 to vector<16x16xf32>
    %860 = arith.mulf %859, %609 : vector<16x16xf32>
    %861 = arith.addf %857, %860 : vector<16x16xf32>
    %862 = arith.maximumf %826, %861 : vector<16x16xf32>
    %c117_87 = arith.constant 117 : index
    %863 = memref.load %arg3[%c117_87] : memref<144xf32, #tpu.memory_space<smem>>
    %864 = vector.broadcast %863 : f32 to vector<16x16xf32>
    %865 = arith.mulf %864, %601 : vector<16x16xf32>
    %c118_88 = arith.constant 118 : index
    %866 = memref.load %arg3[%c118_88] : memref<144xf32, #tpu.memory_space<smem>>
    %867 = vector.broadcast %866 : f32 to vector<16x16xf32>
    %868 = arith.mulf %867, %602 : vector<16x16xf32>
    %869 = arith.addf %865, %868 : vector<16x16xf32>
    %c119_89 = arith.constant 119 : index
    %870 = memref.load %arg3[%c119_89] : memref<144xf32, #tpu.memory_space<smem>>
    %871 = vector.broadcast %870 : f32 to vector<16x16xf32>
    %872 = arith.mulf %871, %603 : vector<16x16xf32>
    %873 = arith.addf %869, %872 : vector<16x16xf32>
    %c120_90 = arith.constant 120 : index
    %874 = memref.load %arg3[%c120_90] : memref<144xf32, #tpu.memory_space<smem>>
    %875 = vector.broadcast %874 : f32 to vector<16x16xf32>
    %876 = arith.mulf %875, %604 : vector<16x16xf32>
    %877 = arith.addf %873, %876 : vector<16x16xf32>
    %c121_91 = arith.constant 121 : index
    %878 = memref.load %arg3[%c121_91] : memref<144xf32, #tpu.memory_space<smem>>
    %879 = vector.broadcast %878 : f32 to vector<16x16xf32>
    %880 = arith.mulf %879, %605 : vector<16x16xf32>
    %881 = arith.addf %877, %880 : vector<16x16xf32>
    %c122_92 = arith.constant 122 : index
    %882 = memref.load %arg3[%c122_92] : memref<144xf32, #tpu.memory_space<smem>>
    %883 = vector.broadcast %882 : f32 to vector<16x16xf32>
    %884 = arith.mulf %883, %606 : vector<16x16xf32>
    %885 = arith.addf %881, %884 : vector<16x16xf32>
    %c123_93 = arith.constant 123 : index
    %886 = memref.load %arg3[%c123_93] : memref<144xf32, #tpu.memory_space<smem>>
    %887 = vector.broadcast %886 : f32 to vector<16x16xf32>
    %888 = arith.mulf %887, %607 : vector<16x16xf32>
    %889 = arith.addf %885, %888 : vector<16x16xf32>
    %c124_94 = arith.constant 124 : index
    %890 = memref.load %arg3[%c124_94] : memref<144xf32, #tpu.memory_space<smem>>
    %891 = vector.broadcast %890 : f32 to vector<16x16xf32>
    %892 = arith.mulf %891, %608 : vector<16x16xf32>
    %893 = arith.addf %889, %892 : vector<16x16xf32>
    %c125_95 = arith.constant 125 : index
    %894 = memref.load %arg3[%c125_95] : memref<144xf32, #tpu.memory_space<smem>>
    %895 = vector.broadcast %894 : f32 to vector<16x16xf32>
    %896 = arith.mulf %895, %609 : vector<16x16xf32>
    %897 = arith.addf %893, %896 : vector<16x16xf32>
    %898 = arith.maximumf %862, %897 : vector<16x16xf32>
    %c1_96 = arith.constant 1 : index
    %c1_97 = arith.constant 1 : index
    %c0_98 = arith.constant 0 : index
    %c0_99 = arith.constant 0 : index
    %899 = vector.load %arg4[%c1_96, %c1_97, %c0_98, %c0_99] : memref<2x4x16x16xf32, #tpu.memory_space<vmem>>, vector<1x1x16x16xf32>
    %900 = vector.shape_cast %899 : vector<1x1x16x16xf32> to vector<16x16xf32>
    %901 = vector.shape_cast %898 : vector<16x16xf32> to vector<1x1x16x16xf32>
    tpu.vector_store %arg4[%c1_96, %c1_97, %c0_98, %c0_99], %901 {strides = array<i32>} : memref<2x4x16x16xf32, #tpu.memory_space<vmem>>, vector<1x1x16x16xf32>,
    %c18_100 = arith.constant 18 : index
    %902 = memref.load %arg3[%c18_100] : memref<144xf32, #tpu.memory_space<smem>>
    %903 = vector.broadcast %902 : f32 to vector<16x16xf32>
    %904 = arith.mulf %903, %601 : vector<16x16xf32>
    %c19_101 = arith.constant 19 : index
    %905 = memref.load %arg3[%c19_101] : memref<144xf32, #tpu.memory_space<smem>>
    %906 = vector.broadcast %905 : f32 to vector<16x16xf32>
    %907 = arith.mulf %906, %602 : vector<16x16xf32>
    %908 = arith.addf %904, %907 : vector<16x16xf32>
    %c20_102 = arith.constant 20 : index
    %909 = memref.load %arg3[%c20_102] : memref<144xf32, #tpu.memory_space<smem>>
    %910 = vector.broadcast %909 : f32 to vector<16x16xf32>
    %911 = arith.mulf %910, %603 : vector<16x16xf32>
    %912 = arith.addf %908, %911 : vector<16x16xf32>
    %c21_103 = arith.constant 21 : index
    %913 = memref.load %arg3[%c21_103] : memref<144xf32, #tpu.memory_space<smem>>
    %914 = vector.broadcast %913 : f32 to vector<16x16xf32>
    %915 = arith.mulf %914, %604 : vector<16x16xf32>
    %916 = arith.addf %912, %915 : vector<16x16xf32>
    %c22_104 = arith.constant 22 : index
    %917 = memref.load %arg3[%c22_104] : memref<144xf32, #tpu.memory_space<smem>>
    %918 = vector.broadcast %917 : f32 to vector<16x16xf32>
    %919 = arith.mulf %918, %605 : vector<16x16xf32>
    %920 = arith.addf %916, %919 : vector<16x16xf32>
    %c23_105 = arith.constant 23 : index
    %921 = memref.load %arg3[%c23_105] : memref<144xf32, #tpu.memory_space<smem>>
    %922 = vector.broadcast %921 : f32 to vector<16x16xf32>
    %923 = arith.mulf %922, %606 : vector<16x16xf32>
    %924 = arith.addf %920, %923 : vector<16x16xf32>
    %c24_106 = arith.constant 24 : index
    %925 = memref.load %arg3[%c24_106] : memref<144xf32, #tpu.memory_space<smem>>
    %926 = vector.broadcast %925 : f32 to vector<16x16xf32>
    %927 = arith.mulf %926, %607 : vector<16x16xf32>
    %928 = arith.addf %924, %927 : vector<16x16xf32>
    %c25_107 = arith.constant 25 : index
    %929 = memref.load %arg3[%c25_107] : memref<144xf32, #tpu.memory_space<smem>>
    %930 = vector.broadcast %929 : f32 to vector<16x16xf32>
    %931 = arith.mulf %930, %608 : vector<16x16xf32>
    %932 = arith.addf %928, %931 : vector<16x16xf32>
    %c26_108 = arith.constant 26 : index
    %933 = memref.load %arg3[%c26_108] : memref<144xf32, #tpu.memory_space<smem>>
    %934 = vector.broadcast %933 : f32 to vector<16x16xf32>
    %935 = arith.mulf %934, %609 : vector<16x16xf32>
    %936 = arith.addf %932, %935 : vector<16x16xf32>
    %c54_109 = arith.constant 54 : index
    %937 = memref.load %arg3[%c54_109] : memref<144xf32, #tpu.memory_space<smem>>
    %938 = vector.broadcast %937 : f32 to vector<16x16xf32>
    %939 = arith.mulf %938, %601 : vector<16x16xf32>
    %c55_110 = arith.constant 55 : index
    %940 = memref.load %arg3[%c55_110] : memref<144xf32, #tpu.memory_space<smem>>
    %941 = vector.broadcast %940 : f32 to vector<16x16xf32>
    %942 = arith.mulf %941, %602 : vector<16x16xf32>
    %943 = arith.addf %939, %942 : vector<16x16xf32>
    %c56_111 = arith.constant 56 : index
    %944 = memref.load %arg3[%c56_111] : memref<144xf32, #tpu.memory_space<smem>>
    %945 = vector.broadcast %944 : f32 to vector<16x16xf32>
    %946 = arith.mulf %945, %603 : vector<16x16xf32>
    %947 = arith.addf %943, %946 : vector<16x16xf32>
    %c57_112 = arith.constant 57 : index
    %948 = memref.load %arg3[%c57_112] : memref<144xf32, #tpu.memory_space<smem>>
    %949 = vector.broadcast %948 : f32 to vector<16x16xf32>
    %950 = arith.mulf %949, %604 : vector<16x16xf32>
    %951 = arith.addf %947, %950 : vector<16x16xf32>
    %c58_113 = arith.constant 58 : index
    %952 = memref.load %arg3[%c58_113] : memref<144xf32, #tpu.memory_space<smem>>
    %953 = vector.broadcast %952 : f32 to vector<16x16xf32>
    %954 = arith.mulf %953, %605 : vector<16x16xf32>
    %955 = arith.addf %951, %954 : vector<16x16xf32>
    %c59_114 = arith.constant 59 : index
    %956 = memref.load %arg3[%c59_114] : memref<144xf32, #tpu.memory_space<smem>>
    %957 = vector.broadcast %956 : f32 to vector<16x16xf32>
    %958 = arith.mulf %957, %606 : vector<16x16xf32>
    %959 = arith.addf %955, %958 : vector<16x16xf32>
    %c60_115 = arith.constant 60 : index
    %960 = memref.load %arg3[%c60_115] : memref<144xf32, #tpu.memory_space<smem>>
    %961 = vector.broadcast %960 : f32 to vector<16x16xf32>
    %962 = arith.mulf %961, %607 : vector<16x16xf32>
    %963 = arith.addf %959, %962 : vector<16x16xf32>
    %c61_116 = arith.constant 61 : index
    %964 = memref.load %arg3[%c61_116] : memref<144xf32, #tpu.memory_space<smem>>
    %965 = vector.broadcast %964 : f32 to vector<16x16xf32>
    %966 = arith.mulf %965, %608 : vector<16x16xf32>
    %967 = arith.addf %963, %966 : vector<16x16xf32>
    %c62_117 = arith.constant 62 : index
    %968 = memref.load %arg3[%c62_117] : memref<144xf32, #tpu.memory_space<smem>>
    %969 = vector.broadcast %968 : f32 to vector<16x16xf32>
    %970 = arith.mulf %969, %609 : vector<16x16xf32>
    %971 = arith.addf %967, %970 : vector<16x16xf32>
    %972 = arith.maximumf %936, %971 : vector<16x16xf32>
    %c90_118 = arith.constant 90 : index
    %973 = memref.load %arg3[%c90_118] : memref<144xf32, #tpu.memory_space<smem>>
    %974 = vector.broadcast %973 : f32 to vector<16x16xf32>
    %975 = arith.mulf %974, %601 : vector<16x16xf32>
    %c91_119 = arith.constant 91 : index
    %976 = memref.load %arg3[%c91_119] : memref<144xf32, #tpu.memory_space<smem>>
    %977 = vector.broadcast %976 : f32 to vector<16x16xf32>
    %978 = arith.mulf %977, %602 : vector<16x16xf32>
    %979 = arith.addf %975, %978 : vector<16x16xf32>
    %c92_120 = arith.constant 92 : index
    %980 = memref.load %arg3[%c92_120] : memref<144xf32, #tpu.memory_space<smem>>
    %981 = vector.broadcast %980 : f32 to vector<16x16xf32>
    %982 = arith.mulf %981, %603 : vector<16x16xf32>
    %983 = arith.addf %979, %982 : vector<16x16xf32>
    %c93_121 = arith.constant 93 : index
    %984 = memref.load %arg3[%c93_121] : memref<144xf32, #tpu.memory_space<smem>>
    %985 = vector.broadcast %984 : f32 to vector<16x16xf32>
    %986 = arith.mulf %985, %604 : vector<16x16xf32>
    %987 = arith.addf %983, %986 : vector<16x16xf32>
    %c94_122 = arith.constant 94 : index
    %988 = memref.load %arg3[%c94_122] : memref<144xf32, #tpu.memory_space<smem>>
    %989 = vector.broadcast %988 : f32 to vector<16x16xf32>
    %990 = arith.mulf %989, %605 : vector<16x16xf32>
    %991 = arith.addf %987, %990 : vector<16x16xf32>
    %c95_123 = arith.constant 95 : index
    %992 = memref.load %arg3[%c95_123] : memref<144xf32, #tpu.memory_space<smem>>
    %993 = vector.broadcast %992 : f32 to vector<16x16xf32>
    %994 = arith.mulf %993, %606 : vector<16x16xf32>
    %995 = arith.addf %991, %994 : vector<16x16xf32>
    %c96_124 = arith.constant 96 : index
    %996 = memref.load %arg3[%c96_124] : memref<144xf32, #tpu.memory_space<smem>>
    %997 = vector.broadcast %996 : f32 to vector<16x16xf32>
    %998 = arith.mulf %997, %607 : vector<16x16xf32>
    %999 = arith.addf %995, %998 : vector<16x16xf32>
    %c97_125 = arith.constant 97 : index
    %1000 = memref.load %arg3[%c97_125] : memref<144xf32, #tpu.memory_space<smem>>
    %1001 = vector.broadcast %1000 : f32 to vector<16x16xf32>
    %1002 = arith.mulf %1001, %608 : vector<16x16xf32>
    %1003 = arith.addf %999, %1002 : vector<16x16xf32>
    %c98_126 = arith.constant 98 : index
    %1004 = memref.load %arg3[%c98_126] : memref<144xf32, #tpu.memory_space<smem>>
    %1005 = vector.broadcast %1004 : f32 to vector<16x16xf32>
    %1006 = arith.mulf %1005, %609 : vector<16x16xf32>
    %1007 = arith.addf %1003, %1006 : vector<16x16xf32>
    %1008 = arith.maximumf %972, %1007 : vector<16x16xf32>
    %c126_127 = arith.constant 126 : index
    %1009 = memref.load %arg3[%c126_127] : memref<144xf32, #tpu.memory_space<smem>>
    %1010 = vector.broadcast %1009 : f32 to vector<16x16xf32>
    %1011 = arith.mulf %1010, %601 : vector<16x16xf32>
    %c127_128 = arith.constant 127 : index
    %1012 = memref.load %arg3[%c127_128] : memref<144xf32, #tpu.memory_space<smem>>
    %1013 = vector.broadcast %1012 : f32 to vector<16x16xf32>
    %1014 = arith.mulf %1013, %602 : vector<16x16xf32>
    %1015 = arith.addf %1011, %1014 : vector<16x16xf32>
    %c128_129 = arith.constant 128 : index
    %1016 = memref.load %arg3[%c128_129] : memref<144xf32, #tpu.memory_space<smem>>
    %1017 = vector.broadcast %1016 : f32 to vector<16x16xf32>
    %1018 = arith.mulf %1017, %603 : vector<16x16xf32>
    %1019 = arith.addf %1015, %1018 : vector<16x16xf32>
    %c129_130 = arith.constant 129 : index
    %1020 = memref.load %arg3[%c129_130] : memref<144xf32, #tpu.memory_space<smem>>
    %1021 = vector.broadcast %1020 : f32 to vector<16x16xf32>
    %1022 = arith.mulf %1021, %604 : vector<16x16xf32>
    %1023 = arith.addf %1019, %1022 : vector<16x16xf32>
    %c130_131 = arith.constant 130 : index
    %1024 = memref.load %arg3[%c130_131] : memref<144xf32, #tpu.memory_space<smem>>
    %1025 = vector.broadcast %1024 : f32 to vector<16x16xf32>
    %1026 = arith.mulf %1025, %605 : vector<16x16xf32>
    %1027 = arith.addf %1023, %1026 : vector<16x16xf32>
    %c131_132 = arith.constant 131 : index
    %1028 = memref.load %arg3[%c131_132] : memref<144xf32, #tpu.memory_space<smem>>
    %1029 = vector.broadcast %1028 : f32 to vector<16x16xf32>
    %1030 = arith.mulf %1029, %606 : vector<16x16xf32>
    %1031 = arith.addf %1027, %1030 : vector<16x16xf32>
    %c132_133 = arith.constant 132 : index
    %1032 = memref.load %arg3[%c132_133] : memref<144xf32, #tpu.memory_space<smem>>
    %1033 = vector.broadcast %1032 : f32 to vector<16x16xf32>
    %1034 = arith.mulf %1033, %607 : vector<16x16xf32>
    %1035 = arith.addf %1031, %1034 : vector<16x16xf32>
    %c133_134 = arith.constant 133 : index
    %1036 = memref.load %arg3[%c133_134] : memref<144xf32, #tpu.memory_space<smem>>
    %1037 = vector.broadcast %1036 : f32 to vector<16x16xf32>
    %1038 = arith.mulf %1037, %608 : vector<16x16xf32>
    %1039 = arith.addf %1035, %1038 : vector<16x16xf32>
    %c134_135 = arith.constant 134 : index
    %1040 = memref.load %arg3[%c134_135] : memref<144xf32, #tpu.memory_space<smem>>
    %1041 = vector.broadcast %1040 : f32 to vector<16x16xf32>
    %1042 = arith.mulf %1041, %609 : vector<16x16xf32>
    %1043 = arith.addf %1039, %1042 : vector<16x16xf32>
    %1044 = arith.maximumf %1008, %1043 : vector<16x16xf32>
    %c1_136 = arith.constant 1 : index
    %c2_137 = arith.constant 2 : index
    %c0_138 = arith.constant 0 : index
    %c0_139 = arith.constant 0 : index
    %1045 = vector.load %arg4[%c1_136, %c2_137, %c0_138, %c0_139] : memref<2x4x16x16xf32, #tpu.memory_space<vmem>>, vector<1x1x16x16xf32>
    %1046 = vector.shape_cast %1045 : vector<1x1x16x16xf32> to vector<16x16xf32>
    %1047 = vector.shape_cast %1044 : vector<16x16xf32> to vector<1x1x16x16xf32>
    tpu.vector_store %arg4[%c1_136, %c2_137, %c0_138, %c0_139], %1047 {strides = array<i32>} : memref<2x4x16x16xf32, #tpu.memory_space<vmem>>, vector<1x1x16x16xf32>,
    %c27_140 = arith.constant 27 : index
    %1048 = memref.load %arg3[%c27_140] : memref<144xf32, #tpu.memory_space<smem>>
    %1049 = vector.broadcast %1048 : f32 to vector<16x16xf32>
    %1050 = arith.mulf %1049, %601 : vector<16x16xf32>
    %c28_141 = arith.constant 28 : index
    %1051 = memref.load %arg3[%c28_141] : memref<144xf32, #tpu.memory_space<smem>>
    %1052 = vector.broadcast %1051 : f32 to vector<16x16xf32>
    %1053 = arith.mulf %1052, %602 : vector<16x16xf32>
    %1054 = arith.addf %1050, %1053 : vector<16x16xf32>
    %c29_142 = arith.constant 29 : index
    %1055 = memref.load %arg3[%c29_142] : memref<144xf32, #tpu.memory_space<smem>>
    %1056 = vector.broadcast %1055 : f32 to vector<16x16xf32>
    %1057 = arith.mulf %1056, %603 : vector<16x16xf32>
    %1058 = arith.addf %1054, %1057 : vector<16x16xf32>
    %c30_143 = arith.constant 30 : index
    %1059 = memref.load %arg3[%c30_143] : memref<144xf32, #tpu.memory_space<smem>>
    %1060 = vector.broadcast %1059 : f32 to vector<16x16xf32>
    %1061 = arith.mulf %1060, %604 : vector<16x16xf32>
    %1062 = arith.addf %1058, %1061 : vector<16x16xf32>
    %c31_144 = arith.constant 31 : index
    %1063 = memref.load %arg3[%c31_144] : memref<144xf32, #tpu.memory_space<smem>>
    %1064 = vector.broadcast %1063 : f32 to vector<16x16xf32>
    %1065 = arith.mulf %1064, %605 : vector<16x16xf32>
    %1066 = arith.addf %1062, %1065 : vector<16x16xf32>
    %c32_145 = arith.constant 32 : index
    %1067 = memref.load %arg3[%c32_145] : memref<144xf32, #tpu.memory_space<smem>>
    %1068 = vector.broadcast %1067 : f32 to vector<16x16xf32>
    %1069 = arith.mulf %1068, %606 : vector<16x16xf32>
    %1070 = arith.addf %1066, %1069 : vector<16x16xf32>
    %c33_146 = arith.constant 33 : index
    %1071 = memref.load %arg3[%c33_146] : memref<144xf32, #tpu.memory_space<smem>>
    %1072 = vector.broadcast %1071 : f32 to vector<16x16xf32>
    %1073 = arith.mulf %1072, %607 : vector<16x16xf32>
    %1074 = arith.addf %1070, %1073 : vector<16x16xf32>
    %c34_147 = arith.constant 34 : index
    %1075 = memref.load %arg3[%c34_147] : memref<144xf32, #tpu.memory_space<smem>>
    %1076 = vector.broadcast %1075 : f32 to vector<16x16xf32>
    %1077 = arith.mulf %1076, %608 : vector<16x16xf32>
    %1078 = arith.addf %1074, %1077 : vector<16x16xf32>
    %c35_148 = arith.constant 35 : index
    %1079 = memref.load %arg3[%c35_148] : memref<144xf32, #tpu.memory_space<smem>>
    %1080 = vector.broadcast %1079 : f32 to vector<16x16xf32>
    %1081 = arith.mulf %1080, %609 : vector<16x16xf32>
    %1082 = arith.addf %1078, %1081 : vector<16x16xf32>
    %c63_149 = arith.constant 63 : index
    %1083 = memref.load %arg3[%c63_149] : memref<144xf32, #tpu.memory_space<smem>>
    %1084 = vector.broadcast %1083 : f32 to vector<16x16xf32>
    %1085 = arith.mulf %1084, %601 : vector<16x16xf32>
    %c64_150 = arith.constant 64 : index
    %1086 = memref.load %arg3[%c64_150] : memref<144xf32, #tpu.memory_space<smem>>
    %1087 = vector.broadcast %1086 : f32 to vector<16x16xf32>
    %1088 = arith.mulf %1087, %602 : vector<16x16xf32>
    %1089 = arith.addf %1085, %1088 : vector<16x16xf32>
    %c65_151 = arith.constant 65 : index
    %1090 = memref.load %arg3[%c65_151] : memref<144xf32, #tpu.memory_space<smem>>
    %1091 = vector.broadcast %1090 : f32 to vector<16x16xf32>
    %1092 = arith.mulf %1091, %603 : vector<16x16xf32>
    %1093 = arith.addf %1089, %1092 : vector<16x16xf32>
    %c66_152 = arith.constant 66 : index
    %1094 = memref.load %arg3[%c66_152] : memref<144xf32, #tpu.memory_space<smem>>
    %1095 = vector.broadcast %1094 : f32 to vector<16x16xf32>
    %1096 = arith.mulf %1095, %604 : vector<16x16xf32>
    %1097 = arith.addf %1093, %1096 : vector<16x16xf32>
    %c67_153 = arith.constant 67 : index
    %1098 = memref.load %arg3[%c67_153] : memref<144xf32, #tpu.memory_space<smem>>
    %1099 = vector.broadcast %1098 : f32 to vector<16x16xf32>
    %1100 = arith.mulf %1099, %605 : vector<16x16xf32>
    %1101 = arith.addf %1097, %1100 : vector<16x16xf32>
    %c68_154 = arith.constant 68 : index
    %1102 = memref.load %arg3[%c68_154] : memref<144xf32, #tpu.memory_space<smem>>
    %1103 = vector.broadcast %1102 : f32 to vector<16x16xf32>
    %1104 = arith.mulf %1103, %606 : vector<16x16xf32>
    %1105 = arith.addf %1101, %1104 : vector<16x16xf32>
    %c69_155 = arith.constant 69 : index
    %1106 = memref.load %arg3[%c69_155] : memref<144xf32, #tpu.memory_space<smem>>
    %1107 = vector.broadcast %1106 : f32 to vector<16x16xf32>
    %1108 = arith.mulf %1107, %607 : vector<16x16xf32>
    %1109 = arith.addf %1105, %1108 : vector<16x16xf32>
    %c70_156 = arith.constant 70 : index
    %1110 = memref.load %arg3[%c70_156] : memref<144xf32, #tpu.memory_space<smem>>
    %1111 = vector.broadcast %1110 : f32 to vector<16x16xf32>
    %1112 = arith.mulf %1111, %608 : vector<16x16xf32>
    %1113 = arith.addf %1109, %1112 : vector<16x16xf32>
    %c71_157 = arith.constant 71 : index
    %1114 = memref.load %arg3[%c71_157] : memref<144xf32, #tpu.memory_space<smem>>
    %1115 = vector.broadcast %1114 : f32 to vector<16x16xf32>
    %1116 = arith.mulf %1115, %609 : vector<16x16xf32>
    %1117 = arith.addf %1113, %1116 : vector<16x16xf32>
    %1118 = arith.maximumf %1082, %1117 : vector<16x16xf32>
    %c99_158 = arith.constant 99 : index
    %1119 = memref.load %arg3[%c99_158] : memref<144xf32, #tpu.memory_space<smem>>
    %1120 = vector.broadcast %1119 : f32 to vector<16x16xf32>
    %1121 = arith.mulf %1120, %601 : vector<16x16xf32>
    %c100_159 = arith.constant 100 : index
    %1122 = memref.load %arg3[%c100_159] : memref<144xf32, #tpu.memory_space<smem>>
    %1123 = vector.broadcast %1122 : f32 to vector<16x16xf32>
    %1124 = arith.mulf %1123, %602 : vector<16x16xf32>
    %1125 = arith.addf %1121, %1124 : vector<16x16xf32>
    %c101_160 = arith.constant 101 : index
    %1126 = memref.load %arg3[%c101_160] : memref<144xf32, #tpu.memory_space<smem>>
    %1127 = vector.broadcast %1126 : f32 to vector<16x16xf32>
    %1128 = arith.mulf %1127, %603 : vector<16x16xf32>
    %1129 = arith.addf %1125, %1128 : vector<16x16xf32>
    %c102_161 = arith.constant 102 : index
    %1130 = memref.load %arg3[%c102_161] : memref<144xf32, #tpu.memory_space<smem>>
    %1131 = vector.broadcast %1130 : f32 to vector<16x16xf32>
    %1132 = arith.mulf %1131, %604 : vector<16x16xf32>
    %1133 = arith.addf %1129, %1132 : vector<16x16xf32>
    %c103_162 = arith.constant 103 : index
    %1134 = memref.load %arg3[%c103_162] : memref<144xf32, #tpu.memory_space<smem>>
    %1135 = vector.broadcast %1134 : f32 to vector<16x16xf32>
    %1136 = arith.mulf %1135, %605 : vector<16x16xf32>
    %1137 = arith.addf %1133, %1136 : vector<16x16xf32>
    %c104_163 = arith.constant 104 : index
    %1138 = memref.load %arg3[%c104_163] : memref<144xf32, #tpu.memory_space<smem>>
    %1139 = vector.broadcast %1138 : f32 to vector<16x16xf32>
    %1140 = arith.mulf %1139, %606 : vector<16x16xf32>
    %1141 = arith.addf %1137, %1140 : vector<16x16xf32>
    %c105_164 = arith.constant 105 : index
    %1142 = memref.load %arg3[%c105_164] : memref<144xf32, #tpu.memory_space<smem>>
    %1143 = vector.broadcast %1142 : f32 to vector<16x16xf32>
    %1144 = arith.mulf %1143, %607 : vector<16x16xf32>
    %1145 = arith.addf %1141, %1144 : vector<16x16xf32>
    %c106_165 = arith.constant 106 : index
    %1146 = memref.load %arg3[%c106_165] : memref<144xf32, #tpu.memory_space<smem>>
    %1147 = vector.broadcast %1146 : f32 to vector<16x16xf32>
    %1148 = arith.mulf %1147, %608 : vector<16x16xf32>
    %1149 = arith.addf %1145, %1148 : vector<16x16xf32>
    %c107_166 = arith.constant 107 : index
    %1150 = memref.load %arg3[%c107_166] : memref<144xf32, #tpu.memory_space<smem>>
    %1151 = vector.broadcast %1150 : f32 to vector<16x16xf32>
    %1152 = arith.mulf %1151, %609 : vector<16x16xf32>
    %1153 = arith.addf %1149, %1152 : vector<16x16xf32>
    %1154 = arith.maximumf %1118, %1153 : vector<16x16xf32>
    %c135_167 = arith.constant 135 : index
    %1155 = memref.load %arg3[%c135_167] : memref<144xf32, #tpu.memory_space<smem>>
    %1156 = vector.broadcast %1155 : f32 to vector<16x16xf32>
    %1157 = arith.mulf %1156, %601 : vector<16x16xf32>
    %c136_168 = arith.constant 136 : index
    %1158 = memref.load %arg3[%c136_168] : memref<144xf32, #tpu.memory_space<smem>>
    %1159 = vector.broadcast %1158 : f32 to vector<16x16xf32>
    %1160 = arith.mulf %1159, %602 : vector<16x16xf32>
    %1161 = arith.addf %1157, %1160 : vector<16x16xf32>
    %c137_169 = arith.constant 137 : index
    %1162 = memref.load %arg3[%c137_169] : memref<144xf32, #tpu.memory_space<smem>>
    %1163 = vector.broadcast %1162 : f32 to vector<16x16xf32>
    %1164 = arith.mulf %1163, %603 : vector<16x16xf32>
    %1165 = arith.addf %1161, %1164 : vector<16x16xf32>
    %c138_170 = arith.constant 138 : index
    %1166 = memref.load %arg3[%c138_170] : memref<144xf32, #tpu.memory_space<smem>>
    %1167 = vector.broadcast %1166 : f32 to vector<16x16xf32>
    %1168 = arith.mulf %1167, %604 : vector<16x16xf32>
    %1169 = arith.addf %1165, %1168 : vector<16x16xf32>
    %c139_171 = arith.constant 139 : index
    %1170 = memref.load %arg3[%c139_171] : memref<144xf32, #tpu.memory_space<smem>>
    %1171 = vector.broadcast %1170 : f32 to vector<16x16xf32>
    %1172 = arith.mulf %1171, %605 : vector<16x16xf32>
    %1173 = arith.addf %1169, %1172 : vector<16x16xf32>
    %c140_172 = arith.constant 140 : index
    %1174 = memref.load %arg3[%c140_172] : memref<144xf32, #tpu.memory_space<smem>>
    %1175 = vector.broadcast %1174 : f32 to vector<16x16xf32>
    %1176 = arith.mulf %1175, %606 : vector<16x16xf32>
    %1177 = arith.addf %1173, %1176 : vector<16x16xf32>
    %c141_173 = arith.constant 141 : index
    %1178 = memref.load %arg3[%c141_173] : memref<144xf32, #tpu.memory_space<smem>>
    %1179 = vector.broadcast %1178 : f32 to vector<16x16xf32>
    %1180 = arith.mulf %1179, %607 : vector<16x16xf32>
    %1181 = arith.addf %1177, %1180 : vector<16x16xf32>
    %c142_174 = arith.constant 142 : index
    %1182 = memref.load %arg3[%c142_174] : memref<144xf32, #tpu.memory_space<smem>>
    %1183 = vector.broadcast %1182 : f32 to vector<16x16xf32>
    %1184 = arith.mulf %1183, %608 : vector<16x16xf32>
    %1185 = arith.addf %1181, %1184 : vector<16x16xf32>
    %c143_175 = arith.constant 143 : index
    %1186 = memref.load %arg3[%c143_175] : memref<144xf32, #tpu.memory_space<smem>>
    %1187 = vector.broadcast %1186 : f32 to vector<16x16xf32>
    %1188 = arith.mulf %1187, %609 : vector<16x16xf32>
    %1189 = arith.addf %1185, %1188 : vector<16x16xf32>
    %1190 = arith.maximumf %1154, %1189 : vector<16x16xf32>
    %c1_176 = arith.constant 1 : index
    %c3_177 = arith.constant 3 : index
    %c0_178 = arith.constant 0 : index
    %c0_179 = arith.constant 0 : index
    %1191 = vector.load %arg4[%c1_176, %c3_177, %c0_178, %c0_179] : memref<2x4x16x16xf32, #tpu.memory_space<vmem>>, vector<1x1x16x16xf32>
    %1192 = vector.shape_cast %1191 : vector<1x1x16x16xf32> to vector<16x16xf32>
    %1193 = vector.shape_cast %1190 : vector<16x16xf32> to vector<1x1x16x16xf32>
    tpu.vector_store %arg4[%c1_176, %c3_177, %c0_178, %c0_179], %1193 {strides = array<i32>} : memref<2x4x16x16xf32, #tpu.memory_space<vmem>>, vector<1x1x16x16xf32>,
    return
  }
  func.func @transform_0(%arg0: i32, %arg1: i32) -> (i32, i32, i32) {
    %c0_i32 = arith.constant 0 : i32
    %c0_i32_0 = arith.constant 0 : i32
    %c0_i32_1 = arith.constant 0 : i32
    return %arg0, %c0_i32, %c0_i32_0 : i32, i32, i32
  }
  func.func @transform_1(%arg0: i32, %arg1: i32) -> i32 {
    %c0_i32 = arith.constant 0 : i32
    %c0_i32_0 = arith.constant 0 : i32
    return %c0_i32 : i32
  }
  func.func @transform_2(%arg0: i32, %arg1: i32) -> (i32, i32, i32, i32) {
    %c0_i32 = arith.constant 0 : i32
    %c0_i32_0 = arith.constant 0 : i32
    %c0_i32_1 = arith.constant 0 : i32
    return %arg0, %c0_i32, %arg1, %c0_i32_0 : i32, i32, i32, i32
  }
}

</mosaic_0001>

<bundles_post_ra>
// kernel: tpu_custom_call.1
= control target key start
LH: loop header
LB: loop body
LE: loop exit
PB: predicated region body
PF: predicated region fallthrough
CT: control target
= control target key end

     0   :  { %7 = vsyncpa [#allocation4], 0  ;;  %s8994_s0 = inlined_call_operand.vmem [shape: f32[2,18,18], index: 0, kind: input, shape index: {}]   ;;  %s8995_s1 = inlined_call_operand.vmem [shape: f32[144], index: 1, kind: input, shape index: {}]   ;;  %s8996_s2 = inlined_call_operand.hbm [shape: f32[2,4,16,16], index: 2, kind: output, shape index: {}]  }
   0x1   :  { %8 = vsyncpa [#allocation3], 0  ;;  %s17_s11 = sshll.u32 %s8995_s1, 4  ;;  %s18_s11 = int_to_ptr.vmem [resolvable:$true] %s17_s11 }
   0x2   :  { %s5242_s12 = scalar_lea.vmem %s18_s11, 32  ;;  %p5247_p1 = scmp.lt.s32.totalorder %s18_s11, %s18_s11 }
   0x3   :  { %p5243_p0 = scmp.ne.s32.totalorder %s18_s11, %s5242_s12  ;;  %p5248_p2 = scmp.lt.s32.totalorder %s5242_s12, %s5242_s12 }
   0x5   :  { %p5249_p3 = por %p5248_p2, %p5247_p1 }
   0x7   :  { %p5250_p4 = pnand %p5249_p3, %p5243_p0 }
   0x9   :  { %5253 = shalt.err (!%p5250_p4)
}
   0xa   :  { %s5278_s13 = smov [#allocation2]  }
   0xb   :  { %20 = dma.vmem_to_smem %s18_s11, 32, %s5278_s13, [#allocation4]  }
   0xc   :  { %5274 = dma.done.wait [#allocation4], 32  }
   0xd   :  { %5275 = vsyncadd [#allocation4], 4294967264 }
   0xe   :  { %24 = sfence }
   0xf   :  { %s4928_s14 = sld [smem:[#allocation2 + $0x2]]  ;;  %v5305_v0 = vld [vmem:[%s8994_s0] sm:$0xff]  ;;  %v5310_v1 = vld [vmem:[%s8994_s0 + $0x8] sm:$0xff]  ;;  %v5315_v3 = vld [vmem:[%s8994_s0 + $0x10] sm:$0x3]  ;;  %vm70_vm0 = vcmask 1046528  }
  0x10   :  { %s4927_s15 = sld [smem:[#allocation2 + $0x1]]  ;;  %s5279_s25 = smov 126   ;;  %vm130_vm1 = vcmask 1045504   ;;  %vm638_vm2 = vcmask 130048  }
  0x11   :  { %s4930_s16 = sld [smem:[#allocation2 + $0x4]]  ;;  %s5280_s26 = smov 127  }
  0x12   :  { %s4931_s17 = sld [smem:[#allocation2 + $0x5]] }
  0x13   :  { %s4933_s1 = sld [smem:[#allocation2 + $0x7]] }
  0x14   :  { %s5318_s24 = sld [smem:[#allocation2 + $0x8]] }
  0x15   :  { %v49_v2 = vstv %s4928_s14  ;;  %s4936_s27 = sld [smem:[#allocation2 + $0x25]] }
  0x16   :  { %v50_v4 = vmul.f32 %v49_v2, %v5305_v0  ;;  %v35_v5 = vstv %s4927_s15  ;;  %v51_v6 = vmul.f32 %v49_v2, %v5310_v1  ;;  %s4939_s28 = sld [smem:[#allocation2 + $0x28]] }
  0x17   :  { %v36_v7 = vmul.f32 %v35_v5, %v5305_v0  ;;  %v81_v8 = vstv %s4930_s16  ;;  %v37_v13 = vmul.f32 %v35_v5, %v5310_v1  ;;  %s4937_s29 = sld [smem:[#allocation2 + $0x26]] }
  0x18   :  { %54 = vrot.lane.b32.xlu1 %v50_v4, %s5279_s25  ;;  %v83_v9 = vmul.f32 %v81_v8, %v5310_v1  ;;  %v84_v10 = vmul.f32 %v81_v8, %v5315_v3  ;;  %v82_v11 = vmul.f32 %v81_v8, %v5305_v0  ;;  %v102_v12 = vstv %s4931_s17  ;;  %s4940_s30 = sld [smem:[#allocation2 + $0x29]] }
  0x19   :  { %40 = vrot.lane.b32.xlu0 %v36_v7, %s5280_s26  ;;  %v104_v14 = vmul.f32 %v102_v12, %v5310_v1  ;;  %v105_v15 = vmul.f32 %v102_v12, %v5315_v3  ;;  %v141_v16 = vstv %s4933_s1  ;;  %v103_v20 = vmul.f32 %v102_v12, %v5305_v0  ;;  %s4942_s3 = sld [smem:[#allocation2 + $0x2b]] }
  0x1a   :  { %v89_v17 = vrot.slane %v83_v9, 1  ;;  %v91_v18 = vrot.slane %v84_v10, 1  ;;  %v88_v19 = vrot.slane %v82_v11, 1  ;;  %v143_v21 = vmul.f32 %v141_v16, %v5310_v1  ;;  %s4943_s4 = sld [smem:[#allocation2 + $0x2c]] }
  0x1b   :  { %v110_v23 = vrot.slane %v104_v14, 1  ;;  %v112_v24 = vrot.slane %v105_v15, 1  ;;  %v144_v25 = vmul.f32 %v141_v16, %v5315_v3  ;;  %v109_v27 = vrot.slane %v103_v20, 1  ;;  %s4945_s5 = sld [smem:[#allocation2 + $0x49]] }
  0x1c   :  { %56 = vrot.lane.b32.xlu1 %v51_v6, %s5279_s25  ;;  %v92_v22 = vsel %vm70_vm0, %v89_v17, %v91_v18  ;;  %v90_v26 = vsel %vm70_vm0, %v88_v19, %v89_v17  ;;  %v142_v28 = vmul.f32 %v141_v16, %v5305_v0  ;;  %v162_v29 = vstv %s5318_s24  ;;  %s4948_s6 = sld [smem:[#allocation2 + $0x4c]] }
  0x1d   :  { %42 = vrot.lane.b32.xlu0 %v37_v13, %s5280_s26  ;;  %v149_v30 = vrot.slane %v143_v21, 2  ;;  %v113_v31 = vsel %vm70_vm0, %v110_v23, %v112_v24  ;;  %v151_v32 = vrot.slane %v144_v25, 2  ;;  %v164_v33 = vmul.f32 %v162_v29, %v5310_v1  ;;  %s5383_s7 = sld [smem:[#allocation2 + $0x4a]] }
  0x1e   :  { %v165_v34 = vmul.f32 %v162_v29, %v5315_v3  ;;  %v111_v35 = vsel %vm70_vm0, %v109_v27, %v110_v23  ;;  %v148_v36 = vrot.slane %v142_v28, 2  ;;  %v163_v37 = vmul.f32 %v162_v29, %v5305_v0  ;;  %s4949_s8 = sld [smem:[#allocation2 + $0x4d]] }
  0x1f   :  { %v152_v38 = vsel %vm130_vm1, %v149_v30, %v151_v32  ;;  %v170_v39 = vrot.slane %v164_v33, 2  ;;  %v187_v44 = vstv %s4936_s27  ;;  %v232_v46 = vstv %s4939_s28  ;;  %s4951_s9 = sld [smem:[#allocation2 + $0x4f]] }
  0x20   :  { %95 = vrot.lane.b32.xlu1 %v92_v22, %s5280_s26  ;;  %v172_v40 = vrot.slane %v165_v34, 2  ;;  %v150_v41 = vsel %vm130_vm1, %v148_v36, %v149_v30  ;;  %v169_v42 = vrot.slane %v163_v37, 2  ;;  %v189_v47 = vmul.f32 %v187_v44, %v5310_v1  ;;  %s4952_s10 = sld [smem:[#allocation2 + $0x50]] }
  0x21   :  { %93 = vrot.lane.b32.xlu0 %v90_v26, %s5280_s26  ;;  %v188_v48 = vmul.f32 %v187_v44, %v5305_v0  ;;  %v201_v49 = vstv %s4937_s29  ;;  %v234_v50 = vmul.f32 %v232_v46, %v5310_v1  ;;  %v235_v51 = vmul.f32 %v232_v46, %v5315_v3  ;;  %s4954_s11 = sld [smem:[#allocation2 + $0x6d]] }
  0x22   :  { %v173_v43 = vsel %vm130_vm1, %v170_v39, %v172_v40  ;;  %v171_v45 = vsel %vm130_vm1, %v169_v42, %v170_v39  ;;  %v233_v52 = vmul.f32 %v232_v46, %v5305_v0  ;;  %v253_v53 = vstv %s4940_s30  ;;  %s4957_s12 = sld [smem:[#allocation2 + $0x70]] }
  0x23   :  { %v203_v54 = vmul.f32 %v201_v49, %v5310_v1  ;;  %v202_v55 = vmul.f32 %v201_v49, %v5305_v0  ;;  %v291_v56 = vstv %s4942_s3  ;;  %v240_v57 = vrot.slane %v234_v50, 1  ;;  %s4955_s13 = sld [smem:[#allocation2 + $0x6e]] }
  0x24   :  { %116 = vrot.lane.b32.xlu1 %v113_v31, %s5279_s25  ;;  %v242_v58 = vrot.slane %v235_v51, 1  ;;  %v255_v59 = vmul.f32 %v253_v53, %v5310_v1  ;;  %v256_v60 = vmul.f32 %v253_v53, %v5315_v3  ;;  %v239_v61 = vrot.slane %v233_v52, 1  ;;  %s4958_s14 = sld [smem:[#allocation2 + $0x71]] }
  0x25   :  { %114 = vrot.lane.b32.xlu0 %v111_v35, %s5279_s25  ;;  %v254_v62 = vmul.f32 %v253_v53, %v5305_v0  ;;  %v293_v63 = vmul.f32 %v291_v56, %v5310_v1  ;;  %v294_v6 = vmul.f32 %v291_v56, %v5315_v3  ;;  %v292_v9 = vmul.f32 %v291_v56, %v5305_v0  ;;  %s4960_s15 = sld [smem:[#allocation2 + $0x73]] }
  0x26   :  { %v243_v2 = vsel %vm70_vm0, %v240_v57, %v242_v58  ;;  %v261_v4 = vrot.slane %v255_v59, 1  ;;  %v263_v5 = vrot.slane %v256_v60, 1  ;;  %v241_v7 = vsel %vm70_vm0, %v239_v61, %v240_v57  ;;  %s4961_s16 = sld [smem:[#allocation2 + $0x74]] }
  0x27   :  { %v260_v8 = vrot.slane %v254_v62, 1  ;;  %v312_v10 = vstv %s4943_s4  ;;  %v299_v11 = vrot.slane %v293_v63, 2  ;;  %v301_v13 = vrot.slane %v294_v6, 2  ;;  %s4963_s17 = sld [smem:[#allocation2 + $0xa]] }
  0x28   :  { %155 = vrot.lane.b32.xlu1 %v152_v38, %s5280_s26  ;;  %v264_v12 = vsel %vm70_vm0, %v261_v4, %v263_v5  ;;  %v314_v14 = vmul.f32 %v312_v10, %v5310_v1  ;;  %v315_v15 = vmul.f32 %v312_v10, %v5315_v3  ;;  %v298_v17 = vrot.slane %v292_v9, 2  ;;  %s4966_s18 = sld [smem:[#allocation2 + $0xd]] }
  0x29   :  { %153 = vrot.lane.b32.xlu0 %v150_v41, %s5280_s26  ;;  %v262_v16 = vsel %vm70_vm0, %v260_v8, %v261_v4  ;;  %v313_v18 = vmul.f32 %v312_v10, %v5305_v0  ;;  %v302_v19 = vsel %vm130_vm1, %v299_v11, %v301_v13  ;;  %v339_v25 = vstv %s4945_s5  ;;  %s5458_s19 = sld [smem:[#allocation2 + $0xb]] }
  0x2a   :  { %v320_v20 = vrot.slane %v314_v14, 2  ;;  %v322_v21 = vrot.slane %v315_v15, 2  ;;  %v300_v22 = vsel %vm130_vm1, %v298_v17, %v299_v11  ;;  %v384_v27 = vstv %s4948_s6  ;;  %s4967_s1 = sld [smem:[#allocation2 + $0xe]] }
  0x2b   :  { %v319_v23 = vrot.slane %v313_v18, 2  ;;  %v341_v28 = vmul.f32 %v339_v25, %v5310_v1  ;;  %v340_v29 = vmul.f32 %v339_v25, %v5305_v0  ;;  %v353_v30 = vstv %s5383_s7  ;;  %s4969_s20 = sld [smem:[#allocation2 + $0x10]] }
  0x2c   :  { %176 = vrot.lane.b32.xlu1 %v173_v43, %s5279_s25  ;;  %v323_v24 = vsel %vm130_vm1, %v320_v20, %v322_v21  ;;  %v386_v31 = vmul.f32 %v384_v27, %v5310_v1  ;;  %v387_v32 = vmul.f32 %v384_v27, %v5315_v3  ;;  %v405_v33 = vstv %s4949_s8  ;;  %s4970_s21 = sld [smem:[#allocation2 + $0x11]] }
  0x2d   :  { %174 = vrot.lane.b32.xlu0 %v171_v45, %s5279_s25  ;;  %v321_v26 = vsel %vm130_vm1, %v319_v23, %v320_v20  ;;  %v385_v34 = vmul.f32 %v384_v27, %v5305_v0  ;;  %v355_v35 = vmul.f32 %v353_v30, %v5310_v1  ;;  %v407_v36 = vmul.f32 %v405_v33, %v5310_v1  ;;  %s5491_s22 = sld [smem:[#allocation2 + $0x2e]] }
  0x2e   :  { %v408_v37 = vmul.f32 %v405_v33, %v5315_v3  ;;  %v354_v38 = vmul.f32 %v353_v30, %v5305_v0  ;;  %v392_v39 = vrot.slane %v386_v31, 1  ;;  %v394_v40 = vrot.slane %v387_v32, 1  ;;  %s4975_s23 = sld [smem:[#allocation2 + $0x31]] }
  0x2f   :  { %v391_v41 = vrot.slane %v385_v34, 1  ;;  %v406_v42 = vmul.f32 %v405_v33, %v5305_v0  ;;  %v443_v43 = vstv %s4951_s9  ;;  %v413_v44 = vrot.slane %v407_v36, 1  ;;  %s4973_s24 = sld [smem:[#allocation2 + $0x2f]] }
  0x30   :  { %194 = vrot.lane.b32.xlu1 %v189_v47, %s5280_s26  ;;  %v415_v45 = vrot.slane %v408_v37, 1  ;;  %v395_v46 = vsel %vm70_vm0, %v392_v39, %v394_v40  ;;  %v445_v47 = vmul.f32 %v443_v43, %v5310_v1  ;;  %v444_v51 = vmul.f32 %v443_v43, %v5305_v0  ;;  %s4976_s27 = sld [smem:[#allocation2 + $0x32]] }
  0x31   :  { %192 = vrot.lane.b32.xlu0 %v188_v48, %s5280_s26  ;;  %v446_v48 = vmul.f32 %v443_v43, %v5315_v3  ;;  %v393_v49 = vsel %vm70_vm0, %v391_v41, %v392_v39  ;;  %v412_v50 = vrot.slane %v406_v42, 1  ;;  %v464_v52 = vstv %s4952_s10  ;;  %s4978_s28 = sld [smem:[#allocation2 + $0x34]] }
  0x32   :  { %v416_v53 = vsel %vm70_vm0, %v413_v44, %v415_v45  ;;  %v466_v56 = vmul.f32 %v464_v52, %v5310_v1  ;;  %v467_v57 = vmul.f32 %v464_v52, %v5315_v3  ;;  %v450_v59 = vrot.slane %v444_v51, 2  ;;  %s4979_s29 = sld [smem:[#allocation2 + $0x35]] }
  0x33   :  { %v414_v58 = vsel %vm70_vm0, %v412_v50, %v413_v44  ;;  %v465_v60 = vmul.f32 %v464_v52, %v5305_v0  ;;  %v491_v6 = vstv %s4954_s11  ;;  %v536_v8 = vstv %s4957_s12  ;;  %s4929_s30 = sld [smem:[#allocation2 + $0x3]] }
  0x34   :  { %208 = vrot.lane.b32.xlu1 %v203_v54, %s5279_s25  ;;  %v451_v54 = vrot.slane %v445_v47, 2  ;;  %v472_v62 = vrot.slane %v466_v56, 2  ;;  %v474_v63 = vrot.slane %v467_v57, 2  ;;  %v493_v9 = vmul.f32 %v491_v6, %v5310_v1  ;;  %s5544_s3 = sld [smem:[#allocation2]] }
  0x35   :  { %206 = vrot.lane.b32.xlu0 %v202_v55, %s5279_s25  ;;  %v453_v55 = vrot.slane %v446_v48, 2  ;;  %v471_v4 = vrot.slane %v465_v60, 2  ;;  %v492_v10 = vmul.f32 %v491_v6, %v5305_v0  ;;  %v505_v11 = vstv %s4955_s13  ;;  %s5551_s4 = sld [smem:[#allocation2 + $0x52]] }
  0x36   :  { %v475_v5 = vsel %vm130_vm1, %v472_v62, %v474_v63  ;;  %v539_v13 = vmul.f32 %v536_v8, %v5315_v3  ;;  %v537_v14 = vmul.f32 %v536_v8, %v5305_v0  ;;  %v557_v15 = vstv %s4958_s14  ;;  %s4984_s5 = sld [smem:[#allocation2 + $0x55]] }
  0x37   :  { %v454_v61 = vsel %vm130_vm1, %v451_v54, %v453_v55  ;;  %v506_v17 = vmul.f32 %v505_v11, %v5305_v0  ;;  %v595_v18 = vstv %s4960_s15  ;;  %v559_v21 = vmul.f32 %v557_v15, %v5310_v1  ;;  %s4932_s6 = sld [smem:[#allocation2 + $0x6]] }
  0x38   :  { %246 = vrot.lane.b32.xlu1 %v243_v2, %s5280_s26  ;;  %v452_v2 = vsel %vm130_vm1, %v450_v59, %v451_v54  ;;  %v546_v20 = vrot.slane %v539_v13, 1  ;;  %v543_v23 = vrot.slane %v537_v14, 1  ;;  %v597_v25 = vmul.f32 %v595_v18, %v5310_v1  ;;  %s5560_s7 = sld [smem:[#allocation2 + $0x53]] }
  0x39   :  { %244 = vrot.lane.b32.xlu0 %v241_v7, %s5280_s26  ;;  %v473_v7 = vsel %vm130_vm1, %v471_v4, %v472_v62  ;;  %v565_v27 = vrot.slane %v559_v21, 1  ;;  %v596_v32 = vmul.f32 %v595_v18, %v5305_v0  ;;  %v616_v33 = vstv %s4961_s16  ;;  %s4985_s8 = sld [smem:[#allocation2 + $0x56]] }
  0x3a   :  { %v603_v34 = vrot.slane %v597_v25, 2  ;;  %v618_v37 = vmul.f32 %v616_v33, %v5310_v1  ;;  %v617_v41 = vmul.f32 %v616_v33, %v5305_v0  ;;  %v646_v48 = vstv %s4963_s17  ;;  %s5571_s9 = sld [smem:[#allocation2 + $0x27]] }
  0x3b   :  { %v602_v40 = vrot.slane %v596_v32, 2  ;;  %v691_v50 = vstv %s4966_s18  ;;  %v648_v51 = vmul.f32 %v646_v48, %v5310_v1  ;;  %v647_v52 = vmul.f32 %v646_v48, %v5305_v0  ;;  %s5581_s10 = sld [smem:[#allocation2 + $0x58]] }
  0x3c   :  { %267 = vrot.lane.b32.xlu1 %v264_v12, %s5279_s25  ;;  %v538_v12 = vmul.f32 %v536_v8, %v5310_v1  ;;  %v624_v43 = vrot.slane %v618_v37, 2  ;;  %v693_v54 = vmul.f32 %v691_v50, %v5310_v1  ;;  %v694_v55 = vmul.f32 %v691_v50, %v5315_v3  ;;  %s5589_s11 = sld [smem:[#allocation2 + $0x2a]] }
  0x3d   :  { %265 = vrot.lane.b32.xlu0 %v262_v16, %s5279_s25  ;;  %v507_v16 = vmul.f32 %v505_v11, %v5310_v1  ;;  %v604_v45 = vsel %vm130_vm1, %v602_v40, %v603_v34  ;;  %v712_v56 = vstv %s4967_s1  ;;  %v692_v57 = vmul.f32 %v691_v50, %v5305_v0  ;;  %s5601_s12 = sld [smem:[#allocation2 + $0x59]] }
  0x3e   :  { %v714_v59 = vmul.f32 %v712_v56, %v5310_v1  ;;  %v715_v60 = vmul.f32 %v712_v56, %v5315_v3  ;;  %v699_v62 = vrot.slane %v693_v54, 1  ;;  %v701_v63 = vrot.slane %v694_v55, 1  ;;  %s5615_s13 = sld [smem:[#allocation2 + $0x24]] }
  0x3f   :  { %v713_v4 = vmul.f32 %v712_v56, %v5305_v0  ;;  %v771_v14 = vstv %s4970_s21  ;;  %v810_v37 = vstv %s4973_s24  ;;  %s5642_s14 = sld [smem:[#allocation2 + $0x48]] }
  0x40   :  { %305 = vrot.lane.b32.xlu1 %v302_v19, %s5280_s26  ;;  %v544_v19 = vrot.slane %v538_v12, 1  ;;  %v720_v6 = vrot.slane %v714_v59, 1  ;;  %v702_v8 = vsel %vm70_vm0, %v699_v62, %v701_v63  ;;  %v921_v63 = vstv %s4979_s29  ;;  %s5649_s15 = sld [smem:[#allocation2 + $0x4b]] }
  0x41   :  { %303 = vrot.lane.b32.xlu0 %v300_v22, %s5280_s26  ;;  %v560_v22 = vmul.f32 %v557_v15, %v5315_v3  ;;  %v719_v12 = vrot.slane %v713_v4, 1  ;;  %s5656_s16 = sld [smem:[#allocation2 + $0x76]] }
  0x42   :  { %v545_v30 = vsel %vm70_vm0, %v543_v23, %v544_v19  ;;  %s5666_s17 = sld [smem:[#allocation2 + $0x79]] }
  0x43   :  { %s5671_s18 = sld [smem:[#allocation2 + $0x4e]] }
  0x44   :  { %326 = vrot.lane.b32.xlu1 %v323_v24, %s5279_s25  ;;  %v558_v24 = vmul.f32 %v557_v15, %v5305_v0  ;;  %s5682_s1 = sld [smem:[#allocation2 + $0x7a]] }
  0x45   :  { %324 = vrot.lane.b32.xlu0 %v321_v26, %s5279_s25  ;;  %v547_v26 = vsel %vm70_vm0, %v544_v19, %v546_v20  ;;  %v774_v19 = vmul.f32 %v771_v14, %v5315_v3  ;;  %v721_v20 = vsel %vm70_vm0, %v719_v12, %v720_v6  ;;  %v922_v12 = vmul.f32 %v921_v63, %v5305_v0  ;;  %s5724_s21 = sld [smem:[#allocation2 + $0x7d]] }
  0x46   :  { %v564_v31 = vrot.slane %v558_v24, 1  ;;  %s6075_s24 = sld [smem:[#allocation2 + $0x61]] }
  0x47   :  { %v781_v25 = vrot.slane %v774_v19, 2  ;;  %v928_v19 = vrot.slane %v922_v12, 2  ;;  %s6109_s29 = sld [smem:[#allocation2 + $0x2d]] }
  0x48   :  { %346 = vrot.lane.b32.xlu1 %v341_v28, %s5280_s26  ;;  %v567_v28 = vrot.slane %v560_v22, 1  ;;  %v566_v39 = vsel %vm70_vm0, %v564_v31, %v565_v27  ;;  %v772_v22 = vmul.f32 %v771_v14, %v5305_v0 }
  0x49   :  { %344 = vrot.lane.b32.xlu0 %v340_v29, %s5280_s26  ;;  %v598_v29 = vmul.f32 %v595_v18, %v5315_v3  ;;  %v773_v18 = vmul.f32 %v771_v14, %v5310_v1 }
  0x4b   :  { %v605_v36 = vrot.slane %v598_v29, 2  ;;  %v779_v24 = vrot.slane %v773_v18, 2  ;;  %v796_v29 = vstv %s5491_s22  ;;  %s5021_s22 = sld [smem:[#allocation2 + $0x5f]] }
  0x4c   :  { %360 = vrot.lane.b32.xlu1 %v355_v35, %s5279_s25  ;;  %v568_v35 = vsel %vm70_vm0, %v565_v27, %v567_v28  ;;  %v778_v27 = vrot.slane %v772_v22, 2 }
  0x4d   :  { %358 = vrot.lane.b32.xlu0 %v354_v38, %s5279_s25  ;;  %v619_v38 = vmul.f32 %v616_v33, %v5315_v3  ;;  %v606_v42 = vsel %vm130_vm1, %v603_v34, %v605_v36  ;;  %v782_v28 = vsel %vm130_vm1, %v779_v24, %v781_v25  ;;  %v798_v34 = vmul.f32 %v796_v29, %v5310_v1 }
  0x4e   :  { %v780_v32 = vsel %vm130_vm1, %v778_v27, %v779_v24  ;;  %v797_v36 = vmul.f32 %v796_v29, %v5305_v0  ;;  %v948_v24 = vstv %s5551_s4  ;;  %v993_v29 = vstv %s4984_s5  ;;  %s5777_s4 = sld [smem:[#allocation2 + $0x13]] }
  0x4f   :  { %v626_v44 = vrot.slane %v619_v38, 2  ;;  %s5782_s5 = sld [smem:[#allocation2 + $0x16]] }
  0x50   :  { %398 = vrot.lane.b32.xlu1 %v395_v46, %s5280_s26  ;;  %v623_v46 = vrot.slane %v617_v41, 2  ;;  %v862_v41 = vstv %s4976_s27  ;;  %s6083_s27 = sld [smem:[#allocation2 + $0x33]] }
  0x51   :  { %396 = vrot.lane.b32.xlu0 %v393_v49, %s5280_s26  ;;  %v627_v47 = vsel %vm130_vm1, %v624_v43, %v626_v44  ;;  %v811_v44 = vmul.f32 %v810_v37, %v5305_v0  ;;  %v865_v48 = vmul.f32 %v862_v41, %v5315_v3 }
  0x52   :  { %v625_v49 = vsel %vm130_vm1, %v623_v46, %v624_v43  ;;  %v812_v43 = vmul.f32 %v810_v37, %v5310_v1  ;;  %v949_v37 = vmul.f32 %v948_v24, %v5305_v0 }
  0x54   :  { %419 = vrot.lane.b32.xlu1 %v416_v53, %s5279_s25  ;;  %v660_v53 = vstv %s5458_s19  ;;  %s5676_s19 = sld [smem:[#allocation2 + $0x77]] }
  0x55   :  { %417 = vrot.lane.b32.xlu0 %v414_v58, %s5279_s25  ;;  %v662_v58 = vmul.f32 %v660_v53, %v5310_v1 }
  0x58   :  { %457 = vrot.lane.b32.xlu1 %v454_v61, %s5280_s26  ;;  %v661_v61 = vmul.f32 %v660_v53, %v5305_v0 }
  0x59   :  { %455 = vrot.lane.b32.xlu0 %v452_v2, %s5280_s26  ;;  %v698_v2 = vrot.slane %v692_v57, 1  ;;  %v872_v57 = vrot.slane %v865_v48, 1  ;;  %v994_v48 = vmul.f32 %v993_v29, %v5305_v0 }
  0x5b   :  { %v700_v11 = vsel %vm70_vm0, %v698_v2, %v699_v62 }
  0x5c   :  { %478 = vrot.lane.b32.xlu1 %v475_v5, %s5279_s25  ;;  %v750_v5 = vstv %s4969_s20  ;;  %s5703_s20 = sld [smem:[#allocation2 + $0x7c]] }
  0x5d   :  { %476 = vrot.lane.b32.xlu0 %v473_v7, %s5279_s25  ;;  %v722_v7 = vrot.slane %v715_v60, 1  ;;  %v751_v13 = vmul.f32 %v750_v5, %v5305_v0 }
  0x5f   :  { %v723_v15 = vsel %vm70_vm0, %v720_v6, %v722_v7  ;;  %v757_v21 = vrot.slane %v751_v13, 2  ;;  %v923_v7 = vmul.f32 %v921_v63, %v5310_v1 }
  0x60   :  { %498 = vrot.lane.b32.xlu1 %v493_v9, %s5280_s26  ;;  %v752_v9 = vmul.f32 %v750_v5, %v5310_v1 }
  0x61   :  { %496 = vrot.lane.b32.xlu0 %v492_v10, %s5280_s26  ;;  %v753_v10 = vmul.f32 %v750_v5, %v5315_v3 }
  0x64   :  { %512 = vrot.lane.b32.xlu1 %v507_v16, %s5279_s25  ;;  %v758_v16 = vrot.slane %v752_v9, 2 }
  0x65   :  { %510 = vrot.lane.b32.xlu0 %v506_v17, %s5279_s25  ;;  %v760_v17 = vrot.slane %v753_v10, 2 }
  0x67   :  { %v761_v23 = vsel %vm130_vm1, %v758_v16, %v760_v17 }
  0x68   :  { %550 = vrot.lane.b32.xlu1 %v547_v26, %s5280_s26  ;;  %v759_v26 = vsel %vm130_vm1, %v757_v21, %v758_v16 }
  0x69   :  { %548 = vrot.lane.b32.xlu0 %v545_v30, %s5280_s26  ;;  %v841_v30 = vstv %s4975_s23  ;;  %s6066_s23 = sld [smem:[#allocation2 + $0x30]] }
  0x6a   :  { %v844_v38 = vmul.f32 %v841_v30, %v5315_v3  ;;  %v842_v40 = vmul.f32 %v841_v30, %v5305_v0 }
  0x6c   :  { %571 = vrot.lane.b32.xlu1 %v568_v35, %s5279_s25  ;;  %v843_v35 = vmul.f32 %v841_v30, %v5310_v1  ;;  %v851_v46 = vrot.slane %v844_v38, 1  ;;  %v31_v30 = vstv %s5544_s3  ;;  %v962_v38 = vstv %s5560_s7  ;;  %s5770_s3 = sld [smem:[#allocation2 + $0x6f]] }
  0x6d   :  { %569 = vrot.lane.b32.xlu0 %v566_v39, %s5279_s25  ;;  %s5813_s7 = sld [smem:[#allocation2 + $0x72]] }
  0x70   :  { %609 = vrot.lane.b32.xlu1 %v606_v42, %s5280_s26 }
  0x71   :  { %607 = vrot.lane.b32.xlu0 %v604_v45, %s5280_s26  ;;  %v849_v45 = vrot.slane %v843_v35, 1  ;;  %v123_v35 = vstv %s4932_s6  ;;  %s5787_s6 = sld [smem:[#allocation2 + $0x14]] }
  0x73   :  { %v852_v55 = vsel %vm70_vm0, %v849_v45, %v851_v46 }
  0x74   :  { %630 = vrot.lane.b32.xlu1 %v627_v47, %s5279_s25  ;;  %v864_v47 = vmul.f32 %v862_v41, %v5310_v1 }
  0x75   :  { %628 = vrot.lane.b32.xlu0 %v625_v49, %s5279_s25  ;;  %v900_v49 = vstv %s4978_s28  ;;  %s6095_s28 = sld [smem:[#allocation2 + $0x62]] }
  0x76   :  { %v902_v54 = vmul.f32 %v900_v49, %v5310_v1  ;;  %v870_v56 = vrot.slane %v864_v47, 1  ;;  %v901_v62 = vmul.f32 %v900_v49, %v5305_v0 }
  0x78   :  { %653 = vrot.lane.b32.xlu1 %v648_v51, %s5280_s26  ;;  %v848_v51 = vrot.slane %v842_v40, 1  ;;  %v908_v4 = vrot.slane %v902_v54, 2  ;;  %v873_v5 = vsel %vm70_vm0, %v870_v56, %v872_v57  ;;  %v995_v40 = vmul.f32 %v993_v29, %v5310_v1 }
  0x79   :  { %651 = vrot.lane.b32.xlu0 %v647_v52, %s5280_s26  ;;  %v863_v52 = vmul.f32 %v862_v41, %v5305_v0  ;;  %v996_v41 = vmul.f32 %v993_v29, %v5315_v3  ;;  %v5611_v54 = vmul.f32 %v123_v35, %v5305_v0  ;;  %v964_v57 = vmul.f32 %v962_v38, %v5310_v1 }
  0x7a   :  { %v850_v60 = vsel %vm70_vm0, %v848_v51, %v849_v45  ;;  %v5607_v51 = vmul.f32 %v123_v35, %v5310_v1 }
  0x7c   :  { %667 = vrot.lane.b32.xlu1 %v662_v58, %s5279_s25  ;;  %v903_v58 = vmul.f32 %v900_v49, %v5315_v3  ;;  %v5604_v49 = vmul.f32 %v31_v30, %v5310_v1 }
  0x7d   :  { %665 = vrot.lane.b32.xlu0 %v661_v61, %s5279_s25  ;;  %v869_v61 = vrot.slane %v863_v52, 1  ;;  %v126_v52 = vmul.f32 %v123_v35, %v5315_v3  ;;  %v1073_v35 = vstv %s5601_s12  ;;  %s5977_s12 = sld [smem:[#allocation2 + $0x3a]] }
  0x7e   :  { %v910_v6 = vrot.slane %v903_v58, 2 }
  0x7f   :  { %v871_v10 = vsel %vm70_vm0, %v869_v61, %v870_v56  ;;  %v215_v56 = vstv %s5571_s9  ;;  %v134_v12 = vrot.slane %v126_v52, 2  ;;  %s5884_s9 = sld [smem:[#allocation2 + $0x19]] }
  0x80   :  { %705 = vrot.lane.b32.xlu1 %v702_v8, %s5280_s26  ;;  %v924_v8 = vmul.f32 %v921_v63, %v5315_v3  ;;  %v911_v14 = vsel %vm130_vm1, %v908_v4, %v910_v6  ;;  %v1001_v63 = vrot.slane %v995_v40, 1 }
  0x81   :  { %703 = vrot.lane.b32.xlu0 %v700_v11, %s5280_s26  ;;  %v907_v11 = vrot.slane %v901_v62, 2  ;;  %v963_v62 = vmul.f32 %v962_v38, %v5305_v0 }
  0x82   :  { %v931_v16 = vrot.slane %v924_v8, 2 }
  0x83   :  { %v909_v18 = vsel %vm130_vm1, %v907_v11, %v908_v4  ;;  %v1003_v4 = vrot.slane %v996_v41, 1  ;;  %v132_v11 = vrot.slane %v5607_v51, 2 }
  0x84   :  { %726 = vrot.lane.b32.xlu1 %v723_v15, %s5279_s25  ;;  %v929_v15 = vrot.slane %v923_v7, 2  ;;  %v1000_v7 = vrot.slane %v994_v48, 1 }
  0x85   :  { %724 = vrot.lane.b32.xlu0 %v721_v20, %s5279_s25  ;;  %v63_v20 = vstv %s4929_s30  ;;  %s5765_s30 = sld [smem:[#allocation2 + $0x6c]] }
  0x86   :  { %v66_v22 = vmul.f32 %v63_v20, %v5315_v3  ;;  %v65_v25 = vmul.f32 %v63_v20, %v5310_v1  ;;  %v1002_v29 = vsel %vm70_vm0, %v1000_v7, %v1001_v63 }
  0x88   :  { %764 = vrot.lane.b32.xlu1 %v761_v23, %s5280_s26  ;;  %v932_v23 = vsel %vm130_vm1, %v929_v15, %v931_v16  ;;  %v72_v45 = vrot.slane %v65_v25, 1 }
  0x89   :  { %762 = vrot.lane.b32.xlu0 %v759_v26, %s5280_s26  ;;  %v64_v26 = vmul.f32 %v63_v20, %v5305_v0 }
  0x8a   :  { %v5506_v31 = vpop.permute.xlu1 %54 }
  0x8b   :  { %v5509_v33 = vpop.permute.xlu0 %40  ;;  %v71_v46 = vrot.slane %v64_v26, 1 }
  0x8c   :  { %785 = vrot.lane.b32.xlu1 %v782_v28, %s5279_s25  ;;  %v930_v28 = vsel %vm130_vm1, %v928_v19, %v929_v15  ;;  %v217_v15 = vmul.f32 %v215_v56, %v5310_v1  ;;  %v274_v19 = vstv %s5589_s11  ;;  %s5972_s11 = sld [smem:[#allocation2 + $0x37]] }
  0x8d   :  { %783 = vrot.lane.b32.xlu0 %v780_v32, %s5279_s25  ;;  %v276_v38 = vmul.f32 %v274_v19, %v5310_v1  ;;  %v277_v40 = vmul.f32 %v274_v19, %v5315_v3  ;;  %v275_v41 = vmul.f32 %v274_v19, %v5305_v0 }
  0x8e   :  { %v5517_v39 = vpop.permute.xlu1 %56 }
  0x8f   :  { %v5520_v42 = vpop.permute.xlu0 %42  ;;  %v282_v7 = vrot.slane %v276_v38, 2 }
  0x90   :  { %803 = vrot.lane.b32.xlu1 %v798_v34, %s5280_s26  ;;  %v74_v34 = vrot.slane %v66_v22, 1 }
  0x91   :  { %801 = vrot.lane.b32.xlu0 %v797_v36, %s5280_s26  ;;  %v950_v36 = vmul.f32 %v948_v24, %v5310_v1  ;;  %v1004_v24 = vsel %vm70_vm0, %v1001_v63, %v1003_v4  ;;  %v1074_v63 = vmul.f32 %v1073_v35, %v5305_v0 }
  0x92   :  { %v5528_v50 = vpop.permute.xlu1 %95  ;;  %v5623_v61 = vsel %vm70_vm0, %v72_v45, %v74_v34 }
  0x93   :  { %v5531_v53 = vpop.permute.xlu0 %93 }
  0x94   :  { %817 = vrot.lane.b32.xlu1 %v812_v43, %s5279_s25  ;;  %v1014_v43 = vstv %s4985_s8  ;;  %s5817_s8 = sld [smem:[#allocation2 + $0x17]] }
  0x95   :  { %815 = vrot.lane.b32.xlu0 %v811_v44, %s5279_s25  ;;  %v5596_v44 = vmul.f32 %v31_v30, %v5305_v0  ;;  %v1016_v58 = vmul.f32 %v1014_v43, %v5310_v1  ;;  %v1015_v8 = vmul.f32 %v1014_v43, %v5305_v0 }
  0x96   :  { %v5538_v59 = vpop.permute.xlu1 %116 }
  0x97   :  { %v5542_v2 = vpop.permute.xlu0 %114  ;;  %v1022_v20 = vrot.slane %v1016_v58, 1  ;;  %v1021_v30 = vrot.slane %v1015_v8, 1  ;;  %v284_v8 = vrot.slane %v277_v40, 2 }
  0x98   :  { %8997 = vst [vmem:[#allocation8_spill] sm:$0xff] %v5542_v2  ;;  %855 = vrot.lane.b32.xlu1 %v852_v55, %s5280_s26 }
  0x99   :  { %853 = vrot.lane.b32.xlu0 %v850_v60, %s5280_s26  ;;  %v1017_v60 = vmul.f32 %v1014_v43, %v5315_v3  ;;  %v183_v43 = vstv %s5615_s13  ;;  %s5985_s13 = sld [smem:[#allocation2 + $0x38]] }
  0x9a   :  { %v5553_v9 = vpop.permute.xlu1 %155 }
  0x9b   :  { %8998 = vst [vmem:[#allocation9_spill] sm:$0xff] %v5553_v9  ;;  %v5557_v13 = vpop.permute.xlu0 %153  ;;  %v1024_v22 = vrot.slane %v1017_v60, 1  ;;  %v1023_v60 = vsel %vm70_vm0, %v1021_v30, %v1022_v20  ;;  %v1100_v30 = vstv %s5656_s16  ;;  %s5015_s16 = sld [smem:[#allocation2 + $0x3e]] }
  0x9c   :  { %8999 = vst [vmem:[#allocation10_spill] sm:$0xff] %v5557_v13  ;;  %876 = vrot.lane.b32.xlu1 %v873_v5, %s5279_s25  ;;  %v5628_v5 = vsel %vm70_vm0, %v71_v46, %v72_v45  ;;  %v223_v45 = vrot.slane %v217_v15, 1  ;;  %v5690_v15 = vmul.f32 %v183_v43, %v5310_v1 }
  0x9d   :  { %874 = vrot.lane.b32.xlu0 %v871_v10, %s5279_s25  ;;  %v1052_v10 = vstv %s5581_s10  ;;  %v1025_v48 = vsel %vm70_vm0, %v1022_v20, %v1024_v22  ;;  %v335_v20 = vstv %s5642_s14  ;;  %s5916_s10 = sld [smem:[#allocation2 + $0x1a]] }
  0x9e   :  { %v5564_v17 = vpop.permute.xlu1 %176  ;;  %v1054_v25 = vmul.f32 %v1052_v10, %v5310_v1  ;;  %v1055_v26 = vmul.f32 %v1052_v10, %v5315_v3  ;;  %v1053_v34 = vmul.f32 %v1052_v10, %v5305_v0  ;;  %v281_v10 = vrot.slane %v275_v41, 2  ;;  %s5988_s14 = sld [smem:[#allocation2 + $0x3b]] }
  0x9f   :  { %9000 = vst [vmem:[#allocation11_spill] sm:$0xff] %v5564_v17  ;;  %v5567_v21 = vpop.permute.xlu0 %174  ;;  %v5721_v40 = vmul.f32 %v335_v20, %v5310_v1  ;;  %v1145_v41 = vstv %s5666_s17  ;;  %v1204_v17 = vstv %s5703_s20  ;;  %s4965_s17 = sld [smem:[#allocation2 + $0xc]] }
  0xa0   :  { %9001 = vst [vmem:[#allocation12_spill] sm:$0xff] %v5567_v21  ;;  %914 = vrot.lane.b32.xlu1 %v911_v14, %s5280_s26  ;;  %v131_v14 = vrot.slane %v5611_v54, 2  ;;  %v1060_v51 = vrot.slane %v1054_v25, 2  ;;  %v1062_v52 = vrot.slane %v1055_v26, 2  ;;  %v1075_v54 = vmul.f32 %v1073_v35, %v5310_v1  ;;  %s4968_s20 = sld [smem:[#allocation2 + $0xf]] }
  0xa1   :  { %912 = vrot.lane.b32.xlu0 %v909_v18, %s5280_s26  ;;  %v218_v18 = vmul.f32 %v215_v56, %v5315_v3 }
  0xa2   :  { %v5578_v27 = vpop.permute.xlu1 %194  ;;  %v5685_v4 = vsel %vm130_vm1, %v131_v14, %v132_v11  ;;  %v1081_v14 = vrot.slane %v1075_v54, 2 }
  0xa3   :  { %v5584_v32 = vpop.permute.xlu0 %192  ;;  %v225_v46 = vrot.slane %v218_v18, 1  ;;  %9004 = vst [vmem:[#allocation15_spill] sm:$0xff] %v5685_v4  ;;  %v5693_v18 = vmul.f32 %v183_v43, %v5305_v0  ;;  %v5728_v43 = vmul.f32 %v335_v20, %v5305_v0 }
  0xa4   :  { %935 = vrot.lane.b32.xlu1 %v932_v23, %s5279_s25  ;;  %v216_v23 = vmul.f32 %v215_v56, %v5305_v0  ;;  %v1076_v56 = vmul.f32 %v1073_v35, %v5315_v3  ;;  %v5716_v35 = vsel %vm130_vm1, %v281_v10, %v282_v7 }
  0xa5   :  { %933 = vrot.lane.b32.xlu0 %v930_v28, %s5279_s25  ;;  %v5696_v19 = vsel %vm70_vm0, %v223_v45, %v225_v46  ;;  %9008 = vst [vmem:[#allocation19_spill] sm:$0xff] %v5716_v35 }
  0xa6   :  { %v5598_v47 = vpop.permute.xlu1 %208  ;;  %v1083_v22 = vrot.slane %v1076_v56, 2  ;;  %v1114_v56 = vstv %s5676_s19  ;;  %s6045_s19 = sld [smem:[#allocation2 + $0x5b]] }
  0xa7   :  { %v5613_v55 = vpop.permute.xlu0 %206 }
  0xa8   :  { %955 = vrot.lane.b32.xlu1 %v950_v36, %s5280_s26  ;;  %v5659_v36 = vsel %vm130_vm1, %v132_v11, %v134_v12  ;;  %v1063_v11 = vsel %vm130_vm1, %v1060_v51, %v1062_v52  ;;  %v1102_v52 = vmul.f32 %v1100_v30, %v5310_v1 }
  0xa9   :  { %953 = vrot.lane.b32.xlu0 %v949_v37, %s5280_s26  ;;  %9002 = vst [vmem:[#allocation13_spill] sm:$0xff] %v5659_v36 }
  0xaa   :  { %v5630_v6 = vpop.permute.xlu1 %246 }
  0xab   :  { %v5637_v16 = vpop.permute.xlu0 %244 }
  0xac   :  { %969 = vrot.lane.b32.xlu1 %v964_v57, %s5279_s25  ;;  %v222_v57 = vrot.slane %v216_v23, 1  ;;  %v367_v23 = vstv %s5649_s15  ;;  %s5014_s15 = sld [smem:[#allocation2 + $0x3d]] }
  0xad   :  { %967 = vrot.lane.b32.xlu0 %v963_v62, %s5279_s25  ;;  %v1059_v62 = vrot.slane %v1053_v34, 2  ;;  %v5713_v34 = vsel %vm130_vm1, %v282_v7, %v284_v8  ;;  %v370_v46 = vmul.f32 %v367_v23, %v5315_v3  ;;  %v368_v54 = vmul.f32 %v367_v23, %v5305_v0  ;;  %v5754_v0 = vld [vmem:[%s8994_s0] sm:$0xff] }
  0xae   :  { %v5651_v28 = vpop.permute.xlu1 %267  ;;  %9007 = vst [vmem:[#allocation18_spill] sm:$0xff] %v5713_v34  ;;  %v1148_v7 = vmul.f32 %v1145_v41, %v5315_v3  ;;  %v1166_v8 = vstv %s5682_s1  ;;  %v1146_v20 = vmul.f32 %v5754_v0, %v1145_v41  ;;  %s5020_s1 = sld [smem:[#allocation2 + $0x5e]] }
  0xaf   :  { %v5661_v37 = vpop.permute.xlu0 %265  ;;  %v1061_v26 = vsel %vm130_vm1, %v1059_v62, %v1060_v51  ;;  %v1084_v51 = vsel %vm130_vm1, %v1081_v14, %v1083_v22  ;;  %v5744_v62 = vld [vmem:[%s8994_s0 + $0x8] sm:$0xff]  ;;  %v1167_v21 = vmul.f32 %v5754_v0, %v1166_v8 }
  0xb0   :  { %1007 = vrot.lane.b32.xlu1 %v1004_v24, %s5280_s26  ;;  %v5706_v24 = vsel %vm70_vm0, %v222_v57, %v223_v45  ;;  %v369_v45 = vmul.f32 %v367_v23, %v5310_v1  ;;  %v1101_v1 = vmul.f32 %v5754_v0, %v1100_v30  ;;  %v377_v23 = vrot.slane %v370_v46, 1 }
  0xb1   :  { %1005 = vrot.lane.b32.xlu0 %v1002_v29, %s5280_s26  ;;  %v1080_v29 = vrot.slane %v1074_v63, 2  ;;  %v1147_v63 = vmul.f32 %v5744_v62, %v1145_v41  ;;  %v1168_v30 = vmul.f32 %v5744_v62, %v1166_v8  ;;  %v374_v46 = vrot.slane %v368_v54, 1 }
  0xb2   :  { %v5678_v58 = vpop.permute.xlu1 %305  ;;  %v375_v22 = vrot.slane %v369_v45, 1  ;;  %v1152_v13 = vrot.slane %v1146_v20, 1  ;;  %v1206_v54 = vmul.f32 %v5744_v62, %v1204_v17 }
  0xb3   :  { %9003 = vst [vmem:[#allocation14_spill] sm:$0xff] %v5678_v58  ;;  %v5687_v12 = vpop.permute.xlu0 %303  ;;  %v1174_v20 = vrot.slane %v1168_v30, 1 }
  0xb4   :  { %9005 = vst [vmem:[#allocation16_spill] sm:$0xff] %v5687_v12  ;;  %1028 = vrot.lane.b32.xlu1 %v1025_v48, %s5279_s25  ;;  %v426_v48 = vstv %s5671_s18  ;;  %v1225_v12 = vstv %s5724_s21  ;;  %s6038_s18 = sld [smem:[#allocation2 + $0x9]] }
  0xb5   :  { %1026 = vrot.lane.b32.xlu0 %v1023_v60, %s5279_s25  ;;  %v1082_v60 = vsel %vm130_vm1, %v1080_v29, %v1081_v14  ;;  %v5762_v14 = vld [vmem:[%s8994_s0 + $0x10] sm:$0x3]  ;;  %v427_v29 = vmul.f32 %v5754_v0, %v426_v48  ;;  %v1226_v36 = vmul.f32 %v5754_v0, %v1225_v12  ;;  %s6054_s21 = sld [smem:[#allocation2 + $0x5c]] }
  0xb6   :  { %v5708_v25 = vpop.permute.xlu1 %326  ;;  %v429_v3 = vmul.f32 %v5762_v14, %v426_v48  ;;  %v1169_v41 = vmul.f32 %v5762_v14, %v1166_v8  ;;  %v5791_v8 = vsel %vm70_vm0, %v375_v22, %v377_v23  ;;  %v1227_v23 = vmul.f32 %v5744_v62, %v1225_v12 }
  0xb7   :  { %9006 = vst [vmem:[#allocation17_spill] sm:$0xff] %v5708_v25  ;;  %v5718_v38 = vpop.permute.xlu0 %324  ;;  %v1228_v4 = vmul.f32 %v5762_v14, %v1225_v12  ;;  %v519_v12 = vstv %s5770_s3  ;;  %s6138_s3 = sld [smem:[#allocation2 + $0x54]] }
  0xb8   :  { %9009 = vst [vmem:[#allocation20_spill] sm:$0xff] %v5718_v38  ;;  %1066 = vrot.lane.b32.xlu1 %v1063_v11, %s5280_s26  ;;  %v428_v11 = vmul.f32 %v5744_v62, %v426_v48  ;;  %v1153_v48 = vrot.slane %v1147_v63, 1  ;;  %v1155_v38 = vrot.slane %v1148_v7, 1  ;;  %v436_v9 = vrot.slane %v429_v3, 2 }
  0xb9   :  { %1064 = vrot.lane.b32.xlu0 %v1061_v26, %s5280_s26  ;;  %v1116_v26 = vmul.f32 %v5744_v62, %v1114_v56  ;;  %v1205_v63 = vmul.f32 %v5754_v0, %v1204_v17  ;;  %v433_v7 = vrot.slane %v427_v29, 2  ;;  %v1173_v3 = vrot.slane %v1167_v21, 1 }
  0xba   :  { %v5738_v57 = vpop.permute.xlu1 %346  ;;  %v434_v25 = vrot.slane %v428_v11, 2  ;;  %v1176_v11 = vrot.slane %v1169_v41, 1  ;;  %v487_v29 = vstv %s5765_s30  ;;  %s6133_s30 = sld [smem:[#allocation2 + $0x51]] }
  0xbb   :  { %v5749_v10 = vpop.permute.xlu0 %344  ;;  %v1211_v41 = vrot.slane %v1205_v63, 2  ;;  %v1300_v63 = vstv %s5782_s5  ;;  %v5832_v34 = vmul.f32 %v5744_v62, %v487_v29  ;;  %s6152_s5 = sld [smem:[#allocation2 + $0x82]] }
  0xbc   :  { %1087 = vrot.lane.b32.xlu1 %v1084_v51, %s5279_s25  ;;  %v1115_v51 = vmul.f32 %v5754_v0, %v1114_v56  ;;  %v1207_v56 = vmul.f32 %v5762_v14, %v1204_v17  ;;  %v1156_v17 = vsel %vm70_vm0, %v1153_v48, %v1155_v38  ;;  %v5810_v21 = vsel %vm130_vm1, %v434_v25, %v436_v9 }
  0xbd   :  { %1085 = vrot.lane.b32.xlu0 %v1082_v60, %s5279_s25  ;;  %9010 = vst [vmem:[#allocation21_spill] sm:$0xff] %v5810_v21  ;;  %v1177_v9 = vsel %vm70_vm0, %v1174_v20, %v1176_v11  ;;  %v1175_v38 = vsel %vm70_vm0, %v1173_v3, %v1174_v20  ;;  %v47_v3 = vadd.f32 %v5520_v42, %v5604_v49 }
  0xbe   :  { %v5779_v45 = vpop.permute.xlu1 %360  ;;  %v1214_v30 = vrot.slane %v1207_v56, 2  ;;  %v1232_v56 = vrot.slane %v1226_v36, 2  ;;  %v520_v36 = vmul.f32 %v5754_v0, %v519_v12  ;;  %v1303_v49 = vmul.f32 %v5762_v14, %v1300_v63 }
  0xbf   :  { %v5784_v60 = vpop.permute.xlu0 %358 }
  0xc0   :  { %1107 = vrot.lane.b32.xlu1 %v1102_v52, %s5280_s26  ;;  %v5800_v52 = vsel %vm70_vm0, %v374_v46, %v375_v22  ;;  %v1212_v22 = vrot.slane %v1206_v54, 2  ;;  %v1255_v46 = vstv %s5777_s4  ;;  %v1235_v54 = vrot.slane %v1228_v4, 2  ;;  %s6145_s4 = sld [smem:[#allocation2 + $0x7f]] }
  0xc1   :  { %1105 = vrot.lane.b32.xlu0 %v1101_v1, %s5280_s26  ;;  %v1154_v1 = vsel %vm70_vm0, %v1152_v13, %v1153_v48  ;;  %v5821_v13 = vsel %vm130_vm1, %v433_v7, %v434_v25  ;;  %v522_v25 = vmul.f32 %v5762_v14, %v519_v12  ;;  %v1269_v7 = vstv %s5787_s6  ;;  %s6162_s6 = sld [smem:[#allocation2 + $0x80]] }
  0xc2   :  { %v5797_v58 = vpop.permute.xlu1 %398  ;;  %9011 = vst [vmem:[#allocation22_spill] sm:$0xff] %v5821_v13  ;;  %v1215_v20 = vsel %vm130_vm1, %v1212_v22, %v1214_v30  ;;  %v1213_v11 = vsel %vm130_vm1, %v1211_v41, %v1212_v22  ;;  %v5841_v4 = vmul.f32 %v5754_v0, %v487_v29  ;;  %v1302_v22 = vmul.f32 %v5744_v62, %v1300_v63 }
  0xc3   :  { %v5805_v35 = vpop.permute.xlu0 %396  ;;  %v5859_v42 = vmul.f32 %v5744_v62, %v1269_v7  ;;  %v529_v13 = vrot.slane %v522_v25, 1 }
  0xc4   :  { %1121 = vrot.lane.b32.xlu1 %v1116_v26, %s5279_s25  ;;  %v1233_v26 = vrot.slane %v1227_v23, 2  ;;  %v5848_v23 = vmul.f32 %v5744_v62, %v1255_v46 }
  0xc5   :  { %1119 = vrot.lane.b32.xlu0 %v1115_v51, %s5279_s25  ;;  %v521_v51 = vmul.f32 %v5744_v62, %v519_v12  ;;  %9014 = vst [vmem:[#allocation25_spill] sm:$0xff] %v5859_v42  ;;  %v61_v42 = vadd.f32 %v5517_v39, %v47_v3 }
  0xc6   :  { %v5826_v48 = vpop.permute.xlu1 %419  ;;  %v1236_v29 = vsel %vm130_vm1, %v1233_v26, %v1235_v54  ;;  %v1234_v41 = vsel %vm130_vm1, %v1232_v56, %v1233_v26  ;;  %v526_v26 = vrot.slane %v520_v36, 1  ;;  %v578_v54 = vstv %s5813_s7  ;;  %s6167_s7 = sld [smem:[#allocation2 + $0x57]] }
  0xc7   :  { %v5829_v21 = vpop.permute.xlu0 %417  ;;  %v1321_v56 = vstv %s5817_s8  ;;  %s6181_s8 = sld [smem:[#allocation2 + $0x83]] }
  0xc8   :  { %9012 = vst [vmem:[#allocation23_spill] sm:$0xff] %v5829_v21  ;;  %1159 = vrot.lane.b32.xlu1 %v1156_v17, %s5280_s26  ;;  %v5851_v17 = vmul.f32 %v5754_v0, %v1255_v46  ;;  %v527_v46 = vrot.slane %v521_v51, 1  ;;  %v1301_v21 = vmul.f32 %v5754_v0, %v1300_v63  ;;  %v46_v63 = vadd.f32 %v5509_v33, %v5596_v44 }
  0xc9   :  { %1157 = vrot.lane.b32.xlu0 %v1154_v1, %s5280_s26  ;;  %v199_v1 = vadd.f32 %v5578_v27, %v5690_v15  ;;  %v351_v27 = vadd.f32 %v5738_v57, %v5721_v40  ;;  %v1308_v15 = vrot.slane %v1302_v22, 1  ;;  %v1310_v51 = vrot.slane %v1303_v49, 1 }
  0xca   :  { %v5854_v30 = vpop.permute.xlu1 %457  ;;  %v5890_v40 = vmul.f32 %v5754_v0, %v1269_v7  ;;  %v1307_v57 = vrot.slane %v1301_v21, 1  ;;  %v580_v33 = vmul.f32 %v5744_v62, %v578_v54  ;;  %v530_v21 = vsel %vm70_vm0, %v527_v46, %v529_v13 }
  0xcb   :  { %9013 = vst [vmem:[#allocation24_spill] sm:$0xff] %v5854_v30  ;;  %v5864_v12 = vpop.permute.xlu0 %455  ;;  %v198_v30 = vadd.f32 %v5584_v32, %v5693_v18  ;;  %v213_v2 = vadd.f32 %v5598_v47, %v199_v1  ;;  %v350_v18 = vadd.f32 %v5749_v10, %v5728_v43  ;;  %v365_v39 = vadd.f32 %v5779_v45, %v351_v27 }
  0xcc   :  { %1180 = vrot.lane.b32.xlu1 %v1177_v9, %s5279_s25  ;;  %v579_v43 = vmul.f32 %v5754_v0, %v578_v54  ;;  %v1323_v10 = vmul.f32 %v5744_v62, %v1321_v56  ;;  %v79_v45 = vadd.f32 %v5623_v61, %v61_v42  ;;  %v1324_v25 = vmul.f32 %v5762_v14, %v1321_v56 }
  0xcd   :  { %1178 = vrot.lane.b32.xlu0 %v1175_v38, %s5279_s25  ;;  %v212_v32 = vadd.f32 %v5613_v55, %v198_v30  ;;  %v364_v44 = vadd.f32 %v5784_v60, %v350_v18  ;;  %v581_v55 = vmul.f32 %v5762_v14, %v578_v54  ;;  %v230_v38 = vadd.f32 %v5696_v19, %v213_v2 }
  0xce   :  { %v5882_v9 = vpop.permute.xlu1 %478  ;;  %v60_v60 = vadd.f32 %v5506_v31, %v46_v63  ;;  %v528_v36 = vsel %vm70_vm0, %v526_v26, %v527_v46  ;;  %v5907_v3 = vsel %vm70_vm0, %v1308_v15, %v1310_v51  ;;  %v382_v61 = vadd.f32 %v5791_v8, %v365_v39  ;;  %v9017_v39 = vld [vmem:[#allocation18_spill] sm:$0xff] }
  0xcf   :  { %v5887_v47 = vpop.permute.xlu0 %476  ;;  %v229_v7 = vadd.f32 %v5706_v24, %v212_v32  ;;  %v5911_v2 = vsel %vm70_vm0, %v1307_v57, %v1308_v15  ;;  %v586_v19 = vrot.slane %v580_v33, 2  ;;  %v1322_v13 = vmul.f32 %v5754_v0, %v1321_v56  ;;  %v9016_v32 = vld [vmem:[#allocation23_spill] sm:$0xff] }
  0xd0   :  { %1218 = vrot.lane.b32.xlu1 %v1215_v20, %s5280_s26  ;;  %v381_v31 = vadd.f32 %v5800_v52, %v364_v44  ;;  %v588_v24 = vrot.slane %v581_v55, 2  ;;  %v1329_v30 = vrot.slane %v1323_v10, 1  ;;  %v100_v42 = vadd.f32 %v5528_v50, %v79_v45  ;;  %v9018_v44 = vld [vmem:[#allocation19_spill] sm:$0xff] }
  0xd1   :  { %1216 = vrot.lane.b32.xlu0 %v1213_v11, %s5280_s26  ;;  %v585_v11 = vrot.slane %v579_v43, 2  ;;  %v251_v8 = vadd.f32 %v5630_v6, %v230_v38  ;;  %v1331_v1 = vrot.slane %v1324_v25, 1  ;;  %v78_v46 = vadd.f32 %v5628_v5, %v60_v60  ;;  %v9019_v43 = vld [vmem:[#allocation25_spill] sm:$0xff] }
  0xd2   :  { %v499_v20 = vpop.permute.xlu1 %498  ;;  %v250_v52 = vadd.f32 %v5637_v16, %v229_v7  ;;  %v1359_v54 = vstv %s5884_s9  ;;  %v403_v27 = vadd.f32 %v5797_v58, %v382_v61  ;;  %v1328_v6 = vrot.slane %v1322_v13, 1  ;;  %v9021_v60 = vld [vmem:[#allocation21_spill] sm:$0xff]  ;;  %v9022_v61 = vld [vmem:[#allocation15_spill] sm:$0xff]  ;;  %s6197_s9 = sld [smem:[#allocation2 + $0x85]] }
  0xd3   :  { %v497_v22 = vpop.permute.xlu0 %496  ;;  %v503_v49 = vadd.f32 %v499_v20, %v5832_v34  ;;  %v272_v56 = vadd.f32 %v5651_v28, %v251_v8  ;;  %v99_v34 = vadd.f32 %v5531_v53, %v78_v46  ;;  %v402_v63 = vadd.f32 %v5805_v35, %v381_v31  ;;  %v9015_v53 = vld [vmem:[#allocation8_spill] sm:$0xff] }
  0xd4   :  { %1239 = vrot.lane.b32.xlu1 %v1236_v29, %s5279_s25  ;;  %v502_v29 = vadd.f32 %v497_v22, %v5841_v4  ;;  %v121_v16 = vadd.f32 %v5538_v59, %v100_v42  ;;  %v424_v4 = vadd.f32 %v5826_v48, %v403_v27  ;;  %v5938_v58 = vmul.f32 %v5744_v62, %v1359_v54  ;;  %v9024_v42 = vld [vmem:[#allocation14_spill] sm:$0xff] }
  0xd5   :  { %1237 = vrot.lane.b32.xlu0 %v1234_v41, %s5279_s25  ;;  %v271_v41 = vadd.f32 %v5661_v37, %v250_v52  ;;  %v120_v37 = vadd.f32 %v9015_v53, %v99_v34  ;;  %v423_v35 = vadd.f32 %v9016_v32, %v402_v63  ;;  %v289_v59 = vadd.f32 %v9017_v39, %v272_v56  ;;  %v9025_v52 = vld [vmem:[#allocation16_spill] sm:$0xff]  ;;  %v9026_v56 = vld [vmem:[#allocation9_spill] sm:$0xff]  ;;  %v9029_v63 = vld [vmem:[#allocation10_spill] sm:$0xff] }
  0xd6   :  { %v513_v26 = vpop.permute.xlu1 %512  ;;  %v589_v48 = vsel %vm130_vm1, %v586_v19, %v588_v24  ;;  %v1360_v33 = vmul.f32 %v5754_v0, %v1359_v54  ;;  %v1332_v10 = vsel %vm70_vm0, %v1329_v30, %v1331_v1  ;;  %v1330_v45 = vsel %vm70_vm0, %v1328_v6, %v1329_v30  ;;  %v9028_v6 = vld [vmem:[#allocation24_spill] sm:$0xff]  ;;  %v9031_v53 = vld [vmem:[#allocation11_spill] sm:$0xff] }
  0xd7   :  { %v517_v50 = vadd.f32 %v513_v26, %v503_v49  ;;  %v511_v15 = vpop.permute.xlu0 %510  ;;  %v288_v55 = vadd.f32 %v9018_v44, %v271_v41  ;;  %v1380_v38 = vstv %s5916_s10  ;;  %v441_v7 = vadd.f32 %v9021_v60, %v424_v4  ;;  %s6206_s10 = sld [smem:[#allocation2 + $0x86]] }
  0xd8   :  { %v516_v5 = vadd.f32 %v511_v15, %v502_v29  ;;  %1262 = vrot.lane.b32.xlu1 %v5848_v23, %s5280_s26  ;;  %v1362_v23 = vmul.f32 %v5762_v14, %v1359_v54  ;;  %v138_v22 = vadd.f32 %v9022_v61, %v120_v37  ;;  %v310_v30 = vadd.f32 %v9024_v42, %v289_v59 }
  0xd9   :  { %1260 = vrot.lane.b32.xlu0 %v5851_v17, %s5280_s26  ;;  %v534_v28 = vadd.f32 %v530_v21, %v517_v50  ;;  %v587_v17 = vsel %vm130_vm1, %v585_v11, %v586_v19  ;;  %v9020_v21 = vld [vmem:[#allocation13_spill] sm:$0xff]  ;;  %v9023_v19 = vld [vmem:[#allocation22_spill] sm:$0xff]  ;;  %v1366_v1 = vrot.slane %v1360_v33, 2  ;;  %v1382_v46 = vmul.f32 %v5744_v62, %v1380_v38 }
  0xda   :  { %v551_v18 = vpop.permute.xlu1 %550  ;;  %v533_v51 = vadd.f32 %v528_v36, %v516_v5  ;;  %v139_v25 = vadd.f32 %v9020_v21, %v121_v16  ;;  %v1367_v36 = vrot.slane %v5938_v58, 2  ;;  %v440_v13 = vadd.f32 %v9023_v19, %v423_v35  ;;  %v9027_v50 = vld [vmem:[#allocation17_spill] sm:$0xff]  ;;  %v9030_v16 = vld [vmem:[#allocation20_spill] sm:$0xff] }
  0xdb   :  { %v549_v57 = vpop.permute.xlu0 %548  ;;  %v555_v20 = vadd.f32 %v551_v18, %v534_v28  ;;  %v1369_v11 = vrot.slane %v1362_v23, 2  ;;  %v309_v29 = vadd.f32 %v9025_v52, %v288_v55  ;;  %v1381_v54 = vmul.f32 %v5754_v0, %v1380_v38  ;;  %v9032_v18 = vld [vmem:[#allocation12_spill] sm:$0xff] }
  0xdc   :  { %1276 = vrot.lane.b32.xlu1 %v9019_v43, %s5279_s25  ;;  %v554_v31 = vadd.f32 %v549_v57, %v533_v51  ;;  %v160_v27 = vadd.f32 %v9026_v56, %v139_v25  ;;  %v331_v15 = vadd.f32 %v9027_v50, %v310_v30  ;;  %v462_v34 = vadd.f32 %v9028_v6, %v441_v7 }
  0xdd   :  { %1274 = vrot.lane.b32.xlu0 %v5890_v40, %s5279_s25  ;;  %v1383_v40 = vmul.f32 %v5762_v14, %v1380_v38  ;;  %v159_v5 = vadd.f32 %v9029_v63, %v138_v22  ;;  %v461_v4 = vadd.f32 %v5864_v12, %v440_v13  ;;  %v1370_v23 = vsel %vm130_vm1, %v1367_v36, %v1369_v11 }
  0xde   :  { %v572_v24 = vpop.permute.xlu1 %571  ;;  %v181_v37 = vadd.f32 %v9031_v53, %v160_v27  ;;  %v483_v32 = vadd.f32 %v5882_v9, %v462_v34  ;;  %v1388_v59 = vrot.slane %v1382_v46, 2  ;;  %v1387_v33 = vrot.slane %v1381_v54, 2 }
  0xdf   :  { %v576_v8 = vadd.f32 %v572_v24, %v555_v20  ;;  %v570_v49 = vpop.permute.xlu0 %569  ;;  %v482_v51 = vadd.f32 %v5887_v47, %v461_v4  ;;  %v1390_v57 = vrot.slane %v1383_v40, 2  ;;  %v1368_v47 = vsel %vm130_vm1, %v1366_v1, %v1367_v36 }
  0xe0   :  { %v575_v26 = vadd.f32 %v570_v49, %v554_v31  ;;  %1314 = vrot.lane.b32.xlu1 %v5907_v3, %s5280_s26  ;;  %v330_v3 = vadd.f32 %v9030_v16, %v309_v29  ;;  %v333_v12 = vmax.f32 %v181_v37, %v331_v15  ;;  %v1405_v25 = vstv %s5972_s11  ;;  %s6244_s11 = sld [smem:[#allocation2 + $0x78]] }
  0xe1   :  { %1312 = vrot.lane.b32.xlu0 %v5911_v2, %s5280_s26  ;;  %v593_v41 = vadd.f32 %v589_v48, %v576_v8  ;;  %v180_v2 = vadd.f32 %v9032_v18, %v159_v5  ;;  %v1391_v21 = vsel %vm130_vm1, %v1388_v59, %v1390_v57  ;;  %v1389_v20 = vsel %vm130_vm1, %v1387_v33, %v1388_v59 }
  0xe2   :  { %v610_v28 = vpop.permute.xlu1 %609  ;;  %v592_v58 = vadd.f32 %v587_v17, %v575_v26  ;;  %v485_v44 = vmax.f32 %v333_v12, %v483_v32  ;;  %v1450_v36 = vstv %s5977_s12  ;;  %v1407_v22 = vmul.f32 %v5744_v62, %v1405_v25  ;;  %s6250_s12 = sld [smem:[#allocation2 + $0x75]] }
  0xe3   :  { %v608_v35 = vpop.permute.xlu0 %607  ;;  %v614_v39 = vadd.f32 %v610_v28, %v593_v41  ;;  %v332_v9 = vmax.f32 %v180_v2, %v330_v3  ;;  %v1419_v19 = vstv %s5985_s13  ;;  %v1406_v13 = vmul.f32 %v5754_v0, %v1405_v25  ;;  %s6254_s13 = sld [smem:[#allocation2 + $0x1c]] }
  0xe4   :  { %1335 = vrot.lane.b32.xlu1 %v1332_v10, %s5279_s25  ;;  %v613_v48 = vadd.f32 %v608_v35, %v592_v58  ;;  %v1452_v31 = vmul.f32 %v5744_v62, %v1450_v36  ;;  %v1453_v24 = vmul.f32 %v5762_v14, %v1450_v36  ;;  %v1471_v11 = vstv %s5988_s14  ;;  %s6262_s14 = sld [smem:[#allocation2 + $0x1d]] }
  0xe5   :  { %1333 = vrot.lane.b32.xlu0 %v1330_v45, %s5279_s25  ;;  %v484_v10 = vmax.f32 %v332_v9, %v482_v51  ;;  %v1451_v30 = vmul.f32 %v5754_v0, %v1450_v36  ;;  %v1421_v49 = vmul.f32 %v5744_v62, %v1419_v19  ;;  %v1473_v1 = vmul.f32 %v5744_v62, %v1471_v11 }
  0xe6   :  { %v631_v17 = vpop.permute.xlu1 %630  ;;  %v1474_v46 = vmul.f32 %v5762_v14, %v1471_v11  ;;  %v1420_v52 = vmul.f32 %v5754_v0, %v1419_v19  ;;  %v1458_v29 = vrot.slane %v1452_v31, 1  ;;  %v1460_v26 = vrot.slane %v1453_v24, 1 }
  0xe7   :  { %v635_v55 = vadd.f32 %v631_v17, %v614_v39  ;;  %v629_v43 = vpop.permute.xlu0 %628  ;;  %v1457_v54 = vrot.slane %v1451_v30, 1  ;;  %v1472_v56 = vmul.f32 %v5754_v0, %v1471_v11  ;;  %v1509_v27 = vstv %s5014_s15  ;;  %s6266_s15 = sld [smem:[#allocation2 + $0x1f]] }
  0xe8   :  { %v634_v38 = vadd.f32 %v629_v43, %v613_v48  ;;  %1373 = vrot.lane.b32.xlu1 %v1370_v23, %s5280_s26  ;;  %v1479_v15 = vrot.slane %v1473_v1, 1  ;;  %v1481_v6 = vrot.slane %v1474_v46, 1  ;;  %v1461_v34 = vsel %vm70_vm0, %v1458_v29, %v1460_v26 }
  0xe9   :  { %v637_v45 = vmax.f32 %v485_v44, %v635_v55  ;;  %1371 = vrot.lane.b32.xlu0 %v1368_v47, %s5280_s26  ;;  %v1511_v41 = vmul.f32 %v5744_v62, %v1509_v27  ;;  %v1512_v63 = vmul.f32 %v5762_v14, %v1509_v27  ;;  %v1459_v16 = vsel %vm70_vm0, %v1457_v54, %v1458_v29 }
  0xea   :  { %v636_v60 = vmax.f32 %v484_v10, %v634_v38  ;;  %v5995_v7 = vpop.permute.xlu1 %653  ;;  %v1478_v3 = vrot.slane %v1472_v56, 1  ;;  %v1510_v4 = vmul.f32 %v5754_v0, %v1509_v27  ;;  %v1530_v28 = vstv %s5015_s16  ;;  %s6284_s16 = sld [smem:[#allocation2 + $0x7b]] }
  0xeb   :  { %640 = vst.msk [vmem:[#allocation5 + $0x8] sm:$0xff] %vm638_vm2, %v637_v45  ;;  %v6000_v61 = vpop.permute.xlu0 %651  ;;  %v1482_v53 = vsel %vm70_vm0, %v1479_v15, %v1481_v6  ;;  %v1517_v37 = vrot.slane %v1511_v41, 2  ;;  %v1519_v32 = vrot.slane %v1512_v63, 2  ;;  %v1532_v35 = vmul.f32 %v5744_v62, %v1530_v28 }
  0xec   :  { %639 = vst.msk [vmem:[#allocation5] sm:$0xff] %vm638_vm2, %v636_v60  ;;  %1394 = vrot.lane.b32.xlu1 %v1391_v21, %s5279_s25  ;;  %v1533_v18 = vmul.f32 %v5762_v14, %v1530_v28  ;;  %v1480_v51 = vsel %vm70_vm0, %v1478_v3, %v1479_v15  ;;  %v1516_v23 = vrot.slane %v1510_v4, 2  ;;  %v1531_v12 = vmul.f32 %v5754_v0, %v1530_v28 }
  0xed   :  { %1392 = vrot.lane.b32.xlu0 %v1389_v20, %s5279_s25  ;;  %v674_v59 = vstv %s4965_s17  ;;  %v1520_v57 = vsel %vm130_vm1, %v1517_v37, %v1519_v32  ;;  %v1538_v9 = vrot.slane %v1532_v35, 2  ;;  %v1557_v38 = vstv %s6045_s19  ;;  %s6298_s17 = sld [smem:[#allocation2 + $0x20]] }
  0xee   :  { %v6011_v42 = vpop.permute.xlu1 %667  ;;  %v1540_v48 = vrot.slane %v1533_v18, 2  ;;  %v1518_v47 = vsel %vm130_vm1, %v1516_v23, %v1517_v37  ;;  %v1537_v33 = vrot.slane %v1531_v12, 2  ;;  %v676_v44 = vmul.f32 %v5744_v62, %v674_v59  ;;  %s6656_s19 = sld [smem:[#allocation2 + $0x88]] }
  0xef   :  { %v6014_v8 = vpop.permute.xlu0 %665  ;;  %v677_v43 = vmul.f32 %v5762_v14, %v674_v59  ;;  %v675_v45 = vmul.f32 %v5754_v0, %v674_v59  ;;  %v1602_v60 = vstv %s5020_s1  ;;  %v642_v20 = vstv %s6038_s18  ;;  %s6646_s18 = sld [smem:[#allocation2 + $0x5a]] }
  0xf0   :  { %1412 = vrot.lane.b32.xlu1 %v1407_v22, %s5280_s26  ;;  %v1541_v10 = vsel %vm130_vm1, %v1538_v9, %v1540_v48  ;;  %v1539_v25 = vsel %vm130_vm1, %v1537_v33, %v1538_v9  ;;  %v682_v36 = vrot.slane %v676_v44, 1  ;;  %v1559_v31 = vmul.f32 %v5744_v62, %v1557_v38  ;;  %s6664_s1 = sld [smem:[#allocation2 + $0x8b]] }
  0xf1   :  { %1410 = vrot.lane.b32.xlu0 %v1406_v13, %s5280_s26  ;;  %v684_v19 = vrot.slane %v677_v43, 1  ;;  %v733_v13 = vstv %s4968_s20  ;;  %v1558_v24 = vmul.f32 %v5754_v0, %v1557_v38  ;;  %v1571_v11 = vstv %s6054_s21  ;;  %s6669_s20 = sld [smem:[#allocation2 + $0x60]] }
  0xf2   :  { %v6022_v40 = vpop.permute.xlu1 %705  ;;  %v1604_v30 = vmul.f32 %v5744_v62, %v1602_v60  ;;  %v1623_v1 = vstv %s5021_s22  ;;  %v6090_v46 = vmul.f32 %v5744_v62, %v642_v20  ;;  %v1603_v26 = vmul.f32 %v5754_v0, %v1602_v60  ;;  %s6675_s21 = sld [smem:[#allocation2 + $0x89]] }
  0xf3   :  { %v6025_v50 = vpop.permute.xlu0 %703  ;;  %v6098_v54 = vmul.f32 %v5754_v0, %v642_v20  ;;  %v6101_v56 = vmul.f32 %v5744_v62, %v733_v13  ;;  %v736_v27 = vmul.f32 %v5762_v14, %v733_v13  ;;  %v6105_v15 = vmul.f32 %v5754_v0, %v733_v13  ;;  %s6695_s22 = sld [smem:[#allocation2 + $0x8c]] }
  0xf4   :  { %1426 = vrot.lane.b32.xlu1 %v1421_v49, %s5279_s25  ;;  %v1605_v49 = vmul.f32 %v5762_v14, %v1602_v60  ;;  %v1573_v41 = vmul.f32 %v5744_v62, %v1571_v11  ;;  %v1625_v63 = vmul.f32 %v5744_v62, %v1623_v1  ;;  %v6117_v3 = vsel %vm70_vm0, %v682_v36, %v684_v19 }
  0xf5   :  { %1424 = vrot.lane.b32.xlu0 %v1420_v52, %s5279_s25  ;;  %v681_v52 = vrot.slane %v675_v45, 1  ;;  %v1572_v4 = vmul.f32 %v5754_v0, %v1571_v11  ;;  %v1610_v28 = vrot.slane %v1604_v30, 1  ;;  %v1609_v35 = vrot.slane %v1603_v26, 1 }
  0xf6   :  { %v6032_v5 = vpop.permute.xlu1 %726  ;;  %v1624_v18 = vmul.f32 %v5754_v0, %v1623_v1  ;;  %v741_v23 = vrot.slane %v6101_v56, 2  ;;  %v743_v12 = vrot.slane %v736_v27, 2  ;;  %v740_v59 = vrot.slane %v6105_v15, 2 }
  0xf7   :  { %v6036_v58 = vpop.permute.xlu0 %724  ;;  %v6122_v37 = vsel %vm70_vm0, %v681_v52, %v682_v36  ;;  %v1631_v33 = vrot.slane %v1625_v63, 1  ;;  %v1611_v60 = vsel %vm70_vm0, %v1609_v35, %v1610_v28  ;;  %v1682_v19 = vstv %s6095_s28  ;;  %s6471_s28 = sld [smem:[#allocation2 + $0x43]] }
  0xf8   :  { %1464 = vrot.lane.b32.xlu1 %v1461_v34, %s5280_s26  ;;  %v824_v34 = vstv %s6066_s23  ;;  %v1630_v20 = vrot.slane %v1624_v18, 1  ;;  %v6155_v13 = vsel %vm130_vm1, %v741_v23, %v743_v12  ;;  %v1684_v15 = vmul.f32 %v5744_v62, %v1682_v19  ;;  %s6376_s23 = sld [smem:[#allocation2 + $0x22]] }
  0xf9   :  { %1462 = vrot.lane.b32.xlu0 %v1459_v16, %s5280_s26  ;;  %v1626_v16 = vmul.f32 %v5762_v14, %v1623_v1  ;;  %v827_v48 = vmul.f32 %v5762_v14, %v824_v34  ;;  %v825_v43 = vmul.f32 %v5754_v0, %v824_v34  ;;  %9037 = vst [vmem:[#allocation25_spill] sm:$0xff] %v6155_v13 }
  0xfa   :  { %v6047_v2 = vpop.permute.xlu1 %764 }
  0xfb   :  { %9033 = vst [vmem:[#allocation8_spill] sm:$0xff] %v6047_v2  ;;  %v6051_v39 = vpop.permute.xlu0 %762  ;;  %v1633_v44 = vrot.slane %v1626_v16, 1  ;;  %v834_v52 = vrot.slane %v827_v48, 1  ;;  %v1632_v16 = vsel %vm70_vm0, %v1630_v20, %v1631_v33  ;;  %v1754_v20 = vstv %s6152_s5  ;;  %s6526_s5 = sld [smem:[#allocation2 + $0x15]] }
  0xfc   :  { %9034 = vst [vmem:[#allocation23_spill] sm:$0xff] %v6051_v39  ;;  %1485 = vrot.lane.b32.xlu1 %v1482_v53, %s5279_s25  ;;  %v1612_v53 = vrot.slane %v1605_v49, 1  ;;  %v792_v49 = vstv %s6109_s29  ;;  %v1834_v39 = vstv %s6206_s10  ;;  %s6479_s29 = sld [smem:[#allocation2 + $0x41]] }
  0xfd   :  { %1483 = vrot.lane.b32.xlu0 %v1480_v51, %s5279_s25  ;;  %v1661_v51 = vstv %s6075_s24  ;;  %v1634_v26 = vsel %vm70_vm0, %v1631_v33, %v1633_v44  ;;  %v6187_v48 = vmul.f32 %v5754_v0, %v792_v49  ;;  %v1690_v33 = vrot.slane %v1684_v15, 2  ;;  %s6412_s24 = sld [smem:[#allocation2 + $0x23]] }
  0xfe   :  { %v6058_v17 = vpop.permute.xlu1 %785  ;;  %v1663_v38 = vmul.f32 %v5744_v62, %v1661_v51  ;;  %v1664_v45 = vmul.f32 %v5762_v14, %v1661_v51  ;;  %v1662_v36 = vmul.f32 %v5754_v0, %v1661_v51  ;;  %s6552_s10 = sld [smem:[#allocation2 + $0x65]] }
  0xff   :  { %9035 = vst [vmem:[#allocation18_spill] sm:$0xff] %v6058_v17  ;;  %v6062_v55 = vpop.permute.xlu0 %783  ;;  %v1813_v17 = vstv %s6197_s9  ;;  %s6547_s9 = sld [smem:[#allocation2 + $0x12]] }
 0x100   :  { %9036 = vst [vmem:[#allocation19_spill] sm:$0xff] %v6062_v55  ;;  %1523 = vrot.lane.b32.xlu1 %v1520_v57, %s5280_s26  ;;  %v826_v57 = vmul.f32 %v5744_v62, %v824_v34  ;;  %v1669_v56 = vrot.slane %v1663_v38, 2  ;;  %v1671_v27 = vrot.slane %v1664_v45, 2  ;;  %v1685_v34 = vmul.f32 %v5762_v14, %v1682_v19 }
 0x101   :  { %1521 = vrot.lane.b32.xlu0 %v1518_v47, %s5280_s26  ;;  %v883_v47 = vstv %s6083_s27  ;;  %v1815_v2 = vmul.f32 %v5744_v62, %v1813_v17  ;;  %s6466_s27 = sld [smem:[#allocation2 + $0x40]] }
 0x102   :  { %v6072_v21 = vpop.permute.xlu1 %803  ;;  %v886_v11 = vmul.f32 %v5762_v14, %v883_v47  ;;  %v884_v30 = vmul.f32 %v5754_v0, %v883_v47  ;;  %v832_v1 = vrot.slane %v826_v57, 1  ;;  %v6184_v57 = vmul.f32 %v5744_v62, %v792_v49 }
 0x103   :  { %v6078_v22 = vpop.permute.xlu0 %801  ;;  %v1692_v44 = vrot.slane %v1685_v34, 2  ;;  %v1756_v34 = vmul.f32 %v5744_v62, %v1754_v20 }
 0x104   :  { %1544 = vrot.lane.b32.xlu1 %v1541_v10, %s5279_s25  ;;  %v1613_v10 = vsel %vm70_vm0, %v1610_v28, %v1612_v53  ;;  %v1683_v28 = vmul.f32 %v5754_v0, %v1682_v19  ;;  %v6177_v53 = vsel %vm130_vm1, %v740_v59, %v741_v23  ;;  %v893_v18 = vrot.slane %v886_v11, 2 }
 0x105   :  { %1542 = vrot.lane.b32.xlu0 %v1539_v25, %s5279_s25  ;;  %9039 = vst [vmem:[#allocation21_spill] sm:$0xff] %v6177_v53  ;;  %v890_v51 = vrot.slane %v884_v30, 2  ;;  %v944_v23 = vstv %s6133_s30  ;;  %v1672_v59 = vsel %vm130_vm1, %v1669_v56, %v1671_v27  ;;  %v1709_v30 = vstv %s6145_s4  ;;  %s6482_s30 = sld [smem:[#allocation2 + $0x44]] }
 0x106   :  { %v6092_v29 = vpop.permute.xlu1 %817  ;;  %v6217_v11 = vmul.f32 %v5744_v62, %v944_v23  ;;  %v6222_v49 = vmul.f32 %v5754_v0, %v944_v23  ;;  %v1762_v55 = vrot.slane %v1756_v34, 1  ;;  %s5051_s4 = sld [smem:[#allocation2 + $0x47]] }
 0x107   :  { %v6107_v6 = vpop.permute.xlu0 %815 }
 0x108   :  { %1564 = vrot.lane.b32.xlu1 %v1559_v31, %s5280_s26 }
 0x109   :  { %1562 = vrot.lane.b32.xlu0 %v1558_v24, %s5280_s26  ;;  %v885_v24 = vmul.f32 %v5744_v62, %v883_v47  ;;  %v6190_v47 = vsel %vm70_vm0, %v832_v1, %v834_v52  ;;  %v1723_v52 = vstv %s6162_s6  ;;  %s5004_s6 = sld [smem:[#allocation2 + $0x18]] }
 0x10a   :  { %v6124_v32 = vpop.permute.xlu1 %855 }
 0x10b   :  { %v6131_v9 = vpop.permute.xlu0 %853  ;;  %v891_v35 = vrot.slane %v885_v24, 2 }
 0x10c   :  { %1578 = vrot.lane.b32.xlu1 %v1573_v41, %s5279_s25  ;;  %v831_v41 = vrot.slane %v825_v43, 1  ;;  %v976_v43 = vstv %s6138_s3  ;;  %s5050_s3 = sld [smem:[#allocation2 + $0x46]] }
 0x10d   :  { %1576 = vrot.lane.b32.xlu0 %v1572_v4, %s5279_s25  ;;  %v1668_v4 = vrot.slane %v1662_v36, 2  ;;  %v6209_v36 = vsel %vm130_vm1, %v891_v35, %v893_v18  ;;  %v6212_v19 = vsel %vm130_vm1, %v890_v51, %v891_v35  ;;  %v979_v27 = vmul.f32 %v5762_v14, %v976_v43 }
 0x10e   :  { %v6147_v25 = vpop.permute.xlu1 %876  ;;  %9042 = vst [vmem:[#allocation14_spill] sm:$0xff] %v6209_v36  ;;  %9043 = vst [vmem:[#allocation16_spill] sm:$0xff] %v6212_v19  ;;  %v977_v15 = vmul.f32 %v5754_v0, %v976_v43  ;;  %v1757_v35 = vmul.f32 %v5762_v14, %v1754_v20  ;;  %v1755_v51 = vmul.f32 %v5754_v0, %v1754_v20 }
 0x10f   :  { %v6157_v31 = vpop.permute.xlu0 %874  ;;  %v1670_v45 = vsel %vm130_vm1, %v1668_v4, %v1669_v56  ;;  %v1693_v56 = vsel %vm130_vm1, %v1690_v33, %v1692_v44  ;;  %v1711_v4 = vmul.f32 %v5744_v62, %v1709_v30  ;;  %v1775_v44 = vstv %s6181_s8  ;;  %s5056_s8 = sld [smem:[#allocation2 + $0x67]] }
 0x110   :  { %1616 = vrot.lane.b32.xlu1 %v1613_v10, %s5280_s26  ;;  %v6200_v10 = vsel %vm70_vm0, %v831_v41, %v832_v1  ;;  %v978_v1 = vmul.f32 %v5744_v62, %v976_v43  ;;  %v1725_v43 = vmul.f32 %v5744_v62, %v1723_v52  ;;  %v986_v20 = vrot.slane %v979_v27, 1 }
 0x111   :  { %1614 = vrot.lane.b32.xlu0 %v1611_v60, %s5280_s26  ;;  %v1689_v60 = vrot.slane %v1683_v28, 2  ;;  %v1710_v28 = vmul.f32 %v5754_v0, %v1709_v30  ;;  %v983_v30 = vrot.slane %v977_v15, 1  ;;  %v1761_v27 = vrot.slane %v1755_v51, 1 }
 0x112   :  { %v6172_v63 = vpop.permute.xlu1 %914  ;;  %v1837_v51 = vmul.f32 %v5762_v14, %v1834_v39 }
 0x113   :  { %9038 = vst [vmem:[#allocation13_spill] sm:$0xff] %v6172_v63  ;;  %v6179_v12 = vpop.permute.xlu0 %912 }
 0x114   :  { %9040 = vst [vmem:[#allocation15_spill] sm:$0xff] %v6179_v12  ;;  %1637 = vrot.lane.b32.xlu1 %v1634_v26, %s5279_s25  ;;  %v1035_v26 = vstv %s6167_s7  ;;  %v1816_v12 = vmul.f32 %v5762_v14, %v1813_v17  ;;  %s6536_s7 = sld [smem:[#allocation2 + $0x64]] }
 0x115   :  { %1635 = vrot.lane.b32.xlu0 %v1632_v16, %s5279_s25  ;;  %v1691_v16 = vsel %vm130_vm1, %v1689_v60, %v1690_v33  ;;  %v1037_v23 = vmul.f32 %v5744_v62, %v1035_v26  ;;  %v984_v33 = vrot.slane %v978_v1, 1  ;;  %v1036_v60 = vmul.f32 %v5754_v0, %v1035_v26 }
 0x116   :  { %v6202_v38 = vpop.permute.xlu1 %935  ;;  %v1777_v1 = vmul.f32 %v5744_v62, %v1775_v44 }
 0x117   :  { %9041 = vst [vmem:[#allocation22_spill] sm:$0xff] %v6202_v38  ;;  %v6214_v24 = vpop.permute.xlu0 %933  ;;  %v1043_v15 = vrot.slane %v1037_v23, 2  ;;  %v1042_v38 = vrot.slane %v1036_v60, 2  ;;  %v6274_v63 = vsel %vm70_vm0, %v984_v33, %v986_v20  ;;  %v1835_v23 = vmul.f32 %v5754_v0, %v1834_v39 }
 0x118   :  { %9044 = vst [vmem:[#allocation9_spill] sm:$0xff] %v6214_v24  ;;  %1675 = vrot.lane.b32.xlu1 %v1672_v59, %s5280_s26  ;;  %v1038_v59 = vmul.f32 %v5762_v14, %v1035_v26  ;;  %v1783_v60 = vrot.slane %v1777_v1, 1 }
 0x119   :  { %1673 = vrot.lane.b32.xlu0 %v1670_v45, %s5280_s26  ;;  %v1724_v45 = vmul.f32 %v5754_v0, %v1723_v52  ;;  %v1776_v52 = vmul.f32 %v5754_v0, %v1775_v44 }
 0x11a   :  { %v6232_v41 = vpop.permute.xlu1 %955  ;;  %v1045_v34 = vrot.slane %v1038_v59, 2  ;;  %v6282_v59 = vsel %vm70_vm0, %v983_v30, %v984_v33  ;;  %v1821_v33 = vrot.slane %v1815_v2, 2  ;;  %v1823_v30 = vrot.slane %v1816_v12, 2  ;;  %v6310_v2 = vld [vmem:[%s8994_s0 + $0x8] sm:$0xff] }
 0x11b   :  { %v6238_v18 = vpop.permute.xlu0 %953  ;;  %v1782_v53 = vrot.slane %v1776_v52, 1  ;;  %v1844_v52 = vrot.slane %v1837_v51, 2  ;;  %v1878_v51 = vstv %s6262_s14  ;;  %s6585_s14 = sld [smem:[#allocation2 + $0x3c]] }
 0x11c   :  { %1696 = vrot.lane.b32.xlu1 %v1693_v56, %s5279_s25  ;;  %v1778_v56 = vmul.f32 %v5762_v14, %v1775_v44  ;;  %v1814_v44 = vmul.f32 %v5754_v0, %v1813_v17  ;;  %v6291_v14 = vsel %vm130_vm1, %v1043_v15, %v1045_v34  ;;  %v1128_v0 = vstv %s6244_s11  ;;  %v6318_v34 = vld [vmem:[%s8994_s0 + $0x10] sm:$0x3]  ;;  %s6557_s11 = sld [smem:[#allocation2 + $0x68]] }
 0x11d   :  { %1694 = vrot.lane.b32.xlu0 %v1691_v16, %s5279_s25  ;;  %v1764_v16 = vrot.slane %v1757_v35, 1  ;;  %v1836_v35 = vmul.f32 %v5744_v62, %v1834_v39  ;;  %v1763_v62 = vsel %vm70_vm0, %v1761_v27, %v1762_v55  ;;  %9045 = vst [vmem:[#allocation17_spill] sm:$0xff] %v6291_v14  ;;  %v6296_v39 = vsel %vm130_vm1, %v1042_v38, %v1043_v15 }
 0x11e   :  { %v6256_v24 = vpop.permute.xlu1 %969  ;;  %v1785_v17 = vrot.slane %v1778_v56, 1  ;;  %9046 = vst [vmem:[#allocation24_spill] sm:$0xff] %v6296_v39  ;;  %v1820_v1 = vrot.slane %v1814_v44, 2  ;;  %v1096_v56 = vstv %s6250_s12  ;;  %v1784_v38 = vsel %vm70_vm0, %v1782_v53, %v1783_v60  ;;  %v6324_v53 = vld [vmem:[%s8994_s0] sm:$0xff]  ;;  %s6563_s12 = sld [smem:[#allocation2 + $0x39]] }
 0x11f   :  { %v6264_v26 = vpop.permute.xlu0 %967  ;;  %v1765_v20 = vsel %vm70_vm0, %v1762_v55, %v1764_v16  ;;  %v1842_v55 = vrot.slane %v1836_v35, 2  ;;  %v1841_v16 = vrot.slane %v1835_v23, 2  ;;  %v1864_v15 = vstv %s6254_s13  ;;  %s6568_s13 = sld [smem:[#allocation2 + $0x6a]] }
 0x120   :  { %1716 = vrot.lane.b32.xlu1 %v1711_v4, %s5280_s26  ;;  %v1130_v12 = vmul.f32 %v6310_v2, %v1128_v0  ;;  %v1131_v44 = vmul.f32 %v6318_v34, %v1128_v0  ;;  %v1129_v35 = vmul.f32 %v6324_v53, %v1128_v0  ;;  %v1909_v23 = vstv %s6266_s15  ;;  %s6596_s15 = sld [smem:[#allocation2 + $0x6b]] }
 0x121   :  { %1714 = vrot.lane.b32.xlu0 %v1710_v28, %s5280_s26  ;;  %v6333_v39 = vmul.f32 %v6310_v2, %v1096_v56  ;;  %v6336_v14 = vmul.f32 %v6324_v53, %v1096_v56  ;;  %v1845_v13 = vsel %vm130_vm1, %v1842_v55, %v1844_v52  ;;  %v1843_v0 = vsel %vm130_vm1, %v1841_v16, %v1842_v55 }
 0x122   :  { %v6279_v4 = vpop.permute.xlu1 %1007  ;;  %v6342_v19 = vmul.f32 %v6310_v2, %v1864_v15  ;;  %v1187_v56 = vstv %s6284_s16  ;;  %v808_v55 = vadd.f32 %v6072_v21, %v6184_v57  ;;  %v1136_v16 = vrot.slane %v1130_v12, 1  ;;  %s6602_s16 = sld [smem:[#allocation2 + $0x36]] }
 0x123   :  { %v6286_v28 = vpop.permute.xlu0 %1005  ;;  %v1138_v36 = vrot.slane %v1131_v44, 1  ;;  %v960_v57 = vadd.f32 %v6232_v41, %v6217_v11  ;;  %v6374_v12 = vmul.f32 %v6310_v2, %v1187_v56  ;;  %v1188_v44 = vmul.f32 %v6324_v53, %v1187_v56 }
 0x124   :  { %1730 = vrot.lane.b32.xlu1 %v1725_v43, %s5279_s25  ;;  %v1786_v43 = vsel %vm70_vm0, %v1783_v60, %v1785_v17  ;;  %v1824_v60 = vsel %vm130_vm1, %v1821_v33, %v1823_v30  ;;  %v1822_v17 = vsel %vm130_vm1, %v1820_v1, %v1821_v33  ;;  %v6350_v30 = vmul.f32 %v6310_v2, %v1878_v51 }
 0x125   :  { %1728 = vrot.lane.b32.xlu0 %v1724_v45, %s5279_s25  ;;  %v6353_v1 = vmul.f32 %v6324_v53, %v1878_v51  ;;  %v1910_v51 = vmul.f32 %v6324_v53, %v1909_v23  ;;  %v822_v21 = vadd.f32 %v6092_v29, %v808_v55  ;;  %v974_v41 = vadd.f32 %v6256_v24, %v960_v57 }
 0x126   :  { %v6302_v27 = vpop.permute.xlu1 %1028  ;;  %9049 = vst [vmem:[#allocation11_spill] sm:$0xff] %v6350_v30  ;;  %v1912_v30 = vmul.f32 %v6318_v34, %v1909_v23 }
 0x127   :  { %v6313_v45 = vpop.permute.xlu0 %1026  ;;  %9050 = vst [vmem:[#allocation12_spill] sm:$0xff] %v6353_v1  ;;  %v1930_v1 = vstv %s6298_s17  ;;  %s6623_s17 = sld [smem:[#allocation2 + $0x5d]] }
 0x128   :  { %9047 = vst [vmem:[#allocation10_spill] sm:$0xff] %v6313_v45  ;;  %1768 = vrot.lane.b32.xlu1 %v1765_v20, %s5280_s26  ;;  %v6345_v20 = vmul.f32 %v6324_v53, %v1864_v15  ;;  %v1135_v15 = vrot.slane %v1129_v35, 1  ;;  %v658_v45 = vadd.f32 %v5995_v7, %v6090_v46  ;;  %v959_v7 = vadd.f32 %v6238_v18, %v6222_v49 }
 0x129   :  { %1766 = vrot.lane.b32.xlu0 %v1763_v62, %s5280_s26  ;;  %v1911_v62 = vmul.f32 %v6310_v2, %v1909_v23  ;;  %v1916_v49 = vrot.slane %v1910_v51, 1  ;;  %v839_v18 = vadd.f32 %v6190_v47, %v822_v21 }
 0x12a   :  { %v6347_v33 = vpop.permute.xlu1 %1066  ;;  %v672_v11 = vadd.f32 %v6011_v42, %v658_v45  ;;  %v1139_v42 = vsel %vm70_vm0, %v1136_v16, %v1138_v36  ;;  %v1137_v24 = vsel %vm70_vm0, %v1135_v15, %v1136_v16  ;;  %v1932_v45 = vmul.f32 %v6310_v2, %v1930_v1 }
 0x12b   :  { %9048 = vst [vmem:[#allocation20_spill] sm:$0xff] %v6347_v33  ;;  %v6359_v52 = vpop.permute.xlu0 %1064  ;;  %v807_v33 = vadd.f32 %v6078_v22, %v6187_v48  ;;  %v657_v22 = vadd.f32 %v6000_v61, %v6098_v54  ;;  %v1917_v29 = vrot.slane %v1911_v62, 1  ;;  %v973_v54 = vadd.f32 %v6264_v26, %v959_v7 }
 0x12c   :  { %1789 = vrot.lane.b32.xlu1 %v1786_v43, %s5279_s25  ;;  %v1933_v26 = vmul.f32 %v6318_v34, %v1930_v1  ;;  %v689_v47 = vadd.f32 %v6117_v3, %v672_v11  ;;  %v860_v3 = vadd.f32 %v6124_v32, %v839_v18  ;;  %v1968_v16 = vstv %s6376_s23  ;;  %v9052_v11 = vld [vmem:[#allocation14_spill] sm:$0xff]  ;;  %v9055_v18 = vld [vmem:[#allocation25_spill] sm:$0xff]  ;;  %s6700_s23 = sld [smem:[#allocation2 + $0x8e]] }
 0x12d   :  { %1787 = vrot.lane.b32.xlu0 %v1784_v38, %s5279_s25  ;;  %v821_v48 = vadd.f32 %v6107_v6, %v807_v33  ;;  %v1190_v38 = vmul.f32 %v6318_v34, %v1187_v56  ;;  %v671_v61 = vadd.f32 %v6014_v8, %v657_v22  ;;  %v1919_v6 = vrot.slane %v1912_v30, 1 }
 0x12e   :  { %v6383_v46 = vpop.permute.xlu1 %1087  ;;  %v1195_v8 = vrot.slane %v6374_v12, 2  ;;  %v1194_v30 = vrot.slane %v1188_v44, 2  ;;  %v990_v56 = vadd.f32 %v6282_v59, %v973_v54  ;;  %v6410_v55 = vsel %vm70_vm0, %v1916_v49, %v1917_v29  ;;  %v9053_v44 = vld [vmem:[#allocation16_spill] sm:$0xff]  ;;  %v9054_v54 = vld [vmem:[#allocation11_spill] sm:$0xff] }
 0x12f   :  { %v6387_v43 = vpop.permute.xlu0 %1085  ;;  %v838_v35 = vadd.f32 %v6200_v10, %v821_v48  ;;  %v1197_v36 = vrot.slane %v1190_v38, 2  ;;  %v688_v62 = vadd.f32 %v6122_v37, %v671_v61  ;;  %v1920_v10 = vsel %vm70_vm0, %v1917_v29, %v1919_v6 }
 0x130   :  { %1827 = vrot.lane.b32.xlu1 %v1824_v60, %s5280_s26  ;;  %v1931_v60 = vmul.f32 %v6324_v53, %v1930_v1  ;;  %v1938_v1 = vrot.slane %v1932_v45, 1  ;;  %v1940_v15 = vrot.slane %v1933_v26, 1  ;;  %v710_v21 = vadd.f32 %v6022_v40, %v689_v47  ;;  %v9058_v26 = vld [vmem:[#allocation21_spill] sm:$0xff]  ;;  %v9059_v47 = vld [vmem:[#allocation24_spill] sm:$0xff] }
 0x131   :  { %1825 = vrot.lane.b32.xlu0 %v1822_v17, %s5280_s26  ;;  %v991_v17 = vadd.f32 %v6274_v63, %v974_v41  ;;  %v859_v37 = vadd.f32 %v6131_v9, %v838_v35  ;;  %v881_v57 = vadd.f32 %v6147_v25, %v860_v3  ;;  %v1011_v48 = vadd.f32 %v6286_v28, %v990_v56 }
 0x132   :  { %v1108_v23 = vpop.permute.xlu1 %1107  ;;  %v1937_v51 = vrot.slane %v1931_v60, 1  ;;  %v1969_v38 = vmul.f32 %v6324_v53, %v1968_v16  ;;  %v1989_v49 = vstv %s6412_s24  ;;  %s6711_s24 = sld [smem:[#allocation2 + $0x8f]] }
 0x133   :  { %v1106_v33 = vpop.permute.xlu0 %1105  ;;  %v1112_v63 = vadd.f32 %v1108_v23, %v6333_v39  ;;  %v1012_v12 = vadd.f32 %v6279_v4, %v991_v17  ;;  %v709_v39 = vadd.f32 %v6025_v50, %v688_v62  ;;  %v6433_v4 = vmul.f32 %v6310_v2, %v1968_v16  ;;  %v9057_v23 = vld [vmem:[#allocation12_spill] sm:$0xff]  ;;  %v9060_v62 = vld [vmem:[#allocation13_spill] sm:$0xff] }
 0x134   :  { %1848 = vrot.lane.b32.xlu1 %v1845_v13, %s5279_s25  ;;  %v1111_v59 = vadd.f32 %v1106_v33, %v6336_v14  ;;  %v731_v14 = vadd.f32 %v6032_v5, %v710_v21  ;;  %v898_v5 = vadd.f32 %v9052_v11, %v881_v57  ;;  %v1939_v6 = vsel %vm70_vm0, %v1937_v51, %v1938_v1  ;;  %v9062_v21 = vld [vmem:[#allocation8_spill] sm:$0xff] }
 0x135   :  { %1846 = vrot.lane.b32.xlu0 %v1843_v0, %s5279_s25  ;;  %v880_v0 = vadd.f32 %v6157_v31, %v859_v37  ;;  %v1033_v40 = vadd.f32 %v6302_v27, %v1012_v12  ;;  %v730_v50 = vadd.f32 %v6036_v58, %v709_v39  ;;  %v9051_v31 = vld [vmem:[#allocation10_spill] sm:$0xff]  ;;  %v1198_v27 = vsel %vm130_vm1, %v1195_v8, %v1197_v36  ;;  %v9061_v37 = vld [vmem:[#allocation15_spill] sm:$0xff] }
 0x136   :  { %v1122_v13 = vpop.permute.xlu1 %1121  ;;  %v1032_v28 = vadd.f32 %v9051_v31, %v1011_v48  ;;  %v1941_v58 = vsel %vm70_vm0, %v1938_v1, %v1940_v15  ;;  %v919_v56 = vadd.f32 %v9060_v62, %v898_v5  ;;  %v1975_v1 = vrot.slane %v1969_v38, 2  ;;  %v9063_v12 = vld [vmem:[#allocation22_spill] sm:$0xff]  ;;  %v9065_v48 = vld [vmem:[#allocation23_spill] sm:$0xff] }
 0x137   :  { %v1126_v32 = vadd.f32 %v1122_v13, %v1112_v63  ;;  %v1120_v22 = vpop.permute.xlu0 %1119  ;;  %v897_v61 = vadd.f32 %v9053_v44, %v880_v0  ;;  %v747_v60 = vadd.f32 %v9058_v26, %v730_v50  ;;  %v1992_v15 = vmul.f32 %v6318_v34, %v1989_v49  ;;  %v9067_v50 = vld [vmem:[#allocation18_spill] sm:$0xff] }
 0x138   :  { %v1125_v9 = vadd.f32 %v1120_v22, %v1111_v59  ;;  %1871 = vrot.lane.b32.xlu1 %v6342_v19, %s5280_s26  ;;  %v1971_v19 = vmul.f32 %v6318_v34, %v1968_v16  ;;  %v1049_v17 = vadd.f32 %v9059_v47, %v1032_v28  ;;  %v1991_v16 = vmul.f32 %v6310_v2, %v1989_v49  ;;  %v9064_v22 = vld [vmem:[#allocation20_spill] sm:$0xff] }
 0x139   :  { %1869 = vrot.lane.b32.xlu0 %v6345_v20, %s5280_s26  ;;  %v1143_v25 = vadd.f32 %v1139_v42, %v1126_v32  ;;  %v1196_v20 = vsel %vm130_vm1, %v1194_v30, %v1195_v8  ;;  %v748_v42 = vadd.f32 %v9055_v18, %v731_v14  ;;  %v1976_v8 = vrot.slane %v6433_v4, 2  ;;  %v9066_v14 = vld [vmem:[#allocation9_spill] sm:$0xff] }
 0x13a   :  { %v1160_v7 = vpop.permute.xlu1 %1159  ;;  %v1142_v29 = vadd.f32 %v1137_v24, %v1125_v9  ;;  %v9056_v24 = vld [vmem:[#allocation17_spill] sm:$0xff]  ;;  %v1978_v30 = vrot.slane %v1971_v19, 2  ;;  %v918_v59 = vadd.f32 %v9061_v37, %v897_v61  ;;  %v1990_v51 = vmul.f32 %v6324_v53, %v1989_v49 }
 0x13b   :  { %v1158_v41 = vpop.permute.xlu0 %1157  ;;  %v1050_v45 = vadd.f32 %v9056_v24, %v1033_v40  ;;  %v1164_v35 = vadd.f32 %v1160_v7, %v1143_v25  ;;  %v769_v57 = vadd.f32 %v9062_v21, %v748_v42  ;;  %v940_v32 = vadd.f32 %v9063_v12, %v919_v56 }
 0x13c   :  { %1885 = vrot.lane.b32.xlu1 %v9054_v54, %s5279_s25  ;;  %v1163_v33 = vadd.f32 %v1158_v41, %v1142_v29  ;;  %v768_v9 = vadd.f32 %v9065_v48, %v747_v60  ;;  %v1070_v40 = vadd.f32 %v6359_v52, %v1049_v17  ;;  %v9068_v29 = vld [vmem:[#allocation19_spill] sm:$0xff]  ;;  %v1979_v11 = vsel %vm130_vm1, %v1976_v8, %v1978_v30 }
 0x13d   :  { %1883 = vrot.lane.b32.xlu0 %v9057_v23, %s5279_s25  ;;  %v1071_v39 = vadd.f32 %v9064_v22, %v1050_v45  ;;  %v790_v31 = vadd.f32 %v9067_v50, %v769_v57  ;;  %v1997_v41 = vrot.slane %v1991_v16, 2  ;;  %v1996_v44 = vrot.slane %v1990_v51, 2 }
 0x13e   :  { %v1181_v36 = vpop.permute.xlu1 %1180  ;;  %v1091_v19 = vadd.f32 %v6387_v43, %v1070_v40  ;;  %v1977_v43 = vsel %vm130_vm1, %v1975_v1, %v1976_v8  ;;  %v2014_v24 = vstv %s6466_s27  ;;  %v2059_v8 = vstv %s6471_s28  ;;  %s6732_s27 = sld [smem:[#allocation2 + $0x81]] }
 0x13f   :  { %v1185_v3 = vadd.f32 %v1181_v36, %v1164_v35  ;;  %v1179_v63 = vpop.permute.xlu0 %1178  ;;  %v1092_v28 = vadd.f32 %v6383_v46, %v1071_v39  ;;  %v942_v52 = vmax.f32 %v790_v31, %v940_v32  ;;  %v1998_v23 = vsel %vm130_vm1, %v1996_v44, %v1997_v41  ;;  %s6762_s28 = sld [smem:[#allocation2 + $0x4]] }
 0x140   :  { %v1184_v13 = vadd.f32 %v1179_v63, %v1163_v33  ;;  %1923 = vrot.lane.b32.xlu1 %v1920_v10, %s5280_s26  ;;  %v939_v10 = vadd.f32 %v9066_v14, %v918_v59  ;;  %v2016_v60 = vmul.f32 %v6310_v2, %v2014_v24  ;;  %v2015_v47 = vmul.f32 %v6324_v53, %v2014_v24 }
 0x141   :  { %1921 = vrot.lane.b32.xlu0 %v6410_v55, %s5280_s26  ;;  %v1202_v0 = vadd.f32 %v1198_v27, %v1185_v3  ;;  %v789_v55 = vadd.f32 %v9068_v29, %v768_v9  ;;  %v1999_v27 = vrot.slane %v1992_v15, 2  ;;  %v1094_v61 = vmax.f32 %v942_v52, %v1092_v28 }
 0x142   :  { %v1219_v25 = vpop.permute.xlu1 %1218  ;;  %v1201_v4 = vadd.f32 %v1196_v20, %v1184_v13  ;;  %v2028_v17 = vstv %s6479_s29  ;;  %v2061_v33 = vmul.f32 %v6310_v2, %v2059_v8  ;;  %v2062_v36 = vmul.f32 %v6318_v34, %v2059_v8  ;;  %s6766_s29 = sld [smem:[#allocation2 + $0x7e]] }
 0x143   :  { %v1217_v7 = vpop.permute.xlu0 %1216  ;;  %v1223_v5 = vadd.f32 %v1219_v25, %v1202_v0  ;;  %v941_v46 = vmax.f32 %v789_v55, %v939_v10  ;;  %v2000_v42 = vsel %vm130_vm1, %v1997_v41, %v1999_v27  ;;  %v2080_v30 = vstv %s6482_s30  ;;  %s6776_s30 = sld [smem:[#allocation2 + $0x1]] }
 0x144   :  { %1944 = vrot.lane.b32.xlu1 %v1941_v58, %s5279_s25  ;;  %v1222_v20 = vadd.f32 %v1217_v7, %v1201_v4  ;;  %v2060_v56 = vmul.f32 %v6324_v53, %v2059_v8  ;;  %v2030_v63 = vmul.f32 %v6310_v2, %v2028_v17  ;;  %v2082_v1 = vmul.f32 %v6310_v2, %v2080_v30 }
 0x145   :  { %1942 = vrot.lane.b32.xlu0 %v1939_v6, %s5279_s25  ;;  %v1093_v49 = vmax.f32 %v941_v46, %v1091_v19  ;;  %v2083_v16 = vmul.f32 %v6318_v34, %v2080_v30  ;;  %v2029_v37 = vmul.f32 %v6324_v53, %v2028_v17  ;;  %v2067_v59 = vrot.slane %v2061_v33, 1 }
 0x146   :  { %v1240_v38 = vpop.permute.xlu1 %1239  ;;  %v2069_v13 = vrot.slane %v2062_v36, 1  ;;  %v2066_v51 = vrot.slane %v2060_v56, 1  ;;  %v2081_v21 = vmul.f32 %v6324_v53, %v2080_v30  ;;  %v2118_v57 = vstv %s5050_s3  ;;  %s6797_s3 = sld [smem:[#allocation2 + $0x2]] }
 0x147   :  { %v1244_v54 = vadd.f32 %v1240_v38, %v1223_v5  ;;  %v1238_v58 = vpop.permute.xlu0 %1237  ;;  %v2088_v32 = vrot.slane %v2082_v1, 1  ;;  %v2090_v22 = vrot.slane %v2083_v16, 1  ;;  %v2120_v0 = vmul.f32 %v6310_v2, %v2118_v57 }
 0x148   :  { %v1243_v18 = vadd.f32 %v1238_v58, %v1222_v20  ;;  %1982 = vrot.lane.b32.xlu1 %v1979_v11, %s5280_s26  ;;  %v2070_v39 = vsel %vm70_vm0, %v2067_v59, %v2069_v13  ;;  %v2121_v48 = vmul.f32 %v6318_v34, %v2118_v57  ;;  %v2068_v14 = vsel %vm70_vm0, %v2066_v51, %v2067_v59 }
 0x149   :  { %v1246_v6 = vmax.f32 %v1094_v61, %v1244_v54  ;;  %1980 = vrot.lane.b32.xlu0 %v1977_v43, %s5280_s26  ;;  %v2087_v10 = vrot.slane %v2081_v21, 1  ;;  %v2119_v40 = vmul.f32 %v6324_v53, %v2118_v57  ;;  %v2139_v25 = vstv %s5051_s4  ;;  %s6800_s4 = sld [smem:[#allocation2 + $0x84]] }
 0x14a   :  { %v1245_v45 = vmax.f32 %v1093_v49, %v1243_v18  ;;  %v6489_v35 = vpop.permute.xlu1 %1262  ;;  %v2091_v50 = vsel %vm70_vm0, %v2088_v32, %v2090_v22  ;;  %v2126_v31 = vrot.slane %v2120_v0, 2  ;;  %v2128_v28 = vrot.slane %v2121_v48, 2 }
 0x14b   :  { %1249 = vst.msk [vmem:[#allocation5 + $0x18] sm:$0xff] %vm638_vm2, %v1246_v6  ;;  %v6494_v26 = vpop.permute.xlu0 %1260  ;;  %v2141_v7 = vmul.f32 %v6310_v2, %v2139_v25  ;;  %v2142_v29 = vmul.f32 %v6318_v34, %v2139_v25  ;;  %v2089_v19 = vsel %vm70_vm0, %v2087_v10, %v2088_v32  ;;  %v2125_v11 = vrot.slane %v2119_v40, 2 }
 0x14c   :  { %1248 = vst.msk [vmem:[#allocation5 + $0x10] sm:$0xff] %vm638_vm2, %v1245_v45  ;;  %2003 = vrot.lane.b32.xlu1 %v2000_v42, %s5279_s25  ;;  %v2140_v52 = vmul.f32 %v6324_v53, %v2139_v25  ;;  %v2129_v41 = vsel %vm130_vm1, %v2126_v31, %v2128_v28  ;;  %v1283_v44 = vstv %s6526_s5  ;;  %v1342_v54 = vstv %s5004_s6  ;;  %s7416_s5 = sld [smem:[#allocation2 + $0x11]] }
 0x14d   :  { %2001 = vrot.lane.b32.xlu0 %v1998_v23, %s5279_s25  ;;  %v2147_v27 = vrot.slane %v2141_v7, 2  ;;  %v2149_v46 = vrot.slane %v2142_v29, 2  ;;  %v2127_v38 = vsel %vm130_vm1, %v2125_v11, %v2126_v31  ;;  %v2166_v49 = vstv %s6536_s7  ;;  %s6818_s7 = sld [smem:[#allocation2 + $0x5]] }
 0x14e   :  { %v6505_v62 = vpop.permute.xlu1 %1276  ;;  %v2146_v43 = vrot.slane %v2140_v52, 2  ;;  %v2211_v18 = vstv %s5056_s8  ;;  %v1285_v6 = vmul.f32 %v6310_v2, %v1283_v44  ;;  %v1286_v42 = vmul.f32 %v6318_v34, %v1283_v44  ;;  %s7097_s8 = sld [smem:[#allocation2 + $0x45]] }
 0x14f   :  { %v6508_v3 = vpop.permute.xlu0 %1274  ;;  %v2150_v58 = vsel %vm130_vm1, %v2147_v27, %v2149_v46  ;;  %v1284_v23 = vmul.f32 %v6324_v53, %v1283_v44  ;;  %v6577_v8 = vmul.f32 %v6310_v2, %v1342_v54  ;;  %v2168_v17 = vmul.f32 %v6310_v2, %v2166_v49  ;;  %s7693_s6 = sld [smem:[#allocation2 + $0x7c]] }
 0x150   :  { %2021 = vrot.lane.b32.xlu1 %v2016_v60, %s5280_s26  ;;  %v2148_v45 = vsel %vm130_vm1, %v2146_v43, %v2147_v27  ;;  %v1345_v60 = vmul.f32 %v6318_v34, %v1342_v54  ;;  %v2213_v33 = vmul.f32 %v6310_v2, %v2211_v18  ;;  %v1251_v36 = vstv %s6547_s9  ;;  %s7108_s9 = sld [smem:[#allocation2 + $0x50]] }
 0x151   :  { %2019 = vrot.lane.b32.xlu0 %v2015_v47, %s5280_s26  ;;  %v2167_v30 = vmul.f32 %v6324_v53, %v2166_v49  ;;  %v2180_v56 = vstv %s6552_s10  ;;  %v1291_v1 = vrot.slane %v1285_v6, 1  ;;  %v1293_v16 = vrot.slane %v1286_v42, 1  ;;  %s7112_s10 = sld [smem:[#allocation2 + $0x3f]] }
 0x152   :  { %v6516_v15 = vpop.permute.xlu1 %1314  ;;  %v2212_v59 = vmul.f32 %v6324_v53, %v2211_v18  ;;  %v2232_v13 = vstv %s6557_s11  ;;  %v1290_v51 = vrot.slane %v1284_v23, 1  ;;  %v1350_v21 = vrot.slane %v6577_v8, 2  ;;  %s7121_s11 = sld [smem:[#allocation2 + $0x66]] }
 0x153   :  { %v6519_v12 = vpop.permute.xlu0 %1312  ;;  %v1352_v57 = vrot.slane %v1345_v60, 2  ;;  %v6600_v32 = vmul.f32 %v6324_v53, %v1342_v54  ;;  %v2182_v0 = vmul.f32 %v6310_v2, %v2180_v56  ;;  %v2181_v48 = vmul.f32 %v6324_v53, %v2180_v56 }
 0x154   :  { %2035 = vrot.lane.b32.xlu1 %v2030_v63, %s5279_s25  ;;  %v2214_v63 = vmul.f32 %v6318_v34, %v2211_v18  ;;  %v2234_v40 = vmul.f32 %v6310_v2, %v2232_v13  ;;  %v2235_v25 = vmul.f32 %v6318_v34, %v2232_v13  ;;  %v6615_v31 = vmul.f32 %v6310_v2, %v1251_v36 }
 0x155   :  { %2033 = vrot.lane.b32.xlu0 %v2029_v37, %s5279_s25  ;;  %v6618_v28 = vmul.f32 %v6324_v53, %v1251_v36  ;;  %v2218_v29 = vrot.slane %v2212_v59, 1  ;;  %v6626_v11 = vsel %vm70_vm0, %v1291_v1, %v1293_v16  ;;  %v6629_v52 = vsel %vm70_vm0, %v1290_v51, %v1291_v1 }
 0x156   :  { %v6528_v9 = vpop.permute.xlu1 %1335  ;;  %v2221_v10 = vrot.slane %v2214_v63, 1  ;;  %v1349_v27 = vrot.slane %v6600_v32, 2  ;;  %v1492_v43 = vstv %s6585_s14  ;;  %v2240_v18 = vrot.slane %v2234_v40, 1  ;;  %s6965_s14 = sld [smem:[#allocation2 + $0x25]] }
 0x157   :  { %9069 = vst [vmem:[#allocation10_spill] sm:$0xff] %v6528_v9  ;;  %v6532_v4 = vpop.permute.xlu0 %1333  ;;  %v2242_v6 = vrot.slane %v2235_v25, 1  ;;  %v1494_v56 = vmul.f32 %v6310_v2, %v1492_v43  ;;  %v1495_v63 = vmul.f32 %v6318_v34, %v1492_v43  ;;  %v1493_v16 = vmul.f32 %v6324_v53, %v1492_v43 }
 0x158   :  { %9070 = vst [vmem:[#allocation14_spill] sm:$0xff] %v6532_v4  ;;  %2073 = vrot.lane.b32.xlu1 %v2070_v39, %s5280_s26  ;;  %v1433_v39 = vstv %s6563_s12  ;;  %v1585_v40 = vstv %s6623_s17  ;;  %v6685_v25 = vsel %vm130_vm1, %v1349_v27, %v1350_v21  ;;  %v2523_v4 = vstv %s6762_s28  ;;  %s6885_s12 = sld [smem:[#allocation2 + $0x7]] }
 0x159   :  { %2071 = vrot.lane.b32.xlu0 %v2068_v14, %s5280_s26  ;;  %v2219_v14 = vrot.slane %v2213_v33, 1  ;;  %v1401_v33 = vstv %s6602_s16  ;;  %v1434_v36 = vmul.f32 %v6324_v53, %v1433_v39  ;;  %9077 = vst [vmem:[#allocation24_spill] sm:$0xff] %v6685_v25  ;;  %v1587_v27 = vmul.f32 %v6310_v2, %v1585_v40  ;;  %s6984_s16 = sld [smem:[#allocation2 + $0x26]] }
 0x15a   :  { %v6541_v55 = vpop.permute.xlu1 %1373  ;;  %v6690_v43 = vmul.f32 %v6310_v2, %v1401_v33  ;;  %s5086_s17 = sld [smem:[#allocation2 + $0x29]] }
 0x15b   :  { %9071 = vst [vmem:[#allocation16_spill] sm:$0xff] %v6541_v55  ;;  %v6545_v5 = vpop.permute.xlu0 %1371  ;;  %v2222_v49 = vsel %vm70_vm0, %v2219_v14, %v2221_v10  ;;  %s7064_s28 = sld [smem:[#allocation2 + $0x4f]] }
 0x15c   :  { %9072 = vst [vmem:[#allocation11_spill] sm:$0xff] %v6545_v5  ;;  %2094 = vrot.lane.b32.xlu1 %v2091_v50, %s5279_s25  ;;  %v2270_v50 = vstv %s6568_s13  ;;  %s6916_s13 = sld [smem:[#allocation2 + $0x8]] }
 0x15d   :  { %2092 = vrot.lane.b32.xlu0 %v2089_v19, %s5279_s25  ;;  %v2233_v19 = vmul.f32 %v6324_v53, %v2232_v13  ;;  %v2272_v44 = vmul.f32 %v6310_v2, %v2270_v50  ;;  %v2273_v54 = vmul.f32 %v6318_v34, %v2270_v50  ;;  %v2271_v60 = vmul.f32 %v6324_v53, %v2270_v50 }
 0x15e   :  { %v6554_v20 = vpop.permute.xlu1 %1394  ;;  %v1440_v50 = vrot.slane %v1434_v36, 1 }
 0x15f   :  { %9073 = vst [vmem:[#allocation25_spill] sm:$0xff] %v6554_v20  ;;  %v6560_v61 = vpop.permute.xlu0 %1392  ;;  %v2239_v23 = vrot.slane %v2233_v19, 1  ;;  %v2278_v59 = vrot.slane %v2272_v44, 2  ;;  %v2280_v13 = vrot.slane %v2273_v54, 2  ;;  %v1502_v19 = vrot.slane %v1495_v63, 2 }
 0x160   :  { %9074 = vst [vmem:[#allocation17_spill] sm:$0xff] %v6560_v61  ;;  %2132 = vrot.lane.b32.xlu1 %v2129_v41, %s5280_s26  ;;  %v6634_v41 = vsel %vm130_vm1, %v1350_v21, %v1352_v57  ;;  %v2243_v57 = vsel %vm70_vm0, %v2240_v18, %v2242_v6  ;;  %v1499_v44 = vrot.slane %v1493_v16, 2  ;;  %v2363_v63 = vstv %s6664_s1  ;;  %s5037_s1 = sld [smem:[#allocation2 + $0x1e]] }
 0x161   :  { %2130 = vrot.lane.b32.xlu0 %v2127_v38, %s5280_s26  ;;  %9075 = vst [vmem:[#allocation12_spill] sm:$0xff] %v6634_v41  ;;  %v6640_v38 = vmul.f32 %v6310_v2, %v1433_v39  ;;  %v2281_v54 = vsel %vm130_vm1, %v2278_v59, %v2280_v13  ;;  %v2318_v13 = vstv %s6656_s19  ;;  %s5089_s19 = sld [smem:[#allocation2 + $0x2c]] }
 0x162   :  { %v6572_v24 = vpop.permute.xlu1 %1412 }
 0x163   :  { %v6580_v47 = vpop.permute.xlu0 %1410  ;;  %v1441_v1 = vrot.slane %v6640_v38, 1 }
 0x164   :  { %2153 = vrot.lane.b32.xlu1 %v2150_v58, %s5279_s25  ;;  %v1436_v58 = vmul.f32 %v6318_v34, %v1433_v39 }
 0x165   :  { %2151 = vrot.lane.b32.xlu0 %v2148_v45, %s5279_s25  ;;  %v2220_v45 = vsel %vm70_vm0, %v2218_v29, %v2219_v14  ;;  %v2277_v14 = vrot.slane %v2271_v60, 2  ;;  %v1500_v29 = vrot.slane %v1494_v56, 2 }
 0x166   :  { %v6592_v37 = vpop.permute.xlu1 %1426  ;;  %v1443_v51 = vrot.slane %v1436_v58, 1  ;;  %v1553_v58 = vstv %s6646_s18  ;;  %s5088_s18 = sld [smem:[#allocation2 + $0x2b]] }
 0x167   :  { %v6604_v22 = vpop.permute.xlu0 %1424  ;;  %v6717_v36 = vsel %vm130_vm1, %v1500_v29, %v1502_v19  ;;  %v6724_v16 = vsel %vm130_vm1, %v1499_v44, %v1500_v29  ;;  %v6744_v29 = vmul.f32 %v6324_v53, %v1553_v58  ;;  %v2320_v44 = vmul.f32 %v6310_v2, %v2318_v13 }
 0x168   :  { %2173 = vrot.lane.b32.xlu1 %v2168_v17, %s5280_s26  ;;  %v2291_v17 = vstv %s6596_s15  ;;  %v6706_v6 = vsel %vm70_vm0, %v1441_v1, %v1443_v51  ;;  %9080 = vst [vmem:[#allocation8_spill] sm:$0xff] %v6717_v36  ;;  %9082 = vst [vmem:[#allocation20_spill] sm:$0xff] %v6724_v16  ;;  %v1644_v51 = vstv %s6669_s20  ;;  %s6972_s15 = sld [smem:[#allocation2 + $0x28]] }
 0x169   :  { %2171 = vrot.lane.b32.xlu0 %v2167_v30, %s5280_s26  ;;  %v2293_v32 = vmul.f32 %v6310_v2, %v2291_v17  ;;  %v2294_v39 = vmul.f32 %v6318_v34, %v2291_v17  ;;  %v2292_v10 = vmul.f32 %v6324_v53, %v2291_v17  ;;  %v6714_v17 = vsel %vm70_vm0, %v1440_v50, %v1441_v1  ;;  %s5040_s20 = sld [smem:[#allocation2 + $0x21]] }
 0x16a   :  { %v6620_v7 = vpop.permute.xlu1 %1464  ;;  %v2364_v50 = vmul.f32 %v6324_v53, %v2363_v63 }
 0x16b   :  { %v6637_v46 = vpop.permute.xlu0 %1462  ;;  %v2299_v8 = vrot.slane %v2293_v32, 2  ;;  %v2301_v21 = vrot.slane %v2294_v39, 2  ;;  %v2298_v60 = vrot.slane %v2292_v10, 2  ;;  %v2332_v39 = vstv %s6675_s21  ;;  %s7038_s21 = sld [smem:[#allocation2 + $0x49]] }
 0x16c   :  { %2187 = vrot.lane.b32.xlu1 %v2182_v0, %s5279_s25  ;;  %v2365_v10 = vmul.f32 %v6310_v2, %v2363_v63  ;;  %v2370_v20 = vrot.slane %v2364_v50, 1 }
 0x16d   :  { %2185 = vrot.lane.b32.xlu0 %v2181_v48, %s5279_s25  ;;  %v2241_v48 = vsel %vm70_vm0, %v2239_v23, %v2240_v18  ;;  %v6703_v18 = vmul.f32 %v6324_v53, %v1401_v33  ;;  %v2279_v23 = vsel %vm130_vm1, %v2277_v14, %v2278_v59  ;;  %v1586_v33 = vmul.f32 %v6324_v53, %v1585_v40 }
 0x16e   :  { %v6651_v42 = vpop.permute.xlu1 %1485  ;;  %v6728_v59 = vmul.f32 %v6310_v2, %v1553_v58  ;;  %v2302_v1 = vsel %vm130_vm1, %v2299_v8, %v2301_v21  ;;  %v2300_v14 = vsel %vm130_vm1, %v2298_v60, %v2299_v8  ;;  %v1646_v21 = vmul.f32 %v6310_v2, %v1644_v51 }
 0x16f   :  { %v6660_v30 = vpop.permute.xlu0 %1483  ;;  %v2319_v8 = vmul.f32 %v6324_v53, %v2318_v13  ;;  %v1647_v60 = vmul.f32 %v6318_v34, %v1644_v51  ;;  %v2371_v13 = vrot.slane %v2365_v10, 1 }
 0x170   :  { %2225 = vrot.lane.b32.xlu1 %v2222_v49, %s5280_s26  ;;  %v1588_v49 = vmul.f32 %v6318_v34, %v1585_v40  ;;  %v2366_v40 = vmul.f32 %v6318_v34, %v2363_v63  ;;  %v2422_v63 = vstv %s6700_s23  ;;  %s7047_s23 = sld [smem:[#allocation2 + $0x4a]] }
 0x171   :  { %2223 = vrot.lane.b32.xlu0 %v2220_v45, %s5280_s26  ;;  %v2425_v50 = vmul.f32 %v6318_v34, %v2422_v63 }
 0x172   :  { %v6677_v0 = vpop.permute.xlu1 %1523  ;;  %v1595_v32 = vrot.slane %v1588_v49, 1  ;;  %v2333_v49 = vmul.f32 %v6324_v53, %v2332_v39  ;;  %v2373_v61 = vrot.slane %v2366_v40, 1  ;;  %v2424_v40 = vmul.f32 %v6310_v2, %v2422_v63 }
 0x173   :  { %9076 = vst [vmem:[#allocation21_spill] sm:$0xff] %v6677_v0  ;;  %v6687_v38 = vpop.permute.xlu0 %1521  ;;  %v2432_v16 = vrot.slane %v2425_v50, 2  ;;  %v2478_v50 = vstv %s6776_s30  ;;  %s7660_s30 = sld [smem:[#allocation2 + $0x76]] }
 0x174   :  { %9078 = vst [vmem:[#allocation13_spill] sm:$0xff] %v6687_v38  ;;  %2246 = vrot.lane.b32.xlu1 %v2243_v57, %s5279_s25  ;;  %v1593_v57 = vrot.slane %v1587_v27, 1  ;;  %v2334_v27 = vmul.f32 %v6310_v2, %v2332_v39  ;;  %v2443_v39 = vstv %s6711_s24  ;;  %v2374_v0 = vsel %vm70_vm0, %v2371_v13, %v2373_v61  ;;  %s7051_s24 = sld [smem:[#allocation2 + $0x4d]] }
 0x175   :  { %2244 = vrot.lane.b32.xlu0 %v2241_v48, %s5279_s25  ;;  %v2445_v55 = vmul.f32 %v6310_v2, %v2443_v39  ;;  %v2444_v25 = vmul.f32 %v6324_v53, %v2443_v39 }
 0x176   :  { %v6708_v45 = vpop.permute.xlu1 %1544  ;;  %v6757_v58 = vsel %vm70_vm0, %v1593_v57, %v1595_v32 }
 0x177   :  { %9079 = vst [vmem:[#allocation15_spill] sm:$0xff] %v6708_v45  ;;  %v6719_v56 = vpop.permute.xlu0 %1542  ;;  %v1737_v45 = vstv %s6732_s27  ;;  %v2451_v36 = vrot.slane %v2445_v55, 2  ;;  %v6825_v55 = vld [vmem:[%s8994_s0 + $0x20] sm:$0xff]  ;;  %s7053_s27 = sld [smem:[#allocation2 + $0x1b]] }
 0x178   :  { %9081 = vst [vmem:[#allocation22_spill] sm:$0xff] %v6719_v56  ;;  %2284 = vrot.lane.b32.xlu1 %v2281_v54, %s5280_s26  ;;  %v1592_v54 = vrot.slane %v1586_v33, 1  ;;  %v1645_v33 = vmul.f32 %v6324_v53, %v1644_v51  ;;  %v1652_v56 = vrot.slane %v1646_v21, 2  ;;  %v2423_v21 = vmul.f32 %v6324_v53, %v2422_v63 }
 0x179   :  { %2282 = vrot.lane.b32.xlu0 %v2279_v23, %s5280_s26  ;;  %v2384_v23 = vstv %s6695_s22  ;;  %v1738_v63 = vmul.f32 %v6324_v53, %v1737_v45  ;;  %s5094_s22 = sld [smem:[#allocation2 + $0x4c]] }
 0x17a   :  { %v6737_v48 = vpop.permute.xlu1 %1564  ;;  %v6772_v32 = vsel %vm70_vm0, %v1592_v54, %v1593_v57  ;;  %v2386_v51 = vmul.f32 %v6310_v2, %v2384_v23  ;;  %v2387_v5 = vmul.f32 %v6318_v34, %v2384_v23  ;;  %v2385_v10 = vmul.f32 %v6324_v53, %v2384_v23 }
 0x17b   :  { %v6746_v19 = vpop.permute.xlu0 %1562  ;;  %v1654_v57 = vrot.slane %v1647_v60, 2  ;;  %v1651_v54 = vrot.slane %v1645_v33, 2  ;;  %v2446_v23 = vmul.f32 %v6318_v34, %v2443_v39  ;;  %v1739_v60 = vmul.f32 %v6310_v2, %v1737_v45 }
 0x17c   :  { %2305 = vrot.lane.b32.xlu1 %v2302_v1, %s5279_s25  ;;  %v1740_v33 = vmul.f32 %v6318_v34, %v1737_v45  ;;  %v2391_v61 = vrot.slane %v2385_v10, 1  ;;  %v2450_v10 = vrot.slane %v2444_v25, 2 }
 0x17d   :  { %2303 = vrot.lane.b32.xlu0 %v2300_v14, %s5279_s25  ;;  %v6804_v39 = vsel %vm130_vm1, %v1652_v56, %v1654_v57  ;;  %v6810_v9 = vsel %vm130_vm1, %v1651_v54, %v1652_v56  ;;  %v6831_v56 = vld [vmem:[%s8994_s0 + $0x18] sm:$0xff]  ;;  %v1745_v25 = vrot.slane %v1739_v60, 1  ;;  %v1744_v54 = vrot.slane %v1738_v63, 1 }
 0x17e   :  { %v6764_v1 = vpop.permute.xlu1 %1578  ;;  %9083 = vst [vmem:[#allocation23_spill] sm:$0xff] %v6804_v39  ;;  %9085 = vst [vmem:[#allocation18_spill] sm:$0xff] %v6810_v9  ;;  %v1747_v57 = vrot.slane %v1740_v33, 1  ;;  %v2525_v39 = vmul.f32 %v6825_v55, %v2523_v4  ;;  %v6850_v63 = vmul.f32 %v6825_v55, %v2478_v50 }
 0x17f   :  { %v6769_v14 = vpop.permute.xlu0 %1576 }
 0x180   :  { %2325 = vrot.lane.b32.xlu1 %v2320_v44, %s5280_s26  ;;  %v2372_v44 = vsel %vm70_vm0, %v2370_v20, %v2371_v13  ;;  %v2394_v20 = vrot.slane %v2387_v5, 1  ;;  %v2430_v13 = vrot.slane %v2424_v40, 2  ;;  %v1705_v5 = vstv %s6766_s29  ;;  %v6816_v40 = vld [vmem:[%s8994_s0 + $0x28] sm:$0x3]  ;;  %s7652_s29 = sld [smem:[#allocation2 + $0x79]] }
 0x181   :  { %2323 = vrot.lane.b32.xlu0 %v2319_v8, %s5280_s26  ;;  %v2392_v8 = vrot.slane %v2386_v51, 1  ;;  %v2429_v51 = vrot.slane %v2423_v21, 2  ;;  %v6842_v60 = vmul.f32 %v6324_v53, %v1705_v5 }
 0x182   :  { %v6786_v38 = vpop.permute.xlu1 %1616  ;;  %v2433_v9 = vsel %vm130_vm1, %v2430_v13, %v2432_v16  ;;  %v2452_v16 = vsel %vm130_vm1, %v2450_v10, %v2451_v36  ;;  %v2531_v10 = vrot.slane %v2525_v39, 1 }
 0x183   :  { %v6792_v41 = vpop.permute.xlu0 %1614  ;;  %v2395_v21 = vsel %vm70_vm0, %v2392_v8, %v2394_v20  ;;  %v1417_v20 = vadd.f32 %v6572_v24, %v6690_v43  ;;  %v1267_v24 = vadd.f32 %v6489_v35, %v6615_v31 }
 0x184   :  { %2339 = vrot.lane.b32.xlu1 %v2334_v27, %s5279_s25  ;;  %v2453_v27 = vrot.slane %v2446_v23, 2  ;;  %v2393_v23 = vsel %vm70_vm0, %v2391_v61, %v2392_v8 }
 0x185   :  { %2337 = vrot.lane.b32.xlu0 %v2333_v49, %s5279_s25  ;;  %v1431_v43 = vadd.f32 %v6592_v37, %v1417_v20  ;;  %v1281_v35 = vadd.f32 %v6505_v62, %v1267_v24 }
 0x186   :  { %v6807_v45 = vpop.permute.xlu1 %1637  ;;  %v2454_v8 = vsel %vm130_vm1, %v2451_v36, %v2453_v27  ;;  %v2524_v36 = vmul.f32 %v6831_v56, %v2523_v4  ;;  %v2492_v27 = vstv %s6797_s3  ;;  %s7075_s3 = sld [smem:[#allocation2 + $0x42]] }
 0x187   :  { %9084 = vst [vmem:[#allocation9_spill] sm:$0xff] %v6807_v45  ;;  %v6820_v49 = vpop.permute.xlu0 %1635  ;;  %v1707_v45 = vmul.f32 %v6310_v2, %v1705_v5  ;;  %v1416_v5 = vadd.f32 %v6580_v47, %v6703_v18  ;;  %v1568_v18 = vadd.f32 %v6746_v19, %v6744_v29  ;;  %v1448_v19 = vadd.f32 %v6706_v6, %v1431_v43 }
 0x188   :  { %9086 = vst [vmem:[#allocation19_spill] sm:$0xff] %v6820_v49  ;;  %2377 = vrot.lane.b32.xlu1 %v2374_v0, %s5280_s26  ;;  %v2431_v49 = vsel %vm130_vm1, %v2429_v51, %v2430_v13  ;;  %v2526_v0 = vmul.f32 %v6816_v40, %v2523_v4  ;;  %v6860_v13 = vsel %vm70_vm0, %v1745_v25, %v1747_v57 }
 0x189   :  { %2375 = vrot.lane.b32.xlu0 %v2372_v44, %s5280_s26  ;;  %v6853_v44 = vmul.f32 %v6831_v56, %v2478_v50  ;;  %v6863_v51 = vsel %vm70_vm0, %v1744_v54, %v1745_v25  ;;  %v1796_v50 = vstv %s6800_s4  ;;  %v1569_v25 = vadd.f32 %v6737_v48, %v6728_v59  ;;  %s7678_s4 = sld [smem:[#allocation2 + $0x77]] }
 0x18a   :  { %v6845_v33 = vpop.permute.xlu1 %1675  ;;  %v2533_v57 = vrot.slane %v2526_v0, 1  ;;  %v1266_v4 = vadd.f32 %v6494_v26, %v6618_v28  ;;  %v1430_v47 = vadd.f32 %v6604_v22, %v1416_v5  ;;  %v2544_v54 = vstv %s6818_s7  ;;  %s7712_s7 = sld [smem:[#allocation2 + $0x7d]] }
 0x18b   :  { %v6857_v61 = vpop.permute.xlu0 %1673  ;;  %v1583_v37 = vadd.f32 %v6764_v1, %v1569_v25  ;;  %v2530_v59 = vrot.slane %v2524_v36, 1  ;;  %v1798_v48 = vmul.f32 %v6310_v2, %v1796_v50  ;;  %v1582_v22 = vadd.f32 %v6769_v14, %v1568_v18 }
 0x18c   :  { %2398 = vrot.lane.b32.xlu1 %v2395_v21, %s5279_s25  ;;  %v1280_v26 = vadd.f32 %v6508_v3, %v1266_v4  ;;  %v1799_v28 = vmul.f32 %v6318_v34, %v1796_v50  ;;  %v1797_v29 = vmul.f32 %v6324_v53, %v1796_v50  ;;  %v2494_v62 = vmul.f32 %v6825_v55, %v2492_v27 }
 0x18d   :  { %2396 = vrot.lane.b32.xlu0 %v2393_v23, %s5279_s25  ;;  %v2546_v1 = vmul.f32 %v6825_v55, %v2544_v54  ;;  %v2547_v2 = vmul.f32 %v6816_v40, %v2544_v54  ;;  %v1447_v3 = vadd.f32 %v6714_v17, %v1430_v47  ;;  %v2493_v14 = vmul.f32 %v6831_v56, %v2492_v27 }
 0x18e   :  { %v6882_v39 = vpop.permute.xlu1 %1696  ;;  %v2545_v34 = vmul.f32 %v6831_v56, %v2544_v54  ;;  %v1298_v53 = vadd.f32 %v6626_v11, %v1281_v35  ;;  %v1600_v6 = vadd.f32 %v6757_v58, %v1583_v37  ;;  %v6911_v23 = vsel %vm70_vm0, %v2530_v59, %v2531_v10  ;;  %v9088_v54 = vld [vmem:[#allocation9_spill] sm:$0xff] }
 0x18f   :  { %v6889_v31 = vpop.permute.xlu0 %1694  ;;  %v1804_v0 = vrot.slane %v1798_v48, 2  ;;  %v1297_v17 = vadd.f32 %v6629_v52, %v1280_v26  ;;  %v1599_v20 = vadd.f32 %v6772_v32, %v1582_v22  ;;  %v1806_v36 = vrot.slane %v1799_v28, 2  ;;  %v9091_v48 = vld [vmem:[#allocation8_spill] sm:$0xff] }
 0x190   :  { %2436 = vrot.lane.b32.xlu1 %v2433_v9, %s5280_s26  ;;  %v6905_v9 = vsel %vm70_vm0, %v2531_v10, %v2533_v57  ;;  %v1803_v5 = vrot.slane %v1797_v29, 2  ;;  %v1469_v11 = vadd.f32 %v6620_v7, %v1448_v19  ;;  %v2552_v58 = vrot.slane %v2546_v1, 1  ;;  %v9092_v29 = vld [vmem:[#allocation20_spill] sm:$0xff] }
 0x191   :  { %2434 = vrot.lane.b32.xlu0 %v2431_v49, %s5280_s26  ;;  %v2554_v10 = vrot.slane %v2547_v2, 1  ;;  %v1468_v50 = vadd.f32 %v6637_v46, %v1447_v3  ;;  %v2551_v43 = vrot.slane %v2545_v34, 1  ;;  %v2582_v32 = vstv %s6885_s12  ;;  %v9093_v3 = vld [vmem:[#allocation12_spill] sm:$0xff]  ;;  %v9094_v34 = vld [vmem:[#allocation23_spill] sm:$0xff]  ;;  %s7154_s12 = sld [smem:[#allocation2 + $0x63]] }
 0x192   :  { %v1717_v21 = vpop.permute.xlu1 %1716  ;;  %v1490_v25 = vadd.f32 %v6651_v42, %v1469_v11  ;;  %v1621_v57 = vadd.f32 %v6786_v38, %v1600_v6  ;;  %v1620_v47 = vadd.f32 %v6792_v41, %v1599_v20  ;;  %v9090_v41 = vld [vmem:[#allocation19_spill] sm:$0xff]  ;;  %v2585_v59 = vmul.f32 %v6816_v40, %v2582_v32  ;;  %v9096_v20 = vld [vmem:[#allocation18_spill] sm:$0xff] }
 0x193   :  { %v1715_v49 = vpop.permute.xlu0 %1714  ;;  %v1721_v27 = vadd.f32 %v1717_v21, %v1707_v45  ;;  %v1318_v45 = vadd.f32 %v6519_v12, %v1297_v17  ;;  %v6937_v12 = vmul.f32 %v6825_v55, %v2582_v32  ;;  %v2583_v28 = vmul.f32 %v6831_v56, %v2582_v32 }
 0x194   :  { %2457 = vrot.lane.b32.xlu1 %v2454_v8, %s5279_s25  ;;  %v1720_v24 = vadd.f32 %v1715_v49, %v6842_v60  ;;  %v1319_v8 = vadd.f32 %v6516_v15, %v1298_v53  ;;  %v9087_v60 = vld [vmem:[#allocation10_spill] sm:$0xff]  ;;  %v1642_v15 = vadd.f32 %v9088_v54, %v1621_v57  ;;  %v1641_v35 = vadd.f32 %v9090_v41, %v1620_v47  ;;  %v9099_v57 = vld [vmem:[#allocation16_spill] sm:$0xff] }
 0x195   :  { %2455 = vrot.lane.b32.xlu0 %v2452_v16, %s5279_s25  ;;  %v1489_v16 = vadd.f32 %v6660_v30, %v1468_v50  ;;  %v9089_v30 = vld [vmem:[#allocation14_spill] sm:$0xff]  ;;  %v1507_v26 = vadd.f32 %v9091_v48, %v1490_v25  ;;  %v2555_v1 = vsel %vm70_vm0, %v2552_v58, %v2554_v10  ;;  %v2553_v2 = vsel %vm70_vm0, %v2551_v43, %v2552_v58  ;;  %v9098_v43 = vld [vmem:[#allocation13_spill] sm:$0xff] }
 0x196   :  { %v1731_v52 = vpop.permute.xlu1 %1730  ;;  %v1340_v18 = vadd.f32 %v9087_v60, %v1319_v8  ;;  %v1339_v38 = vadd.f32 %v9089_v30, %v1318_v45  ;;  %v1659_v53 = vadd.f32 %v9094_v34, %v1642_v15  ;;  %v2590_v49 = vrot.slane %v6937_v12, 2  ;;  %v9102_v60 = vld [vmem:[#allocation22_spill] sm:$0xff]  ;;  %v9103_v12 = vld [vmem:[#allocation25_spill] sm:$0xff] }
 0x197   :  { %v1735_v4 = vadd.f32 %v1731_v52, %v1721_v27  ;;  %v1729_v7 = vpop.permute.xlu0 %1728  ;;  %v1506_v19 = vadd.f32 %v9092_v29, %v1489_v16  ;;  %v2592_v11 = vrot.slane %v2585_v59, 2  ;;  %v9097_v27 = vld [vmem:[#allocation21_spill] sm:$0xff] }
 0x198   :  { %v1734_v46 = vadd.f32 %v1729_v7, %v1720_v24  ;;  %2485 = vrot.lane.b32.xlu1 %v6850_v63, %s5280_s26  ;;  %v1357_v21 = vadd.f32 %v9093_v3, %v1340_v18  ;;  %v1528_v10 = vadd.f32 %v9097_v27, %v1507_v26  ;;  %v2589_v24 = vrot.slane %v2583_v28, 2  ;;  %v9100_v7 = vld [vmem:[#allocation15_spill] sm:$0xff] }
 0x199   :  { %2483 = vrot.lane.b32.xlu0 %v6853_v44, %s5280_s26  ;;  %v1752_v42 = vadd.f32 %v6860_v13, %v1735_v4  ;;  %v1807_v44 = vsel %vm130_vm1, %v1804_v0, %v1806_v36  ;;  %v1805_v13 = vsel %vm130_vm1, %v1803_v5, %v1804_v0  ;;  %v9095_v0 = vld [vmem:[#allocation24_spill] sm:$0xff]  ;;  %v1658_v36 = vadd.f32 %v9096_v20, %v1641_v35 }
 0x19a   :  { %v1769_v37 = vpop.permute.xlu1 %1768  ;;  %v1751_v63 = vadd.f32 %v6863_v51, %v1734_v46  ;;  %v2603_v51 = vstv %s6916_s13  ;;  %v1356_v17 = vadd.f32 %v9095_v0, %v1339_v38  ;;  %v1527_v32 = vadd.f32 %v9098_v43, %v1506_v19  ;;  %v9101_v46 = vld [vmem:[#allocation11_spill] sm:$0xff]  ;;  %s7161_s13 = sld [smem:[#allocation2 + $0x70]] }
 0x19b   :  { %v1767_v22 = vpop.permute.xlu0 %1766  ;;  %v1773_v6 = vadd.f32 %v1769_v37, %v1752_v42  ;;  %v2605_v52 = vmul.f32 %v6825_v55, %v2603_v51  ;;  %v2604_v25 = vmul.f32 %v6831_v56, %v2603_v51  ;;  %v1378_v4 = vadd.f32 %v9099_v57, %v1357_v21 }
 0x19c   :  { %2499 = vrot.lane.b32.xlu1 %v2494_v62, %s5279_s25  ;;  %v1772_v5 = vadd.f32 %v1767_v22, %v1751_v63  ;;  %v1549_v45 = vadd.f32 %v9100_v7, %v1528_v10  ;;  %v1680_v16 = vadd.f32 %v6845_v33, %v1659_v53  ;;  %v1548_v18 = vadd.f32 %v9102_v60, %v1527_v32  ;;  %v9104_v33 = vld [vmem:[#allocation17_spill] sm:$0xff] }
 0x19d   :  { %2497 = vrot.lane.b32.xlu0 %v2493_v14, %s5279_s25  ;;  %v2606_v14 = vmul.f32 %v6816_v40, %v2603_v51  ;;  %v1679_v54 = vadd.f32 %v6857_v61, %v1658_v36  ;;  %v1399_v30 = vadd.f32 %v9103_v12, %v1378_v4  ;;  %v2593_v37 = vsel %vm130_vm1, %v2590_v49, %v2592_v11 }
 0x19e   :  { %v1790_v62 = vpop.permute.xlu1 %1789  ;;  %v1701_v38 = vadd.f32 %v6882_v39, %v1680_v16  ;;  %v2611_v61 = vrot.slane %v2605_v52, 2  ;;  %v2628_v3 = vstv %s6965_s14  ;;  %v2673_v21 = vstv %s6972_s15  ;;  %s7169_s14 = sld [smem:[#allocation2 + $0x6d]] }
 0x19f   :  { %v1794_v58 = vadd.f32 %v1790_v62, %v1773_v6  ;;  %v1788_v50 = vpop.permute.xlu0 %1787  ;;  %v1551_v63 = vmax.f32 %v1399_v30, %v1549_v45  ;;  %v2613_v48 = vrot.slane %v2606_v14, 2  ;;  %v2630_v0 = vmul.f32 %v6825_v55, %v2628_v3  ;;  %s7175_s15 = sld [smem:[#allocation2 + $0x69]] }
 0x1a0   :  { %v1793_v8 = vadd.f32 %v1788_v50, %v1772_v5  ;;  %2537 = vrot.lane.b32.xlu1 %v6905_v9, %s5280_s26  ;;  %v1377_v9 = vadd.f32 %v9101_v46, %v1356_v17  ;;  %v2675_v17 = vmul.f32 %v6825_v55, %v2673_v21  ;;  %v2629_v20 = vmul.f32 %v6831_v56, %v2628_v3 }
 0x1a1   :  { %2535 = vrot.lane.b32.xlu0 %v6911_v23, %s5280_s26  ;;  %v1811_v47 = vadd.f32 %v1807_v44, %v1794_v58  ;;  %v1700_v23 = vadd.f32 %v6889_v31, %v1679_v54  ;;  %v2591_v44 = vsel %vm130_vm1, %v2589_v24, %v2590_v49  ;;  %v2610_v31 = vrot.slane %v2604_v25, 2 }
 0x1a2   :  { %v1828_v15 = vpop.permute.xlu1 %1827  ;;  %v1810_v42 = vadd.f32 %v1805_v13, %v1793_v8  ;;  %v1398_v35 = vadd.f32 %v9104_v33, %v1377_v9  ;;  %v1703_v13 = vmax.f32 %v1551_v63, %v1701_v38  ;;  %v2614_v51 = vsel %vm130_vm1, %v2611_v61, %v2613_v48 }
 0x1a3   :  { %v1826_v41 = vpop.permute.xlu0 %1825  ;;  %v1832_v59 = vadd.f32 %v1828_v15, %v1811_v47  ;;  %v2612_v6 = vsel %vm130_vm1, %v2610_v31, %v2611_v61  ;;  %v2642_v36 = vstv %s6984_s16  ;;  %v2676_v5 = vmul.f32 %v6816_v40, %v2673_v21  ;;  %s7187_s16 = sld [smem:[#allocation2 + $0x6e]] }
 0x1a4   :  { %2558 = vrot.lane.b32.xlu1 %v2555_v1, %s5279_s25  ;;  %v1550_v26 = vmax.f32 %v1398_v35, %v1548_v18  ;;  %v1831_v39 = vadd.f32 %v1826_v41, %v1810_v42  ;;  %v2674_v11 = vmul.f32 %v6831_v56, %v2673_v21  ;;  %v2694_v27 = vstv %s5086_s17  ;;  %s7198_s17 = sld [smem:[#allocation2 + $0x71]] }
 0x1a5   :  { %2556 = vrot.lane.b32.xlu0 %v2553_v2, %s5279_s25  ;;  %v2644_v58 = vmul.f32 %v6825_v55, %v2642_v36  ;;  %v2643_v50 = vmul.f32 %v6831_v56, %v2642_v36  ;;  %v2681_v24 = vrot.slane %v2675_v17, 1  ;;  %v2683_v52 = vrot.slane %v2676_v5, 1 }
 0x1a6   :  { %v1849_v22 = vpop.permute.xlu1 %1848  ;;  %v1702_v19 = vmax.f32 %v1550_v26, %v1700_v23  ;;  %v2696_v43 = vmul.f32 %v6825_v55, %v2694_v27  ;;  %v2697_v32 = vmul.f32 %v6816_v40, %v2694_v27  ;;  %v2732_v8 = vstv %s5088_s18  ;;  %s7202_s18 = sld [smem:[#allocation2 + $0x73]] }
 0x1a7   :  { %v1853_v28 = vadd.f32 %v1849_v22, %v1832_v59  ;;  %v1847_v29 = vpop.permute.xlu0 %1846  ;;  %v2680_v25 = vrot.slane %v2674_v11, 1  ;;  %v2695_v57 = vmul.f32 %v6831_v56, %v2694_v27  ;;  %v2734_v7 = vmul.f32 %v6825_v55, %v2732_v8 }
 0x1a8   :  { %v1852_v1 = vadd.f32 %v1847_v29, %v1831_v39  ;;  %2596 = vrot.lane.b32.xlu1 %v2593_v37, %s5280_s26  ;;  %v2684_v45 = vsel %vm70_vm0, %v2681_v24, %v2683_v52  ;;  %v2702_v16 = vrot.slane %v2696_v43, 1  ;;  %v2704_v47 = vrot.slane %v2697_v32, 1 }
 0x1a9   :  { %v1855_v2 = vmax.f32 %v1703_v13, %v1853_v28  ;;  %2594 = vrot.lane.b32.xlu0 %v2591_v44, %s5280_s26  ;;  %v2735_v46 = vmul.f32 %v6816_v40, %v2732_v8  ;;  %v2682_v60 = vsel %vm70_vm0, %v2680_v25, %v2681_v24  ;;  %v2701_v18 = vrot.slane %v2695_v57, 1 }
 0x1aa   :  { %v1854_v34 = vmax.f32 %v1702_v19, %v1852_v1  ;;  %v6992_v53 = vpop.permute.xlu1 %1871  ;;  %v2733_v54 = vmul.f32 %v6831_v56, %v2732_v8  ;;  %v2753_v15 = vstv %s5089_s19  ;;  %v2740_v12 = vrot.slane %v2734_v7, 2  ;;  %v7069_v1 = vld [vmem:[%s8994_s0 + $0x8] sm:$0xff]  ;;  %s7221_s19 = sld [smem:[#allocation2 + $0x74]] }
 0x1ab   :  { %1858 = vst.msk [vmem:[#allocation5 + $0x28] sm:$0xff] %vm638_vm2, %v1855_v2  ;;  %v6996_v49 = vpop.permute.xlu0 %1869  ;;  %v2705_v30 = vsel %vm70_vm0, %v2702_v16, %v2704_v47  ;;  %v2742_v38 = vrot.slane %v2735_v46, 2  ;;  %v2755_v41 = vmul.f32 %v6825_v55, %v2753_v15  ;;  %v2756_v33 = vmul.f32 %v6816_v40, %v2753_v15 }
 0x1ac   :  { %1857 = vst.msk [vmem:[#allocation5 + $0x20] sm:$0xff] %vm638_vm2, %v1854_v34  ;;  %2617 = vrot.lane.b32.xlu1 %v2614_v51, %s5279_s25  ;;  %v2703_v23 = vsel %vm70_vm0, %v2701_v18, %v2702_v16  ;;  %v2739_v37 = vrot.slane %v2733_v54, 2  ;;  %v2754_v63 = vmul.f32 %v6831_v56, %v2753_v15  ;;  %v1892_v31 = vstv %s5037_s1  ;;  %v7080_v34 = vld [vmem:[%s8994_s0 + $0x10] sm:$0x3]  ;;  %s7226_s1 = sld [smem:[#allocation2 + $0x8a]] }
 0x1ad   :  { %2615 = vrot.lane.b32.xlu0 %v2612_v6, %s5279_s25  ;;  %v2743_v61 = vsel %vm130_vm1, %v2740_v12, %v2742_v38  ;;  %v2761_v48 = vrot.slane %v2755_v41, 2  ;;  %v2763_v26 = vrot.slane %v2756_v33, 2  ;;  %v1951_v28 = vstv %s5040_s20  ;;  %s7260_s20 = sld [smem:[#allocation2 + $0xd]] }
 0x1ae   :  { %v7006_v62 = vpop.permute.xlu1 %1885  ;;  %v2741_v22 = vsel %vm130_vm1, %v2739_v37, %v2740_v12  ;;  %v2760_v44 = vrot.slane %v2754_v63, 2  ;;  %v2780_v19 = vstv %s7038_s21  ;;  %v1894_v2 = vmul.f32 %v7069_v1, %v1892_v31  ;;  %s7269_s21 = sld [smem:[#allocation2 + $0x87]] }
 0x1af   :  { %v7009_v10 = vpop.permute.xlu0 %1883  ;;  %v2764_v29 = vsel %vm130_vm1, %v2761_v48, %v2763_v26  ;;  %v2825_v21 = vstv %s5094_s22  ;;  %v1895_v6 = vmul.f32 %v7080_v34, %v1892_v31  ;;  %v1954_v36 = vmul.f32 %v7080_v34, %v1951_v28  ;;  %s7276_s22 = sld [smem:[#allocation2 + $0xa]] }
 0x1b0   :  { %2635 = vrot.lane.b32.xlu1 %v2630_v0, %s5280_s26  ;;  %v2762_v3 = vsel %vm130_vm1, %v2760_v44, %v2761_v48  ;;  %v7086_v0 = vld [vmem:[%s8994_s0] sm:$0xff]  ;;  %v2782_v27 = vmul.f32 %v6825_v55, %v2780_v19  ;;  %v2827_v24 = vmul.f32 %v6825_v55, %v2825_v21  ;;  %v2828_v52 = vmul.f32 %v6816_v40, %v2825_v21 }
 0x1b1   :  { %2633 = vrot.lane.b32.xlu0 %v2629_v20, %s5280_s26  ;;  %v1893_v17 = vmul.f32 %v7086_v0, %v1892_v31  ;;  %v1953_v20 = vmul.f32 %v7069_v1, %v1951_v28  ;;  %v1952_v11 = vmul.f32 %v7086_v0, %v1951_v28  ;;  %v2846_v43 = vstv %s7051_s24  ;;  %s7300_s24 = sld [smem:[#allocation2 + $0x8d]] }
 0x1b2   :  { %v7017_v14 = vpop.permute.xlu1 %1923  ;;  %v1860_v32 = vstv %s7053_s27  ;;  %v1900_v8 = vrot.slane %v1894_v2, 1  ;;  %v2826_v57 = vmul.f32 %v6831_v56, %v2825_v21  ;;  %v1902_v7 = vrot.slane %v1895_v6, 1  ;;  %s7313_s27 = sld [smem:[#allocation2 + $0xe]] }
 0x1b3   :  { %v7020_v4 = vpop.permute.xlu0 %1921  ;;  %v1959_v16 = vrot.slane %v1953_v20, 2  ;;  %v1961_v47 = vrot.slane %v1954_v36, 2  ;;  %v2848_v54 = vmul.f32 %v6825_v55, %v2846_v43  ;;  %v2849_v15 = vmul.f32 %v6816_v40, %v2846_v43 }
 0x1b4   :  { %9105 = vst [vmem:[#allocation10_spill] sm:$0xff] %v7020_v4  ;;  %2649 = vrot.lane.b32.xlu1 %v2644_v58, %s5279_s25  ;;  %v2781_v58 = vmul.f32 %v6831_v56, %v2780_v19  ;;  %v2835_v38 = vrot.slane %v2828_v52, 1  ;;  %v2884_v41 = vstv %s7064_s28  ;;  %v7124_v33 = vmul.f32 %v7069_v1, %v1860_v32  ;;  %s7372_s28 = sld [smem:[#allocation2 + $0x10]] }
 0x1b5   :  { %2647 = vrot.lane.b32.xlu0 %v2643_v50, %s5279_s25  ;;  %v2794_v50 = vstv %s7047_s23  ;;  %v2832_v63 = vrot.slane %v2826_v57, 1  ;;  %v7131_v48 = vmul.f32 %v7086_v0, %v1860_v32  ;;  %v7134_v26 = vsel %vm70_vm0, %v1900_v8, %v1902_v7  ;;  %s7297_s23 = sld [smem:[#allocation2 + $0xb]] }
 0x1b6   :  { %v7027_v9 = vpop.permute.xlu1 %1944  ;;  %v2796_v18 = vmul.f32 %v6825_v55, %v2794_v50  ;;  %v2795_v12 = vmul.f32 %v6831_v56, %v2794_v50  ;;  %v7140_v44 = vsel %vm130_vm1, %v1959_v16, %v1961_v47  ;;  %v2101_v28 = vstv %s7097_s8  ;;  %s7471_s8 = sld [smem:[#allocation2 + $0x2e]] }
 0x1b7   :  { %9106 = vst [vmem:[#allocation9_spill] sm:$0xff] %v7027_v9  ;;  %v7031_v42 = vpop.permute.xlu0 %1942  ;;  %9112 = vst [vmem:[#allocation23_spill] sm:$0xff] %v7140_v44  ;;  %v2856_v19 = vrot.slane %v2849_v15, 1  ;;  %v2886_v2 = vmul.f32 %v6825_v55, %v2884_v41  ;;  %v2104_v32 = vmul.f32 %v7080_v34, %v2101_v28  ;;  %v2102_v57 = vmul.f32 %v7086_v0, %v2101_v28 }
 0x1b8   :  { %9107 = vst [vmem:[#allocation14_spill] sm:$0xff] %v7031_v42  ;;  %2687 = vrot.lane.b32.xlu1 %v2684_v45, %s5280_s26  ;;  %v1899_v45 = vrot.slane %v1893_v17, 1  ;;  %v2887_v17 = vmul.f32 %v6816_v40, %v2884_v41 }
 0x1b9   :  { %2685 = vrot.lane.b32.xlu0 %v2682_v60, %s5280_s26  ;;  %v1958_v60 = vrot.slane %v1952_v11, 2 }
 0x1ba   :  { %v7040_v35 = vpop.permute.xlu1 %1982 }
 0x1bb   :  { %9108 = vst [vmem:[#allocation19_spill] sm:$0xff] %v7040_v35  ;;  %v7044_v59 = vpop.permute.xlu0 %1980  ;;  %v3057_v35 = vstv %s7221_s19  ;;  %s7557_s19 = sld [smem:[#allocation2 + $0x56]] }
 0x1bc   :  { %9109 = vst [vmem:[#allocation8_spill] sm:$0xff] %v7044_v59  ;;  %2708 = vrot.lane.b32.xlu1 %v2705_v30, %s5279_s25  ;;  %v2833_v30 = vrot.slane %v2827_v24, 1 }
 0x1bd   :  { %2706 = vrot.lane.b32.xlu0 %v2703_v23, %s5279_s25  ;;  %v2042_v23 = vstv %s7075_s3  ;;  %s7666_s3 = sld [smem:[#allocation2 + $0x4e]] }
 0x1be   :  { %v7055_v39 = vpop.permute.xlu1 %2003  ;;  %v2044_v21 = vmul.f32 %v7069_v1, %v2042_v23  ;;  %v2836_v6 = vsel %vm70_vm0, %v2833_v30, %v2835_v38  ;;  %v2834_v36 = vsel %vm70_vm0, %v2832_v63, %v2833_v30  ;;  %v2045_v50 = vmul.f32 %v7080_v34, %v2042_v23 }
 0x1bf   :  { %9110 = vst [vmem:[#allocation20_spill] sm:$0xff] %v7055_v39  ;;  %v7058_v13 = vpop.permute.xlu0 %2001  ;;  %v2043_v24 = vmul.f32 %v7086_v0, %v2042_v23 }
 0x1c0   :  { %9111 = vst [vmem:[#allocation12_spill] sm:$0xff] %v7058_v13  ;;  %2746 = vrot.lane.b32.xlu1 %v2743_v61, %s5280_s26  ;;  %v2847_v61 = vmul.f32 %v6831_v56, %v2846_v43  ;;  %v2103_v43 = vmul.f32 %v7069_v1, %v2101_v28 }
 0x1c1   :  { %2744 = vrot.lane.b32.xlu0 %v2741_v22, %s5280_s26  ;;  %v7137_v22 = vsel %vm70_vm0, %v1899_v45, %v1900_v8  ;;  %v2010_v8 = vstv %s7112_s10  ;;  %v2892_v45 = vrot.slane %v2886_v2, 2  ;;  %v2049_v23 = vrot.slane %v2043_v24, 1  ;;  %s7490_s10 = sld [smem:[#allocation2 + $0x2f]] }
 0x1c2   :  { %v7072_v51 = vpop.permute.xlu1 %2021  ;;  %v2853_v11 = vrot.slane %v2847_v61, 1  ;;  %v2109_v63 = vrot.slane %v2103_v43, 2  ;;  %v2111_v61 = vrot.slane %v2104_v32, 2  ;;  %v7193_v2 = vmul.f32 %v7086_v0, %v2010_v8 }
 0x1c3   :  { %v7091_v5 = vpop.permute.xlu0 %2019  ;;  %v2977_v43 = vstv %s7161_s13  ;;  %s5125_s13 = sld [smem:[#allocation2 + $0x35]] }
 0x1c4   :  { %2767 = vrot.lane.b32.xlu1 %v2764_v29, %s5279_s25  ;;  %v2854_v29 = vrot.slane %v2848_v54, 1  ;;  %v2050_v54 = vrot.slane %v2044_v21, 1 }
 0x1c5   :  { %2765 = vrot.lane.b32.xlu0 %v2762_v3, %s5279_s25  ;;  %v7148_v3 = vsel %vm130_vm1, %v1958_v60, %v1959_v16  ;;  %v2894_v16 = vrot.slane %v2887_v17, 2 }
 0x1c6   :  { %v7105_v25 = vpop.permute.xlu1 %2035  ;;  %9113 = vst [vmem:[#allocation24_spill] sm:$0xff] %v7148_v3  ;;  %v2857_v7 = vsel %vm70_vm0, %v2854_v29, %v2856_v19  ;;  %v7190_v19 = vmul.f32 %v7069_v1, %v2010_v8  ;;  %v7213_v8 = vsel %vm70_vm0, %v2049_v23, %v2050_v54 }
 0x1c7   :  { %v7110_v46 = vpop.permute.xlu0 %2033  ;;  %v2895_v17 = vsel %vm130_vm1, %v2892_v45, %v2894_v16  ;;  %v2162_v16 = vstv %s7154_s12  ;;  %s5124_s12 = sld [smem:[#allocation2 + $0x34]] }
 0x1c8   :  { %2787 = vrot.lane.b32.xlu1 %v2782_v27, %s5280_s26  ;;  %v2885_v27 = vmul.f32 %v6831_v56, %v2884_v41  ;;  %v2052_v41 = vrot.slane %v2045_v50, 1 }
 0x1c9   :  { %2785 = vrot.lane.b32.xlu0 %v2781_v58, %s5280_s26  ;;  %v2905_v58 = vstv %s7108_s9  ;;  %s7478_s9 = sld [smem:[#allocation2 + $0x31]] }
 0x1ca   :  { %v7127_v37 = vpop.permute.xlu1 %2073  ;;  %v2907_v47 = vmul.f32 %v6825_v55, %v2905_v58  ;;  %v2908_v60 = vmul.f32 %v6816_v40, %v2905_v58  ;;  %v2891_v30 = vrot.slane %v2885_v27, 2  ;;  %v2906_v38 = vmul.f32 %v6831_v56, %v2905_v58 }
 0x1cb   :  { %v7142_v31 = vpop.permute.xlu0 %2071  ;;  %v7210_v32 = vsel %vm70_vm0, %v2050_v54, %v2052_v41  ;;  %v7236_v41 = vmul.f32 %v7069_v1, %v2162_v16 }
 0x1cc   :  { %2801 = vrot.lane.b32.xlu1 %v2796_v18, %s5279_s25  ;;  %v2194_v18 = vstv %s7121_s11  ;;  %v2893_v58 = vsel %vm130_vm1, %v2891_v30, %v2892_v45  ;;  %v2912_v50 = vrot.slane %v2906_v38, 2  ;;  %v2932_v45 = vstv %s7169_s14  ;;  %s5122_s11 = sld [smem:[#allocation2 + $0x32]] }
 0x1cd   :  { %2799 = vrot.lane.b32.xlu0 %v2795_v12, %s5279_s25  ;;  %v2855_v12 = vsel %vm70_vm0, %v2853_v11, %v2854_v29  ;;  %v2196_v29 = vmul.f32 %v7069_v1, %v2194_v18  ;;  %v2197_v21 = vmul.f32 %v7080_v34, %v2194_v18  ;;  %v2915_v11 = vrot.slane %v2908_v60, 2  ;;  %s5075_s14 = sld [smem:[#allocation2 + $0x3]] }
 0x1ce   :  { %v7156_v20 = vpop.permute.xlu1 %2094  ;;  %v2195_v24 = vmul.f32 %v7086_v0, %v2194_v18  ;;  %v2253_v18 = vstv %s7175_s15  ;;  %v2979_v30 = vmul.f32 %v6825_v55, %v2977_v43  ;;  %v2980_v38 = vmul.f32 %v6816_v40, %v2977_v43  ;;  %s5078_s15 = sld [smem:[#allocation2 + $0x6]] }
 0x1cf   :  { %v7165_v52 = vpop.permute.xlu0 %2092  ;;  %v2204_v60 = vrot.slane %v2197_v21, 1  ;;  %v7243_v21 = vmul.f32 %v7086_v0, %v2162_v16  ;;  %v2933_v13 = vmul.f32 %v6831_v56, %v2932_v45  ;;  %v2254_v39 = vmul.f32 %v7086_v0, %v2253_v18 }
 0x1d0   :  { %9114 = vst [vmem:[#allocation18_spill] sm:$0xff] %v7165_v52  ;;  %2839 = vrot.lane.b32.xlu1 %v2836_v6, %s5280_s26  ;;  %v2108_v6 = vrot.slane %v2102_v57, 2  ;;  %v7216_v57 = vsel %vm130_vm1, %v2109_v63, %v2111_v61  ;;  %v2987_v16 = vrot.slane %v2980_v38, 1 }
 0x1d1   :  { %2837 = vrot.lane.b32.xlu0 %v2834_v36, %s5280_s26  ;;  %v2913_v36 = vrot.slane %v2907_v47, 2  ;;  %9118 = vst [vmem:[#allocation15_spill] sm:$0xff] %v7216_v57  ;;  %v2202_v47 = vrot.slane %v2196_v29, 1  ;;  %v2201_v29 = vrot.slane %v2195_v24, 1  ;;  %v2998_v24 = vstv %s7198_s17  ;;  %s5130_s17 = sld [smem:[#allocation2 + $0x55]] }
 0x1d2   :  { %v7181_v15 = vpop.permute.xlu1 %2132  ;;  %v7229_v54 = vsel %vm130_vm1, %v2108_v6, %v2109_v63  ;;  %v2978_v63 = vmul.f32 %v6831_v56, %v2977_v43  ;;  %v2985_v43 = vrot.slane %v2979_v30, 1  ;;  %v3058_v57 = vmul.f32 %v6831_v56, %v3057_v35 }
 0x1d3   :  { %9115 = vst [vmem:[#allocation21_spill] sm:$0xff] %v7181_v15  ;;  %v7185_v28 = vpop.permute.xlu0 %2130  ;;  %9120 = vst [vmem:[#allocation22_spill] sm:$0xff] %v7229_v54  ;;  %v2914_v61 = vsel %vm130_vm1, %v2912_v50, %v2913_v36  ;;  %v2256_v50 = vmul.f32 %v7080_v34, %v2253_v18  ;;  %v2260_v15 = vrot.slane %v2254_v39, 2 }
 0x1d4   :  { %9116 = vst [vmem:[#allocation13_spill] sm:$0xff] %v7185_v28  ;;  %2860 = vrot.lane.b32.xlu1 %v2857_v7, %s5279_s25  ;;  %v3064_v4 = vrot.slane %v3058_v57, 2 }
 0x1d5   :  { %2858 = vrot.lane.b32.xlu0 %v2855_v12, %s5279_s25  ;;  %v2916_v12 = vsel %vm130_vm1, %v2913_v36, %v2915_v11  ;;  %v2946_v11 = vstv %s7187_s16  ;;  %v7253_v36 = vsel %vm70_vm0, %v2202_v47, %v2204_v60  ;;  %v2263_v28 = vrot.slane %v2256_v50, 2  ;;  %s7544_s16 = sld [smem:[#allocation2 + $0x52]] }
 0x1d6   :  { %v7204_v27 = vpop.permute.xlu1 %2153  ;;  %v2948_v60 = vmul.f32 %v6825_v55, %v2946_v11 }
 0x1d7   :  { %9117 = vst [vmem:[#allocation16_spill] sm:$0xff] %v7204_v27  ;;  %v7218_v7 = vpop.permute.xlu0 %2151  ;;  %v2984_v27 = vrot.slane %v2978_v63, 1 }
 0x1d8   :  { %9119 = vst [vmem:[#allocation11_spill] sm:$0xff] %v7218_v7  ;;  %2898 = vrot.lane.b32.xlu1 %v2895_v17, %s5280_s26  ;;  %v2934_v17 = vmul.f32 %v6825_v55, %v2932_v45  ;;  %v3036_v7 = vstv %s7202_s18  ;;  %v7265_v45 = vsel %vm70_vm0, %v2201_v29, %v2202_v47  ;;  %v2999_v47 = vmul.f32 %v6831_v56, %v2998_v24  ;;  %s7553_s18 = sld [smem:[#allocation2 + $0x53]] }
 0x1d9   :  { %2896 = vrot.lane.b32.xlu0 %v2893_v58, %s5280_s26  ;;  %v2255_v58 = vmul.f32 %v7069_v1, %v2253_v18  ;;  %v3000_v18 = vmul.f32 %v6825_v55, %v2998_v24  ;;  %v3038_v29 = vmul.f32 %v6825_v55, %v3036_v7  ;;  %v3039_v63 = vmul.f32 %v6816_v40, %v3036_v7 }
 0x1da   :  { %v7238_v23 = vpop.permute.xlu1 %2173  ;;  %v3037_v3 = vmul.f32 %v6831_v56, %v3036_v7  ;;  %v2986_v54 = vsel %vm70_vm0, %v2984_v27, %v2985_v43  ;;  %v3005_v50 = vrot.slane %v2999_v47, 1 }
 0x1db   :  { %v7245_v6 = vpop.permute.xlu0 %2171  ;;  %v2261_v38 = vrot.slane %v2255_v58, 2  ;;  %v2988_v58 = vsel %vm70_vm0, %v2985_v43, %v2987_v16  ;;  %v3044_v43 = vrot.slane %v3038_v29, 2 }
 0x1dc   :  { %2919 = vrot.lane.b32.xlu1 %v2916_v12, %s5279_s25  ;;  %v2947_v12 = vmul.f32 %v6831_v56, %v2946_v11  ;;  %v2346_v11 = vstv %s7226_s1  ;;  %s7559_s1 = sld [smem:[#allocation2]] }
 0x1dd   :  { %2917 = vrot.lane.b32.xlu0 %v2914_v61, %s5279_s25  ;;  %v3001_v61 = vmul.f32 %v6816_v40, %v2998_v24  ;;  %v3060_v24 = vmul.f32 %v6816_v40, %v3057_v35  ;;  %v2348_v16 = vmul.f32 %v7069_v1, %v2346_v11  ;;  %v2349_v39 = vmul.f32 %v7080_v34, %v2346_v11 }
 0x1de   :  { %v7262_v59 = vpop.permute.xlu1 %2187  ;;  %v2347_v7 = vmul.f32 %v7086_v0, %v2346_v11  ;;  %v7307_v9 = vsel %vm130_vm1, %v2260_v15, %v2261_v38  ;;  %v3043_v11 = vrot.slane %v3037_v3, 2 }
 0x1df   :  { %v7271_v30 = vpop.permute.xlu0 %2185  ;;  %v3008_v27 = vrot.slane %v3001_v61, 1  ;;  %v3067_v47 = vrot.slane %v3060_v24, 2 }
 0x1e0   :  { %2939 = vrot.lane.b32.xlu1 %v2934_v17, %s5280_s26  ;;  %v3059_v17 = vmul.f32 %v6825_v55, %v3057_v35  ;;  %v3046_v35 = vrot.slane %v3039_v63, 2  ;;  %v3087_v63 = vstv %s7276_s22  ;;  %v3045_v57 = vsel %vm130_vm1, %v3043_v11, %v3044_v43  ;;  %s7588_s22 = sld [smem:[#allocation2 + $0x2a]] }
 0x1e1   :  { %2937 = vrot.lane.b32.xlu0 %v2933_v13, %s5280_s26  ;;  %v3006_v13 = vrot.slane %v3000_v18, 1  ;;  %v7304_v18 = vsel %vm130_vm1, %v2261_v38, %v2263_v28  ;;  %v2353_v28 = vrot.slane %v2347_v7, 1  ;;  %v2025_v11 = vadd.f32 %v7091_v5, %v7193_v2 }
 0x1e2   :  { %v7286_v44 = vpop.permute.xlu1 %2225  ;;  %v3065_v61 = vrot.slane %v3059_v17, 2  ;;  %v3047_v38 = vsel %vm130_vm1, %v3044_v43, %v3046_v35  ;;  %v2177_v5 = vadd.f32 %v7245_v6, %v7243_v21 }
 0x1e3   :  { %9121 = vst [vmem:[#allocation25_spill] sm:$0xff] %v7286_v44  ;;  %v7292_v42 = vpop.permute.xlu0 %2223  ;;  %v2356_v44 = vrot.slane %v2349_v39, 1  ;;  %v3009_v15 = vsel %vm70_vm0, %v3006_v13, %v3008_v27  ;;  %v3007_v3 = vsel %vm70_vm0, %v3005_v50, %v3006_v13  ;;  %v7340_v27 = vmul.f32 %v6831_v56, %v3087_v63 }
 0x1e4   :  { %9122 = vst [vmem:[#allocation17_spill] sm:$0xff] %v7292_v42  ;;  %2953 = vrot.lane.b32.xlu1 %v2948_v60, %s5279_s25  ;;  %v3132_v42 = vstv %s7260_s20  ;;  %v2314_v60 = vstv %s7269_s21  ;;  %v3068_v13 = vsel %vm130_vm1, %v3065_v61, %v3067_v47  ;;  %v3066_v7 = vsel %vm130_vm1, %v3064_v4, %v3065_v61  ;;  %s7570_s20 = sld [smem:[#allocation2 + $0x58]] }
 0x1e5   :  { %2951 = vrot.lane.b32.xlu0 %v2947_v12, %s5279_s25  ;;  %v2354_v12 = vrot.slane %v2348_v16, 1  ;;  %v3134_v17 = vmul.f32 %v6825_v55, %v3132_v42  ;;  %v7326_v24 = vmul.f32 %v7069_v1, %v2314_v60  ;;  %v7329_v16 = vmul.f32 %v7086_v0, %v2314_v60  ;;  %s7576_s21 = sld [smem:[#allocation2 + $0x27]] }
 0x1e6   :  { %v7310_v52 = vpop.permute.xlu1 %2246  ;;  %v2026_v50 = vadd.f32 %v7072_v51, %v7190_v19  ;;  %v3133_v4 = vmul.f32 %v6831_v56, %v3132_v42  ;;  %v3101_v60 = vstv %s7297_s23  ;;  %v2405_v47 = vstv %s7300_s24  ;;  %s7599_s23 = sld [smem:[#allocation2 + $0x59]] }
 0x1e7   :  { %v7315_v29 = vpop.permute.xlu0 %2244  ;;  %v7347_v35 = vsel %vm70_vm0, %v2354_v12, %v2356_v44  ;;  %v3140_v61 = vrot.slane %v3134_v17, 1  ;;  %v1876_v51 = vadd.f32 %v6992_v53, %v7124_v33  ;;  %v2178_v19 = vadd.f32 %v7238_v23, %v7236_v41  ;;  %s7603_s24 = sld [smem:[#allocation2 + $0x24]] }
 0x1e8   :  { %2991 = vrot.lane.b32.xlu1 %v2988_v58, %s5280_s26  ;;  %v3135_v58 = vmul.f32 %v6816_v40, %v3132_v42  ;;  %v7350_v40 = vsel %vm70_vm0, %v2353_v28, %v2354_v12  ;;  %v2040_v44 = vadd.f32 %v7105_v25, %v2026_v50  ;;  %v1875_v56 = vadd.f32 %v6996_v49, %v7131_v48 }
 0x1e9   :  { %2989 = vrot.lane.b32.xlu0 %v2986_v54, %s5280_s26  ;;  %v7337_v54 = vmul.f32 %v6825_v55, %v3087_v63  ;;  %v2039_v42 = vadd.f32 %v7110_v46, %v2025_v11  ;;  %v3153_v12 = vstv %s7313_s27  ;;  %v1890_v53 = vadd.f32 %v7006_v62, %v1876_v51  ;;  %s7612_s27 = sld [smem:[#allocation2 + $0x4b]] }
 0x1ea   :  { %v7332_v39 = vpop.permute.xlu1 %2284  ;;  %v3142_v63 = vrot.slane %v3135_v58, 1  ;;  %v2192_v25 = vadd.f32 %v7262_v59, %v2178_v19  ;;  %v3139_v41 = vrot.slane %v3133_v4, 1  ;;  %v7379_v23 = vmul.f32 %v7069_v1, %v2405_v47  ;;  %v9123_v19 = vld [vmem:[#allocation25_spill] sm:$0xff] }
 0x1eb   :  { %v7344_v43 = vpop.permute.xlu0 %2282  ;;  %v1889_v49 = vadd.f32 %v7009_v10, %v1875_v56  ;;  %v2191_v46 = vadd.f32 %v7271_v30, %v2177_v5  ;;  %v2408_v48 = vmul.f32 %v7080_v34, %v2405_v47  ;;  %v2406_v21 = vmul.f32 %v7086_v0, %v2405_v47  ;;  %v7393_v10 = vld [vmem:[%s8994_s0 + $0x28] sm:$0x3]  ;;  %v7400_v0 = vld [vmem:[%s8994_s0 + $0x18] sm:$0xff] }
 0x1ec   :  { %3012 = vrot.lane.b32.xlu1 %v3009_v15, %s5279_s25  ;;  %v2057_v62 = vadd.f32 %v7210_v32, %v2040_v44  ;;  %v3103_v59 = vmul.f32 %v6825_v55, %v3101_v60  ;;  %v3155_v6 = vmul.f32 %v6825_v55, %v3153_v12  ;;  %v3156_v1 = vmul.f32 %v7393_v10, %v3153_v12 }
 0x1ed   :  { %3010 = vrot.lane.b32.xlu0 %v3007_v3, %s5279_s25  ;;  %v2056_v30 = vadd.f32 %v7213_v8, %v2039_v42  ;;  %v3102_v32 = vmul.f32 %v7400_v0, %v3101_v60  ;;  %v7404_v28 = vsel %vm70_vm0, %v3140_v61, %v3142_v63  ;;  %v3154_v55 = vmul.f32 %v7400_v0, %v3153_v12  ;;  %v9126_v12 = vld [vmem:[#allocation17_spill] sm:$0xff] }
 0x1ee   :  { %v7369_v2 = vpop.permute.xlu1 %2305  ;;  %v1907_v15 = vadd.f32 %v7134_v26, %v1890_v53  ;;  %v2209_v3 = vadd.f32 %v7253_v36, %v2192_v25  ;;  %v7410_v8 = vsel %vm70_vm0, %v3139_v41, %v3140_v61  ;;  %v2413_v17 = vrot.slane %v7379_v23, 2  ;;  %v7440_v41 = vld [vmem:[%s8994_s0 + $0x20] sm:$0xff] }
 0x1ef   :  { %v7376_v33 = vpop.permute.xlu0 %2303  ;;  %v2208_v58 = vadd.f32 %v7265_v45, %v2191_v46  ;;  %v2415_v50 = vrot.slane %v2408_v48, 2  ;;  %v2412_v4 = vrot.slane %v2406_v21, 2  ;;  %v2078_v26 = vadd.f32 %v7127_v37, %v2057_v62  ;;  %v9129_v21 = vld [vmem:[#allocation15_spill] sm:$0xff] }
 0x1f0   :  { %3050 = vrot.lane.b32.xlu1 %v3047_v38, %s5280_s26  ;;  %v3161_v11 = vrot.slane %v3155_v6, 1  ;;  %v3163_v60 = vrot.slane %v3156_v1, 1  ;;  %v2077_v61 = vadd.f32 %v7142_v31, %v2056_v30  ;;  %v3160_v45 = vrot.slane %v3154_v55, 1 }
 0x1f1   :  { %3048 = vrot.lane.b32.xlu0 %v3045_v57, %s5280_s26  ;;  %v1906_v57 = vadd.f32 %v7137_v22, %v1889_v49  ;;  %v3191_v51 = vstv %s7372_s28  ;;  %v2099_v44 = vadd.f32 %v7156_v20, %v2078_v26  ;;  %v2230_v63 = vadd.f32 %v9123_v19, %v2209_v3  ;;  %v9128_v49 = vld [vmem:[#allocation14_spill] sm:$0xff]  ;;  %v9131_v3 = vld [vmem:[#allocation23_spill] sm:$0xff]  ;;  %s7645_s28 = sld [smem:[#allocation2 + $0x48]] }
 0x1f2   :  { %v2326_v34 = vpop.permute.xlu1 %2325  ;;  %v2229_v53 = vadd.f32 %v9126_v12, %v2208_v58  ;;  %v7443_v23 = vmul.f32 %v7440_v41, %v3191_v51  ;;  %v2416_v6 = vsel %vm130_vm1, %v2413_v17, %v2415_v50  ;;  %v2414_v1 = vsel %vm130_vm1, %v2412_v4, %v2413_v17  ;;  %v9132_v50 = vld [vmem:[#allocation24_spill] sm:$0xff]  ;;  %v9135_v19 = vld [vmem:[#allocation19_spill] sm:$0xff] }
 0x1f3   :  { %v2324_v38 = vpop.permute.xlu0 %2323  ;;  %v2330_v36 = vadd.f32 %v2326_v34, %v7326_v24  ;;  %v9124_v24 = vld [vmem:[#allocation10_spill] sm:$0xff]  ;;  %v3192_v30 = vmul.f32 %v7400_v0, %v3191_v51 }
 0x1f4   :  { %3071 = vrot.lane.b32.xlu1 %v3068_v13, %s5279_s25  ;;  %v2329_v22 = vadd.f32 %v2324_v38, %v7329_v16  ;;  %v1928_v13 = vadd.f32 %v7017_v14, %v1907_v15  ;;  %v1927_v42 = vadd.f32 %v9124_v24, %v1906_v57  ;;  %v9127_v16 = vld [vmem:[#allocation9_spill] sm:$0xff]  ;;  %v2251_v14 = vadd.f32 %v7310_v52, %v2230_v63  ;;  %v9130_v34 = vld [vmem:[#allocation22_spill] sm:$0xff] }
 0x1f5   :  { %3069 = vrot.lane.b32.xlu0 %v3066_v7, %s5279_s25  ;;  %v9125_v7 = vld [vmem:[#allocation18_spill] sm:$0xff]  ;;  %v2250_v46 = vadd.f32 %v7315_v29, %v2229_v53  ;;  %v3164_v29 = vsel %vm70_vm0, %v3161_v11, %v3163_v60  ;;  %v3162_v15 = vsel %vm70_vm0, %v3160_v45, %v3161_v11  ;;  %v3199_v17 = vrot.slane %v7443_v23, 2  ;;  %v9133_v60 = vld [vmem:[#allocation21_spill] sm:$0xff] }
 0x1f6   :  { %v2340_v47 = vpop.permute.xlu1 %2339  ;;  %v2098_v5 = vadd.f32 %v9125_v7, %v2077_v61  ;;  %v1949_v25 = vadd.f32 %v9127_v16, %v1928_v13  ;;  %v2268_v57 = vadd.f32 %v7304_v18, %v2251_v14  ;;  %v3198_v45 = vrot.slane %v3192_v30, 2  ;;  %v9134_v18 = vld [vmem:[#allocation13_spill] sm:$0xff]  ;;  %v9137_v7 = vld [vmem:[#allocation8_spill] sm:$0xff] }
 0x1f7   :  { %v2344_v37 = vadd.f32 %v2340_v47, %v2330_v36  ;;  %v2338_v56 = vpop.permute.xlu0 %2337  ;;  %v2267_v26 = vadd.f32 %v7307_v9, %v2250_v46 }
 0x1f8   :  { %v2343_v31 = vadd.f32 %v2338_v56, %v2329_v22  ;;  %3094 = vrot.lane.b32.xlu1 %v7337_v54, %s5280_s26  ;;  %v1948_v54 = vadd.f32 %v9128_v49, %v1927_v42  ;;  %v2115_v55 = vadd.f32 %v9130_v34, %v2098_v5  ;;  %v1966_v38 = vadd.f32 %v9131_v3, %v1949_v25  ;;  %v9138_v5 = vld [vmem:[#allocation11_spill] sm:$0xff]  ;;  %v9139_v25 = vld [vmem:[#allocation20_spill] sm:$0xff] }
 0x1f9   :  { %3092 = vrot.lane.b32.xlu0 %v7340_v27, %s5280_s26  ;;  %v2361_v20 = vadd.f32 %v7347_v35, %v2344_v37  ;;  %v3194_v27 = vmul.f32 %v7393_v10, %v3191_v51  ;;  %v2116_v35 = vadd.f32 %v9129_v21, %v2099_v44  ;;  %v9136_v37 = vld [vmem:[#allocation16_spill] sm:$0xff]  ;;  %v2289_v24 = vadd.f32 %v7332_v39, %v2268_v57 }
 0x1fa   :  { %v2378_v48 = vpop.permute.xlu1 %2377  ;;  %v2360_v52 = vadd.f32 %v7350_v40, %v2343_v31  ;;  %v3212_v40 = vstv %s7416_s5  ;;  %v1965_v4 = vadd.f32 %v9132_v50, %v1948_v54  ;;  %v2136_v13 = vadd.f32 %v9134_v18, %v2115_v55  ;;  %v9140_v39 = vld [vmem:[#allocation12_spill] sm:$0xff]  ;;  %s7689_s5 = sld [smem:[#allocation2 + $0x7a]] }
 0x1fb   :  { %v2376_v62 = vpop.permute.xlu0 %2375  ;;  %v2382_v58 = vadd.f32 %v2378_v48, %v2361_v20  ;;  %v3201_v61 = vrot.slane %v3194_v27, 2  ;;  %v2137_v22 = vadd.f32 %v9133_v60, %v2116_v35  ;;  %v3214_v51 = vmul.f32 %v7440_v41, %v3212_v40 }
 0x1fc   :  { %3108 = vrot.lane.b32.xlu1 %v3103_v59, %s5279_s25  ;;  %v2381_v36 = vadd.f32 %v2376_v62, %v2360_v52  ;;  %v3213_v9 = vmul.f32 %v7400_v0, %v3212_v40  ;;  %v1987_v63 = vadd.f32 %v9135_v19, %v1966_v38  ;;  %v2157_v12 = vadd.f32 %v9138_v5, %v2136_v13 }
 0x1fd   :  { %3106 = vrot.lane.b32.xlu0 %v3102_v32, %s5279_s25  ;;  %v3215_v32 = vmul.f32 %v7393_v10, %v3212_v40  ;;  %v2158_v56 = vadd.f32 %v9136_v37, %v2137_v22  ;;  %v2288_v53 = vadd.f32 %v7344_v43, %v2267_v26  ;;  %v2310_v20 = vadd.f32 %v7369_v2, %v2289_v24 }
 0x1fe   :  { %v2399_v59 = vpop.permute.xlu1 %2398  ;;  %v2008_v14 = vadd.f32 %v9139_v25, %v1987_v63  ;;  %v3202_v54 = vsel %vm130_vm1, %v3199_v17, %v3201_v61  ;;  %v3220_v43 = vrot.slane %v3214_v51, 2  ;;  %v3200_v35 = vsel %vm130_vm1, %v3198_v45, %v3199_v17 }
 0x1ff   :  { %v2403_v11 = vadd.f32 %v2399_v59, %v2382_v58  ;;  %v2397_v47 = vpop.permute.xlu0 %2396  ;;  %v3222_v52 = vrot.slane %v3215_v32, 2  ;;  %v3282_v40 = vstv %s7478_s9  ;;  %v3251_v26 = vstv %s7490_s10  ;;  %s7751_s9 = sld [smem:[#allocation2 + $0x16]] }
 0x200   :  { %v2402_v44 = vadd.f32 %v2397_v47, %v2381_v36  ;;  %3146 = vrot.lane.b32.xlu1 %v7404_v28, %s5280_s26  ;;  %v1986_v28 = vadd.f32 %v9137_v7, %v1965_v4  ;;  %v2160_v46 = vmax.f32 %v2008_v14, %v2158_v56  ;;  %v3284_v50 = vmul.f32 %v7440_v41, %v3282_v40  ;;  %s7760_s10 = sld [smem:[#allocation2 + $0x6c]] }
 0x201   :  { %3144 = vrot.lane.b32.xlu0 %v7410_v8, %s5280_s26  ;;  %v2420_v42 = vadd.f32 %v2416_v6, %v2403_v11  ;;  %v2309_v8 = vadd.f32 %v7376_v33, %v2288_v53  ;;  %v3219_v33 = vrot.slane %v3213_v9, 2  ;;  %v3285_v36 = vmul.f32 %v7393_v10, %v3282_v40 }
 0x202   :  { %v2437_v31 = vpop.permute.xlu1 %2436  ;;  %v2419_v16 = vadd.f32 %v2414_v1, %v2402_v44  ;;  %v2007_v49 = vadd.f32 %v9140_v39, %v1986_v28  ;;  %v2312_v62 = vmax.f32 %v2160_v46, %v2310_v20  ;;  %v3283_v61 = vmul.f32 %v7400_v0, %v3282_v40 }
 0x203   :  { %v2435_v23 = vpop.permute.xlu0 %2434  ;;  %v2441_v48 = vadd.f32 %v2437_v31, %v2420_v42  ;;  %v3221_v57 = vsel %vm130_vm1, %v3219_v33, %v3220_v43  ;;  %v3303_v60 = vstv %s5122_s11  ;;  %v3253_v11 = vmul.f32 %v7440_v41, %v3251_v26  ;;  %s7767_s11 = sld [smem:[#allocation2 + $0x13]] }
 0x204   :  { %3167 = vrot.lane.b32.xlu1 %v3164_v29, %s5279_s25  ;;  %v2159_v27 = vmax.f32 %v2007_v49, %v2157_v12  ;;  %v2440_v2 = vadd.f32 %v2435_v23, %v2419_v16  ;;  %v3223_v29 = vsel %vm130_vm1, %v3220_v43, %v3222_v52  ;;  %v3252_v47 = vmul.f32 %v7400_v0, %v3251_v26 }
 0x205   :  { %3165 = vrot.lane.b32.xlu0 %v3162_v15, %s5279_s25  ;;  %v3237_v15 = vstv %s7471_s8  ;;  %v3290_v45 = vrot.slane %v3284_v50, 1  ;;  %v3292_v51 = vrot.slane %v3285_v36, 1  ;;  %v3305_v18 = vmul.f32 %v7440_v41, %v3303_v60  ;;  %s7717_s8 = sld [smem:[#allocation2 + $0x6f]] }
 0x206   :  { %v2458_v21 = vpop.permute.xlu1 %2457  ;;  %v2311_v30 = vmax.f32 %v2159_v27, %v2309_v8  ;;  %v3239_v17 = vmul.f32 %v7440_v41, %v3237_v15  ;;  %v3238_v4 = vmul.f32 %v7400_v0, %v3237_v15  ;;  %v3306_v13 = vmul.f32 %v7393_v10, %v3303_v60 }
 0x207   :  { %v2462_v6 = vadd.f32 %v2458_v21, %v2441_v48  ;;  %v2456_v1 = vpop.permute.xlu0 %2455  ;;  %v3341_v44 = vstv %s5124_s12  ;;  %v3289_v9 = vrot.slane %v3283_v61, 1  ;;  %v3304_v19 = vmul.f32 %v7400_v0, %v3303_v60  ;;  %s7788_s12 = sld [smem:[#allocation2 + $0x14]] }
 0x208   :  { %v2461_v34 = vadd.f32 %v2456_v1, %v2440_v2  ;;  %3205 = vrot.lane.b32.xlu1 %v3202_v54, %s5280_s26  ;;  %v3343_v37 = vmul.f32 %v7440_v41, %v3341_v44  ;;  %v3293_v56 = vsel %vm70_vm0, %v3290_v45, %v3292_v51  ;;  %v3311_v24 = vrot.slane %v3305_v18, 1 }
 0x209   :  { %v2464_v55 = vmax.f32 %v2312_v62, %v2462_v6  ;;  %3203 = vrot.lane.b32.xlu0 %v3200_v35, %s5280_s26  ;;  %v3313_v42 = vrot.slane %v3306_v13, 1  ;;  %v3344_v7 = vmul.f32 %v7393_v10, %v3341_v44  ;;  %v3291_v5 = vsel %vm70_vm0, %v3289_v9, %v3290_v45 }
 0x20a   :  { %v2463_v3 = vmax.f32 %v2311_v30, %v2461_v34  ;;  %v7498_v38 = vpop.permute.xlu1 %2485  ;;  %v3310_v12 = vrot.slane %v3304_v19, 1  ;;  %v3342_v53 = vmul.f32 %v7400_v0, %v3341_v44  ;;  %v3362_v31 = vstv %s5125_s13  ;;  %s7791_s13 = sld [smem:[#allocation2 + $0x72]] }
 0x20b   :  { %2467 = vst.msk [vmem:[#allocation5 + $0x38] sm:$0xff] %vm638_vm2, %v2464_v55  ;;  %v7502_v58 = vpop.permute.xlu0 %2483  ;;  %v3349_v25 = vrot.slane %v3343_v37, 2  ;;  %v3314_v14 = vsel %vm70_vm0, %v3311_v24, %v3313_v42  ;;  %v3351_v20 = vrot.slane %v3344_v7, 2  ;;  %v3364_v23 = vmul.f32 %v7440_v41, %v3362_v31 }
 0x20c   :  { %2466 = vst.msk [vmem:[#allocation5 + $0x30] sm:$0xff] %vm638_vm2, %v2463_v3  ;;  %3226 = vrot.lane.b32.xlu1 %v3223_v29, %s5279_s25  ;;  %v3365_v39 = vmul.f32 %v7393_v10, %v3362_v31  ;;  %v3312_v8 = vsel %vm70_vm0, %v3310_v12, %v3311_v24  ;;  %v3348_v54 = vrot.slane %v3342_v53, 2  ;;  %v3363_v46 = vmul.f32 %v7400_v0, %v3362_v31 }
 0x20d   :  { %3224 = vrot.lane.b32.xlu0 %v3221_v57, %s5279_s25  ;;  %v3352_v43 = vsel %vm130_vm1, %v3349_v25, %v3351_v20  ;;  %v3370_v52 = vrot.slane %v3364_v23, 2  ;;  %v2506_v33 = vstv %s5075_s14  ;;  %v2565_v6 = vstv %s5078_s15  ;;  %s7804_s14 = sld [smem:[#allocation2 + $0x17]] }
 0x20e   :  { %v7512_v59 = vpop.permute.xlu1 %2499  ;;  %v3372_v27 = vrot.slane %v3365_v39, 2  ;;  %v3350_v21 = vsel %vm130_vm1, %v3348_v54, %v3349_v25  ;;  %v3369_v35 = vrot.slane %v3363_v46, 2  ;;  %v3389_v30 = vstv %s7544_s16  ;;  %s7861_s15 = sld [smem:[#allocation2 + $0x19]] }
 0x20f   :  { %v7515_v22 = vpop.permute.xlu0 %2497  ;;  %v2508_v34 = vmul.f32 %v7440_v41, %v2506_v33  ;;  %v3434_v15 = vstv %s5130_s17  ;;  %v2509_v40 = vmul.f32 %v7393_v10, %v2506_v33  ;;  %v2507_v3 = vmul.f32 %v7400_v0, %v2506_v33  ;;  %s7892_s16 = sld [smem:[#allocation2 + $0x1a]] }
 0x210   :  { %3244 = vrot.lane.b32.xlu1 %v3239_v17, %s5280_s26  ;;  %v3373_v1 = vsel %vm130_vm1, %v3370_v52, %v3372_v27  ;;  %v3371_v29 = vsel %vm130_vm1, %v3369_v35, %v3370_v52  ;;  %v2567_v57 = vmul.f32 %v7440_v41, %v2565_v6  ;;  %v2568_v17 = vmul.f32 %v7393_v10, %v2565_v6  ;;  %s8148_s17 = sld [smem:[#allocation2 + $0x82]] }
 0x211   :  { %3242 = vrot.lane.b32.xlu0 %v3238_v4, %s5280_s26  ;;  %v2566_v4 = vmul.f32 %v7400_v0, %v2565_v6  ;;  %v3391_v26 = vmul.f32 %v7440_v41, %v3389_v30  ;;  %v3390_v36 = vmul.f32 %v7400_v0, %v3389_v30  ;;  %v3403_v61 = vstv %s7553_s18  ;;  %s8159_s18 = sld [smem:[#allocation2 + $0x80]] }
 0x212   :  { %v7523_v32 = vpop.permute.xlu1 %2537  ;;  %v3436_v60 = vmul.f32 %v7440_v41, %v3434_v15  ;;  %v2474_v45 = vstv %s7559_s1  ;;  %v2514_v51 = vrot.slane %v2508_v34, 1  ;;  %v3435_v13 = vmul.f32 %v7400_v0, %v3434_v15  ;;  %s8168_s1 = sld [smem:[#allocation2 + $0x83]] }
 0x213   :  { %v7526_v63 = vpop.permute.xlu0 %2535  ;;  %v2516_v44 = vrot.slane %v2509_v40, 1  ;;  %v2513_v9 = vrot.slane %v2507_v3, 1  ;;  %v2573_v19 = vrot.slane %v2567_v57, 2  ;;  %v2575_v37 = vrot.slane %v2568_v17, 2 }
 0x214   :  { %3258 = vrot.lane.b32.xlu1 %v3253_v11, %s5279_s25  ;;  %v3437_v11 = vmul.f32 %v7393_v10, %v3434_v15  ;;  %v2572_v24 = vrot.slane %v2566_v4, 2  ;;  %v3405_v42 = vmul.f32 %v7440_v41, %v3403_v61  ;;  %v3404_v12 = vmul.f32 %v7400_v0, %v3403_v61 }
 0x215   :  { %3256 = vrot.lane.b32.xlu0 %v3252_v47, %s5279_s25  ;;  %v3455_v47 = vstv %s7557_s19  ;;  %v3442_v53 = vrot.slane %v3436_v60, 1  ;;  %v3493_v25 = vstv %s7570_s20  ;;  %v2656_v20 = vstv %s7576_s21  ;;  %s7951_s20 = sld [smem:[#allocation2 + $0x37]] }
 0x216   :  { %v7533_v28 = vpop.permute.xlu1 %2558  ;;  %v3457_v7 = vmul.f32 %v7440_v41, %v3455_v47  ;;  %v3444_v31 = vrot.slane %v3437_v11, 1  ;;  %v3441_v39 = vrot.slane %v3435_v13, 1  ;;  %v7622_v54 = vmul.f32 %v7400_v0, %v2474_v45  ;;  %s7958_s21 = sld [smem:[#allocation2 + $0x3a]] }
 0x217   :  { %9141 = vst [vmem:[#allocation25_spill] sm:$0xff] %v7533_v28  ;;  %v7537_v16 = vpop.permute.xlu0 %2556  ;;  %v7625_v46 = vsel %vm70_vm0, %v2514_v51, %v2516_v44  ;;  %v7631_v52 = vsel %vm130_vm1, %v2573_v19, %v2575_v37  ;;  %v3495_v6 = vmul.f32 %v7440_v41, %v3493_v25  ;;  %v2658_v30 = vmul.f32 %v7440_v41, %v2656_v20  ;;  %s8163_s19 = sld [smem:[#allocation2 + $0x57]] }
 0x218   :  { %9142 = vst [vmem:[#allocation10_spill] sm:$0xff] %v7537_v16  ;;  %3296 = vrot.lane.b32.xlu1 %v3293_v56, %s5280_s26  ;;  %9147 = vst [vmem:[#allocation15_spill] sm:$0xff] %v7631_v52  ;;  %v3463_v35 = vrot.slane %v3457_v7, 1  ;;  %v3445_v34 = vsel %vm70_vm0, %v3442_v53, %v3444_v31  ;;  %v3443_v40 = vsel %vm70_vm0, %v3441_v39, %v3442_v53  ;;  %v3514_v17 = vstv %s7599_s23  ;;  %s5158_s23 = sld [smem:[#allocation2 + $0x3b]] }
 0x219   :  { %3294 = vrot.lane.b32.xlu0 %v3291_v5, %s5280_s26  ;;  %v3458_v5 = vmul.f32 %v7393_v10, %v3455_v47  ;;  %v3494_v57 = vmul.f32 %v7400_v0, %v3493_v25  ;;  %v2659_v4 = vmul.f32 %v7393_v10, %v2656_v20  ;;  %v2624_v11 = vstv %s7603_s24  ;;  %s5160_s24 = sld [smem:[#allocation2 + $0x3d]] }
 0x21a   :  { %v7546_v49 = vpop.permute.xlu1 %2596  ;;  %v3516_v44 = vmul.f32 %v7440_v41, %v3514_v17  ;;  %v2664_v37 = vrot.slane %v2658_v30, 1  ;;  %v7681_v39 = vmul.f32 %v7440_v41, %v2624_v11 }
 0x21b   :  { %9143 = vst [vmem:[#allocation18_spill] sm:$0xff] %v7546_v49  ;;  %v7550_v48 = vpop.permute.xlu0 %2594  ;;  %v3465_v33 = vrot.slane %v3458_v5, 1  ;;  %v3500_v7 = vrot.slane %v3494_v57, 2  ;;  %v3515_v5 = vmul.f32 %v7400_v0, %v3514_v17 }
 0x21c   :  { %9144 = vst [vmem:[#allocation17_spill] sm:$0xff] %v7550_v48  ;;  %3317 = vrot.lane.b32.xlu1 %v3314_v14, %s5279_s25  ;;  %v7615_v14 = vmul.f32 %v7440_v41, %v2474_v45  ;;  %v3522_v30 = vrot.slane %v3516_v44, 2 }
 0x21d   :  { %3315 = vrot.lane.b32.xlu0 %v3312_v8, %s5279_s25  ;;  %v3456_v8 = vmul.f32 %v7400_v0, %v3455_v47  ;;  %v3466_v45 = vsel %vm70_vm0, %v3463_v35, %v3465_v33 }
 0x21e   :  { %v7561_v2 = vpop.permute.xlu1 %2617 }
 0x21f   :  { %9145 = vst [vmem:[#allocation9_spill] sm:$0xff] %v7561_v2  ;;  %v7564_v62 = vpop.permute.xlu0 %2615  ;;  %v3462_v3 = vrot.slane %v3456_v8, 1  ;;  %v7684_v8 = vmul.f32 %v7400_v0, %v2624_v11  ;;  %v2776_v11 = vstv %s7645_s28  ;;  %s8279_s28 = sld [smem:[#allocation2 + $0x1d]] }
 0x220   :  { %9146 = vst [vmem:[#allocation14_spill] sm:$0xff] %v7564_v62  ;;  %3355 = vrot.lane.b32.xlu1 %v3352_v43, %s5280_s26  ;;  %v7628_v43 = vsel %vm70_vm0, %v2513_v9, %v2514_v51  ;;  %v3501_v51 = vrot.slane %v3495_v6, 2  ;;  %v3517_v9 = vmul.f32 %v7393_v10, %v3514_v17  ;;  %v3586_v17 = vstv %s7652_s29  ;;  %s5161_s29 = sld [smem:[#allocation2 + $0x3e]] }
 0x221   :  { %3353 = vrot.lane.b32.xlu0 %v3350_v21, %s5280_s26  ;;  %v2715_v21 = vstv %s7588_s22  ;;  %s7970_s22 = sld [smem:[#allocation2 + $0x38]] }
 0x222   :  { %v7573_v55 = vpop.permute.xlu1 %2635  ;;  %v2717_v61 = vmul.f32 %v7440_v41, %v2715_v21  ;;  %v2718_v60 = vmul.f32 %v7393_v10, %v2715_v21  ;;  %v2716_v47 = vmul.f32 %v7400_v0, %v2715_v21 }
 0x223   :  { %v7582_v50 = vpop.permute.xlu0 %2633 }
 0x224   :  { %3376 = vrot.lane.b32.xlu1 %v3373_v1, %s5279_s25  ;;  %v7639_v1 = vsel %vm130_vm1, %v2572_v24, %v2573_v19  ;;  %v2808_v19 = vstv %s7612_s27  ;;  %v2723_v31 = vrot.slane %v2717_v61, 2  ;;  %v2722_v33 = vrot.slane %v2716_v47, 2  ;;  %s8271_s27 = sld [smem:[#allocation2 + $0x1f]] }
 0x225   :  { %3374 = vrot.lane.b32.xlu0 %v3371_v29, %s5279_s25  ;;  %9148 = vst [vmem:[#allocation22_spill] sm:$0xff] %v7639_v1  ;;  %v3496_v29 = vmul.f32 %v7393_v10, %v3493_v25  ;;  %v2725_v25 = vrot.slane %v2718_v60, 2  ;;  %v2810_v21 = vmul.f32 %v7440_v41, %v2808_v19  ;;  %v2809_v57 = vmul.f32 %v7400_v0, %v2808_v19 }
 0x226   :  { %v7596_v18 = vpop.permute.xlu1 %2649  ;;  %v3541_v47 = vstv %s7660_s30  ;;  %v7720_v44 = vsel %vm130_vm1, %v2722_v33, %v2723_v31  ;;  %s5111_s30 = sld [smem:[#allocation2 + $0xc]] }
 0x227   :  { %v7601_v56 = vpop.permute.xlu0 %2647  ;;  %v3503_v13 = vrot.slane %v3496_v29, 2  ;;  %v7707_v61 = vsel %vm130_vm1, %v2723_v31, %v2725_v25  ;;  %9154 = vst [vmem:[#allocation16_spill] sm:$0xff] %v7720_v44  ;;  %v7734_v31 = vmul.f32 %v7400_v0, %v2776_v11 }
 0x228   :  { %3396 = vrot.lane.b32.xlu1 %v3391_v26, %s5280_s26  ;;  %v2657_v26 = vmul.f32 %v7400_v0, %v2656_v20  ;;  %9152 = vst [vmem:[#allocation13_spill] sm:$0xff] %v7707_v61  ;;  %v3741_v61 = vstv %s7751_s9  ;;  %s8058_s9 = sld [smem:[#allocation2 + $0x61]] }
 0x229   :  { %3394 = vrot.lane.b32.xlu0 %v3390_v36, %s5280_s26  ;;  %v3504_v6 = vsel %vm130_vm1, %v3501_v51, %v3503_v13  ;;  %v2867_v13 = vstv %s7666_s3  ;;  %s8029_s3 = sld [smem:[#allocation2 + $0x5b]] }
 0x22a   :  { %v7618_v23 = vpop.permute.xlu1 %2687  ;;  %v2663_v53 = vrot.slane %v2657_v26, 1  ;;  %v2869_v33 = vmul.f32 %v7440_v41, %v2867_v13 }
 0x22b   :  { %v7633_v27 = vpop.permute.xlu0 %2685 }
 0x22c   :  { %3410 = vrot.lane.b32.xlu1 %v3405_v42, %s5279_s25  ;;  %v3464_v42 = vsel %vm70_vm0, %v3462_v3, %v3463_v35  ;;  %v2811_v35 = vmul.f32 %v7393_v10, %v2808_v19  ;;  %v3521_v3 = vrot.slane %v3515_v5, 2  ;;  %v7704_v26 = vsel %vm70_vm0, %v2663_v53, %v2664_v37 }
 0x22d   :  { %3408 = vrot.lane.b32.xlu0 %v3404_v12, %s5279_s25  ;;  %v2666_v12 = vrot.slane %v2659_v4, 1  ;;  %v3588_v19 = vmul.f32 %v7440_v41, %v3586_v17  ;;  %v3587_v53 = vmul.f32 %v7400_v0, %v3586_v17 }
 0x22e   :  { %v7647_v15 = vpop.permute.xlu1 %2708  ;;  %v3523_v5 = vsel %vm130_vm1, %v3521_v3, %v3522_v30 }
 0x22f   :  { %v7656_v36 = vpop.permute.xlu0 %2706  ;;  %v7701_v4 = vsel %vm70_vm0, %v2664_v37, %v2666_v12  ;;  %v3589_v37 = vmul.f32 %v7393_v10, %v3586_v17  ;;  %v2815_v12 = vrot.slane %v2809_v57, 1  ;;  %v3594_v3 = vrot.slane %v3588_v19, 1 }
 0x230   :  { %3448 = vrot.lane.b32.xlu1 %v3445_v34, %s5280_s26  ;;  %v3524_v34 = vrot.slane %v3517_v9, 2  ;;  %v2868_v17 = vmul.f32 %v7400_v0, %v2867_v13  ;;  %v3593_v2 = vrot.slane %v3587_v53, 1 }
 0x231   :  { %3446 = vrot.lane.b32.xlu0 %v3443_v40, %s5280_s26  ;;  %v3502_v40 = vsel %vm130_vm1, %v3500_v7, %v3501_v51  ;;  %v2818_v51 = vrot.slane %v2811_v35, 1  ;;  %v3555_v35 = vstv %s7678_s4  ;;  %v3596_v57 = vrot.slane %v3589_v37, 1  ;;  %s5166_s4 = sld [smem:[#allocation2 + $0x5e]] }
 0x232   :  { %v7672_v24 = vpop.permute.xlu1 %2746  ;;  %v3525_v9 = vsel %vm130_vm1, %v3522_v30, %v3524_v34  ;;  %v2870_v34 = vmul.f32 %v7393_v10, %v2867_v13  ;;  %v2875_v37 = vrot.slane %v2869_v33, 2 }
 0x233   :  { %9149 = vst [vmem:[#allocation23_spill] sm:$0xff] %v7672_v24  ;;  %v7676_v20 = vpop.permute.xlu0 %2744  ;;  %v3597_v33 = vsel %vm70_vm0, %v3594_v3, %v3596_v57  ;;  %v3595_v24 = vsel %vm70_vm0, %v3593_v2, %v3594_v3 }
 0x234   :  { %9150 = vst [vmem:[#allocation24_spill] sm:$0xff] %v7676_v20  ;;  %3469 = vrot.lane.b32.xlu1 %v3466_v45, %s5279_s25  ;;  %v2816_v45 = vrot.slane %v2810_v21, 1  ;;  %v3543_v21 = vmul.f32 %v7440_v41, %v3541_v47  ;;  %v2877_v48 = vrot.slane %v2870_v34, 2 }
 0x235   :  { %3467 = vrot.lane.b32.xlu0 %v3464_v42, %s5279_s25  ;;  %v7727_v42 = vmul.f32 %v7440_v41, %v2776_v11  ;;  %v3645_v11 = vstv %s7693_s6  ;;  %s5167_s6 = sld [smem:[#allocation2 + $0x5f]] }
 0x236   :  { %v7695_v29 = vpop.permute.xlu1 %2767  ;;  %v7744_v30 = vsel %vm70_vm0, %v2816_v45, %v2818_v51  ;;  %v3557_v51 = vmul.f32 %v7440_v41, %v3555_v35  ;;  %v3648_v53 = vmul.f32 %v7393_v10, %v3645_v11  ;;  %v3646_v49 = vmul.f32 %v7400_v0, %v3645_v11 }
 0x237   :  { %9151 = vst [vmem:[#allocation21_spill] sm:$0xff] %v7695_v29  ;;  %v7709_v60 = vpop.permute.xlu0 %2765  ;;  %v2874_v29 = vrot.slane %v2868_v17, 2 }
 0x238   :  { %9153 = vst [vmem:[#allocation19_spill] sm:$0xff] %v7709_v60  ;;  %3507 = vrot.lane.b32.xlu1 %v3504_v6, %s5280_s26  ;;  %v3542_v6 = vmul.f32 %v7400_v0, %v3541_v47  ;;  %v7756_v47 = vsel %vm70_vm0, %v2815_v12, %v2816_v45  ;;  %v3666_v60 = vstv %s7712_s7  ;;  %v3647_v12 = vmul.f32 %v7440_v41, %v3645_v11  ;;  %s8047_s7 = sld [smem:[#allocation2 + $0x9]] }
 0x239   :  { %3505 = vrot.lane.b32.xlu0 %v3502_v40, %s5280_s26  ;;  %v3607_v40 = vstv %s7689_s5  ;;  %v3667_v1 = vmul.f32 %v7400_v0, %v3666_v60  ;;  %v7798_v44 = vsel %vm130_vm1, %v2874_v29, %v2875_v37  ;;  %s8038_s5 = sld [smem:[#allocation2 + $0x5c]] }
 0x23a   :  { %v7729_v7 = vpop.permute.xlu1 %2787  ;;  %v3609_v13 = vmul.f32 %v7440_v41, %v3607_v40  ;;  %v3608_v45 = vmul.f32 %v7400_v0, %v3607_v40  ;;  %v3653_v11 = vrot.slane %v3647_v12, 2 }
 0x23b   :  { %v7736_v25 = vpop.permute.xlu0 %2785  ;;  %v3673_v28 = vrot.slane %v3667_v1, 2 }
 0x23c   :  { %3528 = vrot.lane.b32.xlu1 %v3525_v9, %s5279_s25  ;;  %v3556_v9 = vmul.f32 %v7400_v0, %v3555_v35  ;;  %v2960_v35 = vstv %s7717_s8  ;;  %v3614_v3 = vrot.slane %v3608_v45, 1  ;;  %s8050_s8 = sld [smem:[#allocation2 + $0xf]] }
 0x23d   :  { %3526 = vrot.lane.b32.xlu0 %v3523_v5, %s5279_s25  ;;  %v3610_v5 = vmul.f32 %v7393_v10, %v3607_v40  ;;  %v3669_v40 = vmul.f32 %v7393_v10, %v3666_v60  ;;  %v2962_v57 = vmul.f32 %v7440_v41, %v2960_v35  ;;  %v2963_v34 = vmul.f32 %v7393_v10, %v2960_v35 }
 0x23e   :  { %v7753_v62 = vpop.permute.xlu1 %2801  ;;  %v2961_v17 = vmul.f32 %v7400_v0, %v2960_v35  ;;  %v3652_v35 = vrot.slane %v3646_v49, 2 }
 0x23f   :  { %v7762_v19 = vpop.permute.xlu0 %2799  ;;  %v3617_v2 = vrot.slane %v3610_v5, 1  ;;  %v3676_v45 = vrot.slane %v3669_v40, 2 }
 0x240   :  { %3548 = vrot.lane.b32.xlu1 %v3543_v21, %s5280_s26  ;;  %v3668_v21 = vmul.f32 %v7440_v41, %v3666_v60  ;;  %v3655_v60 = vrot.slane %v3648_v53, 2  ;;  %v3696_v53 = vstv %s7767_s11  ;;  %v3654_v1 = vsel %vm130_vm1, %v3652_v35, %v3653_v11  ;;  %s8074_s11 = sld [smem:[#allocation2 + $0x33]] }
 0x241   :  { %3546 = vrot.lane.b32.xlu0 %v3542_v6, %s5280_s26  ;;  %v3615_v6 = vrot.slane %v3609_v13, 1  ;;  %v7795_v13 = vsel %vm130_vm1, %v2875_v37, %v2877_v48  ;;  %v2967_v48 = vrot.slane %v2961_v17, 1 }
 0x242   :  { %v7777_v20 = vpop.permute.xlu1 %2839  ;;  %v3674_v5 = vrot.slane %v3668_v21, 2  ;;  %v3656_v37 = vsel %vm130_vm1, %v3653_v11, %v3655_v60  ;;  %v3743_v21 = vmul.f32 %v7440_v41, %v3741_v61 }
 0x243   :  { %v7783_v52 = vpop.permute.xlu0 %2837  ;;  %v3618_v29 = vsel %vm70_vm0, %v3615_v6, %v3617_v2  ;;  %v3616_v49 = vsel %vm70_vm0, %v3614_v3, %v3615_v6  ;;  %v7826_v2 = vmul.f32 %v7440_v41, %v3696_v53  ;;  %v2640_v3 = vadd.f32 %v7573_v55, %v7681_v39 }
 0x244   :  { %9155 = vst [vmem:[#allocation8_spill] sm:$0xff] %v7783_v52  ;;  %3562 = vrot.lane.b32.xlu1 %v3557_v51, %s5279_s25  ;;  %v2928_v51 = vstv %s7760_s10  ;;  %v2970_v52 = vrot.slane %v2963_v34, 1  ;;  %v3677_v6 = vsel %vm130_vm1, %v3674_v5, %v3676_v45  ;;  %v3675_v17 = vsel %vm130_vm1, %v3673_v28, %v3674_v5  ;;  %s8068_s10 = sld [smem:[#allocation2 + $0x30]] }
 0x245   :  { %3560 = vrot.lane.b32.xlu0 %v3556_v9, %s5279_s25  ;;  %v2968_v9 = vrot.slane %v2962_v57, 1  ;;  %v2930_v40 = vmul.f32 %v7440_v41, %v2928_v51  ;;  %v7818_v57 = vmul.f32 %v7400_v0, %v2928_v51  ;;  %v3742_v28 = vmul.f32 %v7400_v0, %v3741_v61 }
 0x246   :  { %v7801_v16 = vpop.permute.xlu1 %2860  ;;  %v2639_v51 = vadd.f32 %v7582_v50, %v7684_v8  ;;  %v3710_v5 = vstv %s7788_s12  ;;  %v3749_v45 = vrot.slane %v3743_v21, 1  ;;  %v2490_v55 = vadd.f32 %v7498_v38, %v7615_v14  ;;  %s8079_s12 = sld [smem:[#allocation2 + $0x62]] }
 0x247   :  { %v7806_v12 = vpop.permute.xlu0 %2858  ;;  %v7836_v60 = vsel %vm70_vm0, %v2968_v9, %v2970_v52  ;;  %v7839_v35 = vsel %vm70_vm0, %v2967_v48, %v2968_v9  ;;  %v2654_v52 = vadd.f32 %v7596_v18, %v2640_v3  ;;  %v2792_v39 = vadd.f32 %v7729_v7, %v7727_v42 }
 0x248   :  { %3600 = vrot.lane.b32.xlu1 %v3597_v33, %s5280_s26  ;;  %v3744_v33 = vmul.f32 %v7393_v10, %v3741_v61  ;;  %v2489_v61 = vadd.f32 %v7502_v58, %v7622_v54  ;;  %v2653_v50 = vadd.f32 %v7601_v56, %v2639_v51  ;;  %v2791_v8 = vadd.f32 %v7736_v25, %v7734_v31 }
 0x249   :  { %3598 = vrot.lane.b32.xlu0 %v3595_v24, %s5280_s26  ;;  %v7829_v24 = vmul.f32 %v7400_v0, %v3696_v53  ;;  %v3019_v53 = vstv %s7791_s13  ;;  %v2504_v38 = vadd.f32 %v7512_v59, %v2490_v55  ;;  %v2806_v18 = vadd.f32 %v7753_v62, %v2792_v39  ;;  %s8107_s13 = sld [smem:[#allocation2 + $0x2d]] }
 0x24a   :  { %v7821_v34 = vpop.permute.xlu1 %2898  ;;  %v3751_v9 = vrot.slane %v3744_v33, 1  ;;  %v3748_v42 = vrot.slane %v3742_v28, 1  ;;  %v3021_v7 = vmul.f32 %v7440_v41, %v3019_v53  ;;  %v2503_v58 = vadd.f32 %v7515_v22, %v2489_v61 }
 0x24b   :  { %v7833_v11 = vpop.permute.xlu0 %2896  ;;  %v2805_v56 = vadd.f32 %v7762_v19, %v2791_v8  ;;  %v3022_v54 = vmul.f32 %v7393_v10, %v3019_v53  ;;  %v3020_v31 = vmul.f32 %v7400_v0, %v3019_v53  ;;  %v2671_v25 = vadd.f32 %v7701_v4, %v2654_v52 }
 0x24c   :  { %3621 = vrot.lane.b32.xlu1 %v3618_v29, %s5279_s25  ;;  %v3762_v29 = vstv %s7804_s14  ;;  %v3712_v59 = vmul.f32 %v7440_v41, %v3710_v5  ;;  %v2670_v22 = vadd.f32 %v7704_v26, %v2653_v50  ;;  %v3711_v19 = vmul.f32 %v7400_v0, %v3710_v5  ;;  %s8121_s14 = sld [smem:[#allocation2 + $0x54]] }
 0x24d   :  { %3619 = vrot.lane.b32.xlu0 %v3616_v49, %s5279_s25  ;;  %v3764_v62 = vmul.f32 %v7440_v41, %v3762_v29  ;;  %v3765_v49 = vmul.f32 %v7393_v10, %v3762_v29  ;;  %v3763_v33 = vmul.f32 %v7400_v0, %v3762_v29  ;;  %v2521_v4 = vadd.f32 %v7625_v46, %v2504_v38  ;;  %v9156_v38 = vld [vmem:[#allocation8_spill] sm:$0xff] }
 0x24e   :  { %v7858_v48 = vpop.permute.xlu1 %2919  ;;  %v7887_v28 = vsel %vm70_vm0, %v3748_v42, %v3749_v45  ;;  %v3027_v51 = vrot.slane %v3021_v7, 2  ;;  %v2520_v26 = vadd.f32 %v7628_v43, %v2503_v58  ;;  %v2822_v53 = vadd.f32 %v7756_v47, %v2805_v56 }
 0x24f   :  { %v7865_v14 = vpop.permute.xlu0 %2917  ;;  %v3029_v5 = vrot.slane %v3022_v54, 2  ;;  %v3026_v55 = vrot.slane %v3020_v31, 2  ;;  %v2692_v46 = vadd.f32 %v7618_v23, %v2671_v25  ;;  %v2691_v39 = vadd.f32 %v7633_v27, %v2670_v22  ;;  %v9159_v54 = vld [vmem:[#allocation13_spill] sm:$0xff] }
 0x250   :  { %3659 = vrot.lane.b32.xlu1 %v3656_v37, %s5280_s26  ;;  %v7881_v37 = vsel %vm70_vm0, %v3749_v45, %v3751_v9  ;;  %v3772_v45 = vrot.slane %v3765_v49, 1  ;;  %v3769_v61 = vrot.slane %v3763_v33, 1  ;;  %v3800_v47 = vstv %s7861_s15  ;;  %s8136_s15 = sld [smem:[#allocation2 + $0x51]] }
 0x251   :  { %3657 = vrot.lane.b32.xlu0 %v3654_v1, %s5280_s26  ;;  %v2823_v1 = vadd.f32 %v7744_v30, %v2806_v18  ;;  %v3770_v30 = vrot.slane %v3764_v62, 1  ;;  %v2713_v50 = vadd.f32 %v7647_v15, %v2692_v46  ;;  %v2843_v18 = vadd.f32 %v9156_v38, %v2822_v53  ;;  %v9160_v62 = vld [vmem:[#allocation16_spill] sm:$0xff] }
 0x252   :  { %v2940_v21 = vpop.permute.xlu1 %2939  ;;  %v3803_v56 = vmul.f32 %v7393_v10, %v3800_v47  ;;  %v3801_v25 = vmul.f32 %v7400_v0, %v3800_v47 }
 0x253   :  { %v2938_v3 = vpop.permute.xlu0 %2937  ;;  %v2944_v52 = vadd.f32 %v2940_v21, %v2930_v40  ;;  %v2844_v8 = vadd.f32 %v7777_v20, %v2823_v1  ;;  %v2541_v40 = vadd.f32 %v7526_v63, %v2520_v26  ;;  %v7913_v63 = vmul.f32 %v7440_v41, %v3800_v47  ;;  %v9161_v21 = vld [vmem:[#allocation15_spill] sm:$0xff] }
 0x254   :  { %3680 = vrot.lane.b32.xlu1 %v3677_v6, %s5279_s25  ;;  %v2943_v9 = vadd.f32 %v2938_v3, %v7818_v57  ;;  %v2542_v6 = vadd.f32 %v7523_v32, %v2521_v4  ;;  %v9157_v57 = vld [vmem:[#allocation25_spill] sm:$0xff]  ;;  %v2864_v7 = vadd.f32 %v7806_v12, %v2843_v18  ;;  %v3773_v12 = vsel %vm70_vm0, %v3770_v30, %v3772_v45  ;;  %v9162_v3 = vld [vmem:[#allocation22_spill] sm:$0xff] }
 0x255   :  { %3678 = vrot.lane.b32.xlu0 %v3675_v17, %s5279_s25  ;;  %v2712_v17 = vadd.f32 %v7656_v36, %v2691_v39  ;;  %v2865_v32 = vadd.f32 %v7801_v16, %v2844_v8  ;;  %v9158_v36 = vld [vmem:[#allocation10_spill] sm:$0xff]  ;;  %v2730_v16 = vadd.f32 %v9159_v54, %v2713_v50  ;;  %v3771_v22 = vsel %vm70_vm0, %v3769_v61, %v3770_v30 }
 0x256   :  { %v2954_v43 = vpop.permute.xlu1 %2953  ;;  %v2563_v42 = vadd.f32 %v9157_v57, %v2542_v6  ;;  %v2562_v20 = vadd.f32 %v9158_v36, %v2541_v40  ;;  %v3808_v1 = vrot.slane %v7913_v63, 2  ;;  %v3810_v53 = vrot.slane %v3803_v56, 2  ;;  %v9165_v61 = vld [vmem:[#allocation18_spill] sm:$0xff]  ;;  %v9166_v6 = vld [vmem:[#allocation21_spill] sm:$0xff]  ;;  %v9168_v40 = vld [vmem:[#allocation19_spill] sm:$0xff] }
 0x257   :  { %v2958_v29 = vadd.f32 %v2954_v43, %v2944_v52  ;;  %v2952_v23 = vpop.permute.xlu0 %2951  ;;  %v2729_v49 = vadd.f32 %v9160_v62, %v2712_v17  ;;  %v2882_v33 = vadd.f32 %v7795_v13, %v2865_v32  ;;  %v3807_v30 = vrot.slane %v3801_v25, 2  ;;  %v9164_v13 = vld [vmem:[#allocation24_spill] sm:$0xff]  ;;  %v7948_v43 = vld [vmem:[%s8994_s0 + $0x18] sm:$0xff]  ;;  %v9169_v57 = vld [vmem:[#allocation9_spill] sm:$0xff] }
 0x258   :  { %v2957_v27 = vadd.f32 %v2952_v23, %v2943_v9  ;;  %3703 = vrot.lane.b32.xlu1 %v7826_v2, %s5280_s26  ;;  %v2580_v10 = vadd.f32 %v9161_v21, %v2563_v42  ;;  %v2579_v0 = vadd.f32 %v9162_v3, %v2562_v20  ;;  %v3811_v36 = vsel %vm130_vm1, %v3808_v1, %v3810_v53 }
 0x259   :  { %3701 = vrot.lane.b32.xlu0 %v7829_v24, %s5280_s26  ;;  %v2975_v15 = vadd.f32 %v7836_v60, %v2958_v29  ;;  %v3030_v24 = vsel %vm130_vm1, %v3027_v51, %v3029_v5  ;;  %v3028_v60 = vsel %vm130_vm1, %v3026_v55, %v3027_v51  ;;  %v2881_v51 = vadd.f32 %v7798_v44, %v2864_v7  ;;  %v9163_v5 = vld [vmem:[#allocation23_spill] sm:$0xff]  ;;  %v7942_v44 = vld [vmem:[%s8994_s0 + $0x28] sm:$0x3] }
 0x25a   :  { %v2992_v58 = vpop.permute.xlu1 %2991  ;;  %v2974_v2 = vadd.f32 %v7839_v35, %v2957_v27  ;;  %v3821_v35 = vstv %s7892_s16  ;;  %v2751_v55 = vadd.f32 %v9163_v5, %v2730_v16  ;;  %v2750_v39 = vadd.f32 %v9164_v13, %v2729_v49  ;;  %v9167_v29 = vld [vmem:[#allocation17_spill] sm:$0xff]  ;;  %s8143_s16 = sld [smem:[#allocation2 + $0x7f]] }
 0x25b   :  { %v2990_v31 = vpop.permute.xlu0 %2989  ;;  %v2996_v4 = vadd.f32 %v2992_v58, %v2975_v15  ;;  %v3823_v45 = vmul.f32 %v7440_v41, %v3821_v35  ;;  %v3822_v41 = vmul.f32 %v7948_v43, %v3821_v35  ;;  %v2601_v47 = vadd.f32 %v9165_v61, %v2580_v10 }
 0x25c   :  { %3717 = vrot.lane.b32.xlu1 %v3712_v59, %s5279_s25  ;;  %v2995_v26 = vadd.f32 %v2990_v31, %v2974_v2  ;;  %v2903_v50 = vadd.f32 %v7821_v34, %v2882_v33  ;;  %v2600_v23 = vadd.f32 %v9167_v29, %v2579_v0  ;;  %v2771_v17 = vadd.f32 %v9168_v40, %v2750_v39  ;;  %v9170_v34 = vld [vmem:[#allocation14_spill] sm:$0xff] }
 0x25d   :  { %3715 = vrot.lane.b32.xlu0 %v3711_v19, %s5279_s25  ;;  %v3824_v19 = vmul.f32 %v7942_v44, %v3821_v35  ;;  %v2902_v38 = vadd.f32 %v7833_v11, %v2881_v51  ;;  %v2622_v42 = vadd.f32 %v9169_v57, %v2601_v47  ;;  %v3829_v11 = vrot.slane %v3823_v45, 2 }
 0x25e   :  { %v3013_v59 = vpop.permute.xlu1 %3012  ;;  %v2924_v32 = vadd.f32 %v7858_v48, %v2903_v50  ;;  %v2621_v63 = vadd.f32 %v9170_v34, %v2600_v23  ;;  %v3809_v54 = vsel %vm130_vm1, %v3807_v30, %v3808_v1  ;;  %v3860_v51 = vstv %s7970_s22  ;;  %s8234_s22 = sld [smem:[#allocation2 + $0x78]] }
 0x25f   :  { %v3017_v46 = vadd.f32 %v3013_v59, %v2996_v4  ;;  %v3011_v52 = vpop.permute.xlu0 %3010  ;;  %v3831_v58 = vrot.slane %v3824_v19, 2  ;;  %v7989_v4 = vld [vmem:[%s8994_s0 + $0x20] sm:$0xff]  ;;  %v3912_v5 = vstv %s5158_s23  ;;  %s8251_s23 = sld [smem:[#allocation2 + $0x75]] }
 0x260   :  { %v3016_v9 = vadd.f32 %v3011_v52, %v2995_v26  ;;  %3755 = vrot.lane.b32.xlu1 %v7881_v37, %s5280_s26  ;;  %v2772_v37 = vadd.f32 %v9166_v6, %v2751_v55  ;;  %v2773_v2 = vmax.f32 %v2621_v63, %v2771_v17  ;;  %v3861_v52 = vmul.f32 %v7948_v43, %v3860_v51 }
 0x261   :  { %3753 = vrot.lane.b32.xlu0 %v7887_v28, %s5280_s26  ;;  %v3034_v8 = vadd.f32 %v3030_v24, %v3017_v46  ;;  %v2923_v28 = vadd.f32 %v7865_v14, %v2902_v38  ;;  %v3828_v14 = vrot.slane %v3822_v41, 2  ;;  %v3832_v49 = vsel %vm130_vm1, %v3829_v11, %v3831_v58 }
 0x262   :  { %v3051_v18 = vpop.permute.xlu1 %3050  ;;  %v3033_v27 = vadd.f32 %v3028_v60, %v3016_v9  ;;  %v2774_v20 = vmax.f32 %v2622_v42, %v2772_v37  ;;  %v3862_v46 = vmul.f32 %v7989_v4, %v3860_v51  ;;  %v3914_v13 = vmul.f32 %v7989_v4, %v3912_v5 }
 0x263   :  { %v3049_v15 = vpop.permute.xlu0 %3048  ;;  %v3055_v7 = vadd.f32 %v3051_v18, %v3034_v8  ;;  %v2925_v60 = vmax.f32 %v2773_v2, %v2923_v28  ;;  %v3830_v10 = vsel %vm130_vm1, %v3828_v14, %v3829_v11  ;;  %v3915_v39 = vmul.f32 %v7942_v44, %v3912_v5 }
 0x264   :  { %3776 = vrot.lane.b32.xlu1 %v3773_v12, %s5279_s25  ;;  %v3054_v48 = vadd.f32 %v3049_v15, %v3033_v27  ;;  %v2926_v16 = vmax.f32 %v2774_v20, %v2924_v32  ;;  %v3846_v12 = vstv %s7951_s20  ;;  %v3950_v9 = vstv %s5160_s24  ;;  %s8173_s20 = sld [smem:[#allocation2 + $0x85]] }
 0x265   :  { %3774 = vrot.lane.b32.xlu0 %v3771_v22, %s5279_s25  ;;  %v3891_v22 = vstv %s7958_s21  ;;  %v3848_v1 = vmul.f32 %v7989_v4, %v3846_v12  ;;  %v3847_v0 = vmul.f32 %v7948_v43, %v3846_v12  ;;  %v3913_v61 = vmul.f32 %v7948_v43, %v3912_v5  ;;  %s8189_s21 = sld [smem:[#allocation2 + $0x86]] }
 0x266   :  { %v3072_v56 = vpop.permute.xlu1 %3071  ;;  %v3893_v3 = vmul.f32 %v7989_v4, %v3891_v22  ;;  %v3894_v26 = vmul.f32 %v7942_v44, %v3891_v22  ;;  %v3892_v53 = vmul.f32 %v7948_v43, %v3891_v22  ;;  %v3952_v6 = vmul.f32 %v7989_v4, %v3950_v9  ;;  %s8257_s24 = sld [smem:[#allocation2 + $0x1c]] }
 0x267   :  { %v3076_v31 = vadd.f32 %v3072_v56, %v3055_v7  ;;  %v3070_v24 = vpop.permute.xlu0 %3069  ;;  %v3920_v50 = vrot.slane %v3914_v13, 1  ;;  %v3922_v8 = vrot.slane %v3915_v39, 1  ;;  %v3953_v29 = vmul.f32 %v7942_v44, %v3950_v9 }
 0x268   :  { %v3075_v25 = vadd.f32 %v3070_v24, %v3054_v48  ;;  %3814 = vrot.lane.b32.xlu1 %v3811_v36, %s5280_s26  ;;  %v3899_v30 = vrot.slane %v3893_v3, 1  ;;  %v3901_v45 = vrot.slane %v3894_v26, 1  ;;  %v3898_v41 = vrot.slane %v3892_v53, 1 }
 0x269   :  { %v3078_v62 = vmax.f32 %v2926_v16, %v3076_v31  ;;  %3812 = vrot.lane.b32.xlu0 %v3809_v54, %s5280_s26  ;;  %v3919_v17 = vrot.slane %v3913_v61, 1  ;;  %v3951_v38 = vmul.f32 %v7948_v43, %v3950_v9  ;;  %v3971_v18 = vstv %s5161_s29  ;;  %s8288_s29 = sld [smem:[#allocation2 + $0x7b]] }
 0x26a   :  { %v3077_v35 = vmax.f32 %v2925_v60, %v3075_v25  ;;  %v7978_v21 = vpop.permute.xlu1 %3094  ;;  %v3902_v37 = vsel %vm70_vm0, %v3899_v30, %v3901_v45  ;;  %v3900_v40 = vsel %vm70_vm0, %v3898_v41, %v3899_v30  ;;  %v3958_v57 = vrot.slane %v3952_v6, 2 }
 0x26b   :  { %3081 = vst.msk [vmem:[#allocation5 + $0x48] sm:$0xff] %vm638_vm2, %v3078_v62  ;;  %v7982_v33 = vpop.permute.xlu0 %3092  ;;  %v3923_v42 = vsel %vm70_vm0, %v3920_v50, %v3922_v8  ;;  %v3960_v32 = vrot.slane %v3953_v29, 2  ;;  %v3973_v15 = vmul.f32 %v7989_v4, %v3971_v18  ;;  %v3974_v34 = vmul.f32 %v7942_v44, %v3971_v18 }
 0x26c   :  { %3080 = vst.msk [vmem:[#allocation5 + $0x40] sm:$0xff] %vm638_vm2, %v3077_v35  ;;  %3835 = vrot.lane.b32.xlu1 %v3832_v49, %s5279_s25  ;;  %v3921_v28 = vsel %vm70_vm0, %v3919_v17, %v3920_v50  ;;  %v3957_v36 = vrot.slane %v3951_v38, 2  ;;  %v3972_v20 = vmul.f32 %v7948_v43, %v3971_v18  ;;  %v3115_v16 = vstv %s5111_s30  ;;  %s8315_s30 = sld [smem:[#allocation2 + $0x20]] }
 0x26d   :  { %3833 = vrot.lane.b32.xlu0 %v3830_v10, %s5279_s25  ;;  %v3961_v11 = vsel %vm130_vm1, %v3958_v57, %v3960_v32  ;;  %v3979_v58 = vrot.slane %v3973_v15, 2  ;;  %v3981_v2 = vrot.slane %v3974_v34, 2  ;;  %v3998_v24 = vstv %s8029_s3  ;;  %s8391_s3 = sld [smem:[#allocation2 + $0x40]] }
 0x26e   :  { %v7997_v59 = vpop.permute.xlu1 %3108  ;;  %v3959_v56 = vsel %vm130_vm1, %v3957_v36, %v3958_v57  ;;  %v3978_v54 = vrot.slane %v3972_v20, 2  ;;  %v4043_v62 = vstv %s5166_s4  ;;  %v3117_v49 = vmul.f32 %v7989_v4, %v3115_v16  ;;  %s8398_s4 = sld [smem:[#allocation2 + $0x15]] }
 0x26f   :  { %v8000_v55 = vpop.permute.xlu0 %3106  ;;  %v3982_v31 = vsel %vm130_vm1, %v3979_v58, %v3981_v2  ;;  %v3118_v12 = vmul.f32 %v7942_v44, %v3115_v16  ;;  %v3116_v22 = vmul.f32 %v7948_v43, %v3115_v16  ;;  %v4000_v10 = vmul.f32 %v7989_v4, %v3998_v24 }
 0x270   :  { %3853 = vrot.lane.b32.xlu1 %v3848_v1, %s5280_s26  ;;  %v3980_v25 = vsel %vm130_vm1, %v3978_v54, %v3979_v58  ;;  %v3999_v1 = vmul.f32 %v7948_v43, %v3998_v24  ;;  %v4012_v3 = vstv %s8038_s5  ;;  %v4046_v51 = vmul.f32 %v7942_v44, %v4043_v62  ;;  %s8406_s5 = sld [smem:[#allocation2 + $0x12]] }
 0x271   :  { %3851 = vrot.lane.b32.xlu0 %v3847_v0, %s5280_s26  ;;  %v4045_v0 = vmul.f32 %v7989_v4, %v4043_v62  ;;  %v4064_v26 = vstv %s5167_s6  ;;  %v4044_v5 = vmul.f32 %v7948_v43, %v4043_v62  ;;  %v3122_v30 = vrot.slane %v3116_v22, 1  ;;  %s8412_s6 = sld [smem:[#allocation2 + $0x41]] }
 0x272   :  { %v8008_v19 = vpop.permute.xlu1 %3146  ;;  %v3083_v13 = vstv %s8047_s7  ;;  %v4014_v39 = vmul.f32 %v7989_v4, %v4012_v3  ;;  %v4066_v9 = vmul.f32 %v7989_v4, %v4064_v26  ;;  %v4067_v41 = vmul.f32 %v7942_v44, %v4064_v26  ;;  %s8432_s7 = sld [smem:[#allocation2 + $0x64]] }
 0x273   :  { %v8011_v47 = vpop.permute.xlu0 %3144  ;;  %v3174_v61 = vstv %s8050_s8  ;;  %v4013_v6 = vmul.f32 %v7948_v43, %v4012_v3  ;;  %v4053_v50 = vrot.slane %v4046_v51, 1  ;;  %v4050_v29 = vrot.slane %v4044_v5, 1  ;;  %s8441_s8 = sld [smem:[#allocation2 + $0x18]] }
 0x274   :  { %3867 = vrot.lane.b32.xlu1 %v3862_v46, %s5279_s25  ;;  %v3123_v46 = vrot.slane %v3117_v49, 1  ;;  %v4102_v17 = vstv %s8058_s9  ;;  %v8096_v38 = vmul.f32 %v7989_v4, %v3083_v13  ;;  %v8099_v18 = vmul.f32 %v7948_v43, %v3083_v13  ;;  %s8451_s9 = sld [smem:[#allocation2 + $0x65]] }
 0x275   :  { %3865 = vrot.lane.b32.xlu0 %v3861_v52, %s5279_s25  ;;  %v3125_v52 = vrot.slane %v3118_v12, 1  ;;  %v8112_v15 = vmul.f32 %v7989_v4, %v3174_v61  ;;  %v3265_v34 = vstv %s8068_s10  ;;  %v4074_v36 = vrot.slane %v4067_v41, 1  ;;  %s8453_s10 = sld [smem:[#allocation2 + $0x43]] }
 0x276   :  { %v8018_v23 = vpop.permute.xlu1 %3167  ;;  %v4104_v58 = vmul.f32 %v7989_v4, %v4102_v17  ;;  %v4105_v2 = vmul.f32 %v7942_v44, %v4102_v17  ;;  %v4123_v24 = vstv %s8079_s12  ;;  %v3175_v62 = vmul.f32 %v7948_v43, %v3174_v61  ;;  %s8474_s12 = sld [smem:[#allocation2 + $0x44]] }
 0x277   :  { %v8022_v27 = vpop.permute.xlu0 %3165  ;;  %v8102_v57 = vsel %vm70_vm0, %v3123_v46, %v3125_v52  ;;  %v8131_v49 = vmul.f32 %v7989_v4, %v3265_v34  ;;  %v3268_v12 = vmul.f32 %v7942_v44, %v3265_v34  ;;  %v4125_v5 = vmul.f32 %v7989_v4, %v4123_v24 }
 0x278   :  { %9171 = vst [vmem:[#allocation11_spill] sm:$0xff] %v8022_v27  ;;  %3905 = vrot.lane.b32.xlu1 %v3902_v37, %s5280_s26  ;;  %v4051_v37 = vrot.slane %v4045_v0, 1  ;;  %v4110_v51 = vrot.slane %v4104_v58, 2  ;;  %v3182_v41 = vrot.slane %v8112_v15, 2 }
 0x279   :  { %3903 = vrot.lane.b32.xlu0 %v3900_v40, %s5280_s26  ;;  %v4065_v40 = vmul.f32 %v7948_v43, %v4064_v26  ;;  %v4112_v26 = vrot.slane %v4105_v2, 2 }
 0x27a   :  { %v8031_v63 = vpop.permute.xlu1 %3205  ;;  %v4054_v20 = vsel %vm70_vm0, %v4051_v37, %v4053_v50  ;;  %v4052_v54 = vsel %vm70_vm0, %v4050_v29, %v4051_v37  ;;  %v3233_v37 = vstv %s8107_s13  ;;  %v3273_v29 = vrot.slane %v8131_v49, 1  ;;  %s8734_s13 = sld [smem:[#allocation2 + $0x84]] }
 0x27b   :  { %9172 = vst [vmem:[#allocation20_spill] sm:$0xff] %v8031_v63  ;;  %v8035_v7 = vpop.permute.xlu0 %3203  ;;  %v4071_v16 = vrot.slane %v4065_v40, 1  ;;  %v3275_v40 = vrot.slane %v3268_v12, 1  ;;  %v4113_v15 = vsel %vm130_vm1, %v4110_v51, %v4112_v26 }
 0x27c   :  { %9173 = vst [vmem:[#allocation12_spill] sm:$0xff] %v8035_v7  ;;  %3926 = vrot.lane.b32.xlu1 %v3923_v42, %s5279_s25  ;;  %v8105_v42 = vsel %vm70_vm0, %v3122_v30, %v3123_v46  ;;  %v4126_v46 = vmul.f32 %v7942_v44, %v4123_v24 }
 0x27d   :  { %3924 = vrot.lane.b32.xlu0 %v3921_v28, %s5279_s25  ;;  %v4072_v28 = vrot.slane %v4066_v9, 1  ;;  %v4124_v9 = vmul.f32 %v7948_v43, %v4123_v24  ;;  %v8192_v12 = vsel %vm70_vm0, %v3273_v29, %v3275_v40 }
 0x27e   :  { %v8042_v48 = vpop.permute.xlu1 %3226 }
 0x27f   :  { %9174 = vst [vmem:[#allocation8_spill] sm:$0xff] %v8042_v48  ;;  %v8045_v14 = vpop.permute.xlu0 %3224  ;;  %v4075_v0 = vsel %vm70_vm0, %v4072_v28, %v4074_v36  ;;  %v4073_v13 = vsel %vm70_vm0, %v4071_v16, %v4072_v28  ;;  %v4131_v28 = vrot.slane %v4125_v5, 2  ;;  %v4133_v36 = vrot.slane %v4126_v46, 2 }
 0x280   :  { %9175 = vst [vmem:[#allocation25_spill] sm:$0xff] %v8045_v14  ;;  %3964 = vrot.lane.b32.xlu1 %v3961_v11, %s5280_s26  ;;  %v3324_v11 = vstv %s8074_s11  ;;  %v4130_v16 = vrot.slane %v4124_v9, 2  ;;  %v4195_v5 = vstv %s8148_s17  ;;  %s8462_s11 = sld [smem:[#allocation2 + $0x88]] }
 0x281   :  { %3962 = vrot.lane.b32.xlu0 %v3959_v56, %s5280_s26  ;;  %v3327_v3 = vmul.f32 %v7942_v44, %v3324_v11  ;;  %v3325_v30 = vmul.f32 %v7948_v43, %v3324_v11  ;;  %s8498_s17 = sld [smem:[#allocation2 + $0x89]] }
 0x282   :  { %v8055_v60 = vpop.permute.xlu1 %3244  ;;  %v4132_v9 = vsel %vm130_vm1, %v4130_v16, %v4131_v28 }
 0x283   :  { %v8063_v35 = vpop.permute.xlu0 %3242  ;;  %v3331_v58 = vrot.slane %v3325_v30, 2 }
 0x284   :  { %3985 = vrot.lane.b32.xlu1 %v3982_v31, %s5279_s25  ;;  %v4103_v31 = vmul.f32 %v7948_v43, %v4102_v17 }
 0x285   :  { %3983 = vrot.lane.b32.xlu0 %v3980_v25, %s5279_s25  ;;  %v3177_v25 = vmul.f32 %v7942_v44, %v3174_v61 }
 0x286   :  { %v8076_v53 = vpop.permute.xlu1 %3258 }
 0x287   :  { %v8081_v45 = vpop.permute.xlu0 %3256  ;;  %v3184_v61 = vrot.slane %v3177_v25, 2  ;;  %v8182_v25 = vmul.f32 %v7989_v4, %v3233_v37 }
 0x288   :  { %4005 = vrot.lane.b32.xlu1 %v4000_v10, %s5280_s26  ;;  %v3266_v10 = vmul.f32 %v7948_v43, %v3265_v34 }
 0x289   :  { %4003 = vrot.lane.b32.xlu0 %v3999_v1, %s5280_s26  ;;  %v3326_v1 = vmul.f32 %v7989_v4, %v3324_v11  ;;  %v3334_v11 = vrot.slane %v3327_v3, 2 }
 0x28a   :  { %v8091_v8 = vpop.permute.xlu1 %3296  ;;  %v3272_v17 = vrot.slane %v3266_v10, 1  ;;  %v3385_v10 = vstv %s8136_s15  ;;  %s5192_s15 = sld [smem:[#allocation2 + $0x42]] }
 0x28b   :  { %v8109_v32 = vpop.permute.xlu0 %3294  ;;  %v3332_v34 = vrot.slane %v3326_v1, 2  ;;  %v4150_v1 = vstv %s8143_s16  ;;  %s5201_s16 = sld [smem:[#allocation2 + $0x66]] }
 0x28c   :  { %4019 = vrot.lane.b32.xlu1 %v4014_v39, %s5279_s25  ;;  %v4109_v39 = vrot.slane %v4103_v31, 2  ;;  %v8176_v31 = vsel %vm130_vm1, %v3182_v41, %v3184_v61  ;;  %v8208_v46 = vsel %vm70_vm0, %v3272_v17, %v3273_v29  ;;  %v8223_v61 = vmul.f32 %v7948_v43, %v3385_v10 }
 0x28d   :  { %4017 = vrot.lane.b32.xlu0 %v4013_v6, %s5279_s25  ;;  %v3181_v6 = vrot.slane %v3175_v62, 2  ;;  %9179 = vst [vmem:[#allocation15_spill] sm:$0xff] %v8176_v31  ;;  %v8185_v62 = vmul.f32 %v7948_v43, %v3233_v37  ;;  %v8211_v30 = vsel %vm130_vm1, %v3332_v34, %v3334_v11  ;;  %v4152_v37 = vmul.f32 %v7989_v4, %v4150_v1 }
 0x28e   :  { %v8123_v56 = vpop.permute.xlu1 %3317  ;;  %9182 = vst [vmem:[#allocation24_spill] sm:$0xff] %v8211_v30  ;;  %v4164_v29 = vstv %s8159_s18  ;;  %v4151_v40 = vmul.f32 %v7948_v43, %v4150_v1  ;;  %v4197_v17 = vmul.f32 %v7989_v4, %v4195_v5  ;;  %v4216_v11 = vstv %s8168_s1  ;;  %s8501_s18 = sld [smem:[#allocation2 + $0x67]] }
 0x28f   :  { %v8134_v22 = vpop.permute.xlu0 %3315  ;;  %v8179_v24 = vsel %vm130_vm1, %v3181_v6, %v3182_v41  ;;  %v8220_v41 = vmul.f32 %v7989_v4, %v3385_v10  ;;  %v4165_v16 = vmul.f32 %v7948_v43, %v4164_v29  ;;  %v4196_v10 = vmul.f32 %v7948_v43, %v4195_v5  ;;  %s8518_s1 = sld [smem:[#allocation2 + $0x8b]] }
 0x290   :  { %4057 = vrot.lane.b32.xlu1 %v4054_v20, %s5280_s26  ;;  %v3417_v20 = vstv %s8121_s14  ;;  %9180 = vst [vmem:[#allocation22_spill] sm:$0xff] %v8179_v24  ;;  %v4254_v1 = vstv %s8173_s20  ;;  %s5186_s14 = sld [smem:[#allocation2 + $0x21]] }
 0x291   :  { %4055 = vrot.lane.b32.xlu0 %v4052_v54, %s5280_s26  ;;  %v4111_v54 = vsel %vm130_vm1, %v4109_v39, %v4110_v51  ;;  %v8198_v3 = vmul.f32 %v7989_v4, %v3417_v20  ;;  %v3420_v51 = vmul.f32 %v7942_v44, %v3417_v20  ;;  %v8204_v26 = vmul.f32 %v7948_v43, %v3417_v20  ;;  %s8865_s20 = sld [smem:[#allocation2 + $0x87]] }
 0x292   :  { %v8150_v52 = vpop.permute.xlu1 %3355  ;;  %v4256_v7 = vmul.f32 %v7989_v4, %v4254_v1 }
 0x293   :  { %9176 = vst [vmem:[#allocation10_spill] sm:$0xff] %v8150_v52  ;;  %v8157_v50 = vpop.permute.xlu0 %3353  ;;  %v3424_v20 = vrot.slane %v8204_v26, 1  ;;  %v4203_v26 = vrot.slane %v4197_v17, 1 }
 0x294   :  { %9177 = vst [vmem:[#allocation13_spill] sm:$0xff] %v8157_v50  ;;  %4078 = vrot.lane.b32.xlu1 %v4075_v0, %s5279_s25  ;;  %v4134_v0 = vsel %vm130_vm1, %v4131_v28, %v4133_v36  ;;  %v3425_v28 = vrot.slane %v8198_v3, 1  ;;  %v3427_v36 = vrot.slane %v3420_v51, 1  ;;  %v4275_v51 = vstv %s8189_s21  ;;  %s8887_s21 = sld [smem:[#allocation2 + $0x69]] }
 0x295   :  { %4076 = vrot.lane.b32.xlu0 %v4073_v13, %s5279_s25  ;;  %v8214_v13 = vsel %vm130_vm1, %v3331_v58, %v3332_v34  ;;  %v4198_v34 = vmul.f32 %v7942_v44, %v4195_v5  ;;  %v4219_v5 = vmul.f32 %v7942_v44, %v4216_v11  ;;  %v4277_v63 = vmul.f32 %v7989_v4, %v4275_v51 }
 0x296   :  { %v8170_v2 = vpop.permute.xlu1 %3376  ;;  %9183 = vst [vmem:[#allocation18_spill] sm:$0xff] %v8214_v13  ;;  %v4278_v50 = vmul.f32 %v7942_v44, %v4275_v51  ;;  %v4262_v27 = vrot.slane %v4256_v7, 2  ;;  %v3537_v7 = vstv %s8251_s23  ;;  %s5196_s23 = sld [smem:[#allocation2 + $0x46]] }
 0x297   :  { %9178 = vst [vmem:[#allocation16_spill] sm:$0xff] %v8170_v2  ;;  %v8187_v49 = vpop.permute.xlu0 %3374  ;;  %v4205_v48 = vrot.slane %v4198_v34, 1  ;;  %v4255_v2 = vmul.f32 %v7948_v43, %v4254_v1  ;;  %v4202_v34 = vrot.slane %v4196_v10, 1  ;;  %v4226_v13 = vrot.slane %v4219_v5, 1 }
 0x298   :  { %9181 = vst [vmem:[#allocation23_spill] sm:$0xff] %v8187_v49  ;;  %4116 = vrot.lane.b32.xlu1 %v4113_v15, %s5280_s26  ;;  %v3476_v15 = vstv %s8163_s19  ;;  %v4217_v49 = vmul.f32 %v7948_v43, %v4216_v11  ;;  %v3569_v10 = vstv %s8234_s22  ;;  %s8508_s19 = sld [smem:[#allocation2 + $0x68]] }
 0x299   :  { %4114 = vrot.lane.b32.xlu0 %v4111_v54, %s5280_s26  ;;  %v4166_v54 = vmul.f32 %v7989_v4, %v4164_v29  ;;  %v3478_v14 = vmul.f32 %v7989_v4, %v3476_v15  ;;  %v3477_v3 = vmul.f32 %v7948_v43, %v3476_v15  ;;  %v4218_v29 = vmul.f32 %v7989_v4, %v4216_v11  ;;  %s5187_s22 = sld [smem:[#allocation2 + $0x22]] }
 0x29a   :  { %v8216_v39 = vpop.permute.xlu1 %3396  ;;  %v4223_v30 = vrot.slane %v4217_v49, 1 }
 0x29b   :  { %v8225_v6 = vpop.permute.xlu0 %3394  ;;  %v3484_v11 = vrot.slane %v3478_v14, 2  ;;  %v3483_v24 = vrot.slane %v3477_v3, 2  ;;  %v4224_v31 = vrot.slane %v4218_v29, 1  ;;  %v8283_v3 = vsel %vm70_vm0, %v3424_v20, %v3425_v28 }
 0x29c   :  { %4137 = vrot.lane.b32.xlu1 %v4134_v0, %s5279_s25  ;;  %v4285_v29 = vrot.slane %v4278_v50, 2  ;;  %v4305_v20 = vstv %s8257_s24  ;;  %v3570_v50 = vmul.f32 %v7948_v43, %v3569_v10  ;;  %s5212_s24 = sld [smem:[#allocation2 + $0x8c]] }
 0x29d   :  { %4135 = vrot.lane.b32.xlu0 %v4132_v9, %s5279_s25  ;;  %v3479_v9 = vmul.f32 %v7942_v44, %v3476_v15  ;;  %v4257_v15 = vmul.f32 %v7942_v44, %v4254_v1  ;;  %v4276_v1 = vmul.f32 %v7948_v43, %v4275_v51 }
 0x29e   :  { %v8240_v58 = vpop.permute.xlu1 %3410 }
 0x29f   :  { %v8246_v0 = vpop.permute.xlu0 %3408  ;;  %v3486_v52 = vrot.slane %v3479_v9, 2  ;;  %v4264_v14 = vrot.slane %v4257_v15, 2  ;;  %v4261_v9 = vrot.slane %v4255_v2, 2  ;;  %v4282_v49 = vrot.slane %v4276_v1, 2 }
 0x2a0   :  { %4157 = vrot.lane.b32.xlu1 %v4152_v37, %s5280_s26  ;;  %v8265_v37 = vsel %vm70_vm0, %v3425_v28, %v3427_v36  ;;  %v4206_v36 = vsel %vm70_vm0, %v4203_v26, %v4205_v48  ;;  %v4204_v48 = vsel %vm70_vm0, %v4202_v34, %v4203_v26  ;;  %v3571_v2 = vmul.f32 %v7989_v4, %v3569_v10 }
 0x2a1   :  { %4155 = vrot.lane.b32.xlu0 %v4151_v40, %s5280_s26  ;;  %v8299_v28 = vsel %vm130_vm1, %v3483_v24, %v3484_v11  ;;  %v4225_v26 = vsel %vm70_vm0, %v4223_v30, %v4224_v31  ;;  %v4265_v15 = vsel %vm130_vm1, %v4262_v27, %v4264_v14  ;;  %v4263_v34 = vsel %vm130_vm1, %v4261_v9, %v4262_v27 }
 0x2a2   :  { %v8267_v17 = vpop.permute.xlu1 %3448  ;;  %v3539_v24 = vmul.f32 %v7989_v4, %v3537_v7  ;;  %v8323_v27 = vmul.f32 %v7989_v4, %v4305_v20  ;;  %v3577_v14 = vrot.slane %v3571_v2, 1  ;;  %v3248_v9 = vadd.f32 %v8063_v35, %v8185_v62 }
 0x2a3   :  { %v8273_v40 = vpop.permute.xlu0 %3446  ;;  %v3098_v35 = vadd.f32 %v7982_v33, %v8099_v18  ;;  %v3400_v2 = vadd.f32 %v8225_v6, %v8223_v61  ;;  %v4306_v61 = vmul.f32 %v7948_v43, %v4305_v20 }
 0x2a4   :  { %4171 = vrot.lane.b32.xlu1 %v4166_v54, %s5279_s25  ;;  %v4283_v54 = vrot.slane %v4277_v63, 2  ;;  %v3572_v63 = vmul.f32 %v7942_v44, %v3569_v10  ;;  %v4350_v10 = vstv %s8271_s27  ;;  %v3262_v62 = vadd.f32 %v8081_v45, %v3248_v9  ;;  %s5188_s27 = sld [smem:[#allocation2 + $0x23]] }
 0x2a5   :  { %4169 = vrot.lane.b32.xlu0 %v4165_v16, %s5279_s25  ;;  %v8293_v16 = vsel %vm130_vm1, %v3484_v11, %v3486_v52  ;;  %v4227_v52 = vsel %vm70_vm0, %v4224_v31, %v4226_v13  ;;  %v3538_v11 = vmul.f32 %v7948_v43, %v3537_v7  ;;  %v3249_v13 = vadd.f32 %v8055_v60, %v8182_v25 }
 0x2a6   :  { %v8285_v51 = vpop.permute.xlu1 %3469  ;;  %v4284_v30 = vsel %vm130_vm1, %v4282_v49, %v4283_v54  ;;  %v4319_v7 = vstv %s8279_s28  ;;  %v3099_v60 = vadd.f32 %v7978_v21, %v8096_v38  ;;  %v8336_v49 = vmul.f32 %v7989_v4, %v4350_v10  ;;  %s5197_s28 = sld [smem:[#allocation2 + $0x47]] }
 0x2a7   :  { %v8290_v5 = vpop.permute.xlu0 %3467  ;;  %v3263_v25 = vadd.f32 %v8076_v53, %v3249_v13  ;;  %v3628_v21 = vstv %s8288_s29  ;;  %v8354_v33 = vmul.f32 %v7948_v43, %v4350_v10  ;;  %v3112_v45 = vadd.f32 %v8000_v55, %v3098_v35  ;;  %s8585_s29 = sld [smem:[#allocation2 + $0x39]] }
 0x2a8   :  { %4209 = vrot.lane.b32.xlu1 %v4206_v36, %s5280_s26  ;;  %v4286_v36 = vsel %vm130_vm1, %v4283_v54, %v4285_v29  ;;  %v3576_v29 = vrot.slane %v3570_v50, 1  ;;  %v3401_v54 = vadd.f32 %v8216_v39, %v8220_v41  ;;  %v3113_v53 = vadd.f32 %v7997_v59, %v3099_v60 }
 0x2a9   :  { %4207 = vrot.lane.b32.xlu0 %v4204_v48, %s5280_s26  ;;  %v3579_v48 = vrot.slane %v3572_v63, 1  ;;  %v8351_v41 = vmul.f32 %v7942_v44, %v4350_v10  ;;  %v3414_v18 = vadd.f32 %v8246_v0, %v3400_v2  ;;  %v3280_v6 = vadd.f32 %v8192_v12, %v3263_v25 }
 0x2aa   :  { %v8309_v1 = vpop.permute.xlu1 %3507  ;;  %v3415_v38 = vadd.f32 %v8240_v58, %v3401_v54  ;;  %v3578_v58 = vsel %vm70_vm0, %v3576_v29, %v3577_v14  ;;  %v4321_v50 = vmul.f32 %v7989_v4, %v4319_v7  ;;  %v3279_v55 = vadd.f32 %v8208_v46, %v3262_v62 }
 0x2ab   :  { %v8319_v31 = vpop.permute.xlu0 %3505  ;;  %v3580_v59 = vsel %vm70_vm0, %v3577_v14, %v3579_v48  ;;  %v4358_v20 = vrot.slane %v8336_v49, 1  ;;  %v3130_v10 = vadd.f32 %v8102_v57, %v3113_v53  ;;  %v4360_v13 = vrot.slane %v8351_v41, 1  ;;  %v9184_v53 = vld [vmem:[#allocation11_spill] sm:$0xff] }
 0x2ac   :  { %4230 = vrot.lane.b32.xlu1 %v4227_v52, %s5279_s25  ;;  %v8366_v52 = vmul.f32 %v7989_v4, %v3628_v21  ;;  %v3432_v12 = vadd.f32 %v8265_v37, %v3415_v38  ;;  %v4357_v14 = vrot.slane %v8354_v33, 1  ;;  %v3129_v9 = vadd.f32 %v8105_v42, %v3112_v45  ;;  %v9185_v33 = vld [vmem:[#allocation24_spill] sm:$0xff] }
 0x2ad   :  { %4228 = vrot.lane.b32.xlu0 %v4225_v26, %s5279_s25  ;;  %v4320_v26 = vmul.f32 %v7948_v43, %v4319_v7  ;;  %v3431_v48 = vadd.f32 %v8283_v3, %v3414_v18  ;;  %v3631_v46 = vmul.f32 %v7942_v44, %v3628_v21  ;;  %v3629_v29 = vmul.f32 %v7948_v43, %v3628_v21 }
 0x2ae   :  { %v8343_v63 = vpop.permute.xlu1 %3528  ;;  %v3301_v7 = vadd.f32 %v8091_v8, %v3280_v6  ;;  %v3636_v37 = vrot.slane %v8366_v52, 2  ;;  %v3300_v25 = vadd.f32 %v8109_v32, %v3279_v55  ;;  %v3151_v49 = vadd.f32 %v8008_v19, %v3130_v10  ;;  %v9188_v10 = vld [vmem:[#allocation22_spill] sm:$0xff] }
 0x2af   :  { %v8348_v39 = vpop.permute.xlu0 %3526  ;;  %v3453_v8 = vadd.f32 %v8267_v17, %v3432_v12  ;;  %v3150_v62 = vadd.f32 %v8011_v47, %v3129_v9  ;;  %v3638_v21 = vrot.slane %v3631_v46, 2  ;;  %v3635_v41 = vrot.slane %v3629_v29, 2 }
 0x2b0   :  { %4268 = vrot.lane.b32.xlu1 %v4265_v15, %s5280_s26  ;;  %v4371_v15 = vstv %s8315_s30  ;;  %v3322_v35 = vadd.f32 %v8123_v56, %v3301_v7  ;;  %v3321_v32 = vadd.f32 %v8134_v22, %v3300_v25  ;;  %v3172_v19 = vadd.f32 %v8018_v23, %v3151_v49  ;;  %v9186_v23 = vld [vmem:[#allocation18_spill] sm:$0xff]  ;;  %v9193_v49 = vld [vmem:[#allocation12_spill] sm:$0xff]  ;;  %s8596_s30 = sld [smem:[#allocation2 + $0x6a]] }
 0x2b1   :  { %4266 = vrot.lane.b32.xlu0 %v4263_v34, %s5280_s26  ;;  %v4373_v60 = vmul.f32 %v7989_v4, %v4371_v15  ;;  %v4374_v3 = vmul.f32 %v7942_v44, %v4371_v15  ;;  %v3474_v56 = vadd.f32 %v8285_v51, %v3453_v8  ;;  %v3171_v47 = vadd.f32 %v9184_v53, %v3150_v62  ;;  %v9194_v8 = vld [vmem:[#allocation23_spill] sm:$0xff] }
 0x2b2   :  { %v3549_v0 = vpop.permute.xlu1 %3548  ;;  %v3339_v45 = vadd.f32 %v9185_v33, %v3322_v35  ;;  %v3338_v51 = vadd.f32 %v9186_v23, %v3321_v32  ;;  %v3724_v25 = vstv %s8398_s4  ;;  %s8607_s4 = sld [smem:[#allocation2 + $0x5d]] }
 0x2b3   :  { %v3547_v34 = vpop.permute.xlu0 %3546  ;;  %v3553_v57 = vadd.f32 %v3549_v0, %v3539_v24  ;;  %v4379_v18 = vrot.slane %v4373_v60, 1  ;;  %v4381_v6 = vrot.slane %v4374_v3, 1  ;;  %v3491_v55 = vadd.f32 %v8293_v16, %v3474_v56 }
 0x2b4   :  { %4289 = vrot.lane.b32.xlu1 %v4286_v36, %s5279_s25  ;;  %v3552_v42 = vadd.f32 %v3547_v34, %v3538_v11  ;;  %v4372_v36 = vmul.f32 %v7948_v43, %v4371_v15  ;;  %v3452_v11 = vadd.f32 %v8273_v40, %v3431_v48  ;;  %v3639_v15 = vsel %vm130_vm1, %v3636_v37, %v3638_v21  ;;  %v9196_v21 = vld [vmem:[#allocation25_spill] sm:$0xff] }
 0x2b5   :  { %4287 = vrot.lane.b32.xlu0 %v4284_v30, %s5279_s25  ;;  %v3188_v12 = vadd.f32 %v9188_v10, %v3171_v47  ;;  %v4382_v16 = vsel %vm70_vm0, %v4379_v18, %v4381_v6  ;;  %v4455_v60 = vstv %s8391_s3  ;;  %v3725_v23 = vmul.f32 %v7948_v43, %v3724_v25  ;;  %s8600_s3 = sld [smem:[#allocation2 + $0x36]] }
 0x2b6   :  { %v3563_v54 = vpop.permute.xlu1 %3562  ;;  %v3473_v22 = vadd.f32 %v8290_v5, %v3452_v11  ;;  %v4378_v52 = vrot.slane %v4372_v36, 1  ;;  %v9187_v5 = vld [vmem:[#allocation15_spill] sm:$0xff]  ;;  %v9195_v11 = vld [vmem:[#allocation8_spill] sm:$0xff]  ;;  %v4457_v56 = vmul.f32 %v7989_v4, %v4455_v60 }
 0x2b7   :  { %v3567_v24 = vadd.f32 %v3563_v54, %v3553_v57  ;;  %v3561_v30 = vpop.permute.xlu0 %3560  ;;  %v9192_v54 = vld [vmem:[#allocation16_spill] sm:$0xff]  ;;  %v3209_v35 = vadd.f32 %v9193_v49, %v3188_v12 }
 0x2b8   :  { %v3566_v2 = vadd.f32 %v3561_v30, %v3552_v42  ;;  %4312 = vrot.lane.b32.xlu1 %v8323_v27, %s5280_s26  ;;  %v4380_v29 = vsel %vm70_vm0, %v4378_v52, %v4379_v18 }
 0x2b9   :  { %4310 = vrot.lane.b32.xlu0 %v4306_v61, %s5280_s26  ;;  %v3584_v17 = vadd.f32 %v3580_v59, %v3567_v24  ;;  %v4361_v61 = vsel %vm70_vm0, %v4358_v20, %v4360_v13  ;;  %v4359_v59 = vsel %vm70_vm0, %v4357_v14, %v4358_v20  ;;  %v3637_v20 = vsel %vm130_vm1, %v3635_v41, %v3636_v37  ;;  %v9189_v14 = vld [vmem:[#allocation10_spill] sm:$0xff] }
 0x2ba   :  { %v3601_v38 = vpop.permute.xlu1 %3600  ;;  %v3583_v40 = vadd.f32 %v3578_v58, %v3566_v2  ;;  %v3189_v58 = vadd.f32 %v9187_v5, %v3172_v19  ;;  %v3360_v9 = vadd.f32 %v9189_v14, %v3339_v45  ;;  %v3512_v37 = vadd.f32 %v8309_v1, %v3491_v55 }
 0x2bb   :  { %v3599_v27 = vpop.permute.xlu0 %3598  ;;  %v3605_v0 = vadd.f32 %v3601_v38, %v3584_v17  ;;  %v4456_v17 = vmul.f32 %v7948_v43, %v4455_v60  ;;  %v3230_v53 = vadd.f32 %v9196_v21, %v3209_v35  ;;  %v3727_v41 = vmul.f32 %v7942_v44, %v3724_v25 }
 0x2bc   :  { %4326 = vrot.lane.b32.xlu1 %v4321_v50, %s5279_s25  ;;  %v3490_v50 = vadd.f32 %v8299_v28, %v3473_v22  ;;  %v3604_v34 = vadd.f32 %v3599_v27, %v3583_v40  ;;  %v9191_v28 = vld [vmem:[#allocation20_spill] sm:$0xff]  ;;  %v3381_v3 = vadd.f32 %v9192_v54, %v3360_v9  ;;  %v3533_v19 = vadd.f32 %v8343_v63, %v3512_v37 }
 0x2bd   :  { %4324 = vrot.lane.b32.xlu0 %v4320_v26, %s5279_s25  ;;  %v9190_v26 = vld [vmem:[#allocation13_spill] sm:$0xff]  ;;  %v3210_v42 = vadd.f32 %v9191_v28, %v3189_v58  ;;  %v4469_v22 = vstv %s8412_s6  ;;  %v3726_v63 = vmul.f32 %v7989_v4, %v3724_v25  ;;  %v4607_v58 = vstv %s8432_s7  ;;  %s8621_s6 = sld [smem:[#allocation2 + $0x8e]] }
 0x2be   :  { %v3622_v13 = vpop.permute.xlu1 %3621  ;;  %v3359_v7 = vadd.f32 %v9190_v26, %v3338_v51  ;;  %v3511_v30 = vadd.f32 %v8319_v31, %v3490_v50  ;;  %v3692_v31 = vstv %s8406_s5  ;;  %v4471_v44 = vmul.f32 %v7989_v4, %v4469_v22  ;;  %s8613_s5 = sld [smem:[#allocation2 + $0x6b]] }
 0x2bf   :  { %v3626_v48 = vadd.f32 %v3622_v13, %v3605_v0  ;;  %v3620_v46 = vpop.permute.xlu0 %3619  ;;  %v3231_v2 = vadd.f32 %v9195_v11, %v3210_v42  ;;  %v3694_v52 = vmul.f32 %v7989_v4, %v3692_v31  ;;  %v3732_v55 = vrot.slane %v3726_v63, 1  ;;  %v8488_v42 = vld [vmem:[%s8994_s0 + $0x18] sm:$0xff]  ;;  %s8633_s7 = sld [smem:[#allocation2 + $0x3c]] }
 0x2c0   :  { %v3625_v57 = vadd.f32 %v3620_v46, %v3604_v34  ;;  %4364 = vrot.lane.b32.xlu1 %v4361_v61, %s5280_s26  ;;  %v3380_v24 = vadd.f32 %v9194_v8, %v3359_v7  ;;  %v3532_v47 = vadd.f32 %v8348_v39, %v3511_v30  ;;  %v3734_v0 = vrot.slane %v3727_v41, 1  ;;  %v8480_v7 = vld [vmem:[%s8994_s0 + $0x28] sm:$0x3] }
 0x2c1   :  { %4362 = vrot.lane.b32.xlu0 %v4359_v59, %s5280_s26  ;;  %v3643_v36 = vadd.f32 %v3639_v15, %v3626_v48  ;;  %v3383_v38 = vmax.f32 %v3231_v2, %v3381_v3  ;;  %v4470_v59 = vmul.f32 %v7948_v43, %v4469_v22  ;;  %v3693_v12 = vmul.f32 %v7948_v43, %v3692_v31 }
 0x2c2   :  { %v3660_v62 = vpop.permute.xlu1 %3659  ;;  %v3642_v32 = vadd.f32 %v3637_v20, %v3625_v57  ;;  %v3382_v33 = vmax.f32 %v3230_v53, %v3380_v24  ;;  %v3731_v34 = vrot.slane %v3725_v23, 1  ;;  %v3783_v13 = vstv %s8441_s8  ;;  %s8638_s8 = sld [smem:[#allocation2 + $0x5a]] }
 0x2c3   :  { %v3658_v1 = vpop.permute.xlu0 %3657  ;;  %v3664_v40 = vadd.f32 %v3660_v62, %v3643_v36  ;;  %v3535_v39 = vmax.f32 %v3383_v38, %v3533_v19  ;;  %v4609_v20 = vmul.f32 %v7989_v4, %v4607_v58  ;;  %v4608_v9 = vmul.f32 %v7948_v43, %v4607_v58 }
 0x2c4   :  { %4385 = vrot.lane.b32.xlu1 %v4382_v16, %s5279_s25  ;;  %v3663_v45 = vadd.f32 %v3658_v1, %v3642_v32  ;;  %v3534_v51 = vmax.f32 %v3382_v33, %v3532_v47  ;;  %v3735_v48 = vsel %vm70_vm0, %v3732_v55, %v3734_v0  ;;  %v4621_v46 = vstv %s8451_s9  ;;  %v8527_v0 = vld [vmem:[%s8994_s0 + $0x20] sm:$0xff]  ;;  %s8646_s9 = sld [smem:[#allocation2 + $0x8f]] }
 0x2c5   :  { %4383 = vrot.lane.b32.xlu0 %v4380_v29, %s5279_s25  ;;  %v3785_v26 = vmul.f32 %v7989_v4, %v3783_v13  ;;  %v3786_v57 = vmul.f32 %v8480_v7, %v3783_v13  ;;  %v4500_v60 = vstv %s8453_s10  ;;  %v3733_v28 = vsel %vm70_vm0, %v3731_v34, %v3732_v55  ;;  %s8670_s10 = sld [smem:[#allocation2 + $0x81]] }
 0x2c6   :  { %v3681_v27 = vpop.permute.xlu1 %3680  ;;  %v3784_v54 = vmul.f32 %v8488_v42, %v3783_v13  ;;  %v4623_v37 = vmul.f32 %v7989_v4, %v4621_v46  ;;  %v4622_v36 = vmul.f32 %v8488_v42, %v4621_v46  ;;  %v4759_v35 = vstv %s8462_s11  ;;  %s8676_s11 = sld [smem:[#allocation2 + $0x60]] }
 0x2c7   :  { %v3685_v18 = vadd.f32 %v3681_v27, %v3664_v40  ;;  %v3679_v6 = vpop.permute.xlu0 %3678  ;;  %v4502_v8 = vmul.f32 %v7989_v4, %v4500_v60  ;;  %v4503_v24 = vmul.f32 %v8480_v7, %v4500_v60  ;;  %v3791_v32 = vrot.slane %v3785_v26, 2 }
 0x2c8   :  { %v3684_v61 = vadd.f32 %v3679_v6, %v3663_v45  ;;  %4462 = vrot.lane.b32.xlu1 %v4457_v56, %s5280_s26  ;;  %v3793_v11 = vrot.slane %v3786_v57, 2  ;;  %v4501_v2 = vmul.f32 %v8488_v42, %v4500_v60  ;;  %v3790_v56 = vrot.slane %v3784_v54, 2 }
 0x2c9   :  { %v3687_v5 = vmax.f32 %v3535_v39, %v3685_v18  ;;  %4460 = vrot.lane.b32.xlu0 %v4456_v17, %s5280_s26  ;;  %v4761_v21 = vmul.f32 %v7989_v4, %v4759_v35  ;;  %v4760_v53 = vmul.f32 %v8488_v42, %v4759_v35  ;;  %v4508_v47 = vrot.slane %v4502_v8, 1 }
 0x2ca   :  { %v3686_v15 = vmax.f32 %v3534_v51, %v3684_v61  ;;  %v3704_v10 = vpop.permute.xlu1 %3703  ;;  %v4510_v31 = vrot.slane %v4503_v24, 1  ;;  %v4521_v22 = vstv %s8474_s12  ;;  %v3794_v40 = vsel %vm130_vm1, %v3791_v32, %v3793_v11  ;;  %s8689_s12 = sld [smem:[#allocation2 + $0x7e]] }
 0x2cb   :  { %3690 = vst.msk [vmem:[#allocation5 + $0x58] sm:$0xff] %vm638_vm2, %v3687_v5  ;;  %v3702_v50 = vpop.permute.xlu0 %3701  ;;  %v3708_v14 = vadd.f32 %v3704_v10, %v3694_v52  ;;  %v4507_v63 = vrot.slane %v4501_v2, 1  ;;  %v3792_v45 = vsel %vm130_vm1, %v3790_v56, %v3791_v32  ;;  %v4523_v39 = vmul.f32 %v7989_v4, %v4521_v22 }
 0x2cc   :  { %3689 = vst.msk [vmem:[#allocation5 + $0x50] sm:$0xff] %vm638_vm2, %v3686_v15  ;;  %4476 = vrot.lane.b32.xlu1 %v4471_v44, %s5279_s25  ;;  %v3707_v16 = vadd.f32 %v3702_v50, %v3693_v12  ;;  %v4511_v6 = vsel %vm70_vm0, %v4508_v47, %v4510_v31  ;;  %v4773_v52 = vstv %s8498_s17  ;;  %v4524_v23 = vmul.f32 %v8480_v7, %v4521_v22  ;;  %s8855_s17 = sld [smem:[#allocation2 + $0x3f]] }
 0x2cd   :  { %4474 = vrot.lane.b32.xlu0 %v4470_v59, %s5279_s25  ;;  %v4509_v44 = vsel %vm70_vm0, %v4507_v63, %v4508_v47  ;;  %v4522_v59 = vmul.f32 %v8488_v42, %v4521_v22  ;;  %v4652_v5 = vstv %s8501_s18  ;;  %v4775_v15 = vmul.f32 %v8527_v0, %v4773_v52  ;;  %s5210_s18 = sld [smem:[#allocation2 + $0x8a]] }
 0x2ce   :  { %v3718_v29 = vpop.permute.xlu1 %3717  ;;  %v4774_v10 = vmul.f32 %v8488_v42, %v4773_v52  ;;  %v4529_v12 = vrot.slane %v4523_v39, 1  ;;  %v4531_v50 = vrot.slane %v4524_v23, 1  ;;  %v4654_v34 = vmul.f32 %v8527_v0, %v4652_v5 }
 0x2cf   :  { %v3722_v25 = vadd.f32 %v3718_v29, %v3708_v14  ;;  %v3716_v43 = vpop.permute.xlu0 %3715  ;;  %v4655_v13 = vmul.f32 %v8480_v7, %v4652_v5  ;;  %v4559_v22 = vstv %s5196_s23  ;;  %v4825_v52 = vstv %s5212_s24 }
 0x2d0   :  { %v3721_v3 = vadd.f32 %v3716_v43, %v3707_v16  ;;  %4614 = vrot.lane.b32.xlu1 %v4609_v20, %s5280_s26  ;;  %v4673_v20 = vstv %s8508_s19  ;;  %v4532_v60 = vsel %vm70_vm0, %v4529_v12, %v4531_v50  ;;  %s8859_s19 = sld [smem:[#allocation2 + $0x63]] }
 0x2d1   :  { %4612 = vrot.lane.b32.xlu0 %v4608_v9, %s5280_s26  ;;  %v3739_v49 = vadd.f32 %v3735_v48, %v3722_v25  ;;  %v4528_v9 = vrot.slane %v4522_v59, 1  ;;  %v4653_v48 = vmul.f32 %v8488_v42, %v4652_v5  ;;  %v4675_v26 = vmul.f32 %v8527_v0, %v4673_v20 }
 0x2d2   :  { %v3756_v30 = vpop.permute.xlu1 %3755  ;;  %v3738_v62 = vadd.f32 %v3733_v28, %v3721_v3  ;;  %v4676_v57 = vmul.f32 %v8480_v7, %v4673_v20  ;;  %v4660_v25 = vrot.slane %v4654_v34, 1  ;;  %v4662_v43 = vrot.slane %v4655_v13, 1 }
 0x2d3   :  { %v3760_v19 = vadd.f32 %v3756_v30, %v3739_v49  ;;  %v3754_v1 = vpop.permute.xlu0 %3753  ;;  %v4804_v28 = vstv %s8518_s1  ;;  %v4530_v3 = vsel %vm70_vm0, %v4528_v9, %v4529_v12  ;;  %v4681_v35 = vrot.slane %v4675_v26, 1  ;;  %s5195_s1 = sld [smem:[#allocation2 + $0x45]] }
 0x2d4   :  { %v3759_v17 = vadd.f32 %v3754_v1, %v3738_v62  ;;  %4628 = vrot.lane.b32.xlu1 %v4623_v37, %s5279_s25  ;;  %v4659_v37 = vrot.slane %v4653_v48, 1  ;;  %v4683_v8 = vrot.slane %v4676_v57, 1  ;;  %v4806_v24 = vmul.f32 %v8527_v0, %v4804_v28 }
 0x2d5   :  { %4626 = vrot.lane.b32.xlu0 %v4622_v36, %s5279_s25  ;;  %v4674_v36 = vmul.f32 %v8488_v42, %v4673_v20  ;;  %v4663_v30 = vsel %vm70_vm0, %v4660_v25, %v4662_v43  ;;  %v4807_v62 = vmul.f32 %v8480_v7, %v4804_v28  ;;  %v4409_v1 = vstv %s5187_s22  ;;  %s8899_s22 = sld [smem:[#allocation2 + $0x8d]] }
 0x2d6   :  { %v3777_v38 = vpop.permute.xlu1 %3776  ;;  %v4661_v11 = vsel %vm70_vm0, %v4659_v37, %v4660_v25  ;;  %v4411_v47 = vmul.f32 %v8527_v0, %v4409_v1  ;;  %v4412_v31 = vmul.f32 %v8480_v7, %v4409_v1  ;;  %v4826_v34 = vmul.f32 %v8488_v42, %v4825_v52 }
 0x2d7   :  { %v3781_v41 = vadd.f32 %v3777_v38, %v3760_v19  ;;  %v3775_v33 = vpop.permute.xlu0 %3774  ;;  %v4680_v2 = vrot.slane %v4674_v36, 1  ;;  %v4805_v19 = vmul.f32 %v8488_v42, %v4804_v28  ;;  %v4430_v13 = vstv %s5188_s27 }
 0x2d8   :  { %v3780_v27 = vadd.f32 %v3775_v33, %v3759_v17  ;;  %4766 = vrot.lane.b32.xlu1 %v4761_v21, %s5280_s26  ;;  %v4684_v17 = vsel %vm70_vm0, %v4681_v35, %v4683_v8  ;;  %v4812_v21 = vrot.slane %v4806_v24, 1  ;;  %v4433_v26 = vmul.f32 %v8480_v7, %v4430_v13 }
 0x2d9   :  { %4764 = vrot.lane.b32.xlu0 %v4760_v53, %s5280_s26  ;;  %v3798_v18 = vadd.f32 %v3794_v40, %v3781_v41  ;;  %v4814_v53 = vrot.slane %v4807_v62, 1  ;;  %v4682_v40 = vsel %vm70_vm0, %v4680_v2, %v4681_v35  ;;  %v4811_v63 = vrot.slane %v4805_v19, 1 }
 0x2da   :  { %v3815_v51 = vpop.permute.xlu1 %3814  ;;  %v3797_v61 = vadd.f32 %v3792_v45, %v3780_v27  ;;  %v4410_v41 = vmul.f32 %v8488_v42, %v4409_v1  ;;  %v4561_v45 = vmul.f32 %v8527_v0, %v4559_v22  ;;  %v4562_v27 = vmul.f32 %v8480_v7, %v4559_v22 }
 0x2db   :  { %v3819_v58 = vadd.f32 %v3815_v51, %v3798_v18  ;;  %v3813_v4 = vpop.permute.xlu0 %3812  ;;  %v4815_v39 = vsel %vm70_vm0, %v4812_v21, %v4814_v53  ;;  %v4417_v18 = vrot.slane %v4411_v47, 2  ;;  %v4813_v51 = vsel %vm70_vm0, %v4811_v63, %v4812_v21 }
 0x2dc   :  { %v3818_v55 = vadd.f32 %v3813_v4, %v3797_v61  ;;  %4514 = vrot.lane.b32.xlu1 %v4511_v6, %s5280_s26  ;;  %v4419_v6 = vrot.slane %v4412_v31, 2  ;;  %v4416_v61 = vrot.slane %v4410_v41, 2  ;;  %v4567_v5 = vrot.slane %v4561_v45, 2 }
 0x2dd   :  { %4512 = vrot.lane.b32.xlu0 %v4509_v44, %s5280_s26  ;;  %v4560_v44 = vmul.f32 %v8488_v42, %v4559_v22  ;;  %v4827_v4 = vmul.f32 %v8527_v0, %v4825_v52  ;;  %v4580_v57 = vstv %s5197_s28  ;;  %v4832_v43 = vrot.slane %v4826_v34, 1 }
 0x2de   :  { %v3836_v14 = vpop.permute.xlu1 %3835  ;;  %v4418_v12 = vsel %vm130_vm1, %v4416_v61, %v4417_v18  ;;  %v4431_v28 = vmul.f32 %v8488_v42, %v4430_v13  ;;  %v3874_v37 = vstv %s8585_s29  ;;  %v4582_v36 = vmul.f32 %v8527_v0, %v4580_v57 }
 0x2df   :  { %v8536_v46 = vadd.f32 %v3836_v14, %v3819_v58  ;;  %v3834_v16 = vpop.permute.xlu0 %3833  ;;  %v4569_v58 = vrot.slane %v4562_v27, 2  ;;  %v4566_v50 = vrot.slane %v4560_v44, 2  ;;  %v4833_v9 = vrot.slane %v4827_v4, 1 }
 0x2e0   :  { %v8538_v29 = vadd.f32 %v3834_v16, %v3818_v55  ;;  %4780 = vrot.lane.b32.xlu1 %v4775_v15, %s5279_s25  ;;  %v4420_v55 = vsel %vm130_vm1, %v4417_v18, %v4419_v6  ;;  %v4828_v15 = vmul.f32 %v8480_v7, %v4825_v52  ;;  %v4432_v16 = vmul.f32 %v8527_v0, %v4430_v13 }
 0x2e1   :  { %4778 = vrot.lane.b32.xlu0 %v4774_v10, %s5279_s25  ;;  %v4570_v14 = vsel %vm130_vm1, %v4567_v5, %v4569_v58  ;;  %v4568_v25 = vsel %vm130_vm1, %v4566_v50, %v4567_v5  ;;  %v4583_v35 = vmul.f32 %v8480_v7, %v4580_v57  ;;  %v4437_v2 = vrot.slane %v4431_v28, 2 }
 0x2e2   :  { %v8546_v54 = vpop.permute.xlu1 %3853  ;;  %v4835_v48 = vrot.slane %v4828_v15, 1  ;;  %v4438_v24 = vrot.slane %v4432_v16, 2  ;;  %v4581_v19 = vmul.f32 %v8488_v42, %v4580_v57  ;;  %v4711_v1 = vstv %s8596_s30 }
 0x2e3   :  { %v8550_v49 = vpop.permute.xlu0 %3851  ;;  %v3877_v21 = vmul.f32 %v8480_v7, %v3874_v37  ;;  %v3875_v53 = vmul.f32 %v8488_v42, %v3874_v37  ;;  %v3842_v31 = vstv %s8600_s3  ;;  %v4588_v22 = vrot.slane %v4582_v36, 2 }
 0x2e4   :  { %4535 = vrot.lane.b32.xlu1 %v4532_v60, %s5279_s25  ;;  %v4836_v8 = vsel %vm70_vm0, %v4833_v9, %v4835_v48  ;;  %v4026_v41 = vstv %s8607_s4  ;;  %v4713_v45 = vmul.f32 %v8527_v0, %v4711_v1  ;;  %v4714_v27 = vmul.f32 %v8480_v7, %v4711_v1 }
 0x2e5   :  { %4533 = vrot.lane.b32.xlu0 %v4530_v3, %s5279_s25  ;;  %v4439_v18 = vsel %vm130_vm1, %v4437_v2, %v4438_v24  ;;  %v4587_v6 = vrot.slane %v4581_v19, 2  ;;  %v4712_v52 = vmul.f32 %v8488_v42, %v4711_v1  ;;  %v8654_v61 = vmul.f32 %v8527_v0, %v3842_v31 }
 0x2e6   :  { %v8557_v32 = vpop.permute.xlu1 %3867  ;;  %v3884_v5 = vrot.slane %v3877_v21, 1  ;;  %v3881_v58 = vrot.slane %v3875_v53, 1  ;;  %v8663_v15 = vmul.f32 %v8527_v0, %v4026_v41  ;;  %v4863_v50 = vstv %s8621_s6 }
 0x2e7   :  { %v8561_v56 = vpop.permute.xlu0 %3865  ;;  %v4719_v34 = vrot.slane %v4713_v45, 2  ;;  %v4721_v13 = vrot.slane %v4714_v27, 2  ;;  %v4029_v48 = vmul.f32 %v8480_v7, %v4026_v41  ;;  %v4718_v57 = vrot.slane %v4712_v52, 2 }
 0x2e8   :  { %4666 = vrot.lane.b32.xlu1 %v4663_v30, %s5280_s26  ;;  %v4440_v30 = vrot.slane %v4433_v26, 2  ;;  %v4589_v26 = vsel %vm130_vm1, %v4587_v6, %v4588_v22  ;;  %v4865_v36 = vmul.f32 %v8527_v0, %v4863_v50 }
 0x2e9   :  { %4664 = vrot.lane.b32.xlu0 %v4661_v11, %s5280_s26  ;;  %v4834_v11 = vsel %vm70_vm0, %v4832_v43, %v4833_v9  ;;  %v4722_v2 = vsel %vm130_vm1, %v4719_v34, %v4721_v13  ;;  %v4036_v21 = vrot.slane %v4029_v48, 1  ;;  %v3858_v48 = vadd.f32 %v8546_v54, %v8654_v61 }
 0x2ea   :  { %v8568_v38 = vpop.permute.xlu1 %3905  ;;  %v4441_v63 = vsel %vm130_vm1, %v4438_v24, %v4440_v30  ;;  %v3994_v24 = vstv %s8638_s8  ;;  %v4034_v30 = vrot.slane %v8663_v15, 1  ;;  %v4871_v27 = vrot.slane %v4865_v36, 2 }
 0x2eb   :  { %v8572_v33 = vpop.permute.xlu0 %3903  ;;  %v3996_v52 = vmul.f32 %v8527_v0, %v3994_v24  ;;  %v4146_v36 = vstv %s8689_s12 }
 0x2ec   :  { %4687 = vrot.lane.b32.xlu1 %v4684_v17, %s5279_s25  ;;  %v3876_v17 = vmul.f32 %v8527_v0, %v3874_v37 }
 0x2ed   :  { %4685 = vrot.lane.b32.xlu0 %v4682_v40, %s5279_s25  ;;  %v4590_v40 = vrot.slane %v4583_v35, 2  ;;  %v4866_v35 = vmul.f32 %v8480_v7, %v4863_v50 }
 0x2ee   :  { %v8579_v23 = vpop.permute.xlu1 %3926  ;;  %v3882_v44 = vrot.slane %v3876_v17, 1  ;;  %v4884_v17 = vstv %s8646_s9 }
 0x2ef   :  { %v8583_v59 = vpop.permute.xlu0 %3924 }
 0x2f0   :  { %4818 = vrot.lane.b32.xlu1 %v4815_v39, %s5280_s26  ;;  %v8680_v43 = vsel %vm70_vm0, %v3882_v44, %v3884_v5  ;;  %v8683_v28 = vsel %vm70_vm0, %v3881_v58, %v3882_v44  ;;  %v4887_v44 = vmul.f32 %v8480_v7, %v4884_v17  ;;  %v3995_v5 = vmul.f32 %v8488_v42, %v3994_v24 }
 0x2f1   :  { %4816 = vrot.lane.b32.xlu0 %v4813_v51, %s5280_s26  ;;  %v4732_v51 = vstv %s8613_s5 }
 0x2f2   :  { %v8592_v10 = vpop.permute.xlu1 %3964  ;;  %v4735_v9 = vmul.f32 %v8480_v7, %v4732_v51  ;;  %v4894_v24 = vrot.slane %v4887_v44, 2 }
 0x2f3   :  { %v8598_v20 = vpop.permute.xlu0 %3962 }
 0x2f4   :  { %4423 = vrot.lane.b32.xlu1 %v4420_v55, %s5280_s26  ;;  %v8659_v55 = vmul.f32 %v8488_v42, %v3842_v31  ;;  %v4742_v1 = vrot.slane %v4735_v9, 2  ;;  %v4720_v31 = vsel %vm130_vm1, %v4718_v57, %v4719_v34  ;;  %v4885_v9 = vmul.f32 %v8488_v42, %v4884_v17 }
 0x2f5   :  { %4421 = vrot.lane.b32.xlu0 %v4418_v12, %s5280_s26  ;;  %v4591_v12 = vsel %vm130_vm1, %v4588_v22, %v4590_v40  ;;  %v4864_v40 = vmul.f32 %v8488_v42, %v4863_v50  ;;  %v4037_v50 = vsel %vm70_vm0, %v4034_v30, %v4036_v21 }
 0x2f6   :  { %v8609_v60 = vpop.permute.xlu1 %3985  ;;  %v4891_v21 = vrot.slane %v4885_v9, 2  ;;  %v4237_v9 = vstv %s8734_s13 }
 0x2f7   :  { %v8615_v3 = vpop.permute.xlu0 %3983 }
 0x2f8   :  { %4573 = vrot.lane.b32.xlu1 %v4570_v14, %s5280_s26  ;;  %v4734_v14 = vmul.f32 %v8527_v0, %v4732_v51 }
 0x2f9   :  { %4571 = vrot.lane.b32.xlu0 %v4568_v25, %s5280_s26  ;;  %v4733_v25 = vmul.f32 %v8488_v42, %v4732_v51  ;;  %v4886_v51 = vmul.f32 %v8527_v0, %v4884_v17 }
 0x2fa   :  { %v8625_v62 = vpop.permute.xlu1 %4005  ;;  %v4740_v19 = vrot.slane %v4734_v14, 2  ;;  %v4870_v14 = vrot.slane %v4864_v40, 2 }
 0x2fb   :  { %v8635_v47 = vpop.permute.xlu0 %4003  ;;  %v4739_v22 = vrot.slane %v4733_v25, 2  ;;  %v4010_v54 = vadd.f32 %v8625_v62, %v3996_v52 }
 0x2fc   :  { %4839 = vrot.lane.b32.xlu1 %v4836_v8, %s5279_s25  ;;  %v3933_v8 = vstv %s8633_s7  ;;  %v4743_v15 = vsel %vm130_vm1, %v4740_v19, %v4742_v1  ;;  %v4872_v17 = vsel %vm130_vm1, %v4870_v14, %v4871_v27 }
 0x2fd   :  { %4837 = vrot.lane.b32.xlu0 %v4834_v11, %s5279_s25  ;;  %v4027_v11 = vmul.f32 %v8488_v42, %v4026_v41  ;;  %v8707_v41 = vmul.f32 %v8480_v7, %v3933_v8  ;;  %v8712_v6 = vmul.f32 %v8488_v42, %v3933_v8  ;;  %v4741_v13 = vsel %vm130_vm1, %v4739_v22, %v4740_v19 }
 0x2fe   :  { %v8648_v39 = vpop.permute.xlu1 %4019 }
 0x2ff   :  { %v8656_v4 = vpop.permute.xlu0 %4017  ;;  %v4033_v58 = vrot.slane %v4027_v11, 1 }
 0x300   :  { %4444 = vrot.lane.b32.xlu1 %v4441_v63, %s5279_s25  ;;  %v8704_v63 = vmul.f32 %v8527_v0, %v3933_v8  ;;  %v4892_v8 = vrot.slane %v4886_v51, 2 }
 0x301   :  { %4442 = vrot.lane.b32.xlu0 %v4439_v18, %s5279_s25  ;;  %v4873_v18 = vrot.slane %v4866_v35, 2  ;;  %v3857_v35 = vadd.f32 %v8550_v49, %v8659_v55  ;;  %v4009_v49 = vadd.f32 %v8635_v47, %v3995_v5  ;;  %v4148_v47 = vmul.f32 %v8527_v0, %v4146_v36 }
 0x302   :  { %v8673_v16 = vpop.permute.xlu1 %4057 }
 0x303   :  { %v8685_v37 = vpop.permute.xlu0 %4055  ;;  %v4874_v25 = vsel %vm130_vm1, %v4871_v27, %v4873_v18  ;;  %v3871_v1 = vadd.f32 %v8561_v56, %v3857_v35  ;;  %v4023_v18 = vadd.f32 %v8656_v4, %v4009_v49  ;;  %v4895_v27 = vsel %vm130_vm1, %v4892_v8, %v4894_v24 }
 0x304   :  { %4594 = vrot.lane.b32.xlu1 %v4591_v12, %s5279_s25  ;;  %v4178_v12 = vstv %s8670_s10  ;;  %v3941_v4 = vrot.slane %v8704_v63, 2  ;;  %v4239_v24 = vmul.f32 %v8527_v0, %v4237_v9 }
 0x305   :  { %4592 = vrot.lane.b32.xlu0 %v4589_v26, %s5279_s25  ;;  %v4085_v26 = vstv %s8676_s11  ;;  %v4180_v11 = vmul.f32 %v8527_v0, %v4178_v12  ;;  %v4181_v61 = vmul.f32 %v8480_v7, %v4178_v12  ;;  %v4179_v19 = vmul.f32 %v8488_v42, %v4178_v12 }
 0x306   :  { %v8699_v53 = vpop.permute.xlu1 %4078  ;;  %v4087_v62 = vmul.f32 %v8527_v0, %v4085_v26  ;;  %v4088_v22 = vmul.f32 %v8480_v7, %v4085_v26  ;;  %v4086_v56 = vmul.f32 %v8488_v42, %v4085_v26  ;;  %v3888_v44 = vadd.f32 %v8683_v28, %v3871_v1 }
 0x307   :  { %v8709_v45 = vpop.permute.xlu0 %4076  ;;  %v4188_v52 = vrot.slane %v4181_v61, 1  ;;  %v4185_v51 = vrot.slane %v4179_v19, 1  ;;  %v3943_v12 = vrot.slane %v8707_v41, 2  ;;  %v4238_v19 = vmul.f32 %v8488_v42, %v4237_v9 }
 0x308   :  { %4725 = vrot.lane.b32.xlu1 %v4722_v2, %s5280_s26  ;;  %v3872_v2 = vadd.f32 %v8557_v32, %v3858_v48  ;;  %v4035_v32 = vsel %vm70_vm0, %v4033_v58, %v4034_v30  ;;  %v4186_v30 = vrot.slane %v4180_v11, 1  ;;  %v4147_v58 = vmul.f32 %v8488_v42, %v4146_v36 }
 0x309   :  { %4723 = vrot.lane.b32.xlu0 %v4720_v31, %s5280_s26  ;;  %v4024_v31 = vadd.f32 %v8648_v39, %v4010_v54  ;;  %v4040_v48 = vadd.f32 %v4035_v32, %v4023_v18  ;;  %v4093_v26 = vrot.slane %v4087_v62, 2  ;;  %v4092_v35 = vrot.slane %v4086_v56, 2 }
 0x30a   :  { %v8723_v34 = vpop.permute.xlu1 %4116  ;;  %v3889_v39 = vadd.f32 %v8680_v43, %v3872_v2  ;;  %v4189_v36 = vsel %vm70_vm0, %v4186_v30, %v4188_v52  ;;  %v4187_v41 = vsel %vm70_vm0, %v4185_v51, %v4186_v30  ;;  %v4240_v11 = vmul.f32 %v8480_v7, %v4237_v9 }
 0x30b   :  { %v8730_v57 = vpop.permute.xlu0 %4114  ;;  %v4041_v14 = vadd.f32 %v4037_v50, %v4024_v31  ;;  %v3944_v49 = vsel %vm130_vm1, %v3941_v4, %v3943_v12  ;;  %v4245_v18 = vrot.slane %v4239_v24, 2 }
 0x30c   :  { %4746 = vrot.lane.b32.xlu1 %v4743_v15, %s5279_s25  ;;  %v4893_v15 = vsel %vm130_vm1, %v4891_v21, %v4892_v8  ;;  %v3910_v28 = vadd.f32 %v8568_v38, %v3889_v39  ;;  %v4247_v56 = vrot.slane %v4240_v11, 2  ;;  %v4244_v39 = vrot.slane %v4238_v19, 2 }
 0x30d   :  { %4744 = vrot.lane.b32.xlu0 %v4741_v13, %s5279_s25  ;;  %v3940_v13 = vrot.slane %v8712_v6, 2  ;;  %v3909_v6 = vadd.f32 %v8572_v33, %v3888_v44  ;;  %v4062_v54 = vadd.f32 %v8673_v16, %v4041_v14  ;;  %v4061_v33 = vadd.f32 %v8685_v37, %v4040_v48 }
 0x30e   :  { %v8747_v55 = vpop.permute.xlu1 %4137  ;;  %v3931_v2 = vadd.f32 %v8579_v23, %v3910_v28 }
 0x30f   :  { %v8754_v40 = vpop.permute.xlu0 %4135  ;;  %v3930_v1 = vadd.f32 %v8583_v59, %v3909_v6  ;;  %v3942_v21 = vsel %vm130_vm1, %v3940_v13, %v3941_v4  ;;  %v4083_v31 = vadd.f32 %v8699_v53, %v4062_v54  ;;  %v4082_v16 = vadd.f32 %v8709_v45, %v4061_v33 }
 0x310   :  { %4877 = vrot.lane.b32.xlu1 %v4874_v25, %s5280_s26  ;;  %v4095_v25 = vrot.slane %v4088_v22, 2  ;;  %v4094_v59 = vsel %vm130_vm1, %v4092_v35, %v4093_v26  ;;  %v4248_v45 = vsel %vm130_vm1, %v4245_v18, %v4247_v56 }
 0x311   :  { %4875 = vrot.lane.b32.xlu0 %v4872_v17, %s5280_s26  ;;  %v3947_v37 = vadd.f32 %v3942_v21, %v3930_v1  ;;  %s8789_s26 = sld [smem:[#allocation2 + $0x1b]]  ;;  %v4099_v53 = vadd.f32 %v4094_v59, %v4082_v16 }
 0x312   :  { %v4158_v5 = vpop.permute.xlu1 %4157  ;;  %v4096_v32 = vsel %vm130_vm1, %v4093_v26, %v4095_v25 }
 0x313   :  { %v4156_v43 = vpop.permute.xlu0 %4155  ;;  %v4162_v63 = vadd.f32 %v4158_v5, %v4148_v47  ;;  %v3948_v47 = vadd.f32 %v3944_v49, %v3931_v2  ;;  %v4100_v30 = vadd.f32 %v4096_v32, %v4083_v31  ;;  %v3968_v12 = vadd.f32 %v8598_v20, %v3947_v37 }
 0x314   :  { %4898 = vrot.lane.b32.xlu1 %v4895_v27, %s5279_s25  ;;  %v4161_v50 = vadd.f32 %v4156_v43, %v4147_v58  ;;  %v4120_v26 = vadd.f32 %v8730_v57, %v4099_v53 }
 0x315   :  { %4896 = vrot.lane.b32.xlu0 %v4893_v15, %s5279_s25  ;;  %s5183_s25 = sld [smem:[#allocation2 + $0x1e]]  ;;  %v3969_v4 = vadd.f32 %v8592_v10, %v3948_v47  ;;  %v4246_v15 = vsel %vm130_vm1, %v4244_v39, %v4245_v18  ;;  %v4121_v43 = vadd.f32 %v8723_v34, %v4100_v30  ;;  %v3989_v48 = vadd.f32 %v8615_v3, %v3968_v12 }
 0x316   :  { %v4172_v8 = vpop.permute.xlu1 %4171 }
 0x317   :  { %v4176_v38 = vadd.f32 %v4172_v8, %v4162_v63  ;;  %v4170_v61 = vpop.permute.xlu0 %4169  ;;  %v3990_v14 = vadd.f32 %v8609_v60, %v3969_v4  ;;  %v4142_v10 = vadd.f32 %v8747_v55, %v4121_v43  ;;  %v4301_v6 = vstv %s8789_s26 }
 0x318   :  { %v4175_v17 = vadd.f32 %v4170_v61, %v4161_v50  ;;  %v3991_v60 = vmax.f32 %v8538_v29, %v3989_v48  ;;  %v4302_v29 = vmul.f32 %v8488_v42, %v4301_v6 }
 0x319   :  { %v4193_v23 = vadd.f32 %v4189_v36, %v4176_v38  ;;  %v4141_v36 = vadd.f32 %v8754_v40, %v4120_v26  ;;  %v3992_v20 = vmax.f32 %v8536_v46, %v3990_v14  ;;  %v4303_v46 = vmul.f32 %v8527_v0, %v4301_v6 }
 0x31a   :  { %v4210_v62 = vpop.permute.xlu1 %4209  ;;  %v4192_v22 = vadd.f32 %v4187_v41, %v4175_v17 }
 0x31b   :  { %v4208_v27 = vpop.permute.xlu0 %4207  ;;  %v4214_v52 = vadd.f32 %v4210_v62, %v4193_v23  ;;  %v4333_v63 = vstv %s5183_s25  ;;  %v4144_v8 = vmax.f32 %v3992_v20, %v4142_v10  ;;  %v4143_v2 = vmax.f32 %v3991_v60, %v4141_v36 }
 0x31c   :  { %v4213_v51 = vadd.f32 %v4208_v27, %v4192_v22  ;;  %v4335_v3 = vmul.f32 %v8527_v0, %v4333_v63  ;;  %v4336_v57 = vmul.f32 %v8480_v7, %v4333_v63  ;;  %v4334_v55 = vmul.f32 %v8488_v42, %v4333_v63 }
 0x31d   :  { %v4392_v20 = vstv %s5186_s14  ;;  %v4635_v60 = vstv %s5201_s16 }
 0x31e   :  { %v4231_v44 = vpop.permute.xlu1 %4230  ;;  %v4341_v19 = vrot.slane %v4335_v3, 1  ;;  %v4343_v1 = vrot.slane %v4336_v57, 1  ;;  %v4340_v33 = vrot.slane %v4334_v55, 1 }
 0x31f   :  { %v4235_v5 = vadd.f32 %v4231_v44, %v4214_v52  ;;  %v4229_v58 = vpop.permute.xlu0 %4228 }
 0x320   :  { %v4234_v13 = vadd.f32 %v4229_v58, %v4213_v51  ;;  %v4344_v32 = vsel %vm70_vm0, %v4341_v19, %v4343_v1  ;;  %v4342_v62 = vsel %vm70_vm0, %v4340_v33, %v4341_v19 }
 0x321   :  { %v4252_v9 = vadd.f32 %v4248_v45, %v4235_v5 }
 0x322   :  { %v4269_v25 = vpop.permute.xlu1 %4268  ;;  %v4251_v35 = vadd.f32 %v4246_v15, %v4234_v13 }
 0x323   :  { %v4267_v28 = vpop.permute.xlu0 %4266  ;;  %v4273_v41 = vadd.f32 %v4269_v25, %v4252_v9 }
 0x324   :  { %v4272_v34 = vadd.f32 %v4267_v28, %v4251_v35 }
 0x326   :  { %v4290_v50 = vpop.permute.xlu1 %4289 }
 0x327   :  { %v4294_v24 = vadd.f32 %v4290_v50, %v4273_v41  ;;  %v4288_v11 = vpop.permute.xlu0 %4287  ;;  %v4483_v41 = vstv %s5192_s15  ;;  %v8868_v50 = vmul.f32 %v8527_v0, %v4392_v20 }
 0x328   :  { %v4293_v54 = vadd.f32 %v4288_v11, %v4272_v34  ;;  %v4485_v3 = vmul.f32 %v8527_v0, %v4483_v41  ;;  %v4486_v57 = vmul.f32 %v8480_v7, %v4483_v41  ;;  %v4638_v11 = vmul.f32 %v8480_v7, %v4635_v60 }
 0x329   :  { %v4296_v40 = vmax.f32 %v4144_v8, %v4294_v24  ;;  %v4484_v8 = vmul.f32 %v8488_v42, %v4483_v41  ;;  %v4637_v24 = vmul.f32 %v8527_v0, %v4635_v60 }
 0x32a   :  { %v4295_v38 = vmax.f32 %v4143_v2, %v4293_v54  ;;  %v4313_v61 = vpop.permute.xlu1 %4312  ;;  %v8878_v2 = vmul.f32 %v8480_v7, %v4392_v20  ;;  %v4491_v19 = vrot.slane %v4485_v3, 1  ;;  %v4493_v1 = vrot.slane %v4486_v57, 1 }
 0x32b   :  { %4299 = vst.msk [vmem:[#allocation5 + $0x68] sm:$0xff] %vm638_vm2, %v4296_v40  ;;  %v4311_v49 = vpop.permute.xlu0 %4310  ;;  %v4317_v17 = vadd.f32 %v4313_v61, %v4303_v46  ;;  %v4451_v40 = vstv %s8855_s17  ;;  %v4787_v46 = vstv %s5210_s18  ;;  %v8885_v61 = vmul.f32 %v8488_v42, %v4392_v20 }
 0x32c   :  { %4298 = vst.msk [vmem:[#allocation5 + $0x60] sm:$0xff] %vm638_vm2, %v4295_v38  ;;  %v4316_v21 = vadd.f32 %v4311_v49, %v4302_v29  ;;  %v4603_v29 = vstv %s8859_s19  ;;  %v4490_v49 = vrot.slane %v4484_v8, 1  ;;  %v4643_v33 = vrot.slane %v4637_v24, 1 }
 0x32d   :  { %v4604_v41 = vmul.f32 %v8488_v42, %v4603_v29 }
 0x32e   :  { %v4327_v31 = vpop.permute.xlu1 %4326 }
 0x32f   :  { %v4331_v23 = vadd.f32 %v4327_v31, %v4317_v17  ;;  %v4325_v16 = vpop.permute.xlu0 %4324  ;;  %v4645_v17 = vrot.slane %v4638_v11, 1  ;;  %v4542_v31 = vstv %s5195_s1 }
 0x330   :  { %v4330_v22 = vadd.f32 %v4325_v16, %v4316_v21  ;;  %v4636_v21 = vmul.f32 %v8488_v42, %v4635_v60  ;;  %v4789_v16 = vmul.f32 %v8527_v0, %v4787_v46  ;;  %v4545_v20 = vmul.f32 %v8480_v7, %v4542_v31 }
 0x331   :  { %v4348_v18 = vadd.f32 %v4344_v32, %v4331_v23  ;;  %v4453_v23 = vmul.f32 %v8527_v0, %v4451_v40  ;;  %v4492_v60 = vsel %vm70_vm0, %v4490_v49, %v4491_v19  ;;  %v4646_v3 = vsel %vm70_vm0, %v4643_v33, %v4645_v17 }
 0x332   :  { %v4365_v56 = vpop.permute.xlu1 %4364  ;;  %v4347_v47 = vadd.f32 %v4342_v62, %v4330_v22  ;;  %v4790_v62 = vmul.f32 %v8480_v7, %v4787_v46  ;;  %v4402_v22 = vrot.slane %v8878_v2, 2  ;;  %v4642_v57 = vrot.slane %v4636_v21, 1 }
 0x333   :  { %v4369_v59 = vadd.f32 %v4365_v56, %v4348_v18  ;;  %v4363_v27 = vpop.permute.xlu0 %4362  ;;  %v4452_v56 = vmul.f32 %v8488_v42, %v4451_v40  ;;  %v4795_v40 = vrot.slane %v4789_v16, 1 }
 0x334   :  { %v4368_v39 = vadd.f32 %v4363_v27, %v4347_v47  ;;  %v4755_v47 = vstv %s8865_s20 }
 0x335   :  { %v4757_v11 = vmul.f32 %v8527_v0, %v4755_v47 }
 0x336   :  { %v4386_v37 = vpop.permute.xlu1 %4385 }
 0x337   :  { %v8813_v30 = vadd.f32 %v4386_v37, %v4369_v59  ;;  %v4384_v52 = vpop.permute.xlu0 %4383  ;;  %v4788_v59 = vmul.f32 %v8488_v42, %v4787_v46  ;;  %v4494_v37 = vsel %vm70_vm0, %v4491_v19, %v4493_v1  ;;  %v4797_v46 = vrot.slane %v4790_v62, 1 }
 0x338   :  { %v8815_v53 = vadd.f32 %v4384_v52, %v4368_v39  ;;  %v4605_v39 = vmul.f32 %v8527_v0, %v4603_v29  ;;  %v8908_v52 = vmul.f32 %v8527_v0, %v4542_v31  ;;  %v4543_v29 = vmul.f32 %v8488_v42, %v4542_v31 }
 0x339   :  { %v4794_v38 = vrot.slane %v4788_v59, 1  ;;  %v4694_v19 = vstv %s8887_s21  ;;  %v4756_v62 = vmul.f32 %v8488_v42, %v4755_v47  ;;  %v4798_v59 = vsel %vm70_vm0, %v4795_v40, %v4797_v46 }
 0x33a   :  { %v8817_v51 = vpop.permute.xlu1 %4462  ;;  %v4550_v21 = vrot.slane %v8908_v52, 2  ;;  %v4697_v47 = vmul.f32 %v8480_v7, %v4694_v19 }
 0x33b   :  { %v8819_v44 = vpop.permute.xlu0 %4460  ;;  %v4467_v24 = vadd.f32 %v8817_v51, %v4453_v23  ;;  %v4552_v51 = vrot.slane %v4545_v20, 2 }
 0x33c   :  { %v4466_v27 = vadd.f32 %v8819_v44, %v4452_v56  ;;  %v4644_v44 = vsel %vm70_vm0, %v4642_v57, %v4643_v33 }
 0x33d   :  { %v4553_v20 = vsel %vm130_vm1, %v4550_v21, %v4552_v51 }
 0x33e   :  { %v8821_v45 = vpop.permute.xlu1 %4476 }
 0x33f   :  { %v8823_v4 = vpop.permute.xlu0 %4474  ;;  %v4481_v49 = vadd.f32 %v8821_v45, %v4467_v24 }
 0x340   :  { %v4480_v23 = vadd.f32 %v8823_v4, %v4466_v27  ;;  %v4796_v4 = vsel %vm70_vm0, %v4794_v38, %v4795_v40 }
 0x341   :  { %v4498_v27 = vadd.f32 %v4494_v37, %v4481_v49 }
 0x342   :  { %v8825_v5 = vpop.permute.xlu1 %4614  ;;  %v4497_v57 = vadd.f32 %v4492_v60, %v4480_v23 }
 0x343   :  { %v8827_v58 = vpop.permute.xlu0 %4612  ;;  %v4619_v17 = vadd.f32 %v8825_v5, %v4605_v39  ;;  %v4696_v5 = vmul.f32 %v8527_v0, %v4694_v19  ;;  %v4846_v39 = vstv %s8899_s22 }
 0x344   :  { %v4618_v16 = vadd.f32 %v8827_v58, %v4604_v41  ;;  %v4549_v58 = vrot.slane %v4543_v29, 2  ;;  %v4848_v46 = vmul.f32 %v8527_v0, %v4846_v39  ;;  %v4704_v29 = vrot.slane %v4697_v47, 2 }
 0x345   :  { %v4702_v40 = vrot.slane %v4696_v5, 2  ;;  %v9199_v5 = vrot.slane %v8885_v61, 2 }
 0x346   :  { %v8829_v15 = vpop.permute.xlu1 %4628 }
 0x347   :  { %v8831_v12 = vpop.permute.xlu0 %4626  ;;  %v4633_v31 = vadd.f32 %v8829_v15, %v4619_v17  ;;  %v4695_v15 = vmul.f32 %v8488_v42, %v4694_v19 }
 0x348   :  { %v4632_v52 = vadd.f32 %v8831_v12, %v4618_v16  ;;  %v5240_v12 = vld [vmem:[%s8994_s0 + $0x28] sm:$0x3] }
 0x349   :  { %v4849_v38 = vmul.f32 %v5240_v12, %v4846_v39  ;;  %v4650_v37 = vadd.f32 %v4646_v3, %v4633_v31  ;;  %v4701_v49 = vrot.slane %v4695_v15, 2 }
 0x34a   :  { %v8833_v13 = vpop.permute.xlu1 %4766  ;;  %v4649_v60 = vadd.f32 %v4644_v44, %v4632_v52 }
 0x34b   :  { %v8835_v14 = vpop.permute.xlu0 %4764  ;;  %v4771_v33 = vadd.f32 %v8833_v13, %v4757_v11  ;;  %v4856_v23 = vrot.slane %v4849_v38, 2  ;;  %v4703_v52 = vsel %vm130_vm1, %v4701_v49, %v4702_v40 }
 0x34c   :  { %v4770_v41 = vadd.f32 %v8835_v14, %v4756_v62  ;;  %v4551_v62 = vsel %vm130_vm1, %v4549_v58, %v4550_v21 }
 0x34e   :  { %v8837_v43 = vpop.permute.xlu1 %4514 }
 0x34f   :  { %v8839_v9 = vpop.permute.xlu0 %4512  ;;  %v4519_v7 = vadd.f32 %v8837_v43, %v4498_v27  ;;  %v5241_v43 = vld [vmem:[%s8994_s0 + $0x18] sm:$0xff]  ;;  %s5281_s0 = smov [#allocation5]  }
 0x350   :  { %v4518_v42 = vadd.f32 %v8839_v9, %v4497_v57  ;;  %v4847_v17 = vmul.f32 %v5241_v43, %v4846_v39  ;;  %v4854_v9 = vrot.slane %v4848_v46, 2  ;;  %s4914_s29 = sshll.u32 %s5281_s0, 4  ;;  %s4915_s29 = int_to_ptr.vmem [resolvable:$true] %s4914_s29 }
 0x351   :  { %s5254_s30 = scalar_lea.vmem %s4915_s29, 2048  ;;  %p5259_p6 = scmp.lt.s32.totalorder %s4915_s29, %s4915_s29 }
 0x352   :  { %v8841_v48 = vpop.permute.xlu1 %4780  ;;  %p5255_p5 = scmp.ne.s32.totalorder %s4915_s29, %s5254_s30  ;;  %p5260_p7 = scmp.lt.s32.totalorder %s5254_s30, %s5254_s30 }
 0x353   :  { %v8843_v26 = vpop.permute.xlu0 %4778  ;;  %v4785_v13 = vadd.f32 %v8841_v48, %v4771_v33 }
 0x354   :  { %v4784_v14 = vadd.f32 %v8843_v26, %v4770_v41  ;;  %p5261_p8 = por %p5260_p7, %p5259_p6 }
 0x355   :  { %v4802_v16 = vadd.f32 %v4798_v59, %v4785_v13 }
 0x356   :  { %v8845_v25 = vpop.permute.xlu1 %4535  ;;  %p5262_p9 = pnand %p5261_p8, %p5255_p5 }
 0x357   :  { %v8847_v35 = vpop.permute.xlu0 %4533  ;;  %v4540_v0 = vadd.f32 %v8845_v25, %v4519_v7  ;;  %v9197_v25 = vrot.slane %v8868_v50, 2 }
 0x358   :  { %v4539_v48 = vadd.f32 %v8847_v35, %v4518_v42  ;;  %v4801_v35 = vadd.f32 %v4796_v4, %v4784_v14 }
 0x359   :  { %v4557_v59 = vadd.f32 %v4553_v20, %v4540_v0 }
 0x35a   :  { %v8849_v10 = vpop.permute.xlu1 %4666  ;;  %v4556_v58 = vadd.f32 %v4551_v62, %v4539_v48 }
 0x35b   :  { %v8851_v28 = vpop.permute.xlu0 %4664  ;;  %v4671_v19 = vadd.f32 %v8849_v10, %v4650_v37  ;;  %v4403_v10 = vsel %vm130_vm1, %v9197_v25, %v4402_v22  ;;  %v4853_v22 = vrot.slane %v4847_v17, 2 }
 0x35c   :  { %v4670_v3 = vadd.f32 %v8851_v28, %v4649_v60  ;;  %v9198_v28 = vmov %v9197_v25  ;;  %v4407_v50 = vadd.f32 %v4403_v10, %v8813_v30 }
 0x35d   :  { %v4401_v39 = vsel %vm130_vm1, %v9199_v5, %v9198_v28  ;;  %v4855_v12 = vsel %vm130_vm1, %v4853_v22, %v4854_v9 }
 0x35e   :  { %v8853_v63 = vpop.permute.xlu1 %4687 }
 0x35f   :  { %v8857_v36 = vpop.permute.xlu0 %4685  ;;  %v4692_v26 = vadd.f32 %v8853_v63, %v4671_v19  ;;  %v4705_v63 = vsel %vm130_vm1, %v4702_v40, %v4704_v29 }
 0x360   :  { %v4691_v31 = vadd.f32 %v8857_v36, %v4670_v3  ;;  %v4857_v36 = vsel %vm130_vm1, %v4854_v9, %v4856_v23 }
 0x361   :  { %v4709_v33 = vadd.f32 %v4705_v63, %v4692_v26 }
 0x362   :  { %v8861_v6 = vpop.permute.xlu1 %4818  ;;  %v4708_v41 = vadd.f32 %v4703_v52, %v4691_v31 }
 0x363   :  { %v8863_v34 = vpop.permute.xlu0 %4816  ;;  %v4823_v2 = vadd.f32 %v8861_v6, %v4802_v16  ;;  %v4406_v6 = vadd.f32 %v4401_v39, %v8815_v53 }
 0x364   :  { %v4822_v21 = vadd.f32 %v8863_v34, %v4801_v35 }
 0x366   :  { %v8875_v55 = vpop.permute.xlu1 %4423 }
 0x367   :  { %v8880_v54 = vpop.permute.xlu0 %4421  ;;  %v4428_v34 = vadd.f32 %v8875_v55, %v4407_v50 }
 0x368   :  { %v4427_v30 = vadd.f32 %v8880_v54, %v4406_v6 }
 0x36a   :  { %v8891_v32 = vpop.permute.xlu1 %4573 }
 0x36b   :  { %v8897_v18 = vpop.permute.xlu0 %4571  ;;  %v4578_v61 = vadd.f32 %v8891_v32, %v4557_v59 }
 0x36c   :  { %v4577_v20 = vadd.f32 %v8897_v18, %v4556_v58 }
 0x36e   :  { %v8914_v8 = vpop.permute.xlu1 %4839 }
 0x36f   :  { %v8918_v1 = vpop.permute.xlu0 %4837  ;;  %v4844_v4 = vadd.f32 %v8914_v8, %v4823_v2 }
 0x370   :  { %v4843_v15 = vadd.f32 %v8918_v1, %v4822_v21 }
 0x371   :  { %v4861_v53 = vadd.f32 %v4857_v36, %v4844_v4 }
 0x372   :  { %v8930_v56 = vpop.permute.xlu1 %4444  ;;  %v4860_v40 = vadd.f32 %v4855_v12, %v4843_v15 }
 0x373   :  { %v8934_v45 = vpop.permute.xlu0 %4442  ;;  %v4449_v7 = vadd.f32 %v8930_v56, %v4428_v34 }
 0x374   :  { %v4448_v18 = vadd.f32 %v8934_v45, %v4427_v30 }
 0x376   :  { %v4595_v24 = vpop.permute.xlu1 %4594 }
 0x377   :  { %v4593_v11 = vpop.permute.xlu0 %4592  ;;  %v4599_v57 = vadd.f32 %v4595_v24, %v4578_v61 }
 0x378   :  { %v4598_v32 = vadd.f32 %v4593_v11, %v4577_v20 }
 0x379   :  { %v4601_v42 = vmax.f32 %v4449_v7, %v4599_v57 }
 0x37a   :  { %v4726_v51 = vpop.permute.xlu1 %4725  ;;  %v4600_v24 = vmax.f32 %v4448_v18, %v4598_v32 }
 0x37b   :  { %v4724_v44 = vpop.permute.xlu0 %4723  ;;  %v4730_v46 = vadd.f32 %v4726_v51, %v4709_v33 }
 0x37c   :  { %v4729_v38 = vadd.f32 %v4724_v44, %v4708_v41 }
 0x37e   :  { %v4747_v47 = vpop.permute.xlu1 %4746 }
 0x37f   :  { %v4745_v27 = vpop.permute.xlu0 %4744  ;;  %v4751_v13 = vadd.f32 %v4747_v47, %v4730_v46 }
 0x380   :  { %v4750_v1 = vadd.f32 %v4745_v27, %v4729_v38 }
 0x381   :  { %v4753_v54 = vmax.f32 %v4601_v42, %v4751_v13 }
 0x382   :  { %v4878_v8 = vpop.permute.xlu1 %4877  ;;  %v4752_v0 = vmax.f32 %v4600_v24, %v4750_v1 }
 0x383   :  { %v4876_v37 = vpop.permute.xlu0 %4875  ;;  %v4882_v55 = vadd.f32 %v4878_v8, %v4861_v53 }
 0x384   :  { %v4881_v14 = vadd.f32 %v4876_v37, %v4860_v40 }
 0x386   :  { %v4899_v60 = vpop.permute.xlu1 %4898 }
 0x387   :  { %v4903_v11 = vadd.f32 %v4899_v60, %v4882_v55  ;;  %v4897_v29 = vpop.permute.xlu0 %4896 }
 0x388   :  { %v4902_v19 = vadd.f32 %v4897_v29, %v4881_v14 }
 0x389   :  { %v4905_v56 = vmax.f32 %v4753_v54, %v4903_v11 }
 0x38a   :  { %v4904_v49 = vmax.f32 %v4752_v0, %v4902_v19 }
 0x38b   :  { %4908 = vst.msk [vmem:[#allocation5 + $0x78] sm:$0xff] %vm638_vm2, %v4905_v56 }
 0x38c   :  { %4907 = vst.msk [vmem:[#allocation5 + $0x70] sm:$0xff] %vm638_vm2, %v4904_v49 }
 0x38d   :  { %5265 = shalt.err (!%p5262_p9)
}
 0x38e   :  { %s5282_s3 = smov 128   ;;  %s5283_s4 = smov 8  }
 0x38f   :  { %4920 = dma.vmem_to_hbm [thread:$0]  %s4915_s29, 2048, %s8996_s2, [#allocation3], %s5282_s3, %s5282_s3, %s5283_s4  }
 0x390   :  { %5276 = dma.done.wait [#allocation3], 2048  }
 0x391   :  { %5277 = vsyncadd [#allocation3], 4294965248 }
 0x392   :  { %4924 = vsyncpa [#allocation3], 1 }
 0x393   :  { %4925 = vsyncpa [#allocation4], 1 }

</bundles_post_ra>
